<compile_context>
chip_gen: v6e
topology: v6e:2x2x1
jax: 0.10.0
libtpu: 0.0.40
codegen_flags: <defaults>
</compile_context>

<pallas_src>
import functools

import jax
import jax.numpy as jnp
from jax.experimental import pallas as pl
from jax.experimental.pallas import tpu as pltpu

_EPS = 1e-5
_MAX_ROWS = 512                    # max rows per tile (block second-minor dim)
_ROW_BUDGET = 4 * 1024 * 1024      # per-input VMEM budget used to size row tiles
_VMEM_LIMIT = 64 * 1024 * 1024     # explicit scoped-VMEM cap (fits v7x's 64 MiB)


def _cparams():
    return pltpu.CompilerParams(dimension_semantics=("parallel",),
                                vmem_limit_bytes=_VMEM_LIMIT)


def _pick_rows(n_rows, bytes_per_row):
    """Row-tile size: either the full extent (always a legal block) or a multiple
    of 8 that keeps a single input buffer under _ROW_BUDGET."""
    if n_rows <= _MAX_ROWS and n_rows * bytes_per_row <= _ROW_BUDGET:
        return n_rows
    t = min(_MAX_ROWS, _ROW_BUDGET // max(bytes_per_row, 1))
    return max(8, (t // 8) * 8)


# ----------------------------------------------------------------------------
# Pallas kernels
# ----------------------------------------------------------------------------
def _conv_stats_kernel(taps_ref, w_ref, out_ref, sum_ref, sq_ref, *,
                       rows_total, tile_rows):
    """K-folded 3x3 conv tile (one MXU matmul) + per-tile BN partial statistics.

    taps_ref: (TM, 9*Cin) bf16     w_ref: (9*Cin, Cout) bf16 (resident)
    out_ref:  (TM, Cout)  f32      sum_ref / sq_ref: (1, 1, Cout) f32 partials
    """
    acc = jnp.dot(taps_ref[...], w_ref[...], preferred_element_type=jnp.float32)
    out_ref[...] = acc
    if rows_total % tile_rows:                      # mask rows of a ragged last tile
        rem = rows_total - pl.program_id(0) * tile_rows
        row = jax.lax.broadcasted_iota(jnp.int32, acc.shape, 0)
        acc = jnp.where(row < rem, acc, 0.0)
    sum_ref[...] = jnp.sum(acc, axis=0, keepdims=True).reshape(1, 1, -1)
    sq_ref[...] = jnp.sum(acc * acc, axis=0, keepdims=True).reshape(1, 1, -1)


def _matmul_kernel(a_ref, b_ref, o_ref):
    """Tiled matmul with resident RHS (plain conv / conv-transpose)."""
    o_ref[...] = jnp.dot(a_ref[...], b_ref[...],
                         preferred_element_type=jnp.float32).astype(o_ref.dtype)


def _scale_shift_relu_kernel(x_ref, s_ref, b_ref, o_ref):
    """Fused BatchNorm apply (y = x*scale + shift) + ReLU, bf16 output."""
    y = x_ref[...] * s_ref[...] + b_ref[...]
    o_ref[...] = jnp.maximum(y, 0.0).astype(o_ref.dtype)


def _maxpool_kernel(x_ref, o_ref):
    """2x2/stride-2 max pool.  x_ref: (TR, 2, Wo, 2*C), o_ref: (TR, Wo, C)."""
    c = o_ref.shape[-1]
    top = x_ref[:, 0, :, :]                         # di = 0   -> (TR, Wo, 2*C)
    bot = x_ref[:, 1, :, :]                         # di = 1
    m = jnp.maximum(top, bot)
    o_ref[...] = jnp.maximum(m[:, :, :c], m[:, :, c:])   # max over dj


# ----------------------------------------------------------------------------
# Pallas wrappers
# ----------------------------------------------------------------------------
def _make_taps(x):
    """im2col with the 9 taps folded into K: (N*H*W, 9*Cin), bf16."""
    n, h, w, cin = x.shape
    xp = jnp.pad(x.astype(jnp.bfloat16), ((0, 0), (1, 1), (1, 1), (0, 0)))
    taps = jnp.concatenate(
        [xp[:, kh:kh + h, kw:kw + w, :] for kh in range(3) for kw in range(3)],
        axis=-1)                                    # (N, H, W, 9*Cin)
    return taps.reshape(n * h * w, 9 * cin)


def _tiled_matmul(a, b, out_dtype):
    """(M, K) @ (K, N) tiled over M, RHS resident, bf16 in / f32 accumulate."""
    m, k = a.shape
    n = b.shape[-1]
    tm = _pick_rows(m, k * a.dtype.itemsize)
    return pl.pallas_call(
        _matmul_kernel,
        grid=(pl.cdiv(m, tm),),
        out_shape=jax.ShapeDtypeStruct((m, n), out_dtype),
        in_specs=[pl.BlockSpec((tm, k), lambda i: (i, 0)),
                  pl.BlockSpec((k, n), lambda i: (0, 0))],
        out_specs=pl.BlockSpec((tm, n), lambda i: (i, 0)),
        compiler_params=_cparams(),
    )(a, b)


def conv3x3(x, w, out_dtype=jnp.float32):
    """3x3 conv, stride 1, zero pad 1, no bias, no BN (used for the final `outc`)."""
    n, h, wd, cin = x.shape
    cout = w.shape[-1]
    taps = _make_taps(x)
    wf = w.reshape(9 * cin, cout).astype(jnp.bfloat16)
    out = _tiled_matmul(taps, wf, out_dtype)
    return out.reshape(n, h, wd, cout)


def conv_bn_relu(x, w, gamma, beta):
    """Conv3x3 (bias-free) -> BatchNorm2d (training-mode batch stats) -> ReLU."""
    n, h, wd, cin = x.shape
    cout = w.shape[-1]
    m = n * h * wd
    k = 9 * cin

    taps = _make_taps(x)                                   # (M, 9*Cin) bf16
    wf = w.reshape(k, cout).astype(jnp.bfloat16)

    tm = _pick_rows(m, k * 2)
    ntiles = pl.cdiv(m, tm)
    kernel = functools.partial(_conv_stats_kernel, rows_total=m, tile_rows=tm)
    raw, psum, psq = pl.pallas_call(
        kernel,
        grid=(ntiles,),
        out_shape=(jax.ShapeDtypeStruct((m, cout), jnp.float32),
                   jax.ShapeDtypeStruct((ntiles, 1, cout), jnp.float32),
                   jax.ShapeDtypeStruct((ntiles, 1, cout), jnp.float32)),
        in_specs=[pl.BlockSpec((tm, k), lambda i: (i, 0)),
                  pl.BlockSpec((k, cout), lambda i: (0, 0))],
        out_specs=(pl.BlockSpec((tm, cout), lambda i: (i, 0)),
                   pl.BlockSpec((1, 1, cout), lambda i: (i, 0, 0)),
                   pl.BlockSpec((1, 1, cout), lambda i: (i, 0, 0))),
        compiler_params=_cparams(),
    )(taps, wf)

    # Tiny per-channel finalization in plain JAX (Cout <= a few hundred floats).
    mean = jnp.sum(psum, axis=(0, 1)) / m
    var = jnp.maximum(jnp.sum(psq, axis=(0, 1)) / m - mean * mean, 0.0)
    scale = gamma * jax.lax.rsqrt(var + _EPS)
    shift = beta - mean * scale

    # Fused BN-apply + ReLU on a lane-dense (N*H, W*Cout) view of the conv output.
    rows, cols = n * h, wd * cout
    x2d = raw.reshape(rows, cols)
    s2d = jnp.tile(scale, wd).reshape(1, cols)
    b2d = jnp.tile(shift, wd).reshape(1, cols)
    tr = _pick_rows(rows, cols * 4)
    y = pl.pallas_call(
        _scale_shift_relu_kernel,
        grid=(pl.cdiv(rows, tr),),
        out_shape=jax.ShapeDtypeStruct((rows, cols), jnp.bfloat16),
        in_specs=[pl.BlockSpec((tr, cols), lambda i: (i, 0)),
                  pl.BlockSpec((1, cols), lambda i: (0, 0)),
                  pl.BlockSpec((1, cols), lambda i: (0, 0))],
        out_specs=pl.BlockSpec((tr, cols), lambda i: (i, 0)),
        compiler_params=_cparams(),
    )(x2d, s2d, b2d)
    return y.reshape(n, h, wd, cout)


def maxpool2x2(x):
    """MaxPool2d(kernel=2, stride=2).  x: (N,H,W,C) with even H, W."""
    n, h, w, c = x.shape
    ho, wo = h // 2, w // 2
    rows = n * ho
    xr = x.reshape(rows, 2, wo, 2 * c)                    # free row-major view
    tr = _pick_rows(rows, 2 * w * c * x.dtype.itemsize)
    out = pl.pallas_call(
        _maxpool_kernel,
        grid=(pl.cdiv(rows, tr),),
        out_shape=jax.ShapeDtypeStruct((rows, wo, c), x.dtype),
        in_specs=[pl.BlockSpec((tr, 2, wo, 2 * c), lambda i: (i, 0, 0, 0))],
        out_specs=pl.BlockSpec((tr, wo, c), lambda i: (i, 0, 0)),
        compiler_params=_cparams(),
    )(xr)
    return out.reshape(n, ho, wo, c)


def conv_transpose2x2(x, w):
    """ConvTranspose2d(kernel=2, stride=2, bias=False).

    x: (N,H,W,Cin) ; w: (Cin, Cout, 2, 2) (PyTorch layout) -> (N,2H,2W,Cout).
    """
    n, h, wd, cin = x.shape
    cout = w.shape[1]
    m = n * h * wd
    xf = x.reshape(m, cin).astype(jnp.bfloat16)
    wf = jnp.transpose(w, (0, 2, 3, 1)).reshape(cin, 4 * cout).astype(jnp.bfloat16)
    y = _tiled_matmul(xf, wf, jnp.bfloat16)               # (M, di*dj*Cout)
    # De-interleave (di, dj) into the spatial dims.
    # TODO(synk): write an (N*H, 2, W, 2, Cout) output directly from the kernel to
    # avoid this XLA transpose round-trip.
    y = y.reshape(n, h, wd, 2, 2, cout)
    y = jnp.transpose(y, (0, 1, 3, 2, 4, 5)).reshape(n, 2 * h, 2 * wd, cout)
    return y


# ----------------------------------------------------------------------------
# UNet2D forward (orchestration in plain JAX, compute in Pallas)
# ----------------------------------------------------------------------------
def double_conv(x, p):
    x = conv_bn_relu(x, p["w1"], p["g1"], p["b1"])
    x = conv_bn_relu(x, p["w2"], p["g2"], p["b2"])
    return x


def down(x, p):
    return double_conv(maxpool2x2(x), p["conv"])


def up(x1, x2, p):
    x1 = conv_transpose2x2(x1, p["up_w"])
    diff_y = x2.shape[1] - x1.shape[1]
    diff_x = x2.shape[2] - x1.shape[2]
    if diff_y or diff_x:
        x1 = jnp.pad(x1, ((0, 0),
                          (diff_y // 2, diff_y - diff_y // 2),
                          (diff_x // 2, diff_x - diff_x // 2),
                          (0, 0)))
    # TODO(synk): split the K reduction of the following conv across x2/x1 taps to
    # avoid materializing this concat in HBM.
    x = jnp.concatenate([x2.astype(jnp.bfloat16), x1], axis=-1)
    return double_conv(x, p["conv"])


@jax.jit
def unet2d_forward(x, params):
    # x: (N, H, W, in_channels)  -- NHWC (matches data_format='NHWC')
    x0 = x
    x1 = double_conv(x0, params["inc"])
    x2 = down(x1, params["down1"])
    x3 = down(x2, params["down2"])
    x4 = down(x3, params["down3"])
    x5 = down(x4, params["down4"])
    y = up(x5, x4, params["up1"])
    y = up(y, x3, params["up2"])
    y = up(y, x2, params["up3"])
    y = up(y, x1, params["up4"])
    y = jnp.concatenate([y, x0.astype(jnp.bfloat16)], axis=-1)  # torch.cat([x, x0], 1)
    y = conv3x3(y, params["outc"], out_dtype=jnp.float32)
    return y                                   # (N, H, W, out_channels), NHWC


# ----------------------------------------------------------------------------
# Deterministic parameter construction (synthetic, no checkpoint)
# ----------------------------------------------------------------------------
def init_params(key, in_ch, out_ch, base):
    keys = iter(jax.random.split(key, 128))

    def conv_w(cin, cout):
        bound = 1.0 / jnp.sqrt(jnp.float32(cin * 9))
        return jax.random.uniform(next(keys), (3, 3, cin, cout),
                                  jnp.float32, -bound, bound)

    def up_w(cin, cout):
        bound = 1.0 / jnp.sqrt(jnp.float32(cin * 4))
        return jax.random.uniform(next(keys), (cin, cout, 2, 2),
                                  jnp.float32, -bound, bound)

    def dc(cin, cout, mid=None):
        mid = mid or cout
        return dict(w1=conv_w(cin, mid),
                    g1=jnp.ones((mid,), jnp.float32),
                    b1=jnp.zeros((mid,), jnp.float32),
                    w2=conv_w(mid, cout),
                    g2=jnp.ones((cout,), jnp.float32),
                    b2=jnp.zeros((cout,), jnp.float32))

    b = base
    return dict(
        inc=dc(in_ch, b),
        down1=dict(conv=dc(b, 2 * b)),
        down2=dict(conv=dc(2 * b, 4 * b)),
        down3=dict(conv=dc(4 * b, 8 * b)),
        down4=dict(conv=dc(8 * b, 16 * b)),
        up1=dict(up_w=up_w(16 * b, 8 * b), conv=dc(16 * b, 8 * b)),
        up2=dict(up_w=up_w(8 * b, 4 * b), conv=dc(8 * b, 4 * b)),
        up3=dict(up_w=up_w(4 * b, 2 * b), conv=dc(4 * b, 2 * b)),
        up4=dict(up_w=up_w(2 * b, b), conv=dc(2 * b, b)),
        outc=conv_w(b + in_ch, out_ch),
    )


if __name__ == "__main__":
    key = jax.random.PRNGKey(0)
    kx, kp = jax.random.split(key)

    # Small shapes consistent with the module: resolution must be divisible by 16.
    N, RES = 2, 16
    IN_CH, OUT_CH, BASE = 3, 3, 8

    x = jax.random.normal(kx, (N, RES, RES, IN_CH), jnp.float32)
    params = init_params(kp, IN_CH, OUT_CH, BASE)

    y = unet2d_forward(x, params)
    y = jax.block_until_ready(y)
    assert y.shape == (N, RES, RES, OUT_CH), y.shape
    assert jnp.all(jnp.isfinite(y))
    print("KERNEL_OK")
</pallas_src>

<mosaic_0001>
module attributes {stable_mosaic.version = 11 : i64} {
  func.func @_conv_stats_kernel(%arg0: i32, %arg1: memref<512x27xbf16, #tpu.memory_space<vmem>>, %arg2: memref<27x8xbf16, #tpu.memory_space<vmem>>, %arg3: memref<512x8xf32, #tpu.memory_space<vmem>>, %arg4: memref<1x1x8xf32, #tpu.memory_space<vmem>>, %arg5: memref<1x1x8xf32, #tpu.memory_space<vmem>>) attributes {dimension_semantics = [#tpu.dimension_semantics<parallel>], iteration_bounds = array<i64: 1>, scalar_prefetch = 0 : i64, scratch_operands = 0 : i64, tpu.core_type = #tpu.core_type<tc>, window_params = [{transform_indices = @transform_0, window_bounds = array<i64: 512, 27>}, {pipeline_mode = #tpu.pipeline_mode<synchronous>, transform_indices = @transform_1, window_bounds = array<i64: 27, 8>}, {transform_indices = @transform_2, window_bounds = array<i64: 512, 8>}, {transform_indices = @transform_3, window_bounds = array<i64: 1, 1, 8>}, {transform_indices = @transform_4, window_bounds = array<i64: 1, 1, 8>}]} {
    %c0 = arith.constant 0 : index
    %c0_0 = arith.constant 0 : index
    %0 = vector.load %arg1[%c0, %c0_0] : memref<512x27xbf16, #tpu.memory_space<vmem>>, vector<512x27xbf16>
    %c0_1 = arith.constant 0 : index
    %c0_2 = arith.constant 0 : index
    %1 = vector.load %arg2[%c0_1, %c0_2] : memref<27x8xbf16, #tpu.memory_space<vmem>>, vector<27x8xbf16>
    %cst = arith.constant dense<0.000000e+00> : vector<512x8xf32>
    %2 = tpu.matmul %0, %1, %cst {dimension_numbers = #tpu.dot_dimension_numbers<[1], [0], [0], [1], [0, 0, 1, 1], [], []>} : vector<512x27xbf16>, vector<27x8xbf16>, vector<512x8xf32> -> vector<512x8xf32>
    %c0_3 = arith.constant 0 : index
    %c0_4 = arith.constant 0 : index
    %3 = vector.load %arg3[%c0_3, %c0_4] : memref<512x8xf32, #tpu.memory_space<vmem>>, vector<512x8xf32>
    tpu.vector_store %arg3[%c0_3, %c0_4], %2 {strides = array<i32>} : memref<512x8xf32, #tpu.memory_space<vmem>>, vector<512x8xf32>,
    %cst_5 = arith.constant dense<0.000000e+00> : vector<8xf32>
    %4 = vector.multi_reduction <add>, %2, %cst_5 [0] : vector<512x8xf32> to vector<8xf32>
    %5 = vector.shape_cast %4 : vector<8xf32> to vector<1x8xf32>
    %6 = vector.shape_cast %5 : vector<1x8xf32> to vector<1x1x8xf32>
    %c0_6 = arith.constant 0 : index
    %c0_7 = arith.constant 0 : index
    %c0_8 = arith.constant 0 : index
    %7 = vector.load %arg4[%c0_6, %c0_7, %c0_8] : memref<1x1x8xf32, #tpu.memory_space<vmem>>, vector<1x1x8xf32>
    tpu.vector_store %arg4[%c0_6, %c0_7, %c0_8], %6 {strides = array<i32>} : memref<1x1x8xf32, #tpu.memory_space<vmem>>, vector<1x1x8xf32>,
    %8 = arith.mulf %2, %2 : vector<512x8xf32>
    %cst_9 = arith.constant dense<0.000000e+00> : vector<8xf32>
    %9 = vector.multi_reduction <add>, %8, %cst_9 [0] : vector<512x8xf32> to vector<8xf32>
    %10 = vector.shape_cast %9 : vector<8xf32> to vector<1x8xf32>
    %11 = vector.shape_cast %10 : vector<1x8xf32> to vector<1x1x8xf32>
    %c0_10 = arith.constant 0 : index
    %c0_11 = arith.constant 0 : index
    %c0_12 = arith.constant 0 : index
    %12 = vector.load %arg5[%c0_10, %c0_11, %c0_12] : memref<1x1x8xf32, #tpu.memory_space<vmem>>, vector<1x1x8xf32>
    tpu.vector_store %arg5[%c0_10, %c0_11, %c0_12], %11 {strides = array<i32>} : memref<1x1x8xf32, #tpu.memory_space<vmem>>, vector<1x1x8xf32>,
    return
  }
  func.func @transform_0(%arg0: i32) -> (i32, i32) {
    %c0_i32 = arith.constant 0 : i32
    %c0_i32_0 = arith.constant 0 : i32
    return %arg0, %c0_i32 : i32, i32
  }
  func.func @transform_1(%arg0: i32) -> (i32, i32) {
    %c0_i32 = arith.constant 0 : i32
    %c0_i32_0 = arith.constant 0 : i32
    %c0_i32_1 = arith.constant 0 : i32
    return %c0_i32, %c0_i32_0 : i32, i32
  }
  func.func @transform_2(%arg0: i32) -> (i32, i32) {
    %c0_i32 = arith.constant 0 : i32
    %c0_i32_0 = arith.constant 0 : i32
    return %arg0, %c0_i32 : i32, i32
  }
  func.func @transform_3(%arg0: i32) -> (i32, i32, i32) {
    %c0_i32 = arith.constant 0 : i32
    %c0_i32_0 = arith.constant 0 : i32
    %c0_i32_1 = arith.constant 0 : i32
    return %arg0, %c0_i32, %c0_i32_0 : i32, i32, i32
  }
  func.func @transform_4(%arg0: i32) -> (i32, i32, i32) {
    %c0_i32 = arith.constant 0 : i32
    %c0_i32_0 = arith.constant 0 : i32
    %c0_i32_1 = arith.constant 0 : i32
    return %arg0, %c0_i32, %c0_i32_0 : i32, i32, i32
  }
}

module attributes {stable_mosaic.version = 11 : i64} {
  func.func @_scale_shift_relu_kernel(%arg0: i32, %arg1: memref<32x128xf32, #tpu.memory_space<vmem>>, %arg2: memref<1x128xf32, #tpu.memory_space<vmem>>, %arg3: memref<1x128xf32, #tpu.memory_space<vmem>>, %arg4: memref<32x128xbf16, #tpu.memory_space<vmem>>) attributes {dimension_semantics = [#tpu.dimension_semantics<parallel>], iteration_bounds = array<i64: 1>, scalar_prefetch = 0 : i64, scratch_operands = 0 : i64, tpu.core_type = #tpu.core_type<tc>, window_params = [{transform_indices = @transform_0, window_bounds = array<i64: 32, 128>}, {pipeline_mode = #tpu.pipeline_mode<synchronous>, transform_indices = @transform_1, window_bounds = array<i64: 1, 128>}, {pipeline_mode = #tpu.pipeline_mode<synchronous>, transform_indices = @transform_2, window_bounds = array<i64: 1, 128>}, {transform_indices = @transform_3, window_bounds = array<i64: 32, 128>}]} {
    %c0 = arith.constant 0 : index
    %c0_0 = arith.constant 0 : index
    %0 = vector.load %arg1[%c0, %c0_0] : memref<32x128xf32, #tpu.memory_space<vmem>>, vector<32x128xf32>
    %c0_1 = arith.constant 0 : index
    %c0_2 = arith.constant 0 : index
    %1 = vector.load %arg2[%c0_1, %c0_2] : memref<1x128xf32, #tpu.memory_space<vmem>>, vector<1x128xf32>
    %2 = vector.broadcast %1 : vector<1x128xf32> to vector<32x128xf32>
    %3 = arith.mulf %0, %2 : vector<32x128xf32>
    %c0_3 = arith.constant 0 : index
    %c0_4 = arith.constant 0 : index
    %4 = vector.load %arg3[%c0_3, %c0_4] : memref<1x128xf32, #tpu.memory_space<vmem>>, vector<1x128xf32>
    %5 = vector.broadcast %4 : vector<1x128xf32> to vector<32x128xf32>
    %6 = arith.addf %3, %5 : vector<32x128xf32>
    %cst = arith.constant 0.000000e+00 : f32
    %7 = vector.broadcast %cst : f32 to vector<32x128xf32>
    %8 = arith.maximumf %6, %7 : vector<32x128xf32>
    %9 = arith.truncf %8 : vector<32x128xf32> to vector<32x128xbf16>
    %c0_5 = arith.constant 0 : index
    %c0_6 = arith.constant 0 : index
    %10 = vector.load %arg4[%c0_5, %c0_6] : memref<32x128xbf16, #tpu.memory_space<vmem>>, vector<32x128xbf16>
    tpu.vector_store %arg4[%c0_5, %c0_6], %9 {strides = array<i32>} : memref<32x128xbf16, #tpu.memory_space<vmem>>, vector<32x128xbf16>,
    return
  }
  func.func @transform_0(%arg0: i32) -> (i32, i32) {
    %c0_i32 = arith.constant 0 : i32
    %c0_i32_0 = arith.constant 0 : i32
    return %arg0, %c0_i32 : i32, i32
  }
  func.func @transform_1(%arg0: i32) -> (i32, i32) {
    %c0_i32 = arith.constant 0 : i32
    %c0_i32_0 = arith.constant 0 : i32
    %c0_i32_1 = arith.constant 0 : i32
    return %c0_i32, %c0_i32_0 : i32, i32
  }
  func.func @transform_2(%arg0: i32) -> (i32, i32) {
    %c0_i32 = arith.constant 0 : i32
    %c0_i32_0 = arith.constant 0 : i32
    %c0_i32_1 = arith.constant 0 : i32
    return %c0_i32, %c0_i32_0 : i32, i32
  }
  func.func @transform_3(%arg0: i32) -> (i32, i32) {
    %c0_i32 = arith.constant 0 : i32
    %c0_i32_0 = arith.constant 0 : i32
    return %arg0, %c0_i32 : i32, i32
  }
}

module attributes {stable_mosaic.version = 11 : i64} {
  func.func @_maxpool_kernel(%arg0: i32, %arg1: memref<16x2x8x16xbf16, #tpu.memory_space<vmem>>, %arg2: memref<16x8x8xbf16, #tpu.memory_space<vmem>>) attributes {dimension_semantics = [#tpu.dimension_semantics<parallel>], iteration_bounds = array<i64: 1>, scalar_prefetch = 0 : i64, scratch_operands = 0 : i64, tpu.core_type = #tpu.core_type<tc>, window_params = [{transform_indices = @transform_0, window_bounds = array<i64: 16, 2, 8, 16>}, {transform_indices = @transform_1, window_bounds = array<i64: 16, 8, 8>}]} {
    %c0 = arith.constant 0 : index
    %c0_0 = arith.constant 0 : index
    %c0_1 = arith.constant 0 : index
    %c0_2 = arith.constant 0 : index
    %0 = vector.load %arg1[%c0, %c0_0, %c0_1, %c0_2] : memref<16x2x8x16xbf16, #tpu.memory_space<vmem>>, vector<16x1x8x16xbf16>
    %1 = vector.shape_cast %0 : vector<16x1x8x16xbf16> to vector<16x8x16xbf16>
    %c0_3 = arith.constant 0 : index
    %c1 = arith.constant 1 : index
    %c0_4 = arith.constant 0 : index
    %c0_5 = arith.constant 0 : index
    %2 = vector.load %arg1[%c0_3, %c1, %c0_4, %c0_5] : memref<16x2x8x16xbf16, #tpu.memory_space<vmem>>, vector<16x1x8x16xbf16>
    %3 = vector.shape_cast %2 : vector<16x1x8x16xbf16> to vector<16x8x16xbf16>
    %4 = arith.maximumf %1, %3 : vector<16x8x16xbf16>
    %5 = vector.extract_strided_slice %4 {offsets = [0, 0, 0], sizes = [16, 8, 8], strides = [1, 1, 1]} : vector<16x8x16xbf16> to vector<16x8x8xbf16>
    %6 = vector.extract_strided_slice %4 {offsets = [0, 0, 8], sizes = [16, 8, 8], strides = [1, 1, 1]} : vector<16x8x16xbf16> to vector<16x8x8xbf16>
    %7 = arith.maximumf %5, %6 : vector<16x8x8xbf16>
    %c0_6 = arith.constant 0 : index
    %c0_7 = arith.constant 0 : index
    %c0_8 = arith.constant 0 : index
    %8 = vector.load %arg2[%c0_6, %c0_7, %c0_8] : memref<16x8x8xbf16, #tpu.memory_space<vmem>>, vector<16x8x8xbf16>
    tpu.vector_store %arg2[%c0_6, %c0_7, %c0_8], %7 {strides = array<i32>} : memref<16x8x8xbf16, #tpu.memory_space<vmem>>, vector<16x8x8xbf16>,
    return
  }
  func.func @transform_0(%arg0: i32) -> (i32, i32, i32, i32) {
    %c0_i32 = arith.constant 0 : i32
    %c0_i32_0 = arith.constant 0 : i32
    %c0_i32_1 = arith.constant 0 : i32
    %c0_i32_2 = arith.constant 0 : i32
    return %arg0, %c0_i32, %c0_i32_0, %c0_i32_1 : i32, i32, i32, i32
  }
  func.func @transform_1(%arg0: i32) -> (i32, i32, i32) {
    %c0_i32 = arith.constant 0 : i32
    %c0_i32_0 = arith.constant 0 : i32
    %c0_i32_1 = arith.constant 0 : i32
    return %arg0, %c0_i32, %c0_i32_0 : i32, i32, i32
  }
}

module attributes {stable_mosaic.version = 11 : i64} {
  func.func @_conv_stats_kernel(%arg0: i32, %arg1: memref<512x72xbf16, #tpu.memory_space<vmem>>, %arg2: memref<72x8xbf16, #tpu.memory_space<vmem>>, %arg3: memref<512x8xf32, #tpu.memory_space<vmem>>, %arg4: memref<1x1x8xf32, #tpu.memory_space<vmem>>, %arg5: memref<1x1x8xf32, #tpu.memory_space<vmem>>) attributes {dimension_semantics = [#tpu.dimension_semantics<parallel>], iteration_bounds = array<i64: 1>, scalar_prefetch = 0 : i64, scratch_operands = 0 : i64, tpu.core_type = #tpu.core_type<tc>, window_params = [{transform_indices = @transform_0, window_bounds = array<i64: 512, 72>}, {pipeline_mode = #tpu.pipeline_mode<synchronous>, transform_indices = @transform_1, window_bounds = array<i64: 72, 8>}, {transform_indices = @transform_2, window_bounds = array<i64: 512, 8>}, {transform_indices = @transform_3, window_bounds = array<i64: 1, 1, 8>}, {transform_indices = @transform_4, window_bounds = array<i64: 1, 1, 8>}]} {
    %c0 = arith.constant 0 : index
    %c0_0 = arith.constant 0 : index
    %0 = vector.load %arg1[%c0, %c0_0] : memref<512x72xbf16, #tpu.memory_space<vmem>>, vector<512x72xbf16>
    %c0_1 = arith.constant 0 : index
    %c0_2 = arith.constant 0 : index
    %1 = vector.load %arg2[%c0_1, %c0_2] : memref<72x8xbf16, #tpu.memory_space<vmem>>, vector<72x8xbf16>
    %cst = arith.constant dense<0.000000e+00> : vector<512x8xf32>
    %2 = tpu.matmul %0, %1, %cst {dimension_numbers = #tpu.dot_dimension_numbers<[1], [0], [0], [1], [0, 0, 1, 1], [], []>} : vector<512x72xbf16>, vector<72x8xbf16>, vector<512x8xf32> -> vector<512x8xf32>
    %c0_3 = arith.constant 0 : index
    %c0_4 = arith.constant 0 : index
    %3 = vector.load %arg3[%c0_3, %c0_4] : memref<512x8xf32, #tpu.memory_space<vmem>>, vector<512x8xf32>
    tpu.vector_store %arg3[%c0_3, %c0_4], %2 {strides = array<i32>} : memref<512x8xf32, #tpu.memory_space<vmem>>, vector<512x8xf32>,
    %cst_5 = arith.constant dense<0.000000e+00> : vector<8xf32>
    %4 = vector.multi_reduction <add>, %2, %cst_5 [0] : vector<512x8xf32> to vector<8xf32>
    %5 = vector.shape_cast %4 : vector<8xf32> to vector<1x8xf32>
    %6 = vector.shape_cast %5 : vector<1x8xf32> to vector<1x1x8xf32>
    %c0_6 = arith.constant 0 : index
    %c0_7 = arith.constant 0 : index
    %c0_8 = arith.constant 0 : index
    %7 = vector.load %arg4[%c0_6, %c0_7, %c0_8] : memref<1x1x8xf32, #tpu.memory_space<vmem>>, vector<1x1x8xf32>
    tpu.vector_store %arg4[%c0_6, %c0_7, %c0_8], %6 {strides = array<i32>} : memref<1x1x8xf32, #tpu.memory_space<vmem>>, vector<1x1x8xf32>,
    %8 = arith.mulf %2, %2 : vector<512x8xf32>
    %cst_9 = arith.constant dense<0.000000e+00> : vector<8xf32>
    %9 = vector.multi_reduction <add>, %8, %cst_9 [0] : vector<512x8xf32> to vector<8xf32>
    %10 = vector.shape_cast %9 : vector<8xf32> to vector<1x8xf32>
    %11 = vector.shape_cast %10 : vector<1x8xf32> to vector<1x1x8xf32>
    %c0_10 = arith.constant 0 : index
    %c0_11 = arith.constant 0 : index
    %c0_12 = arith.constant 0 : index
    %12 = vector.load %arg5[%c0_10, %c0_11, %c0_12] : memref<1x1x8xf32, #tpu.memory_space<vmem>>, vector<1x1x8xf32>
    tpu.vector_store %arg5[%c0_10, %c0_11, %c0_12], %11 {strides = array<i32>} : memref<1x1x8xf32, #tpu.memory_space<vmem>>, vector<1x1x8xf32>,
    return
  }
  func.func @transform_0(%arg0: i32) -> (i32, i32) {
    %c0_i32 = arith.constant 0 : i32
    %c0_i32_0 = arith.constant 0 : i32
    return %arg0, %c0_i32 : i32, i32
  }
  func.func @transform_1(%arg0: i32) -> (i32, i32) {
    %c0_i32 = arith.constant 0 : i32
    %c0_i32_0 = arith.constant 0 : i32
    %c0_i32_1 = arith.constant 0 : i32
    return %c0_i32, %c0_i32_0 : i32, i32
  }
  func.func @transform_2(%arg0: i32) -> (i32, i32) {
    %c0_i32 = arith.constant 0 : i32
    %c0_i32_0 = arith.constant 0 : i32
    return %arg0, %c0_i32 : i32, i32
  }
  func.func @transform_3(%arg0: i32) -> (i32, i32, i32) {
    %c0_i32 = arith.constant 0 : i32
    %c0_i32_0 = arith.constant 0 : i32
    %c0_i32_1 = arith.constant 0 : i32
    return %arg0, %c0_i32, %c0_i32_0 : i32, i32, i32
  }
  func.func @transform_4(%arg0: i32) -> (i32, i32, i32) {
    %c0_i32 = arith.constant 0 : i32
    %c0_i32_0 = arith.constant 0 : i32
    %c0_i32_1 = arith.constant 0 : i32
    return %arg0, %c0_i32, %c0_i32_0 : i32, i32, i32
  }
}

module attributes {stable_mosaic.version = 11 : i64} {
  func.func @_conv_stats_kernel(%arg0: i32, %arg1: memref<128x72xbf16, #tpu.memory_space<vmem>>, %arg2: memref<72x16xbf16, #tpu.memory_space<vmem>>, %arg3: memref<128x16xf32, #tpu.memory_space<vmem>>, %arg4: memref<1x1x16xf32, #tpu.memory_space<vmem>>, %arg5: memref<1x1x16xf32, #tpu.memory_space<vmem>>) attributes {dimension_semantics = [#tpu.dimension_semantics<parallel>], iteration_bounds = array<i64: 1>, scalar_prefetch = 0 : i64, scratch_operands = 0 : i64, tpu.core_type = #tpu.core_type<tc>, window_params = [{transform_indices = @transform_0, window_bounds = array<i64: 128, 72>}, {pipeline_mode = #tpu.pipeline_mode<synchronous>, transform_indices = @transform_1, window_bounds = array<i64: 72, 16>}, {transform_indices = @transform_2, window_bounds = array<i64: 128, 16>}, {transform_indices = @transform_3, window_bounds = array<i64: 1, 1, 16>}, {transform_indices = @transform_4, window_bounds = array<i64: 1, 1, 16>}]} {
    %c0 = arith.constant 0 : index
    %c0_0 = arith.constant 0 : index
    %0 = vector.load %arg1[%c0, %c0_0] : memref<128x72xbf16, #tpu.memory_space<vmem>>, vector<128x72xbf16>
    %c0_1 = arith.constant 0 : index
    %c0_2 = arith.constant 0 : index
    %1 = vector.load %arg2[%c0_1, %c0_2] : memref<72x16xbf16, #tpu.memory_space<vmem>>, vector<72x16xbf16>
    %cst = arith.constant dense<0.000000e+00> : vector<128x16xf32>
    %2 = tpu.matmul %0, %1, %cst {dimension_numbers = #tpu.dot_dimension_numbers<[1], [0], [0], [1], [0, 0, 1, 1], [], []>} : vector<128x72xbf16>, vector<72x16xbf16>, vector<128x16xf32> -> vector<128x16xf32>
    %c0_3 = arith.constant 0 : index
    %c0_4 = arith.constant 0 : index
    %3 = vector.load %arg3[%c0_3, %c0_4] : memref<128x16xf32, #tpu.memory_space<vmem>>, vector<128x16xf32>
    tpu.vector_store %arg3[%c0_3, %c0_4], %2 {strides = array<i32>} : memref<128x16xf32, #tpu.memory_space<vmem>>, vector<128x16xf32>,
    %cst_5 = arith.constant dense<0.000000e+00> : vector<16xf32>
    %4 = vector.multi_reduction <add>, %2, %cst_5 [0] : vector<128x16xf32> to vector<16xf32>
    %5 = vector.shape_cast %4 : vector<16xf32> to vector<1x16xf32>
    %6 = vector.shape_cast %5 : vector<1x16xf32> to vector<1x1x16xf32>
    %c0_6 = arith.constant 0 : index
    %c0_7 = arith.constant 0 : index
    %c0_8 = arith.constant 0 : index
    %7 = vector.load %arg4[%c0_6, %c0_7, %c0_8] : memref<1x1x16xf32, #tpu.memory_space<vmem>>, vector<1x1x16xf32>
    tpu.vector_store %arg4[%c0_6, %c0_7, %c0_8], %6 {strides = array<i32>} : memref<1x1x16xf32, #tpu.memory_space<vmem>>, vector<1x1x16xf32>,
    %8 = arith.mulf %2, %2 : vector<128x16xf32>
    %cst_9 = arith.constant dense<0.000000e+00> : vector<16xf32>
    %9 = vector.multi_reduction <add>, %8, %cst_9 [0] : vector<128x16xf32> to vector<16xf32>
    %10 = vector.shape_cast %9 : vector<16xf32> to vector<1x16xf32>
    %11 = vector.shape_cast %10 : vector<1x16xf32> to vector<1x1x16xf32>
    %c0_10 = arith.constant 0 : index
    %c0_11 = arith.constant 0 : index
    %c0_12 = arith.constant 0 : index
    %12 = vector.load %arg5[%c0_10, %c0_11, %c0_12] : memref<1x1x16xf32, #tpu.memory_space<vmem>>, vector<1x1x16xf32>
    tpu.vector_store %arg5[%c0_10, %c0_11, %c0_12], %11 {strides = array<i32>} : memref<1x1x16xf32, #tpu.memory_space<vmem>>, vector<1x1x16xf32>,
    return
  }
  func.func @transform_0(%arg0: i32) -> (i32, i32) {
    %c0_i32 = arith.constant 0 : i32
    %c0_i32_0 = arith.constant 0 : i32
    return %arg0, %c0_i32 : i32, i32
  }
  func.func @transform_1(%arg0: i32) -> (i32, i32) {
    %c0_i32 = arith.constant 0 : i32
    %c0_i32_0 = arith.constant 0 : i32
    %c0_i32_1 = arith.constant 0 : i32
    return %c0_i32, %c0_i32_0 : i32, i32
  }
  func.func @transform_2(%arg0: i32) -> (i32, i32) {
    %c0_i32 = arith.constant 0 : i32
    %c0_i32_0 = arith.constant 0 : i32
    return %arg0, %c0_i32 : i32, i32
  }
  func.func @transform_3(%arg0: i32) -> (i32, i32, i32) {
    %c0_i32 = arith.constant 0 : i32
    %c0_i32_0 = arith.constant 0 : i32
    %c0_i32_1 = arith.constant 0 : i32
    return %arg0, %c0_i32, %c0_i32_0 : i32, i32, i32
  }
  func.func @transform_4(%arg0: i32) -> (i32, i32, i32) {
    %c0_i32 = arith.constant 0 : i32
    %c0_i32_0 = arith.constant 0 : i32
    %c0_i32_1 = arith.constant 0 : i32
    return %arg0, %c0_i32, %c0_i32_0 : i32, i32, i32
  }
}

module attributes {stable_mosaic.version = 11 : i64} {
  func.func @_scale_shift_relu_kernel(%arg0: i32, %arg1: memref<16x128xf32, #tpu.memory_space<vmem>>, %arg2: memref<1x128xf32, #tpu.memory_space<vmem>>, %arg3: memref<1x128xf32, #tpu.memory_space<vmem>>, %arg4: memref<16x128xbf16, #tpu.memory_space<vmem>>) attributes {dimension_semantics = [#tpu.dimension_semantics<parallel>], iteration_bounds = array<i64: 1>, scalar_prefetch = 0 : i64, scratch_operands = 0 : i64, tpu.core_type = #tpu.core_type<tc>, window_params = [{transform_indices = @transform_0, window_bounds = array<i64: 16, 128>}, {pipeline_mode = #tpu.pipeline_mode<synchronous>, transform_indices = @transform_1, window_bounds = array<i64: 1, 128>}, {pipeline_mode = #tpu.pipeline_mode<synchronous>, transform_indices = @transform_2, window_bounds = array<i64: 1, 128>}, {transform_indices = @transform_3, window_bounds = array<i64: 16, 128>}]} {
    %c0 = arith.constant 0 : index
    %c0_0 = arith.constant 0 : index
    %0 = vector.load %arg1[%c0, %c0_0] : memref<16x128xf32, #tpu.memory_space<vmem>>, vector<16x128xf32>
    %c0_1 = arith.constant 0 : index
    %c0_2 = arith.constant 0 : index
    %1 = vector.load %arg2[%c0_1, %c0_2] : memref<1x128xf32, #tpu.memory_space<vmem>>, vector<1x128xf32>
    %2 = vector.broadcast %1 : vector<1x128xf32> to vector<16x128xf32>
    %3 = arith.mulf %0, %2 : vector<16x128xf32>
    %c0_3 = arith.constant 0 : index
    %c0_4 = arith.constant 0 : index
    %4 = vector.load %arg3[%c0_3, %c0_4] : memref<1x128xf32, #tpu.memory_space<vmem>>, vector<1x128xf32>
    %5 = vector.broadcast %4 : vector<1x128xf32> to vector<16x128xf32>
    %6 = arith.addf %3, %5 : vector<16x128xf32>
    %cst = arith.constant 0.000000e+00 : f32
    %7 = vector.broadcast %cst : f32 to vector<16x128xf32>
    %8 = arith.maximumf %6, %7 : vector<16x128xf32>
    %9 = arith.truncf %8 : vector<16x128xf32> to vector<16x128xbf16>
    %c0_5 = arith.constant 0 : index
    %c0_6 = arith.constant 0 : index
    %10 = vector.load %arg4[%c0_5, %c0_6] : memref<16x128xbf16, #tpu.memory_space<vmem>>, vector<16x128xbf16>
    tpu.vector_store %arg4[%c0_5, %c0_6], %9 {strides = array<i32>} : memref<16x128xbf16, #tpu.memory_space<vmem>>, vector<16x128xbf16>,
    return
  }
  func.func @transform_0(%arg0: i32) -> (i32, i32) {
    %c0_i32 = arith.constant 0 : i32
    %c0_i32_0 = arith.constant 0 : i32
    return %arg0, %c0_i32 : i32, i32
  }
  func.func @transform_1(%arg0: i32) -> (i32, i32) {
    %c0_i32 = arith.constant 0 : i32
    %c0_i32_0 = arith.constant 0 : i32
    %c0_i32_1 = arith.constant 0 : i32
    return %c0_i32, %c0_i32_0 : i32, i32
  }
  func.func @transform_2(%arg0: i32) -> (i32, i32) {
    %c0_i32 = arith.constant 0 : i32
    %c0_i32_0 = arith.constant 0 : i32
    %c0_i32_1 = arith.constant 0 : i32
    return %c0_i32, %c0_i32_0 : i32, i32
  }
  func.func @transform_3(%arg0: i32) -> (i32, i32) {
    %c0_i32 = arith.constant 0 : i32
    %c0_i32_0 = arith.constant 0 : i32
    return %arg0, %c0_i32 : i32, i32
  }
}

module attributes {stable_mosaic.version = 11 : i64} {
  func.func @_conv_stats_kernel(%arg0: i32, %arg1: memref<128x144xbf16, #tpu.memory_space<vmem>>, %arg2: memref<144x16xbf16, #tpu.memory_space<vmem>>, %arg3: memref<128x16xf32, #tpu.memory_space<vmem>>, %arg4: memref<1x1x16xf32, #tpu.memory_space<vmem>>, %arg5: memref<1x1x16xf32, #tpu.memory_space<vmem>>) attributes {dimension_semantics = [#tpu.dimension_semantics<parallel>], iteration_bounds = array<i64: 1>, scalar_prefetch = 0 : i64, scratch_operands = 0 : i64, tpu.core_type = #tpu.core_type<tc>, window_params = [{transform_indices = @transform_0, window_bounds = array<i64: 128, 144>}, {pipeline_mode = #tpu.pipeline_mode<synchronous>, transform_indices = @transform_1, window_bounds = array<i64: 144, 16>}, {transform_indices = @transform_2, window_bounds = array<i64: 128, 16>}, {transform_indices = @transform_3, window_bounds = array<i64: 1, 1, 16>}, {transform_indices = @transform_4, window_bounds = array<i64: 1, 1, 16>}]} {
    %c0 = arith.constant 0 : index
    %c0_0 = arith.constant 0 : index
    %0 = vector.load %arg1[%c0, %c0_0] : memref<128x144xbf16, #tpu.memory_space<vmem>>, vector<128x144xbf16>
    %c0_1 = arith.constant 0 : index
    %c0_2 = arith.constant 0 : index
    %1 = vector.load %arg2[%c0_1, %c0_2] : memref<144x16xbf16, #tpu.memory_space<vmem>>, vector<144x16xbf16>
    %cst = arith.constant dense<0.000000e+00> : vector<128x16xf32>
    %2 = tpu.matmul %0, %1, %cst {dimension_numbers = #tpu.dot_dimension_numbers<[1], [0], [0], [1], [0, 0, 1, 1], [], []>} : vector<128x144xbf16>, vector<144x16xbf16>, vector<128x16xf32> -> vector<128x16xf32>
    %c0_3 = arith.constant 0 : index
    %c0_4 = arith.constant 0 : index
    %3 = vector.load %arg3[%c0_3, %c0_4] : memref<128x16xf32, #tpu.memory_space<vmem>>, vector<128x16xf32>
    tpu.vector_store %arg3[%c0_3, %c0_4], %2 {strides = array<i32>} : memref<128x16xf32, #tpu.memory_space<vmem>>, vector<128x16xf32>,
    %cst_5 = arith.constant dense<0.000000e+00> : vector<16xf32>
    %4 = vector.multi_reduction <add>, %2, %cst_5 [0] : vector<128x16xf32> to vector<16xf32>
    %5 = vector.shape_cast %4 : vector<16xf32> to vector<1x16xf32>
    %6 = vector.shape_cast %5 : vector<1x16xf32> to vector<1x1x16xf32>
    %c0_6 = arith.constant 0 : index
    %c0_7 = arith.constant 0 : index
    %c0_8 = arith.constant 0 : index
    %7 = vector.load %arg4[%c0_6, %c0_7, %c0_8] : memref<1x1x16xf32, #tpu.memory_space<vmem>>, vector<1x1x16xf32>
    tpu.vector_store %arg4[%c0_6, %c0_7, %c0_8], %6 {strides = array<i32>} : memref<1x1x16xf32, #tpu.memory_space<vmem>>, vector<1x1x16xf32>,
    %8 = arith.mulf %2, %2 : vector<128x16xf32>
    %cst_9 = arith.constant dense<0.000000e+00> : vector<16xf32>
    %9 = vector.multi_reduction <add>, %8, %cst_9 [0] : vector<128x16xf32> to vector<16xf32>
    %10 = vector.shape_cast %9 : vector<16xf32> to vector<1x16xf32>
    %11 = vector.shape_cast %10 : vector<1x16xf32> to vector<1x1x16xf32>
    %c0_10 = arith.constant 0 : index
    %c0_11 = arith.constant 0 : index
    %c0_12 = arith.constant 0 : index
    %12 = vector.load %arg5[%c0_10, %c0_11, %c0_12] : memref<1x1x16xf32, #tpu.memory_space<vmem>>, vector<1x1x16xf32>
    tpu.vector_store %arg5[%c0_10, %c0_11, %c0_12], %11 {strides = array<i32>} : memref<1x1x16xf32, #tpu.memory_space<vmem>>, vector<1x1x16xf32>,
    return
  }
  func.func @transform_0(%arg0: i32) -> (i32, i32) {
    %c0_i32 = arith.constant 0 : i32
    %c0_i32_0 = arith.constant 0 : i32
    return %arg0, %c0_i32 : i32, i32
  }
  func.func @transform_1(%arg0: i32) -> (i32, i32) {
    %c0_i32 = arith.constant 0 : i32
    %c0_i32_0 = arith.constant 0 : i32
    %c0_i32_1 = arith.constant 0 : i32
    return %c0_i32, %c0_i32_0 : i32, i32
  }
  func.func @transform_2(%arg0: i32) -> (i32, i32) {
    %c0_i32 = arith.constant 0 : i32
    %c0_i32_0 = arith.constant 0 : i32
    return %arg0, %c0_i32 : i32, i32
  }
  func.func @transform_3(%arg0: i32) -> (i32, i32, i32) {
    %c0_i32 = arith.constant 0 : i32
    %c0_i32_0 = arith.constant 0 : i32
    %c0_i32_1 = arith.constant 0 : i32
    return %arg0, %c0_i32, %c0_i32_0 : i32, i32, i32
  }
  func.func @transform_4(%arg0: i32) -> (i32, i32, i32) {
    %c0_i32 = arith.constant 0 : i32
    %c0_i32_0 = arith.constant 0 : i32
    %c0_i32_1 = arith.constant 0 : i32
    return %arg0, %c0_i32, %c0_i32_0 : i32, i32, i32
  }
}

module attributes {stable_mosaic.version = 11 : i64} {
  func.func @_maxpool_kernel(%arg0: i32, %arg1: memref<8x2x4x32xbf16, #tpu.memory_space<vmem>>, %arg2: memref<8x4x16xbf16, #tpu.memory_space<vmem>>) attributes {dimension_semantics = [#tpu.dimension_semantics<parallel>], iteration_bounds = array<i64: 1>, scalar_prefetch = 0 : i64, scratch_operands = 0 : i64, tpu.core_type = #tpu.core_type<tc>, window_params = [{transform_indices = @transform_0, window_bounds = array<i64: 8, 2, 4, 32>}, {transform_indices = @transform_1, window_bounds = array<i64: 8, 4, 16>}]} {
    %c0 = arith.constant 0 : index
    %c0_0 = arith.constant 0 : index
    %c0_1 = arith.constant 0 : index
    %c0_2 = arith.constant 0 : index
    %0 = vector.load %arg1[%c0, %c0_0, %c0_1, %c0_2] : memref<8x2x4x32xbf16, #tpu.memory_space<vmem>>, vector<8x1x4x32xbf16>
    %1 = vector.shape_cast %0 : vector<8x1x4x32xbf16> to vector<8x4x32xbf16>
    %c0_3 = arith.constant 0 : index
    %c1 = arith.constant 1 : index
    %c0_4 = arith.constant 0 : index
    %c0_5 = arith.constant 0 : index
    %2 = vector.load %arg1[%c0_3, %c1, %c0_4, %c0_5] : memref<8x2x4x32xbf16, #tpu.memory_space<vmem>>, vector<8x1x4x32xbf16>
    %3 = vector.shape_cast %2 : vector<8x1x4x32xbf16> to vector<8x4x32xbf16>
    %4 = arith.maximumf %1, %3 : vector<8x4x32xbf16>
    %5 = vector.extract_strided_slice %4 {offsets = [0, 0, 0], sizes = [8, 4, 16], strides = [1, 1, 1]} : vector<8x4x32xbf16> to vector<8x4x16xbf16>
    %6 = vector.extract_strided_slice %4 {offsets = [0, 0, 16], sizes = [8, 4, 16], strides = [1, 1, 1]} : vector<8x4x32xbf16> to vector<8x4x16xbf16>
    %7 = arith.maximumf %5, %6 : vector<8x4x16xbf16>
    %c0_6 = arith.constant 0 : index
    %c0_7 = arith.constant 0 : index
    %c0_8 = arith.constant 0 : index
    %8 = vector.load %arg2[%c0_6, %c0_7, %c0_8] : memref<8x4x16xbf16, #tpu.memory_space<vmem>>, vector<8x4x16xbf16>
    tpu.vector_store %arg2[%c0_6, %c0_7, %c0_8], %7 {strides = array<i32>} : memref<8x4x16xbf16, #tpu.memory_space<vmem>>, vector<8x4x16xbf16>,
    return
  }
  func.func @transform_0(%arg0: i32) -> (i32, i32, i32, i32) {
    %c0_i32 = arith.constant 0 : i32
    %c0_i32_0 = arith.constant 0 : i32
    %c0_i32_1 = arith.constant 0 : i32
    %c0_i32_2 = arith.constant 0 : i32
    return %arg0, %c0_i32, %c0_i32_0, %c0_i32_1 : i32, i32, i32, i32
  }
  func.func @transform_1(%arg0: i32) -> (i32, i32, i32) {
    %c0_i32 = arith.constant 0 : i32
    %c0_i32_0 = arith.constant 0 : i32
    %c0_i32_1 = arith.constant 0 : i32
    return %arg0, %c0_i32, %c0_i32_0 : i32, i32, i32
  }
}

module attributes {stable_mosaic.version = 11 : i64} {
  func.func @_conv_stats_kernel(%arg0: i32, %arg1: memref<32x144xbf16, #tpu.memory_space<vmem>>, %arg2: memref<144x32xbf16, #tpu.memory_space<vmem>>, %arg3: memref<32x32xf32, #tpu.memory_space<vmem>>, %arg4: memref<1x1x32xf32, #tpu.memory_space<vmem>>, %arg5: memref<1x1x32xf32, #tpu.memory_space<vmem>>) attributes {dimension_semantics = [#tpu.dimension_semantics<parallel>], iteration_bounds = array<i64: 1>, scalar_prefetch = 0 : i64, scratch_operands = 0 : i64, tpu.core_type = #tpu.core_type<tc>, window_params = [{transform_indices = @transform_0, window_bounds = array<i64: 32, 144>}, {pipeline_mode = #tpu.pipeline_mode<synchronous>, transform_indices = @transform_1, window_bounds = array<i64: 144, 32>}, {transform_indices = @transform_2, window_bounds = array<i64: 32, 32>}, {transform_indices = @transform_3, window_bounds = array<i64: 1, 1, 32>}, {transform_indices = @transform_4, window_bounds = array<i64: 1, 1, 32>}]} {
    %c0 = arith.constant 0 : index
    %c0_0 = arith.constant 0 : index
    %0 = vector.load %arg1[%c0, %c0_0] : memref<32x144xbf16, #tpu.memory_space<vmem>>, vector<32x144xbf16>
    %c0_1 = arith.constant 0 : index
    %c0_2 = arith.constant 0 : index
    %1 = vector.load %arg2[%c0_1, %c0_2] : memref<144x32xbf16, #tpu.memory_space<vmem>>, vector<144x32xbf16>
    %cst = arith.constant dense<0.000000e+00> : vector<32x32xf32>
    %2 = tpu.matmul %0, %1, %cst {dimension_numbers = #tpu.dot_dimension_numbers<[1], [0], [0], [1], [0, 0, 1, 1], [], []>} : vector<32x144xbf16>, vector<144x32xbf16>, vector<32x32xf32> -> vector<32x32xf32>
    %c0_3 = arith.constant 0 : index
    %c0_4 = arith.constant 0 : index
    %3 = vector.load %arg3[%c0_3, %c0_4] : memref<32x32xf32, #tpu.memory_space<vmem>>, vector<32x32xf32>
    tpu.vector_store %arg3[%c0_3, %c0_4], %2 {strides = array<i32>} : memref<32x32xf32, #tpu.memory_space<vmem>>, vector<32x32xf32>,
    %cst_5 = arith.constant dense<0.000000e+00> : vector<32xf32>
    %4 = vector.multi_reduction <add>, %2, %cst_5 [0] : vector<32x32xf32> to vector<32xf32>
    %5 = vector.shape_cast %4 : vector<32xf32> to vector<1x32xf32>
    %6 = vector.shape_cast %5 : vector<1x32xf32> to vector<1x1x32xf32>
    %c0_6 = arith.constant 0 : index
    %c0_7 = arith.constant 0 : index
    %c0_8 = arith.constant 0 : index
    %7 = vector.load %arg4[%c0_6, %c0_7, %c0_8] : memref<1x1x32xf32, #tpu.memory_space<vmem>>, vector<1x1x32xf32>
    tpu.vector_store %arg4[%c0_6, %c0_7, %c0_8], %6 {strides = array<i32>} : memref<1x1x32xf32, #tpu.memory_space<vmem>>, vector<1x1x32xf32>,
    %8 = arith.mulf %2, %2 : vector<32x32xf32>
    %cst_9 = arith.constant dense<0.000000e+00> : vector<32xf32>
    %9 = vector.multi_reduction <add>, %8, %cst_9 [0] : vector<32x32xf32> to vector<32xf32>
    %10 = vector.shape_cast %9 : vector<32xf32> to vector<1x32xf32>
    %11 = vector.shape_cast %10 : vector<1x32xf32> to vector<1x1x32xf32>
    %c0_10 = arith.constant 0 : index
    %c0_11 = arith.constant 0 : index
    %c0_12 = arith.constant 0 : index
    %12 = vector.load %arg5[%c0_10, %c0_11, %c0_12] : memref<1x1x32xf32, #tpu.memory_space<vmem>>, vector<1x1x32xf32>
    tpu.vector_store %arg5[%c0_10, %c0_11, %c0_12], %11 {strides = array<i32>} : memref<1x1x32xf32, #tpu.memory_space<vmem>>, vector<1x1x32xf32>,
    return
  }
  func.func @transform_0(%arg0: i32) -> (i32, i32) {
    %c0_i32 = arith.constant 0 : i32
    %c0_i32_0 = arith.constant 0 : i32
    return %arg0, %c0_i32 : i32, i32
  }
  func.func @transform_1(%arg0: i32) -> (i32, i32) {
    %c0_i32 = arith.constant 0 : i32
    %c0_i32_0 = arith.constant 0 : i32
    %c0_i32_1 = arith.constant 0 : i32
    return %c0_i32, %c0_i32_0 : i32, i32
  }
  func.func @transform_2(%arg0: i32) -> (i32, i32) {
    %c0_i32 = arith.constant 0 : i32
    %c0_i32_0 = arith.constant 0 : i32
    return %arg0, %c0_i32 : i32, i32
  }
  func.func @transform_3(%arg0: i32) -> (i32, i32, i32) {
    %c0_i32 = arith.constant 0 : i32
    %c0_i32_0 = arith.constant 0 : i32
    %c0_i32_1 = arith.constant 0 : i32
    return %arg0, %c0_i32, %c0_i32_0 : i32, i32, i32
  }
  func.func @transform_4(%arg0: i32) -> (i32, i32, i32) {
    %c0_i32 = arith.constant 0 : i32
    %c0_i32_0 = arith.constant 0 : i32
    %c0_i32_1 = arith.constant 0 : i32
    return %arg0, %c0_i32, %c0_i32_0 : i32, i32, i32
  }
}

module attributes {stable_mosaic.version = 11 : i64} {
  func.func @_scale_shift_relu_kernel(%arg0: i32, %arg1: memref<8x128xf32, #tpu.memory_space<vmem>>, %arg2: memref<1x128xf32, #tpu.memory_space<vmem>>, %arg3: memref<1x128xf32, #tpu.memory_space<vmem>>, %arg4: memref<8x128xbf16, #tpu.memory_space<vmem>>) attributes {dimension_semantics = [#tpu.dimension_semantics<parallel>], iteration_bounds = array<i64: 1>, scalar_prefetch = 0 : i64, scratch_operands = 0 : i64, tpu.core_type = #tpu.core_type<tc>, window_params = [{transform_indices = @transform_0, window_bounds = array<i64: 8, 128>}, {pipeline_mode = #tpu.pipeline_mode<synchronous>, transform_indices = @transform_1, window_bounds = array<i64: 1, 128>}, {pipeline_mode = #tpu.pipeline_mode<synchronous>, transform_indices = @transform_2, window_bounds = array<i64: 1, 128>}, {transform_indices = @transform_3, window_bounds = array<i64: 8, 128>}]} {
    %c0 = arith.constant 0 : index
    %c0_0 = arith.constant 0 : index
    %0 = vector.load %arg1[%c0, %c0_0] : memref<8x128xf32, #tpu.memory_space<vmem>>, vector<8x128xf32>
    %c0_1 = arith.constant 0 : index
    %c0_2 = arith.constant 0 : index
    %1 = vector.load %arg2[%c0_1, %c0_2] : memref<1x128xf32, #tpu.memory_space<vmem>>, vector<1x128xf32>
    %2 = vector.broadcast %1 : vector<1x128xf32> to vector<8x128xf32>
    %3 = arith.mulf %0, %2 : vector<8x128xf32>
    %c0_3 = arith.constant 0 : index
    %c0_4 = arith.constant 0 : index
    %4 = vector.load %arg3[%c0_3, %c0_4] : memref<1x128xf32, #tpu.memory_space<vmem>>, vector<1x128xf32>
    %5 = vector.broadcast %4 : vector<1x128xf32> to vector<8x128xf32>
    %6 = arith.addf %3, %5 : vector<8x128xf32>
    %cst = arith.constant 0.000000e+00 : f32
    %7 = vector.broadcast %cst : f32 to vector<8x128xf32>
    %8 = arith.maximumf %6, %7 : vector<8x128xf32>
    %9 = arith.truncf %8 : vector<8x128xf32> to vector<8x128xbf16>
    %c0_5 = arith.constant 0 : index
    %c0_6 = arith.constant 0 : index
    %10 = vector.load %arg4[%c0_5, %c0_6] : memref<8x128xbf16, #tpu.memory_space<vmem>>, vector<8x128xbf16>
    tpu.vector_store %arg4[%c0_5, %c0_6], %9 {strides = array<i32>} : memref<8x128xbf16, #tpu.memory_space<vmem>>, vector<8x128xbf16>,
    return
  }
  func.func @transform_0(%arg0: i32) -> (i32, i32) {
    %c0_i32 = arith.constant 0 : i32
    %c0_i32_0 = arith.constant 0 : i32
    return %arg0, %c0_i32 : i32, i32
  }
  func.func @transform_1(%arg0: i32) -> (i32, i32) {
    %c0_i32 = arith.constant 0 : i32
    %c0_i32_0 = arith.constant 0 : i32
    %c0_i32_1 = arith.constant 0 : i32
    return %c0_i32, %c0_i32_0 : i32, i32
  }
  func.func @transform_2(%arg0: i32) -> (i32, i32) {
    %c0_i32 = arith.constant 0 : i32
    %c0_i32_0 = arith.constant 0 : i32
    %c0_i32_1 = arith.constant 0 : i32
    return %c0_i32, %c0_i32_0 : i32, i32
  }
  func.func @transform_3(%arg0: i32) -> (i32, i32) {
    %c0_i32 = arith.constant 0 : i32
    %c0_i32_0 = arith.constant 0 : i32
    return %arg0, %c0_i32 : i32, i32
  }
}

module attributes {stable_mosaic.version = 11 : i64} {
  func.func @_conv_stats_kernel(%arg0: i32, %arg1: memref<32x288xbf16, #tpu.memory_space<vmem>>, %arg2: memref<288x32xbf16, #tpu.memory_space<vmem>>, %arg3: memref<32x32xf32, #tpu.memory_space<vmem>>, %arg4: memref<1x1x32xf32, #tpu.memory_space<vmem>>, %arg5: memref<1x1x32xf32, #tpu.memory_space<vmem>>) attributes {dimension_semantics = [#tpu.dimension_semantics<parallel>], iteration_bounds = array<i64: 1>, scalar_prefetch = 0 : i64, scratch_operands = 0 : i64, tpu.core_type = #tpu.core_type<tc>, window_params = [{transform_indices = @transform_0, window_bounds = array<i64: 32, 288>}, {pipeline_mode = #tpu.pipeline_mode<synchronous>, transform_indices = @transform_1, window_bounds = array<i64: 288, 32>}, {transform_indices = @transform_2, window_bounds = array<i64: 32, 32>}, {transform_indices = @transform_3, window_bounds = array<i64: 1, 1, 32>}, {transform_indices = @transform_4, window_bounds = array<i64: 1, 1, 32>}]} {
    %c0 = arith.constant 0 : index
    %c0_0 = arith.constant 0 : index
    %0 = vector.load %arg1[%c0, %c0_0] : memref<32x288xbf16, #tpu.memory_space<vmem>>, vector<32x288xbf16>
    %c0_1 = arith.constant 0 : index
    %c0_2 = arith.constant 0 : index
    %1 = vector.load %arg2[%c0_1, %c0_2] : memref<288x32xbf16, #tpu.memory_space<vmem>>, vector<288x32xbf16>
    %cst = arith.constant dense<0.000000e+00> : vector<32x32xf32>
    %2 = tpu.matmul %0, %1, %cst {dimension_numbers = #tpu.dot_dimension_numbers<[1], [0], [0], [1], [0, 0, 1, 1], [], []>} : vector<32x288xbf16>, vector<288x32xbf16>, vector<32x32xf32> -> vector<32x32xf32>
    %c0_3 = arith.constant 0 : index
    %c0_4 = arith.constant 0 : index
    %3 = vector.load %arg3[%c0_3, %c0_4] : memref<32x32xf32, #tpu.memory_space<vmem>>, vector<32x32xf32>
    tpu.vector_store %arg3[%c0_3, %c0_4], %2 {strides = array<i32>} : memref<32x32xf32, #tpu.memory_space<vmem>>, vector<32x32xf32>,
    %cst_5 = arith.constant dense<0.000000e+00> : vector<32xf32>
    %4 = vector.multi_reduction <add>, %2, %cst_5 [0] : vector<32x32xf32> to vector<32xf32>
    %5 = vector.shape_cast %4 : vector<32xf32> to vector<1x32xf32>
    %6 = vector.shape_cast %5 : vector<1x32xf32> to vector<1x1x32xf32>
    %c0_6 = arith.constant 0 : index
    %c0_7 = arith.constant 0 : index
    %c0_8 = arith.constant 0 : index
    %7 = vector.load %arg4[%c0_6, %c0_7, %c0_8] : memref<1x1x32xf32, #tpu.memory_space<vmem>>, vector<1x1x32xf32>
    tpu.vector_store %arg4[%c0_6, %c0_7, %c0_8], %6 {strides = array<i32>} : memref<1x1x32xf32, #tpu.memory_space<vmem>>, vector<1x1x32xf32>,
    %8 = arith.mulf %2, %2 : vector<32x32xf32>
    %cst_9 = arith.constant dense<0.000000e+00> : vector<32xf32>
    %9 = vector.multi_reduction <add>, %8, %cst_9 [0] : vector<32x32xf32> to vector<32xf32>
    %10 = vector.shape_cast %9 : vector<32xf32> to vector<1x32xf32>
    %11 = vector.shape_cast %10 : vector<1x32xf32> to vector<1x1x32xf32>
    %c0_10 = arith.constant 0 : index
    %c0_11 = arith.constant 0 : index
    %c0_12 = arith.constant 0 : index
    %12 = vector.load %arg5[%c0_10, %c0_11, %c0_12] : memref<1x1x32xf32, #tpu.memory_space<vmem>>, vector<1x1x32xf32>
    tpu.vector_store %arg5[%c0_10, %c0_11, %c0_12], %11 {strides = array<i32>} : memref<1x1x32xf32, #tpu.memory_space<vmem>>, vector<1x1x32xf32>,
    return
  }
  func.func @transform_0(%arg0: i32) -> (i32, i32) {
    %c0_i32 = arith.constant 0 : i32
    %c0_i32_0 = arith.constant 0 : i32
    return %arg0, %c0_i32 : i32, i32
  }
  func.func @transform_1(%arg0: i32) -> (i32, i32) {
    %c0_i32 = arith.constant 0 : i32
    %c0_i32_0 = arith.constant 0 : i32
    %c0_i32_1 = arith.constant 0 : i32
    return %c0_i32, %c0_i32_0 : i32, i32
  }
  func.func @transform_2(%arg0: i32) -> (i32, i32) {
    %c0_i32 = arith.constant 0 : i32
    %c0_i32_0 = arith.constant 0 : i32
    return %arg0, %c0_i32 : i32, i32
  }
  func.func @transform_3(%arg0: i32) -> (i32, i32, i32) {
    %c0_i32 = arith.constant 0 : i32
    %c0_i32_0 = arith.constant 0 : i32
    %c0_i32_1 = arith.constant 0 : i32
    return %arg0, %c0_i32, %c0_i32_0 : i32, i32, i32
  }
  func.func @transform_4(%arg0: i32) -> (i32, i32, i32) {
    %c0_i32 = arith.constant 0 : i32
    %c0_i32_0 = arith.constant 0 : i32
    %c0_i32_1 = arith.constant 0 : i32
    return %arg0, %c0_i32, %c0_i32_0 : i32, i32, i32
  }
}

module attributes {stable_mosaic.version = 11 : i64} {
  func.func @_maxpool_kernel(%arg0: i32, %arg1: memref<4x2x2x64xbf16, #tpu.memory_space<vmem>>, %arg2: memref<4x2x32xbf16, #tpu.memory_space<vmem>>) attributes {dimension_semantics = [#tpu.dimension_semantics<parallel>], iteration_bounds = array<i64: 1>, scalar_prefetch = 0 : i64, scratch_operands = 0 : i64, tpu.core_type = #tpu.core_type<tc>, window_params = [{transform_indices = @transform_0, window_bounds = array<i64: 4, 2, 2, 64>}, {transform_indices = @transform_1, window_bounds = array<i64: 4, 2, 32>}]} {
    %c0 = arith.constant 0 : index
    %c0_0 = arith.constant 0 : index
    %c0_1 = arith.constant 0 : index
    %c0_2 = arith.constant 0 : index
    %0 = vector.load %arg1[%c0, %c0_0, %c0_1, %c0_2] : memref<4x2x2x64xbf16, #tpu.memory_space<vmem>>, vector<4x1x2x64xbf16>
    %1 = vector.shape_cast %0 : vector<4x1x2x64xbf16> to vector<4x2x64xbf16>
    %c0_3 = arith.constant 0 : index
    %c1 = arith.constant 1 : index
    %c0_4 = arith.constant 0 : index
    %c0_5 = arith.constant 0 : index
    %2 = vector.load %arg1[%c0_3, %c1, %c0_4, %c0_5] : memref<4x2x2x64xbf16, #tpu.memory_space<vmem>>, vector<4x1x2x64xbf16>
    %3 = vector.shape_cast %2 : vector<4x1x2x64xbf16> to vector<4x2x64xbf16>
    %4 = arith.maximumf %1, %3 : vector<4x2x64xbf16>
    %5 = vector.extract_strided_slice %4 {offsets = [0, 0, 0], sizes = [4, 2, 32], strides = [1, 1, 1]} : vector<4x2x64xbf16> to vector<4x2x32xbf16>
    %6 = vector.extract_strided_slice %4 {offsets = [0, 0, 32], sizes = [4, 2, 32], strides = [1, 1, 1]} : vector<4x2x64xbf16> to vector<4x2x32xbf16>
    %7 = arith.maximumf %5, %6 : vector<4x2x32xbf16>
    %c0_6 = arith.constant 0 : index
    %c0_7 = arith.constant 0 : index
    %c0_8 = arith.constant 0 : index
    %8 = vector.load %arg2[%c0_6, %c0_7, %c0_8] : memref<4x2x32xbf16, #tpu.memory_space<vmem>>, vector<4x2x32xbf16>
    tpu.vector_store %arg2[%c0_6, %c0_7, %c0_8], %7 {strides = array<i32>} : memref<4x2x32xbf16, #tpu.memory_space<vmem>>, vector<4x2x32xbf16>,
    return
  }
  func.func @transform_0(%arg0: i32) -> (i32, i32, i32, i32) {
    %c0_i32 = arith.constant 0 : i32
    %c0_i32_0 = arith.constant 0 : i32
    %c0_i32_1 = arith.constant 0 : i32
    %c0_i32_2 = arith.constant 0 : i32
    return %arg0, %c0_i32, %c0_i32_0, %c0_i32_1 : i32, i32, i32, i32
  }
  func.func @transform_1(%arg0: i32) -> (i32, i32, i32) {
    %c0_i32 = arith.constant 0 : i32
    %c0_i32_0 = arith.constant 0 : i32
    %c0_i32_1 = arith.constant 0 : i32
    return %arg0, %c0_i32, %c0_i32_0 : i32, i32, i32
  }
}

module attributes {stable_mosaic.version = 11 : i64} {
  func.func @_conv_stats_kernel(%arg0: i32, %arg1: memref<8x288xbf16, #tpu.memory_space<vmem>>, %arg2: memref<288x64xbf16, #tpu.memory_space<vmem>>, %arg3: memref<8x64xf32, #tpu.memory_space<vmem>>, %arg4: memref<1x1x64xf32, #tpu.memory_space<vmem>>, %arg5: memref<1x1x64xf32, #tpu.memory_space<vmem>>) attributes {dimension_semantics = [#tpu.dimension_semantics<parallel>], iteration_bounds = array<i64: 1>, scalar_prefetch = 0 : i64, scratch_operands = 0 : i64, tpu.core_type = #tpu.core_type<tc>, window_params = [{transform_indices = @transform_0, window_bounds = array<i64: 8, 288>}, {pipeline_mode = #tpu.pipeline_mode<synchronous>, transform_indices = @transform_1, window_bounds = array<i64: 288, 64>}, {transform_indices = @transform_2, window_bounds = array<i64: 8, 64>}, {transform_indices = @transform_3, window_bounds = array<i64: 1, 1, 64>}, {transform_indices = @transform_4, window_bounds = array<i64: 1, 1, 64>}]} {
    %c0 = arith.constant 0 : index
    %c0_0 = arith.constant 0 : index
    %0 = vector.load %arg1[%c0, %c0_0] : memref<8x288xbf16, #tpu.memory_space<vmem>>, vector<8x288xbf16>
    %c0_1 = arith.constant 0 : index
    %c0_2 = arith.constant 0 : index
    %1 = vector.load %arg2[%c0_1, %c0_2] : memref<288x64xbf16, #tpu.memory_space<vmem>>, vector<288x64xbf16>
    %cst = arith.constant dense<0.000000e+00> : vector<8x64xf32>
    %2 = tpu.matmul %0, %1, %cst {dimension_numbers = #tpu.dot_dimension_numbers<[1], [0], [0], [1], [0, 0, 1, 1], [], []>} : vector<8x288xbf16>, vector<288x64xbf16>, vector<8x64xf32> -> vector<8x64xf32>
    %c0_3 = arith.constant 0 : index
    %c0_4 = arith.constant 0 : index
    %3 = vector.load %arg3[%c0_3, %c0_4] : memref<8x64xf32, #tpu.memory_space<vmem>>, vector<8x64xf32>
    tpu.vector_store %arg3[%c0_3, %c0_4], %2 {strides = array<i32>} : memref<8x64xf32, #tpu.memory_space<vmem>>, vector<8x64xf32>,
    %cst_5 = arith.constant dense<0.000000e+00> : vector<64xf32>
    %4 = vector.multi_reduction <add>, %2, %cst_5 [0] : vector<8x64xf32> to vector<64xf32>
    %5 = vector.shape_cast %4 : vector<64xf32> to vector<1x64xf32>
    %6 = vector.shape_cast %5 : vector<1x64xf32> to vector<1x1x64xf32>
    %c0_6 = arith.constant 0 : index
    %c0_7 = arith.constant 0 : index
    %c0_8 = arith.constant 0 : index
    %7 = vector.load %arg4[%c0_6, %c0_7, %c0_8] : memref<1x1x64xf32, #tpu.memory_space<vmem>>, vector<1x1x64xf32>
    tpu.vector_store %arg4[%c0_6, %c0_7, %c0_8], %6 {strides = array<i32>} : memref<1x1x64xf32, #tpu.memory_space<vmem>>, vector<1x1x64xf32>,
    %8 = arith.mulf %2, %2 : vector<8x64xf32>
    %cst_9 = arith.constant dense<0.000000e+00> : vector<64xf32>
    %9 = vector.multi_reduction <add>, %8, %cst_9 [0] : vector<8x64xf32> to vector<64xf32>
    %10 = vector.shape_cast %9 : vector<64xf32> to vector<1x64xf32>
    %11 = vector.shape_cast %10 : vector<1x64xf32> to vector<1x1x64xf32>
    %c0_10 = arith.constant 0 : index
    %c0_11 = arith.constant 0 : index
    %c0_12 = arith.constant 0 : index
    %12 = vector.load %arg5[%c0_10, %c0_11, %c0_12] : memref<1x1x64xf32, #tpu.memory_space<vmem>>, vector<1x1x64xf32>
    tpu.vector_store %arg5[%c0_10, %c0_11, %c0_12], %11 {strides = array<i32>} : memref<1x1x64xf32, #tpu.memory_space<vmem>>, vector<1x1x64xf32>,
    return
  }
  func.func @transform_0(%arg0: i32) -> (i32, i32) {
    %c0_i32 = arith.constant 0 : i32
    %c0_i32_0 = arith.constant 0 : i32
    return %arg0, %c0_i32 : i32, i32
  }
  func.func @transform_1(%arg0: i32) -> (i32, i32) {
    %c0_i32 = arith.constant 0 : i32
    %c0_i32_0 = arith.constant 0 : i32
    %c0_i32_1 = arith.constant 0 : i32
    return %c0_i32, %c0_i32_0 : i32, i32
  }
  func.func @transform_2(%arg0: i32) -> (i32, i32) {
    %c0_i32 = arith.constant 0 : i32
    %c0_i32_0 = arith.constant 0 : i32
    return %arg0, %c0_i32 : i32, i32
  }
  func.func @transform_3(%arg0: i32) -> (i32, i32, i32) {
    %c0_i32 = arith.constant 0 : i32
    %c0_i32_0 = arith.constant 0 : i32
    %c0_i32_1 = arith.constant 0 : i32
    return %arg0, %c0_i32, %c0_i32_0 : i32, i32, i32
  }
  func.func @transform_4(%arg0: i32) -> (i32, i32, i32) {
    %c0_i32 = arith.constant 0 : i32
    %c0_i32_0 = arith.constant 0 : i32
    %c0_i32_1 = arith.constant 0 : i32
    return %arg0, %c0_i32, %c0_i32_0 : i32, i32, i32
  }
}

module attributes {stable_mosaic.version = 11 : i64} {
  func.func @_scale_shift_relu_kernel(%arg0: i32, %arg1: memref<4x128xf32, #tpu.memory_space<vmem>>, %arg2: memref<1x128xf32, #tpu.memory_space<vmem>>, %arg3: memref<1x128xf32, #tpu.memory_space<vmem>>, %arg4: memref<4x128xbf16, #tpu.memory_space<vmem>>) attributes {dimension_semantics = [#tpu.dimension_semantics<parallel>], iteration_bounds = array<i64: 1>, scalar_prefetch = 0 : i64, scratch_operands = 0 : i64, tpu.core_type = #tpu.core_type<tc>, window_params = [{transform_indices = @transform_0, window_bounds = array<i64: 4, 128>}, {pipeline_mode = #tpu.pipeline_mode<synchronous>, transform_indices = @transform_1, window_bounds = array<i64: 1, 128>}, {pipeline_mode = #tpu.pipeline_mode<synchronous>, transform_indices = @transform_2, window_bounds = array<i64: 1, 128>}, {transform_indices = @transform_3, window_bounds = array<i64: 4, 128>}]} {
    %c0 = arith.constant 0 : index
    %c0_0 = arith.constant 0 : index
    %0 = vector.load %arg1[%c0, %c0_0] : memref<4x128xf32, #tpu.memory_space<vmem>>, vector<4x128xf32>
    %c0_1 = arith.constant 0 : index
    %c0_2 = arith.constant 0 : index
    %1 = vector.load %arg2[%c0_1, %c0_2] : memref<1x128xf32, #tpu.memory_space<vmem>>, vector<1x128xf32>
    %2 = vector.broadcast %1 : vector<1x128xf32> to vector<4x128xf32>
    %3 = arith.mulf %0, %2 : vector<4x128xf32>
    %c0_3 = arith.constant 0 : index
    %c0_4 = arith.constant 0 : index
    %4 = vector.load %arg3[%c0_3, %c0_4] : memref<1x128xf32, #tpu.memory_space<vmem>>, vector<1x128xf32>
    %5 = vector.broadcast %4 : vector<1x128xf32> to vector<4x128xf32>
    %6 = arith.addf %3, %5 : vector<4x128xf32>
    %cst = arith.constant 0.000000e+00 : f32
    %7 = vector.broadcast %cst : f32 to vector<4x128xf32>
    %8 = arith.maximumf %6, %7 : vector<4x128xf32>
    %9 = arith.truncf %8 : vector<4x128xf32> to vector<4x128xbf16>
    %c0_5 = arith.constant 0 : index
    %c0_6 = arith.constant 0 : index
    %10 = vector.load %arg4[%c0_5, %c0_6] : memref<4x128xbf16, #tpu.memory_space<vmem>>, vector<4x128xbf16>
    tpu.vector_store %arg4[%c0_5, %c0_6], %9 {strides = array<i32>} : memref<4x128xbf16, #tpu.memory_space<vmem>>, vector<4x128xbf16>,
    return
  }
  func.func @transform_0(%arg0: i32) -> (i32, i32) {
    %c0_i32 = arith.constant 0 : i32
    %c0_i32_0 = arith.constant 0 : i32
    return %arg0, %c0_i32 : i32, i32
  }
  func.func @transform_1(%arg0: i32) -> (i32, i32) {
    %c0_i32 = arith.constant 0 : i32
    %c0_i32_0 = arith.constant 0 : i32
    %c0_i32_1 = arith.constant 0 : i32
    return %c0_i32, %c0_i32_0 : i32, i32
  }
  func.func @transform_2(%arg0: i32) -> (i32, i32) {
    %c0_i32 = arith.constant 0 : i32
    %c0_i32_0 = arith.constant 0 : i32
    %c0_i32_1 = arith.constant 0 : i32
    return %c0_i32, %c0_i32_0 : i32, i32
  }
  func.func @transform_3(%arg0: i32) -> (i32, i32) {
    %c0_i32 = arith.constant 0 : i32
    %c0_i32_0 = arith.constant 0 : i32
    return %arg0, %c0_i32 : i32, i32
  }
}

module attributes {stable_mosaic.version = 11 : i64} {
  func.func @_conv_stats_kernel(%arg0: i32, %arg1: memref<8x576xbf16, #tpu.memory_space<vmem>>, %arg2: memref<576x64xbf16, #tpu.memory_space<vmem>>, %arg3: memref<8x64xf32, #tpu.memory_space<vmem>>, %arg4: memref<1x1x64xf32, #tpu.memory_space<vmem>>, %arg5: memref<1x1x64xf32, #tpu.memory_space<vmem>>) attributes {dimension_semantics = [#tpu.dimension_semantics<parallel>], iteration_bounds = array<i64: 1>, scalar_prefetch = 0 : i64, scratch_operands = 0 : i64, tpu.core_type = #tpu.core_type<tc>, window_params = [{transform_indices = @transform_0, window_bounds = array<i64: 8, 576>}, {pipeline_mode = #tpu.pipeline_mode<synchronous>, transform_indices = @transform_1, window_bounds = array<i64: 576, 64>}, {transform_indices = @transform_2, window_bounds = array<i64: 8, 64>}, {transform_indices = @transform_3, window_bounds = array<i64: 1, 1, 64>}, {transform_indices = @transform_4, window_bounds = array<i64: 1, 1, 64>}]} {
    %c0 = arith.constant 0 : index
    %c0_0 = arith.constant 0 : index
    %0 = vector.load %arg1[%c0, %c0_0] : memref<8x576xbf16, #tpu.memory_space<vmem>>, vector<8x576xbf16>
    %c0_1 = arith.constant 0 : index
    %c0_2 = arith.constant 0 : index
    %1 = vector.load %arg2[%c0_1, %c0_2] : memref<576x64xbf16, #tpu.memory_space<vmem>>, vector<576x64xbf16>
    %cst = arith.constant dense<0.000000e+00> : vector<8x64xf32>
    %2 = tpu.matmul %0, %1, %cst {dimension_numbers = #tpu.dot_dimension_numbers<[1], [0], [0], [1], [0, 0, 1, 1], [], []>} : vector<8x576xbf16>, vector<576x64xbf16>, vector<8x64xf32> -> vector<8x64xf32>
    %c0_3 = arith.constant 0 : index
    %c0_4 = arith.constant 0 : index
    %3 = vector.load %arg3[%c0_3, %c0_4] : memref<8x64xf32, #tpu.memory_space<vmem>>, vector<8x64xf32>
    tpu.vector_store %arg3[%c0_3, %c0_4], %2 {strides = array<i32>} : memref<8x64xf32, #tpu.memory_space<vmem>>, vector<8x64xf32>,
    %cst_5 = arith.constant dense<0.000000e+00> : vector<64xf32>
    %4 = vector.multi_reduction <add>, %2, %cst_5 [0] : vector<8x64xf32> to vector<64xf32>
    %5 = vector.shape_cast %4 : vector<64xf32> to vector<1x64xf32>
    %6 = vector.shape_cast %5 : vector<1x64xf32> to vector<1x1x64xf32>
    %c0_6 = arith.constant 0 : index
    %c0_7 = arith.constant 0 : index
    %c0_8 = arith.constant 0 : index
    %7 = vector.load %arg4[%c0_6, %c0_7, %c0_8] : memref<1x1x64xf32, #tpu.memory_space<vmem>>, vector<1x1x64xf32>
    tpu.vector_store %arg4[%c0_6, %c0_7, %c0_8], %6 {strides = array<i32>} : memref<1x1x64xf32, #tpu.memory_space<vmem>>, vector<1x1x64xf32>,
    %8 = arith.mulf %2, %2 : vector<8x64xf32>
    %cst_9 = arith.constant dense<0.000000e+00> : vector<64xf32>
    %9 = vector.multi_reduction <add>, %8, %cst_9 [0] : vector<8x64xf32> to vector<64xf32>
    %10 = vector.shape_cast %9 : vector<64xf32> to vector<1x64xf32>
    %11 = vector.shape_cast %10 : vector<1x64xf32> to vector<1x1x64xf32>
    %c0_10 = arith.constant 0 : index
    %c0_11 = arith.constant 0 : index
    %c0_12 = arith.constant 0 : index
    %12 = vector.load %arg5[%c0_10, %c0_11, %c0_12] : memref<1x1x64xf32, #tpu.memory_space<vmem>>, vector<1x1x64xf32>
    tpu.vector_store %arg5[%c0_10, %c0_11, %c0_12], %11 {strides = array<i32>} : memref<1x1x64xf32, #tpu.memory_space<vmem>>, vector<1x1x64xf32>,
    return
  }
  func.func @transform_0(%arg0: i32) -> (i32, i32) {
    %c0_i32 = arith.constant 0 : i32
    %c0_i32_0 = arith.constant 0 : i32
    return %arg0, %c0_i32 : i32, i32
  }
  func.func @transform_1(%arg0: i32) -> (i32, i32) {
    %c0_i32 = arith.constant 0 : i32
    %c0_i32_0 = arith.constant 0 : i32
    %c0_i32_1 = arith.constant 0 : i32
    return %c0_i32, %c0_i32_0 : i32, i32
  }
  func.func @transform_2(%arg0: i32) -> (i32, i32) {
    %c0_i32 = arith.constant 0 : i32
    %c0_i32_0 = arith.constant 0 : i32
    return %arg0, %c0_i32 : i32, i32
  }
  func.func @transform_3(%arg0: i32) -> (i32, i32, i32) {
    %c0_i32 = arith.constant 0 : i32
    %c0_i32_0 = arith.constant 0 : i32
    %c0_i32_1 = arith.constant 0 : i32
    return %arg0, %c0_i32, %c0_i32_0 : i32, i32, i32
  }
  func.func @transform_4(%arg0: i32) -> (i32, i32, i32) {
    %c0_i32 = arith.constant 0 : i32
    %c0_i32_0 = arith.constant 0 : i32
    %c0_i32_1 = arith.constant 0 : i32
    return %arg0, %c0_i32, %c0_i32_0 : i32, i32, i32
  }
}

module attributes {stable_mosaic.version = 11 : i64} {
  func.func @_maxpool_kernel(%arg0: i32, %arg1: memref<2x2x1x128xbf16, #tpu.memory_space<vmem>>, %arg2: memref<2x1x64xbf16, #tpu.memory_space<vmem>>) attributes {dimension_semantics = [#tpu.dimension_semantics<parallel>], iteration_bounds = array<i64: 1>, scalar_prefetch = 0 : i64, scratch_operands = 0 : i64, tpu.core_type = #tpu.core_type<tc>, window_params = [{transform_indices = @transform_0, window_bounds = array<i64: 2, 2, 1, 128>}, {transform_indices = @transform_1, window_bounds = array<i64: 2, 1, 64>}]} {
    %c0 = arith.constant 0 : index
    %c0_0 = arith.constant 0 : index
    %c0_1 = arith.constant 0 : index
    %c0_2 = arith.constant 0 : index
    %0 = vector.load %arg1[%c0, %c0_0, %c0_1, %c0_2] : memref<2x2x1x128xbf16, #tpu.memory_space<vmem>>, vector<2x1x1x128xbf16>
    %1 = vector.shape_cast %0 : vector<2x1x1x128xbf16> to vector<2x1x128xbf16>
    %c0_3 = arith.constant 0 : index
    %c1 = arith.constant 1 : index
    %c0_4 = arith.constant 0 : index
    %c0_5 = arith.constant 0 : index
    %2 = vector.load %arg1[%c0_3, %c1, %c0_4, %c0_5] : memref<2x2x1x128xbf16, #tpu.memory_space<vmem>>, vector<2x1x1x128xbf16>
    %3 = vector.shape_cast %2 : vector<2x1x1x128xbf16> to vector<2x1x128xbf16>
    %4 = arith.maximumf %1, %3 : vector<2x1x128xbf16>
    %5 = vector.extract_strided_slice %4 {offsets = [0, 0, 0], sizes = [2, 1, 64], strides = [1, 1, 1]} : vector<2x1x128xbf16> to vector<2x1x64xbf16>
    %6 = vector.extract_strided_slice %4 {offsets = [0, 0, 64], sizes = [2, 1, 64], strides = [1, 1, 1]} : vector<2x1x128xbf16> to vector<2x1x64xbf16>
    %7 = arith.maximumf %5, %6 : vector<2x1x64xbf16>
    %c0_6 = arith.constant 0 : index
    %c0_7 = arith.constant 0 : index
    %c0_8 = arith.constant 0 : index
    %8 = vector.load %arg2[%c0_6, %c0_7, %c0_8] : memref<2x1x64xbf16, #tpu.memory_space<vmem>>, vector<2x1x64xbf16>
    tpu.vector_store %arg2[%c0_6, %c0_7, %c0_8], %7 {strides = array<i32>} : memref<2x1x64xbf16, #tpu.memory_space<vmem>>, vector<2x1x64xbf16>,
    return
  }
  func.func @transform_0(%arg0: i32) -> (i32, i32, i32, i32) {
    %c0_i32 = arith.constant 0 : i32
    %c0_i32_0 = arith.constant 0 : i32
    %c0_i32_1 = arith.constant 0 : i32
    %c0_i32_2 = arith.constant 0 : i32
    return %arg0, %c0_i32, %c0_i32_0, %c0_i32_1 : i32, i32, i32, i32
  }
  func.func @transform_1(%arg0: i32) -> (i32, i32, i32) {
    %c0_i32 = arith.constant 0 : i32
    %c0_i32_0 = arith.constant 0 : i32
    %c0_i32_1 = arith.constant 0 : i32
    return %arg0, %c0_i32, %c0_i32_0 : i32, i32, i32
  }
}

module attributes {stable_mosaic.version = 11 : i64} {
  func.func @_conv_stats_kernel(%arg0: i32, %arg1: memref<2x576xbf16, #tpu.memory_space<vmem>>, %arg2: memref<576x128xbf16, #tpu.memory_space<vmem>>, %arg3: memref<2x128xf32, #tpu.memory_space<vmem>>, %arg4: memref<1x1x128xf32, #tpu.memory_space<vmem>>, %arg5: memref<1x1x128xf32, #tpu.memory_space<vmem>>) attributes {dimension_semantics = [#tpu.dimension_semantics<parallel>], iteration_bounds = array<i64: 1>, scalar_prefetch = 0 : i64, scratch_operands = 0 : i64, tpu.core_type = #tpu.core_type<tc>, window_params = [{transform_indices = @transform_0, window_bounds = array<i64: 2, 576>}, {pipeline_mode = #tpu.pipeline_mode<synchronous>, transform_indices = @transform_1, window_bounds = array<i64: 576, 128>}, {transform_indices = @transform_2, window_bounds = array<i64: 2, 128>}, {transform_indices = @transform_3, window_bounds = array<i64: 1, 1, 128>}, {transform_indices = @transform_4, window_bounds = array<i64: 1, 1, 128>}]} {
    %c0 = arith.constant 0 : index
    %c0_0 = arith.constant 0 : index
    %0 = vector.load %arg1[%c0, %c0_0] : memref<2x576xbf16, #tpu.memory_space<vmem>>, vector<2x576xbf16>
    %c0_1 = arith.constant 0 : index
    %c0_2 = arith.constant 0 : index
    %1 = vector.load %arg2[%c0_1, %c0_2] : memref<576x128xbf16, #tpu.memory_space<vmem>>, vector<576x128xbf16>
    %cst = arith.constant dense<0.000000e+00> : vector<2x128xf32>
    %2 = tpu.matmul %0, %1, %cst {dimension_numbers = #tpu.dot_dimension_numbers<[1], [0], [0], [1], [0, 0, 1, 1], [], []>} : vector<2x576xbf16>, vector<576x128xbf16>, vector<2x128xf32> -> vector<2x128xf32>
    %c0_3 = arith.constant 0 : index
    %c0_4 = arith.constant 0 : index
    %3 = vector.load %arg3[%c0_3, %c0_4] : memref<2x128xf32, #tpu.memory_space<vmem>>, vector<2x128xf32>
    tpu.vector_store %arg3[%c0_3, %c0_4], %2 {strides = array<i32>} : memref<2x128xf32, #tpu.memory_space<vmem>>, vector<2x128xf32>,
    %cst_5 = arith.constant dense<0.000000e+00> : vector<128xf32>
    %4 = vector.multi_reduction <add>, %2, %cst_5 [0] : vector<2x128xf32> to vector<128xf32>
    %5 = vector.shape_cast %4 : vector<128xf32> to vector<1x128xf32>
    %6 = vector.shape_cast %5 : vector<1x128xf32> to vector<1x1x128xf32>
    %c0_6 = arith.constant 0 : index
    %c0_7 = arith.constant 0 : index
    %c0_8 = arith.constant 0 : index
    %7 = vector.load %arg4[%c0_6, %c0_7, %c0_8] : memref<1x1x128xf32, #tpu.memory_space<vmem>>, vector<1x1x128xf32>
    tpu.vector_store %arg4[%c0_6, %c0_7, %c0_8], %6 {strides = array<i32>} : memref<1x1x128xf32, #tpu.memory_space<vmem>>, vector<1x1x128xf32>,
    %8 = arith.mulf %2, %2 : vector<2x128xf32>
    %cst_9 = arith.constant dense<0.000000e+00> : vector<128xf32>
    %9 = vector.multi_reduction <add>, %8, %cst_9 [0] : vector<2x128xf32> to vector<128xf32>
    %10 = vector.shape_cast %9 : vector<128xf32> to vector<1x128xf32>
    %11 = vector.shape_cast %10 : vector<1x128xf32> to vector<1x1x128xf32>
    %c0_10 = arith.constant 0 : index
    %c0_11 = arith.constant 0 : index
    %c0_12 = arith.constant 0 : index
    %12 = vector.load %arg5[%c0_10, %c0_11, %c0_12] : memref<1x1x128xf32, #tpu.memory_space<vmem>>, vector<1x1x128xf32>
    tpu.vector_store %arg5[%c0_10, %c0_11, %c0_12], %11 {strides = array<i32>} : memref<1x1x128xf32, #tpu.memory_space<vmem>>, vector<1x1x128xf32>,
    return
  }
  func.func @transform_0(%arg0: i32) -> (i32, i32) {
    %c0_i32 = arith.constant 0 : i32
    %c0_i32_0 = arith.constant 0 : i32
    return %arg0, %c0_i32 : i32, i32
  }
  func.func @transform_1(%arg0: i32) -> (i32, i32) {
    %c0_i32 = arith.constant 0 : i32
    %c0_i32_0 = arith.constant 0 : i32
    %c0_i32_1 = arith.constant 0 : i32
    return %c0_i32, %c0_i32_0 : i32, i32
  }
  func.func @transform_2(%arg0: i32) -> (i32, i32) {
    %c0_i32 = arith.constant 0 : i32
    %c0_i32_0 = arith.constant 0 : i32
    return %arg0, %c0_i32 : i32, i32
  }
  func.func @transform_3(%arg0: i32) -> (i32, i32, i32) {
    %c0_i32 = arith.constant 0 : i32
    %c0_i32_0 = arith.constant 0 : i32
    %c0_i32_1 = arith.constant 0 : i32
    return %arg0, %c0_i32, %c0_i32_0 : i32, i32, i32
  }
  func.func @transform_4(%arg0: i32) -> (i32, i32, i32) {
    %c0_i32 = arith.constant 0 : i32
    %c0_i32_0 = arith.constant 0 : i32
    %c0_i32_1 = arith.constant 0 : i32
    return %arg0, %c0_i32, %c0_i32_0 : i32, i32, i32
  }
}

module attributes {stable_mosaic.version = 11 : i64} {
  func.func @_scale_shift_relu_kernel(%arg0: i32, %arg1: memref<2x128xf32, #tpu.memory_space<vmem>>, %arg2: memref<1x128xf32, #tpu.memory_space<vmem>>, %arg3: memref<1x128xf32, #tpu.memory_space<vmem>>, %arg4: memref<2x128xbf16, #tpu.memory_space<vmem>>) attributes {dimension_semantics = [#tpu.dimension_semantics<parallel>], iteration_bounds = array<i64: 1>, scalar_prefetch = 0 : i64, scratch_operands = 0 : i64, tpu.core_type = #tpu.core_type<tc>, window_params = [{transform_indices = @transform_0, window_bounds = array<i64: 2, 128>}, {pipeline_mode = #tpu.pipeline_mode<synchronous>, transform_indices = @transform_1, window_bounds = array<i64: 1, 128>}, {pipeline_mode = #tpu.pipeline_mode<synchronous>, transform_indices = @transform_2, window_bounds = array<i64: 1, 128>}, {transform_indices = @transform_3, window_bounds = array<i64: 2, 128>}]} {
    %c0 = arith.constant 0 : index
    %c0_0 = arith.constant 0 : index
    %0 = vector.load %arg1[%c0, %c0_0] : memref<2x128xf32, #tpu.memory_space<vmem>>, vector<2x128xf32>
    %c0_1 = arith.constant 0 : index
    %c0_2 = arith.constant 0 : index
    %1 = vector.load %arg2[%c0_1, %c0_2] : memref<1x128xf32, #tpu.memory_space<vmem>>, vector<1x128xf32>
    %2 = vector.broadcast %1 : vector<1x128xf32> to vector<2x128xf32>
    %3 = arith.mulf %0, %2 : vector<2x128xf32>
    %c0_3 = arith.constant 0 : index
    %c0_4 = arith.constant 0 : index
    %4 = vector.load %arg3[%c0_3, %c0_4] : memref<1x128xf32, #tpu.memory_space<vmem>>, vector<1x128xf32>
    %5 = vector.broadcast %4 : vector<1x128xf32> to vector<2x128xf32>
    %6 = arith.addf %3, %5 : vector<2x128xf32>
    %cst = arith.constant 0.000000e+00 : f32
    %7 = vector.broadcast %cst : f32 to vector<2x128xf32>
    %8 = arith.maximumf %6, %7 : vector<2x128xf32>
    %9 = arith.truncf %8 : vector<2x128xf32> to vector<2x128xbf16>
    %c0_5 = arith.constant 0 : index
    %c0_6 = arith.constant 0 : index
    %10 = vector.load %arg4[%c0_5, %c0_6] : memref<2x128xbf16, #tpu.memory_space<vmem>>, vector<2x128xbf16>
    tpu.vector_store %arg4[%c0_5, %c0_6], %9 {strides = array<i32>} : memref<2x128xbf16, #tpu.memory_space<vmem>>, vector<2x128xbf16>,
    return
  }
  func.func @transform_0(%arg0: i32) -> (i32, i32) {
    %c0_i32 = arith.constant 0 : i32
    %c0_i32_0 = arith.constant 0 : i32
    return %arg0, %c0_i32 : i32, i32
  }
  func.func @transform_1(%arg0: i32) -> (i32, i32) {
    %c0_i32 = arith.constant 0 : i32
    %c0_i32_0 = arith.constant 0 : i32
    %c0_i32_1 = arith.constant 0 : i32
    return %c0_i32, %c0_i32_0 : i32, i32
  }
  func.func @transform_2(%arg0: i32) -> (i32, i32) {
    %c0_i32 = arith.constant 0 : i32
    %c0_i32_0 = arith.constant 0 : i32
    %c0_i32_1 = arith.constant 0 : i32
    return %c0_i32, %c0_i32_0 : i32, i32
  }
  func.func @transform_3(%arg0: i32) -> (i32, i32) {
    %c0_i32 = arith.constant 0 : i32
    %c0_i32_0 = arith.constant 0 : i32
    return %arg0, %c0_i32 : i32, i32
  }
}

module attributes {stable_mosaic.version = 11 : i64} {
  func.func @_conv_stats_kernel(%arg0: i32, %arg1: memref<2x1152xbf16, #tpu.memory_space<vmem>>, %arg2: memref<1152x128xbf16, #tpu.memory_space<vmem>>, %arg3: memref<2x128xf32, #tpu.memory_space<vmem>>, %arg4: memref<1x1x128xf32, #tpu.memory_space<vmem>>, %arg5: memref<1x1x128xf32, #tpu.memory_space<vmem>>) attributes {dimension_semantics = [#tpu.dimension_semantics<parallel>], iteration_bounds = array<i64: 1>, scalar_prefetch = 0 : i64, scratch_operands = 0 : i64, tpu.core_type = #tpu.core_type<tc>, window_params = [{transform_indices = @transform_0, window_bounds = array<i64: 2, 1152>}, {pipeline_mode = #tpu.pipeline_mode<synchronous>, transform_indices = @transform_1, window_bounds = array<i64: 1152, 128>}, {transform_indices = @transform_2, window_bounds = array<i64: 2, 128>}, {transform_indices = @transform_3, window_bounds = array<i64: 1, 1, 128>}, {transform_indices = @transform_4, window_bounds = array<i64: 1, 1, 128>}]} {
    %c0 = arith.constant 0 : index
    %c0_0 = arith.constant 0 : index
    %0 = vector.load %arg1[%c0, %c0_0] : memref<2x1152xbf16, #tpu.memory_space<vmem>>, vector<2x1152xbf16>
    %c0_1 = arith.constant 0 : index
    %c0_2 = arith.constant 0 : index
    %1 = vector.load %arg2[%c0_1, %c0_2] : memref<1152x128xbf16, #tpu.memory_space<vmem>>, vector<1152x128xbf16>
    %cst = arith.constant dense<0.000000e+00> : vector<2x128xf32>
    %2 = tpu.matmul %0, %1, %cst {dimension_numbers = #tpu.dot_dimension_numbers<[1], [0], [0], [1], [0, 0, 1, 1], [], []>} : vector<2x1152xbf16>, vector<1152x128xbf16>, vector<2x128xf32> -> vector<2x128xf32>
    %c0_3 = arith.constant 0 : index
    %c0_4 = arith.constant 0 : index
    %3 = vector.load %arg3[%c0_3, %c0_4] : memref<2x128xf32, #tpu.memory_space<vmem>>, vector<2x128xf32>
    tpu.vector_store %arg3[%c0_3, %c0_4], %2 {strides = array<i32>} : memref<2x128xf32, #tpu.memory_space<vmem>>, vector<2x128xf32>,
    %cst_5 = arith.constant dense<0.000000e+00> : vector<128xf32>
    %4 = vector.multi_reduction <add>, %2, %cst_5 [0] : vector<2x128xf32> to vector<128xf32>
    %5 = vector.shape_cast %4 : vector<128xf32> to vector<1x128xf32>
    %6 = vector.shape_cast %5 : vector<1x128xf32> to vector<1x1x128xf32>
    %c0_6 = arith.constant 0 : index
    %c0_7 = arith.constant 0 : index
    %c0_8 = arith.constant 0 : index
    %7 = vector.load %arg4[%c0_6, %c0_7, %c0_8] : memref<1x1x128xf32, #tpu.memory_space<vmem>>, vector<1x1x128xf32>
    tpu.vector_store %arg4[%c0_6, %c0_7, %c0_8], %6 {strides = array<i32>} : memref<1x1x128xf32, #tpu.memory_space<vmem>>, vector<1x1x128xf32>,
    %8 = arith.mulf %2, %2 : vector<2x128xf32>
    %cst_9 = arith.constant dense<0.000000e+00> : vector<128xf32>
    %9 = vector.multi_reduction <add>, %8, %cst_9 [0] : vector<2x128xf32> to vector<128xf32>
    %10 = vector.shape_cast %9 : vector<128xf32> to vector<1x128xf32>
    %11 = vector.shape_cast %10 : vector<1x128xf32> to vector<1x1x128xf32>
    %c0_10 = arith.constant 0 : index
    %c0_11 = arith.constant 0 : index
    %c0_12 = arith.constant 0 : index
    %12 = vector.load %arg5[%c0_10, %c0_11, %c0_12] : memref<1x1x128xf32, #tpu.memory_space<vmem>>, vector<1x1x128xf32>
    tpu.vector_store %arg5[%c0_10, %c0_11, %c0_12], %11 {strides = array<i32>} : memref<1x1x128xf32, #tpu.memory_space<vmem>>, vector<1x1x128xf32>,
    return
  }
  func.func @transform_0(%arg0: i32) -> (i32, i32) {
    %c0_i32 = arith.constant 0 : i32
    %c0_i32_0 = arith.constant 0 : i32
    return %arg0, %c0_i32 : i32, i32
  }
  func.func @transform_1(%arg0: i32) -> (i32, i32) {
    %c0_i32 = arith.constant 0 : i32
    %c0_i32_0 = arith.constant 0 : i32
    %c0_i32_1 = arith.constant 0 : i32
    return %c0_i32, %c0_i32_0 : i32, i32
  }
  func.func @transform_2(%arg0: i32) -> (i32, i32) {
    %c0_i32 = arith.constant 0 : i32
    %c0_i32_0 = arith.constant 0 : i32
    return %arg0, %c0_i32 : i32, i32
  }
  func.func @transform_3(%arg0: i32) -> (i32, i32, i32) {
    %c0_i32 = arith.constant 0 : i32
    %c0_i32_0 = arith.constant 0 : i32
    %c0_i32_1 = arith.constant 0 : i32
    return %arg0, %c0_i32, %c0_i32_0 : i32, i32, i32
  }
  func.func @transform_4(%arg0: i32) -> (i32, i32, i32) {
    %c0_i32 = arith.constant 0 : i32
    %c0_i32_0 = arith.constant 0 : i32
    %c0_i32_1 = arith.constant 0 : i32
    return %arg0, %c0_i32, %c0_i32_0 : i32, i32, i32
  }
}

module attributes {stable_mosaic.version = 11 : i64} {
  func.func @_matmul_kernel(%arg0: i32, %arg1: memref<2x128xbf16, #tpu.memory_space<vmem>>, %arg2: memref<128x256xbf16, #tpu.memory_space<vmem>>, %arg3: memref<2x256xbf16, #tpu.memory_space<vmem>>) attributes {dimension_semantics = [#tpu.dimension_semantics<parallel>], iteration_bounds = array<i64: 1>, scalar_prefetch = 0 : i64, scratch_operands = 0 : i64, tpu.core_type = #tpu.core_type<tc>, window_params = [{transform_indices = @transform_0, window_bounds = array<i64: 2, 128>}, {pipeline_mode = #tpu.pipeline_mode<synchronous>, transform_indices = @transform_1, window_bounds = array<i64: 128, 256>}, {transform_indices = @transform_2, window_bounds = array<i64: 2, 256>}]} {
    %c0 = arith.constant 0 : index
    %c0_0 = arith.constant 0 : index
    %0 = vector.load %arg1[%c0, %c0_0] : memref<2x128xbf16, #tpu.memory_space<vmem>>, vector<2x128xbf16>
    %c0_1 = arith.constant 0 : index
    %c0_2 = arith.constant 0 : index
    %1 = vector.load %arg2[%c0_1, %c0_2] : memref<128x256xbf16, #tpu.memory_space<vmem>>, vector<128x256xbf16>
    %cst = arith.constant dense<0.000000e+00> : vector<2x256xf32>
    %2 = tpu.matmul %0, %1, %cst {dimension_numbers = #tpu.dot_dimension_numbers<[1], [0], [0], [1], [0, 0, 1, 1], [], []>} : vector<2x128xbf16>, vector<128x256xbf16>, vector<2x256xf32> -> vector<2x256xf32>
    %3 = arith.truncf %2 : vector<2x256xf32> to vector<2x256xbf16>
    %c0_3 = arith.constant 0 : index
    %c0_4 = arith.constant 0 : index
    %4 = vector.load %arg3[%c0_3, %c0_4] : memref<2x256xbf16, #tpu.memory_space<vmem>>, vector<2x256xbf16>
    tpu.vector_store %arg3[%c0_3, %c0_4], %3 {strides = array<i32>} : memref<2x256xbf16, #tpu.memory_space<vmem>>, vector<2x256xbf16>,
    return
  }
  func.func @transform_0(%arg0: i32) -> (i32, i32) {
    %c0_i32 = arith.constant 0 : i32
    %c0_i32_0 = arith.constant 0 : i32
    return %arg0, %c0_i32 : i32, i32
  }
  func.func @transform_1(%arg0: i32) -> (i32, i32) {
    %c0_i32 = arith.constant 0 : i32
    %c0_i32_0 = arith.constant 0 : i32
    %c0_i32_1 = arith.constant 0 : i32
    return %c0_i32, %c0_i32_0 : i32, i32
  }
  func.func @transform_2(%arg0: i32) -> (i32, i32) {
    %c0_i32 = arith.constant 0 : i32
    %c0_i32_0 = arith.constant 0 : i32
    return %arg0, %c0_i32 : i32, i32
  }
}

module attributes {stable_mosaic.version = 11 : i64} {
  func.func @_conv_stats_kernel(%arg0: i32, %arg1: memref<8x1152xbf16, #tpu.memory_space<vmem>>, %arg2: memref<1152x64xbf16, #tpu.memory_space<vmem>>, %arg3: memref<8x64xf32, #tpu.memory_space<vmem>>, %arg4: memref<1x1x64xf32, #tpu.memory_space<vmem>>, %arg5: memref<1x1x64xf32, #tpu.memory_space<vmem>>) attributes {dimension_semantics = [#tpu.dimension_semantics<parallel>], iteration_bounds = array<i64: 1>, scalar_prefetch = 0 : i64, scratch_operands = 0 : i64, tpu.core_type = #tpu.core_type<tc>, window_params = [{transform_indices = @transform_0, window_bounds = array<i64: 8, 1152>}, {pipeline_mode = #tpu.pipeline_mode<synchronous>, transform_indices = @transform_1, window_bounds = array<i64: 1152, 64>}, {transform_indices = @transform_2, window_bounds = array<i64: 8, 64>}, {transform_indices = @transform_3, window_bounds = array<i64: 1, 1, 64>}, {transform_indices = @transform_4, window_bounds = array<i64: 1, 1, 64>}]} {
    %c0 = arith.constant 0 : index
    %c0_0 = arith.constant 0 : index
    %0 = vector.load %arg1[%c0, %c0_0] : memref<8x1152xbf16, #tpu.memory_space<vmem>>, vector<8x1152xbf16>
    %c0_1 = arith.constant 0 : index
    %c0_2 = arith.constant 0 : index
    %1 = vector.load %arg2[%c0_1, %c0_2] : memref<1152x64xbf16, #tpu.memory_space<vmem>>, vector<1152x64xbf16>
    %cst = arith.constant dense<0.000000e+00> : vector<8x64xf32>
    %2 = tpu.matmul %0, %1, %cst {dimension_numbers = #tpu.dot_dimension_numbers<[1], [0], [0], [1], [0, 0, 1, 1], [], []>} : vector<8x1152xbf16>, vector<1152x64xbf16>, vector<8x64xf32> -> vector<8x64xf32>
    %c0_3 = arith.constant 0 : index
    %c0_4 = arith.constant 0 : index
    %3 = vector.load %arg3[%c0_3, %c0_4] : memref<8x64xf32, #tpu.memory_space<vmem>>, vector<8x64xf32>
    tpu.vector_store %arg3[%c0_3, %c0_4], %2 {strides = array<i32>} : memref<8x64xf32, #tpu.memory_space<vmem>>, vector<8x64xf32>,
    %cst_5 = arith.constant dense<0.000000e+00> : vector<64xf32>
    %4 = vector.multi_reduction <add>, %2, %cst_5 [0] : vector<8x64xf32> to vector<64xf32>
    %5 = vector.shape_cast %4 : vector<64xf32> to vector<1x64xf32>
    %6 = vector.shape_cast %5 : vector<1x64xf32> to vector<1x1x64xf32>
    %c0_6 = arith.constant 0 : index
    %c0_7 = arith.constant 0 : index
    %c0_8 = arith.constant 0 : index
    %7 = vector.load %arg4[%c0_6, %c0_7, %c0_8] : memref<1x1x64xf32, #tpu.memory_space<vmem>>, vector<1x1x64xf32>
    tpu.vector_store %arg4[%c0_6, %c0_7, %c0_8], %6 {strides = array<i32>} : memref<1x1x64xf32, #tpu.memory_space<vmem>>, vector<1x1x64xf32>,
    %8 = arith.mulf %2, %2 : vector<8x64xf32>
    %cst_9 = arith.constant dense<0.000000e+00> : vector<64xf32>
    %9 = vector.multi_reduction <add>, %8, %cst_9 [0] : vector<8x64xf32> to vector<64xf32>
    %10 = vector.shape_cast %9 : vector<64xf32> to vector<1x64xf32>
    %11 = vector.shape_cast %10 : vector<1x64xf32> to vector<1x1x64xf32>
    %c0_10 = arith.constant 0 : index
    %c0_11 = arith.constant 0 : index
    %c0_12 = arith.constant 0 : index
    %12 = vector.load %arg5[%c0_10, %c0_11, %c0_12] : memref<1x1x64xf32, #tpu.memory_space<vmem>>, vector<1x1x64xf32>
    tpu.vector_store %arg5[%c0_10, %c0_11, %c0_12], %11 {strides = array<i32>} : memref<1x1x64xf32, #tpu.memory_space<vmem>>, vector<1x1x64xf32>,
    return
  }
  func.func @transform_0(%arg0: i32) -> (i32, i32) {
    %c0_i32 = arith.constant 0 : i32
    %c0_i32_0 = arith.constant 0 : i32
    return %arg0, %c0_i32 : i32, i32
  }
  func.func @transform_1(%arg0: i32) -> (i32, i32) {
    %c0_i32 = arith.constant 0 : i32
    %c0_i32_0 = arith.constant 0 : i32
    %c0_i32_1 = arith.constant 0 : i32
    return %c0_i32, %c0_i32_0 : i32, i32
  }
  func.func @transform_2(%arg0: i32) -> (i32, i32) {
    %c0_i32 = arith.constant 0 : i32
    %c0_i32_0 = arith.constant 0 : i32
    return %arg0, %c0_i32 : i32, i32
  }
  func.func @transform_3(%arg0: i32) -> (i32, i32, i32) {
    %c0_i32 = arith.constant 0 : i32
    %c0_i32_0 = arith.constant 0 : i32
    %c0_i32_1 = arith.constant 0 : i32
    return %arg0, %c0_i32, %c0_i32_0 : i32, i32, i32
  }
  func.func @transform_4(%arg0: i32) -> (i32, i32, i32) {
    %c0_i32 = arith.constant 0 : i32
    %c0_i32_0 = arith.constant 0 : i32
    %c0_i32_1 = arith.constant 0 : i32
    return %arg0, %c0_i32, %c0_i32_0 : i32, i32, i32
  }
}

module attributes {stable_mosaic.version = 11 : i64} {
  func.func @_matmul_kernel(%arg0: i32, %arg1: memref<8x64xbf16, #tpu.memory_space<vmem>>, %arg2: memref<64x128xbf16, #tpu.memory_space<vmem>>, %arg3: memref<8x128xbf16, #tpu.memory_space<vmem>>) attributes {dimension_semantics = [#tpu.dimension_semantics<parallel>], iteration_bounds = array<i64: 1>, scalar_prefetch = 0 : i64, scratch_operands = 0 : i64, tpu.core_type = #tpu.core_type<tc>, window_params = [{transform_indices = @transform_0, window_bounds = array<i64: 8, 64>}, {pipeline_mode = #tpu.pipeline_mode<synchronous>, transform_indices = @transform_1, window_bounds = array<i64: 64, 128>}, {transform_indices = @transform_2, window_bounds = array<i64: 8, 128>}]} {
    %c0 = arith.constant 0 : index
    %c0_0 = arith.constant 0 : index
    %0 = vector.load %arg1[%c0, %c0_0] : memref<8x64xbf16, #tpu.memory_space<vmem>>, vector<8x64xbf16>
    %c0_1 = arith.constant 0 : index
    %c0_2 = arith.constant 0 : index
    %1 = vector.load %arg2[%c0_1, %c0_2] : memref<64x128xbf16, #tpu.memory_space<vmem>>, vector<64x128xbf16>
    %cst = arith.constant dense<0.000000e+00> : vector<8x128xf32>
    %2 = tpu.matmul %0, %1, %cst {dimension_numbers = #tpu.dot_dimension_numbers<[1], [0], [0], [1], [0, 0, 1, 1], [], []>} : vector<8x64xbf16>, vector<64x128xbf16>, vector<8x128xf32> -> vector<8x128xf32>
    %3 = arith.truncf %2 : vector<8x128xf32> to vector<8x128xbf16>
    %c0_3 = arith.constant 0 : index
    %c0_4 = arith.constant 0 : index
    %4 = vector.load %arg3[%c0_3, %c0_4] : memref<8x128xbf16, #tpu.memory_space<vmem>>, vector<8x128xbf16>
    tpu.vector_store %arg3[%c0_3, %c0_4], %3 {strides = array<i32>} : memref<8x128xbf16, #tpu.memory_space<vmem>>, vector<8x128xbf16>,
    return
  }
  func.func @transform_0(%arg0: i32) -> (i32, i32) {
    %c0_i32 = arith.constant 0 : i32
    %c0_i32_0 = arith.constant 0 : i32
    return %arg0, %c0_i32 : i32, i32
  }
  func.func @transform_1(%arg0: i32) -> (i32, i32) {
    %c0_i32 = arith.constant 0 : i32
    %c0_i32_0 = arith.constant 0 : i32
    %c0_i32_1 = arith.constant 0 : i32
    return %c0_i32, %c0_i32_0 : i32, i32
  }
  func.func @transform_2(%arg0: i32) -> (i32, i32) {
    %c0_i32 = arith.constant 0 : i32
    %c0_i32_0 = arith.constant 0 : i32
    return %arg0, %c0_i32 : i32, i32
  }
}

module attributes {stable_mosaic.version = 11 : i64} {
  func.func @_conv_stats_kernel(%arg0: i32, %arg1: memref<32x576xbf16, #tpu.memory_space<vmem>>, %arg2: memref<576x32xbf16, #tpu.memory_space<vmem>>, %arg3: memref<32x32xf32, #tpu.memory_space<vmem>>, %arg4: memref<1x1x32xf32, #tpu.memory_space<vmem>>, %arg5: memref<1x1x32xf32, #tpu.memory_space<vmem>>) attributes {dimension_semantics = [#tpu.dimension_semantics<parallel>], iteration_bounds = array<i64: 1>, scalar_prefetch = 0 : i64, scratch_operands = 0 : i64, tpu.core_type = #tpu.core_type<tc>, window_params = [{transform_indices = @transform_0, window_bounds = array<i64: 32, 576>}, {pipeline_mode = #tpu.pipeline_mode<synchronous>, transform_indices = @transform_1, window_bounds = array<i64: 576, 32>}, {transform_indices = @transform_2, window_bounds = array<i64: 32, 32>}, {transform_indices = @transform_3, window_bounds = array<i64: 1, 1, 32>}, {transform_indices = @transform_4, window_bounds = array<i64: 1, 1, 32>}]} {
    %c0 = arith.constant 0 : index
    %c0_0 = arith.constant 0 : index
    %0 = vector.load %arg1[%c0, %c0_0] : memref<32x576xbf16, #tpu.memory_space<vmem>>, vector<32x576xbf16>
    %c0_1 = arith.constant 0 : index
    %c0_2 = arith.constant 0 : index
    %1 = vector.load %arg2[%c0_1, %c0_2] : memref<576x32xbf16, #tpu.memory_space<vmem>>, vector<576x32xbf16>
    %cst = arith.constant dense<0.000000e+00> : vector<32x32xf32>
    %2 = tpu.matmul %0, %1, %cst {dimension_numbers = #tpu.dot_dimension_numbers<[1], [0], [0], [1], [0, 0, 1, 1], [], []>} : vector<32x576xbf16>, vector<576x32xbf16>, vector<32x32xf32> -> vector<32x32xf32>
    %c0_3 = arith.constant 0 : index
    %c0_4 = arith.constant 0 : index
    %3 = vector.load %arg3[%c0_3, %c0_4] : memref<32x32xf32, #tpu.memory_space<vmem>>, vector<32x32xf32>
    tpu.vector_store %arg3[%c0_3, %c0_4], %2 {strides = array<i32>} : memref<32x32xf32, #tpu.memory_space<vmem>>, vector<32x32xf32>,
    %cst_5 = arith.constant dense<0.000000e+00> : vector<32xf32>
    %4 = vector.multi_reduction <add>, %2, %cst_5 [0] : vector<32x32xf32> to vector<32xf32>
    %5 = vector.shape_cast %4 : vector<32xf32> to vector<1x32xf32>
    %6 = vector.shape_cast %5 : vector<1x32xf32> to vector<1x1x32xf32>
    %c0_6 = arith.constant 0 : index
    %c0_7 = arith.constant 0 : index
    %c0_8 = arith.constant 0 : index
    %7 = vector.load %arg4[%c0_6, %c0_7, %c0_8] : memref<1x1x32xf32, #tpu.memory_space<vmem>>, vector<1x1x32xf32>
    tpu.vector_store %arg4[%c0_6, %c0_7, %c0_8], %6 {strides = array<i32>} : memref<1x1x32xf32, #tpu.memory_space<vmem>>, vector<1x1x32xf32>,
    %8 = arith.mulf %2, %2 : vector<32x32xf32>
    %cst_9 = arith.constant dense<0.000000e+00> : vector<32xf32>
    %9 = vector.multi_reduction <add>, %8, %cst_9 [0] : vector<32x32xf32> to vector<32xf32>
    %10 = vector.shape_cast %9 : vector<32xf32> to vector<1x32xf32>
    %11 = vector.shape_cast %10 : vector<1x32xf32> to vector<1x1x32xf32>
    %c0_10 = arith.constant 0 : index
    %c0_11 = arith.constant 0 : index
    %c0_12 = arith.constant 0 : index
    %12 = vector.load %arg5[%c0_10, %c0_11, %c0_12] : memref<1x1x32xf32, #tpu.memory_space<vmem>>, vector<1x1x32xf32>
    tpu.vector_store %arg5[%c0_10, %c0_11, %c0_12], %11 {strides = array<i32>} : memref<1x1x32xf32, #tpu.memory_space<vmem>>, vector<1x1x32xf32>,
    return
  }
  func.func @transform_0(%arg0: i32) -> (i32, i32) {
    %c0_i32 = arith.constant 0 : i32
    %c0_i32_0 = arith.constant 0 : i32
    return %arg0, %c0_i32 : i32, i32
  }
  func.func @transform_1(%arg0: i32) -> (i32, i32) {
    %c0_i32 = arith.constant 0 : i32
    %c0_i32_0 = arith.constant 0 : i32
    %c0_i32_1 = arith.constant 0 : i32
    return %c0_i32, %c0_i32_0 : i32, i32
  }
  func.func @transform_2(%arg0: i32) -> (i32, i32) {
    %c0_i32 = arith.constant 0 : i32
    %c0_i32_0 = arith.constant 0 : i32
    return %arg0, %c0_i32 : i32, i32
  }
  func.func @transform_3(%arg0: i32) -> (i32, i32, i32) {
    %c0_i32 = arith.constant 0 : i32
    %c0_i32_0 = arith.constant 0 : i32
    %c0_i32_1 = arith.constant 0 : i32
    return %arg0, %c0_i32, %c0_i32_0 : i32, i32, i32
  }
  func.func @transform_4(%arg0: i32) -> (i32, i32, i32) {
    %c0_i32 = arith.constant 0 : i32
    %c0_i32_0 = arith.constant 0 : i32
    %c0_i32_1 = arith.constant 0 : i32
    return %arg0, %c0_i32, %c0_i32_0 : i32, i32, i32
  }
}

module attributes {stable_mosaic.version = 11 : i64} {
  func.func @_matmul_kernel(%arg0: i32, %arg1: memref<32x32xbf16, #tpu.memory_space<vmem>>, %arg2: memref<32x64xbf16, #tpu.memory_space<vmem>>, %arg3: memref<32x64xbf16, #tpu.memory_space<vmem>>) attributes {dimension_semantics = [#tpu.dimension_semantics<parallel>], iteration_bounds = array<i64: 1>, scalar_prefetch = 0 : i64, scratch_operands = 0 : i64, tpu.core_type = #tpu.core_type<tc>, window_params = [{transform_indices = @transform_0, window_bounds = array<i64: 32, 32>}, {pipeline_mode = #tpu.pipeline_mode<synchronous>, transform_indices = @transform_1, window_bounds = array<i64: 32, 64>}, {transform_indices = @transform_2, window_bounds = array<i64: 32, 64>}]} {
    %c0 = arith.constant 0 : index
    %c0_0 = arith.constant 0 : index
    %0 = vector.load %arg1[%c0, %c0_0] : memref<32x32xbf16, #tpu.memory_space<vmem>>, vector<32x32xbf16>
    %c0_1 = arith.constant 0 : index
    %c0_2 = arith.constant 0 : index
    %1 = vector.load %arg2[%c0_1, %c0_2] : memref<32x64xbf16, #tpu.memory_space<vmem>>, vector<32x64xbf16>
    %cst = arith.constant dense<0.000000e+00> : vector<32x64xf32>
    %2 = tpu.matmul %0, %1, %cst {dimension_numbers = #tpu.dot_dimension_numbers<[1], [0], [0], [1], [0, 0, 1, 1], [], []>} : vector<32x32xbf16>, vector<32x64xbf16>, vector<32x64xf32> -> vector<32x64xf32>
    %3 = arith.truncf %2 : vector<32x64xf32> to vector<32x64xbf16>
    %c0_3 = arith.constant 0 : index
    %c0_4 = arith.constant 0 : index
    %4 = vector.load %arg3[%c0_3, %c0_4] : memref<32x64xbf16, #tpu.memory_space<vmem>>, vector<32x64xbf16>
    tpu.vector_store %arg3[%c0_3, %c0_4], %3 {strides = array<i32>} : memref<32x64xbf16, #tpu.memory_space<vmem>>, vector<32x64xbf16>,
    return
  }
  func.func @transform_0(%arg0: i32) -> (i32, i32) {
    %c0_i32 = arith.constant 0 : i32
    %c0_i32_0 = arith.constant 0 : i32
    return %arg0, %c0_i32 : i32, i32
  }
  func.func @transform_1(%arg0: i32) -> (i32, i32) {
    %c0_i32 = arith.constant 0 : i32
    %c0_i32_0 = arith.constant 0 : i32
    %c0_i32_1 = arith.constant 0 : i32
    return %c0_i32, %c0_i32_0 : i32, i32
  }
  func.func @transform_2(%arg0: i32) -> (i32, i32) {
    %c0_i32 = arith.constant 0 : i32
    %c0_i32_0 = arith.constant 0 : i32
    return %arg0, %c0_i32 : i32, i32
  }
}

module attributes {stable_mosaic.version = 11 : i64} {
  func.func @_conv_stats_kernel(%arg0: i32, %arg1: memref<128x288xbf16, #tpu.memory_space<vmem>>, %arg2: memref<288x16xbf16, #tpu.memory_space<vmem>>, %arg3: memref<128x16xf32, #tpu.memory_space<vmem>>, %arg4: memref<1x1x16xf32, #tpu.memory_space<vmem>>, %arg5: memref<1x1x16xf32, #tpu.memory_space<vmem>>) attributes {dimension_semantics = [#tpu.dimension_semantics<parallel>], iteration_bounds = array<i64: 1>, scalar_prefetch = 0 : i64, scratch_operands = 0 : i64, tpu.core_type = #tpu.core_type<tc>, window_params = [{transform_indices = @transform_0, window_bounds = array<i64: 128, 288>}, {pipeline_mode = #tpu.pipeline_mode<synchronous>, transform_indices = @transform_1, window_bounds = array<i64: 288, 16>}, {transform_indices = @transform_2, window_bounds = array<i64: 128, 16>}, {transform_indices = @transform_3, window_bounds = array<i64: 1, 1, 16>}, {transform_indices = @transform_4, window_bounds = array<i64: 1, 1, 16>}]} {
    %c0 = arith.constant 0 : index
    %c0_0 = arith.constant 0 : index
    %0 = vector.load %arg1[%c0, %c0_0] : memref<128x288xbf16, #tpu.memory_space<vmem>>, vector<128x288xbf16>
    %c0_1 = arith.constant 0 : index
    %c0_2 = arith.constant 0 : index
    %1 = vector.load %arg2[%c0_1, %c0_2] : memref<288x16xbf16, #tpu.memory_space<vmem>>, vector<288x16xbf16>
    %cst = arith.constant dense<0.000000e+00> : vector<128x16xf32>
    %2 = tpu.matmul %0, %1, %cst {dimension_numbers = #tpu.dot_dimension_numbers<[1], [0], [0], [1], [0, 0, 1, 1], [], []>} : vector<128x288xbf16>, vector<288x16xbf16>, vector<128x16xf32> -> vector<128x16xf32>
    %c0_3 = arith.constant 0 : index
    %c0_4 = arith.constant 0 : index
    %3 = vector.load %arg3[%c0_3, %c0_4] : memref<128x16xf32, #tpu.memory_space<vmem>>, vector<128x16xf32>
    tpu.vector_store %arg3[%c0_3, %c0_4], %2 {strides = array<i32>} : memref<128x16xf32, #tpu.memory_space<vmem>>, vector<128x16xf32>,
    %cst_5 = arith.constant dense<0.000000e+00> : vector<16xf32>
    %4 = vector.multi_reduction <add>, %2, %cst_5 [0] : vector<128x16xf32> to vector<16xf32>
    %5 = vector.shape_cast %4 : vector<16xf32> to vector<1x16xf32>
    %6 = vector.shape_cast %5 : vector<1x16xf32> to vector<1x1x16xf32>
    %c0_6 = arith.constant 0 : index
    %c0_7 = arith.constant 0 : index
    %c0_8 = arith.constant 0 : index
    %7 = vector.load %arg4[%c0_6, %c0_7, %c0_8] : memref<1x1x16xf32, #tpu.memory_space<vmem>>, vector<1x1x16xf32>
    tpu.vector_store %arg4[%c0_6, %c0_7, %c0_8], %6 {strides = array<i32>} : memref<1x1x16xf32, #tpu.memory_space<vmem>>, vector<1x1x16xf32>,
    %8 = arith.mulf %2, %2 : vector<128x16xf32>
    %cst_9 = arith.constant dense<0.000000e+00> : vector<16xf32>
    %9 = vector.multi_reduction <add>, %8, %cst_9 [0] : vector<128x16xf32> to vector<16xf32>
    %10 = vector.shape_cast %9 : vector<16xf32> to vector<1x16xf32>
    %11 = vector.shape_cast %10 : vector<1x16xf32> to vector<1x1x16xf32>
    %c0_10 = arith.constant 0 : index
    %c0_11 = arith.constant 0 : index
    %c0_12 = arith.constant 0 : index
    %12 = vector.load %arg5[%c0_10, %c0_11, %c0_12] : memref<1x1x16xf32, #tpu.memory_space<vmem>>, vector<1x1x16xf32>
    tpu.vector_store %arg5[%c0_10, %c0_11, %c0_12], %11 {strides = array<i32>} : memref<1x1x16xf32, #tpu.memory_space<vmem>>, vector<1x1x16xf32>,
    return
  }
  func.func @transform_0(%arg0: i32) -> (i32, i32) {
    %c0_i32 = arith.constant 0 : i32
    %c0_i32_0 = arith.constant 0 : i32
    return %arg0, %c0_i32 : i32, i32
  }
  func.func @transform_1(%arg0: i32) -> (i32, i32) {
    %c0_i32 = arith.constant 0 : i32
    %c0_i32_0 = arith.constant 0 : i32
    %c0_i32_1 = arith.constant 0 : i32
    return %c0_i32, %c0_i32_0 : i32, i32
  }
  func.func @transform_2(%arg0: i32) -> (i32, i32) {
    %c0_i32 = arith.constant 0 : i32
    %c0_i32_0 = arith.constant 0 : i32
    return %arg0, %c0_i32 : i32, i32
  }
  func.func @transform_3(%arg0: i32) -> (i32, i32, i32) {
    %c0_i32 = arith.constant 0 : i32
    %c0_i32_0 = arith.constant 0 : i32
    %c0_i32_1 = arith.constant 0 : i32
    return %arg0, %c0_i32, %c0_i32_0 : i32, i32, i32
  }
  func.func @transform_4(%arg0: i32) -> (i32, i32, i32) {
    %c0_i32 = arith.constant 0 : i32
    %c0_i32_0 = arith.constant 0 : i32
    %c0_i32_1 = arith.constant 0 : i32
    return %arg0, %c0_i32, %c0_i32_0 : i32, i32, i32
  }
}

module attributes {stable_mosaic.version = 11 : i64} {
  func.func @_matmul_kernel(%arg0: i32, %arg1: memref<128x16xbf16, #tpu.memory_space<vmem>>, %arg2: memref<16x32xbf16, #tpu.memory_space<vmem>>, %arg3: memref<128x32xbf16, #tpu.memory_space<vmem>>) attributes {dimension_semantics = [#tpu.dimension_semantics<parallel>], iteration_bounds = array<i64: 1>, scalar_prefetch = 0 : i64, scratch_operands = 0 : i64, tpu.core_type = #tpu.core_type<tc>, window_params = [{transform_indices = @transform_0, window_bounds = array<i64: 128, 16>}, {pipeline_mode = #tpu.pipeline_mode<synchronous>, transform_indices = @transform_1, window_bounds = array<i64: 16, 32>}, {transform_indices = @transform_2, window_bounds = array<i64: 128, 32>}]} {
    %c0 = arith.constant 0 : index
    %c0_0 = arith.constant 0 : index
    %0 = vector.load %arg1[%c0, %c0_0] : memref<128x16xbf16, #tpu.memory_space<vmem>>, vector<128x16xbf16>
    %c0_1 = arith.constant 0 : index
    %c0_2 = arith.constant 0 : index
    %1 = vector.load %arg2[%c0_1, %c0_2] : memref<16x32xbf16, #tpu.memory_space<vmem>>, vector<16x32xbf16>
    %cst = arith.constant dense<0.000000e+00> : vector<128x32xf32>
    %2 = tpu.matmul %0, %1, %cst {dimension_numbers = #tpu.dot_dimension_numbers<[1], [0], [0], [1], [0, 0, 1, 1], [], []>} : vector<128x16xbf16>, vector<16x32xbf16>, vector<128x32xf32> -> vector<128x32xf32>
    %3 = arith.truncf %2 : vector<128x32xf32> to vector<128x32xbf16>
    %c0_3 = arith.constant 0 : index
    %c0_4 = arith.constant 0 : index
    %4 = vector.load %arg3[%c0_3, %c0_4] : memref<128x32xbf16, #tpu.memory_space<vmem>>, vector<128x32xbf16>
    tpu.vector_store %arg3[%c0_3, %c0_4], %3 {strides = array<i32>} : memref<128x32xbf16, #tpu.memory_space<vmem>>, vector<128x32xbf16>,
    return
  }
  func.func @transform_0(%arg0: i32) -> (i32, i32) {
    %c0_i32 = arith.constant 0 : i32
    %c0_i32_0 = arith.constant 0 : i32
    return %arg0, %c0_i32 : i32, i32
  }
  func.func @transform_1(%arg0: i32) -> (i32, i32) {
    %c0_i32 = arith.constant 0 : i32
    %c0_i32_0 = arith.constant 0 : i32
    %c0_i32_1 = arith.constant 0 : i32
    return %c0_i32, %c0_i32_0 : i32, i32
  }
  func.func @transform_2(%arg0: i32) -> (i32, i32) {
    %c0_i32 = arith.constant 0 : i32
    %c0_i32_0 = arith.constant 0 : i32
    return %arg0, %c0_i32 : i32, i32
  }
}

module attributes {stable_mosaic.version = 11 : i64} {
  func.func @_conv_stats_kernel(%arg0: i32, %arg1: memref<512x144xbf16, #tpu.memory_space<vmem>>, %arg2: memref<144x8xbf16, #tpu.memory_space<vmem>>, %arg3: memref<512x8xf32, #tpu.memory_space<vmem>>, %arg4: memref<1x1x8xf32, #tpu.memory_space<vmem>>, %arg5: memref<1x1x8xf32, #tpu.memory_space<vmem>>) attributes {dimension_semantics = [#tpu.dimension_semantics<parallel>], iteration_bounds = array<i64: 1>, scalar_prefetch = 0 : i64, scratch_operands = 0 : i64, tpu.core_type = #tpu.core_type<tc>, window_params = [{transform_indices = @transform_0, window_bounds = array<i64: 512, 144>}, {pipeline_mode = #tpu.pipeline_mode<synchronous>, transform_indices = @transform_1, window_bounds = array<i64: 144, 8>}, {transform_indices = @transform_2, window_bounds = array<i64: 512, 8>}, {transform_indices = @transform_3, window_bounds = array<i64: 1, 1, 8>}, {transform_indices = @transform_4, window_bounds = array<i64: 1, 1, 8>}]} {
    %c0 = arith.constant 0 : index
    %c0_0 = arith.constant 0 : index
    %0 = vector.load %arg1[%c0, %c0_0] : memref<512x144xbf16, #tpu.memory_space<vmem>>, vector<512x144xbf16>
    %c0_1 = arith.constant 0 : index
    %c0_2 = arith.constant 0 : index
    %1 = vector.load %arg2[%c0_1, %c0_2] : memref<144x8xbf16, #tpu.memory_space<vmem>>, vector<144x8xbf16>
    %cst = arith.constant dense<0.000000e+00> : vector<512x8xf32>
    %2 = tpu.matmul %0, %1, %cst {dimension_numbers = #tpu.dot_dimension_numbers<[1], [0], [0], [1], [0, 0, 1, 1], [], []>} : vector<512x144xbf16>, vector<144x8xbf16>, vector<512x8xf32> -> vector<512x8xf32>
    %c0_3 = arith.constant 0 : index
    %c0_4 = arith.constant 0 : index
    %3 = vector.load %arg3[%c0_3, %c0_4] : memref<512x8xf32, #tpu.memory_space<vmem>>, vector<512x8xf32>
    tpu.vector_store %arg3[%c0_3, %c0_4], %2 {strides = array<i32>} : memref<512x8xf32, #tpu.memory_space<vmem>>, vector<512x8xf32>,
    %cst_5 = arith.constant dense<0.000000e+00> : vector<8xf32>
    %4 = vector.multi_reduction <add>, %2, %cst_5 [0] : vector<512x8xf32> to vector<8xf32>
    %5 = vector.shape_cast %4 : vector<8xf32> to vector<1x8xf32>
    %6 = vector.shape_cast %5 : vector<1x8xf32> to vector<1x1x8xf32>
    %c0_6 = arith.constant 0 : index
    %c0_7 = arith.constant 0 : index
    %c0_8 = arith.constant 0 : index
    %7 = vector.load %arg4[%c0_6, %c0_7, %c0_8] : memref<1x1x8xf32, #tpu.memory_space<vmem>>, vector<1x1x8xf32>
    tpu.vector_store %arg4[%c0_6, %c0_7, %c0_8], %6 {strides = array<i32>} : memref<1x1x8xf32, #tpu.memory_space<vmem>>, vector<1x1x8xf32>,
    %8 = arith.mulf %2, %2 : vector<512x8xf32>
    %cst_9 = arith.constant dense<0.000000e+00> : vector<8xf32>
    %9 = vector.multi_reduction <add>, %8, %cst_9 [0] : vector<512x8xf32> to vector<8xf32>
    %10 = vector.shape_cast %9 : vector<8xf32> to vector<1x8xf32>
    %11 = vector.shape_cast %10 : vector<1x8xf32> to vector<1x1x8xf32>
    %c0_10 = arith.constant 0 : index
    %c0_11 = arith.constant 0 : index
    %c0_12 = arith.constant 0 : index
    %12 = vector.load %arg5[%c0_10, %c0_11, %c0_12] : memref<1x1x8xf32, #tpu.memory_space<vmem>>, vector<1x1x8xf32>
    tpu.vector_store %arg5[%c0_10, %c0_11, %c0_12], %11 {strides = array<i32>} : memref<1x1x8xf32, #tpu.memory_space<vmem>>, vector<1x1x8xf32>,
    return
  }
  func.func @transform_0(%arg0: i32) -> (i32, i32) {
    %c0_i32 = arith.constant 0 : i32
    %c0_i32_0 = arith.constant 0 : i32
    return %arg0, %c0_i32 : i32, i32
  }
  func.func @transform_1(%arg0: i32) -> (i32, i32) {
    %c0_i32 = arith.constant 0 : i32
    %c0_i32_0 = arith.constant 0 : i32
    %c0_i32_1 = arith.constant 0 : i32
    return %c0_i32, %c0_i32_0 : i32, i32
  }
  func.func @transform_2(%arg0: i32) -> (i32, i32) {
    %c0_i32 = arith.constant 0 : i32
    %c0_i32_0 = arith.constant 0 : i32
    return %arg0, %c0_i32 : i32, i32
  }
  func.func @transform_3(%arg0: i32) -> (i32, i32, i32) {
    %c0_i32 = arith.constant 0 : i32
    %c0_i32_0 = arith.constant 0 : i32
    %c0_i32_1 = arith.constant 0 : i32
    return %arg0, %c0_i32, %c0_i32_0 : i32, i32, i32
  }
  func.func @transform_4(%arg0: i32) -> (i32, i32, i32) {
    %c0_i32 = arith.constant 0 : i32
    %c0_i32_0 = arith.constant 0 : i32
    %c0_i32_1 = arith.constant 0 : i32
    return %arg0, %c0_i32, %c0_i32_0 : i32, i32, i32
  }
}

module attributes {stable_mosaic.version = 11 : i64} {
  func.func @_matmul_kernel(%arg0: i32, %arg1: memref<512x99xbf16, #tpu.memory_space<vmem>>, %arg2: memref<99x3xbf16, #tpu.memory_space<vmem>>, %arg3: memref<512x3xf32, #tpu.memory_space<vmem>>) attributes {dimension_semantics = [#tpu.dimension_semantics<parallel>], iteration_bounds = array<i64: 1>, scalar_prefetch = 0 : i64, scratch_operands = 0 : i64, tpu.core_type = #tpu.core_type<tc>, window_params = [{transform_indices = @transform_0, window_bounds = array<i64: 512, 99>}, {pipeline_mode = #tpu.pipeline_mode<synchronous>, transform_indices = @transform_1, window_bounds = array<i64: 99, 3>}, {transform_indices = @transform_2, window_bounds = array<i64: 512, 3>}]} {
    %c0 = arith.constant 0 : index
    %c0_0 = arith.constant 0 : index
    %0 = vector.load %arg1[%c0, %c0_0] : memref<512x99xbf16, #tpu.memory_space<vmem>>, vector<512x99xbf16>
    %c0_1 = arith.constant 0 : index
    %c0_2 = arith.constant 0 : index
    %1 = vector.load %arg2[%c0_1, %c0_2] : memref<99x3xbf16, #tpu.memory_space<vmem>>, vector<99x3xbf16>
    %cst = arith.constant dense<0.000000e+00> : vector<512x3xf32>
    %2 = tpu.matmul %0, %1, %cst {dimension_numbers = #tpu.dot_dimension_numbers<[1], [0], [0], [1], [0, 0, 1, 1], [], []>} : vector<512x99xbf16>, vector<99x3xbf16>, vector<512x3xf32> -> vector<512x3xf32>
    %c0_3 = arith.constant 0 : index
    %c0_4 = arith.constant 0 : index
    %3 = vector.load %arg3[%c0_3, %c0_4] : memref<512x3xf32, #tpu.memory_space<vmem>>, vector<512x3xf32>
    tpu.vector_store %arg3[%c0_3, %c0_4], %2 {strides = array<i32>} : memref<512x3xf32, #tpu.memory_space<vmem>>, vector<512x3xf32>,
    return
  }
  func.func @transform_0(%arg0: i32) -> (i32, i32) {
    %c0_i32 = arith.constant 0 : i32
    %c0_i32_0 = arith.constant 0 : i32
    return %arg0, %c0_i32 : i32, i32
  }
  func.func @transform_1(%arg0: i32) -> (i32, i32) {
    %c0_i32 = arith.constant 0 : i32
    %c0_i32_0 = arith.constant 0 : i32
    %c0_i32_1 = arith.constant 0 : i32
    return %c0_i32, %c0_i32_0 : i32, i32
  }
  func.func @transform_2(%arg0: i32) -> (i32, i32) {
    %c0_i32 = arith.constant 0 : i32
    %c0_i32_0 = arith.constant 0 : i32
    return %arg0, %c0_i32 : i32, i32
  }
}

</mosaic_0001>

<bundles_post_ra>
// kernel: tile.167
= control target key start
LH: loop header
LB: loop body
LE: loop exit
PB: predicated region body
PF: predicated region fallthrough
CT: control target
= control target key end

     0   :  { %s28_s0 = inlined_call_operand.vmem [shape: f32[8], index: 0, kind: input, shape index: {}]   ;;  %s29_s1 = inlined_call_operand.vmem [shape: f32[16,8], index: 1, kind: output, shape index: {}]  }
   0x1   :  { %v4_v0 = vld [vmem:[%s28_s0] ss:$0 sm:$0xff] }
   0x2   :  { %5 = vst [vmem:[%s29_s1] sm:$0xff] %v4_v0  ;;  %8 = vst [vmem:[%s29_s1 + $0x8] sm:$0xff] %v4_v0 }

// kernel: tile.168
= control target key start
LH: loop header
LB: loop body
LE: loop exit
PB: predicated region body
PF: predicated region fallthrough
CT: control target
= control target key end

     0   :  { %s133_s10 = smov 120   ;;  %s134_s11 = smov 104   ;;  %vm3_vm0 = vcmask 64512   ;;  %vm9_vm1 = vcmask 1048512   ;;  %vm15_vm2 = vcmask 982912   ;;  %vm21_vm3 = vcmask 917312   ;;  %s209_s0 = inlined_call_operand.vmem [shape: f32[16,8], index: 0, kind: input, shape index: {}]   ;;  %s210_s1 = inlined_call_operand.vmem [shape: f32[1,128], index: 1, kind: output, shape index: {}]  }
   0x1   :  { %v103_v0 = vld [vmem:[%s209_s0 + $0xf] sm:$0x1]   ;;  %v105_v1 = vld [vmem:[%s209_s0 + $0xd] sm:$0x1]   ;;  %v104_v2 = vld [vmem:[%s209_s0 + $0xe] sm:$0x1]  }
   0x2   :  { %7 = vrot.lane.b32.xlu0 %v103_v0, %s133_s10  ;;  %19 = vrot.lane.b32.xlu1 %v105_v1, %s134_s11  ;;  %v106_v3 = vld [vmem:[%s209_s0 + $0xc] sm:$0x1]   ;;  %s135_s16 = smov 112   ;;  %s136_s17 = smov 96   ;;  %v107_v4 = vld [vmem:[%s209_s0 + $0xb] sm:$0x1]  }
   0x3   :  { %v108_v5 = vld [vmem:[%s209_s0 + $0xa] sm:$0x1]   ;;  %v2_v6 = vld [vmem:[%s209_s0] sm:$0x1]   ;;  %s137_s24 = smov 88   ;;  %s138_s25 = smov 80  }
   0x4   :  { %4 = vst.msk [vmem:[#allocation0] sm:$0x1] %vm3_vm0, %v2_v6   ;;  %v109_v7 = vld [vmem:[%s209_s0 + $0x9] sm:$0x1]   ;;  %v110_v8 = vld [vmem:[%s209_s0 + $0x8] sm:$0x1]  }
   0x5   :  { %s139_s30 = smov 72   ;;  %s140_s2 = smov 64   ;;  %v111_v9 = vld [vmem:[%s209_s0 + $0x7] sm:$0x1]   ;;  %v112_v10 = vld [vmem:[%s209_s0 + $0x6] sm:$0x1]  }
   0x6   :  { %13 = vrot.lane.b32.xlu0 %v104_v2, %s135_s16  ;;  %25 = vrot.lane.b32.xlu1 %v106_v3, %s136_s17  ;;  %s141_s7 = smov 56   ;;  %s142_s8 = smov 48   ;;  %v113_v11 = vld [vmem:[%s209_s0 + $0x5] sm:$0x1]   ;;  %v114_v12 = vld [vmem:[%s209_s0 + $0x4] sm:$0x1]  }
   0x7   :  { %s143_s13 = smov 40   ;;  %s144_s14 = smov 32   ;;  %v115_v13 = vld [vmem:[%s209_s0 + $0x3] sm:$0x1]   ;;  %v116_v14 = vld [vmem:[%s209_s0 + $0x2] sm:$0x1]  }
   0x8   :  { %s145_s19 = smov 24   ;;  %s146_s20 = smov 16   ;;  %v117_v15 = vld [vmem:[%s209_s0 + $0x1] sm:$0x1]   ;;  %vm27_vm4 = vcmask 851712   ;;  %vm33_vm5 = vcmask 786112  }
   0x9   :  { %s147_s0 = smov 8   ;;  %vm39_vm6 = vcmask 720512   ;;  %vm45_vm7 = vcmask 654912   ;;  %vm51_vm8 = vcmask 589312   ;;  %vm57_vm9 = vcmask 523712  }
   0xa   :  { %31 = vrot.lane.b32.xlu0 %v107_v4, %s137_s24  ;;  %37 = vrot.lane.b32.xlu1 %v108_v5, %s138_s25  ;;  %vm63_vm10 = vcmask 458112   ;;  %vm69_vm11 = vcmask 392512   ;;  %vm75_vm12 = vcmask 326912   ;;  %vm81_vm13 = vcmask 261312  }
   0xb   :  { %vm87_vm14 = vcmask 195712   ;;  %vm93_vm15 = vcmask 130112  }
   0xe   :  { %43 = vrot.lane.b32.xlu0 %v109_v7, %s139_s30  ;;  %49 = vrot.lane.b32.xlu1 %v110_v8, %s140_s2 }
  0x12   :  { %55 = vrot.lane.b32.xlu0 %v111_v9, %s141_s7  ;;  %61 = vrot.lane.b32.xlu1 %v112_v10, %s142_s8 }
  0x16   :  { %67 = vrot.lane.b32.xlu0 %v113_v11, %s143_s13  ;;  %73 = vrot.lane.b32.xlu1 %v114_v12, %s144_s14 }
  0x1a   :  { %79 = vrot.lane.b32.xlu0 %v115_v13, %s145_s19  ;;  %85 = vrot.lane.b32.xlu1 %v116_v14, %s146_s20 }
  0x1e   :  { %91 = vrot.lane.b32.xlu0 %v117_v15, %s147_s0 }
  0x74   :  { %v8_v16 = vpop.permute.xlu0 %7   ;;  %v20_v17 = vpop.permute.xlu1 %19  }
  0x75   :  { %10 = vst.msk [vmem:[#allocation0] sm:$0x1] %vm9_vm1, %v8_v16  }
  0x78   :  { %v14_v18 = vpop.permute.xlu0 %13   ;;  %v26_v19 = vpop.permute.xlu1 %25  }
  0x79   :  { %16 = vst.msk [vmem:[#allocation0] sm:$0x1] %vm15_vm2, %v14_v18  }
  0x7a   :  { %22 = vst.msk [vmem:[#allocation0] sm:$0x1] %vm21_vm3, %v20_v17  }
  0x7b   :  { %28 = vst.msk [vmem:[#allocation0] sm:$0x1] %vm27_vm4, %v26_v19  }
  0x7c   :  { %v32_v20 = vpop.permute.xlu0 %31   ;;  %v38_v21 = vpop.permute.xlu1 %37  }
  0x7d   :  { %34 = vst.msk [vmem:[#allocation0] sm:$0x1] %vm33_vm5, %v32_v20  }
  0x7e   :  { %40 = vst.msk [vmem:[#allocation0] sm:$0x1] %vm39_vm6, %v38_v21  }
  0x80   :  { %v44_v22 = vpop.permute.xlu0 %43   ;;  %v50_v23 = vpop.permute.xlu1 %49  }
  0x81   :  { %46 = vst.msk [vmem:[#allocation0] sm:$0x1] %vm45_vm7, %v44_v22  }
  0x82   :  { %52 = vst.msk [vmem:[#allocation0] sm:$0x1] %vm51_vm8, %v50_v23  }
  0x84   :  { %v56_v24 = vpop.permute.xlu0 %55   ;;  %v62_v25 = vpop.permute.xlu1 %61  }
  0x85   :  { %58 = vst.msk [vmem:[#allocation0] sm:$0x1] %vm57_vm9, %v56_v24  }
  0x86   :  { %64 = vst.msk [vmem:[#allocation0] sm:$0x1] %vm63_vm10, %v62_v25  }
  0x88   :  { %v68_v26 = vpop.permute.xlu0 %67   ;;  %v74_v27 = vpop.permute.xlu1 %73  }
  0x89   :  { %70 = vst.msk [vmem:[#allocation0] sm:$0x1] %vm69_vm11, %v68_v26  }
  0x8a   :  { %76 = vst.msk [vmem:[#allocation0] sm:$0x1] %vm75_vm12, %v74_v27  }
  0x8c   :  { %v80_v28 = vpop.permute.xlu0 %79   ;;  %v86_v29 = vpop.permute.xlu1 %85  }
  0x8d   :  { %82 = vst.msk [vmem:[#allocation0] sm:$0x1] %vm81_vm13, %v80_v28  }
  0x8e   :  { %88 = vst.msk [vmem:[#allocation0] sm:$0x1] %vm87_vm14, %v86_v29  }
  0x90   :  { %v92_v30 = vpop.permute.xlu0 %91  }
  0x91   :  { %94 = vst.msk [vmem:[#allocation0] sm:$0x1] %vm93_vm15, %v92_v30  }
  0x98   :  { %v99_v31 = vld [vmem:[#allocation0] sm:$0x1] }
  0x99   :  { %102 = vst [vmem:[%s210_s1] sm:$0x1] %v99_v31 }

// kernel: unet2d_forward.46
= control target key start
LH: loop header
LB: loop body
LE: loop exit
PB: predicated region body
PF: predicated region fallthrough
CT: control target
= control target key end

     0   :  { %s133_s0 = inlined_call_operand.vmem [shape: f32[32,128], index: 0, kind: input, shape index: {}]   ;;  %s134_s1 = inlined_call_operand.vmem [shape: f32[1,128], index: 1, kind: input, shape index: {}]   ;;  %s135_s2 = inlined_call_operand.vmem [shape: f32[1,128], index: 2, kind: input, shape index: {}]   ;;  %s136_s3 = inlined_call_operand.vmem [shape: bf16[32,128], index: 3, kind: output, shape index: {}]  }
   0x1   :  { %v14_v0 = vld [vmem:[%s133_s0] sm:$0xff]  ;;  %v15_v1 = vld [vmem:[%s133_s0 + $0x8] sm:$0xff]  ;;  %v16_v6 = vld [vmem:[%s133_s0 + $0x10] sm:$0xff] }
   0x2   :  { %v68_v2 = vld [vmem:[%s134_s1] ss:$0 sm:$0xff]  ;;  %v17_v7 = vld [vmem:[%s133_s0 + $0x18] sm:$0xff] }
   0x3   :  { %v25_v3 = vmul.f32 %v68_v2, %v14_v0  ;;  %v26_v4 = vmul.f32 %v68_v2, %v15_v1  ;;  %v69_v5 = vld [vmem:[%s135_s2] ss:$0 sm:$0xff]  ;;  %v27_v8 = vmul.f32 %v68_v2, %v16_v6  ;;  %v28_v9 = vmul.f32 %v68_v2, %v17_v7 }
   0x5   :  { %v36_v10 = vadd.f32 %v69_v5, %v25_v3  ;;  %v37_v11 = vadd.f32 %v69_v5, %v26_v4  ;;  %v38_v12 = vadd.f32 %v69_v5, %v27_v8  ;;  %v39_v13 = vadd.f32 %v69_v5, %v28_v9 }
   0x7   :  { %v40_v14 = vmax.f32 %v36_v10, 0.0  ;;  %v41_v15 = vmax.f32 %v37_v11, 0.0  ;;  %v42_v16 = vmax.f32 %v38_v12, 0.0  ;;  %v43_v17 = vmax.f32 %v39_v13, 0.0 }
   0x9   :  { %v81_v18 = vpack.c.bf16 %v41_v15, %v40_v14  ;;  %v86_v19 = vpack.c.bf16 %v43_v17, %v42_v16 }
   0xb   :  { %82 = vst [vmem:[%s136_s3] sm:$0xff] %v81_v18   ;;  %88 = vst [vmem:[%s136_s3 + $0x8] sm:$0xff] %v86_v19  }

// kernel: unet2d_forward.45
= control target key start
LH: loop header
LB: loop body
LE: loop exit
PB: predicated region body
PF: predicated region fallthrough
CT: control target
= control target key end

     0   :  { %vm351_vm0 = vcmask 1044480   ;;  %vm352_vm1 = vcmask 1045504   ;;  %v1264_v1 = vmov 65535   ;;  %vm254_vm2 = vcmask 220160   ;;  %s2006_s1 = inlined_call_operand.vmem [shape: bf16[27,8], index: 1, kind: input, shape index: {}]   ;;  %s2007_s0 = inlined_call_operand.vmem [shape: bf16[512,27], index: 0, kind: input, shape index: {}]   ;;  %s2008_s2 = inlined_call_operand.vmem [shape: f32[512,8], index: 2, kind: output, shape index: {0}]   ;;  %s2009_s3 = inlined_call_operand.vmem [shape: f32[1,1,8], index: 3, kind: output, shape index: {1}]   ;;  %s2010_s4 = inlined_call_operand.vmem [shape: f32[1,1,8], index: 4, kind: output, shape index: {2}]  }
   0x1   :  { %v1230_v0 = vld [vmem:[%s2006_s1 + $0x8] sm:$0x3f]   ;;  %v353_v2 = vsel %vm351_vm0, 4294967295, %v1264_v1  ;;  %v1232_v4 = vld [vmem:[%s2007_s0] sm:$0xff]   ;;  %v1234_v8 = vld [vmem:[%s2007_s0 + $0x10] sm:$0xff]   ;;  %vm647_vm3 = vcmask 64512  }
   0x2   :  { %v354_v3 = vsel %vm352_vm1, %v353_v2, 0  ;;  %v1231_v6 = vld [vmem:[%s2006_s1] sm:$0xff]   ;;  %1161 = vmatprep.mubr.msk.bf16.mxu0 %vm254_vm2, %v1232_v4  ;;  %v1233_v7 = vld [vmem:[%s2007_s0 + $0x8] sm:$0xff]   ;;  %v1235_v9 = vld [vmem:[%s2007_s0 + $0x18] sm:$0xff]   ;;  %vm845_vm4 = vcmask 57344  }
   0x3   :  { %v356_v5 = vand.u32 %v1230_v0, %v354_v3  ;;  %v1236_v10 = vld [vmem:[%s2007_s0 + $0x20] sm:$0xff]   ;;  %v1249_v12 = vld [vmem:[%s2007_s0 + $0x88] sm:$0xff]   ;;  %v1250_v13 = vld [vmem:[%s2007_s0 + $0x90] sm:$0xff]  }
   0x4   :  { %v1248_v11 = vld [vmem:[%s2007_s0 + $0x80] sm:$0xff]   ;;  %v1237_v14 = vld [vmem:[%s2007_s0 + $0x28] sm:$0xff]   ;;  %v1238_v15 = vld [vmem:[%s2007_s0 + $0x30] sm:$0xff]  }
   0x5   :  { %1157 = vmatprep.subr.bf16.mxu0 %v356_v5  ;;  %1225 = vmatprep.subr.bf16.mxu1 %v356_v5  ;;  %v1251_v16 = vld [vmem:[%s2007_s0 + $0x98] sm:$0xff]   ;;  %v1252_v17 = vld [vmem:[%s2007_s0 + $0xa0] sm:$0xff]   ;;  %v1253_v19 = vld [vmem:[%s2007_s0 + $0xa8] sm:$0xff]  }
   0x6   :  { %1158 = vmatpush3.bf16.msra.mxu0 %v356_v5  ;;  %1227 = vmatpush3.bf16.msra.mxu1 %v356_v5  ;;  %v1239_v18 = vld [vmem:[%s2007_s0 + $0x38] sm:$0xff]   ;;  %v1240_v20 = vld [vmem:[%s2007_s0 + $0x40] sm:$0xff]   ;;  %v1254_v21 = vld [vmem:[%s2007_s0 + $0xb0] sm:$0xff]  }
   0x7   :  { %1159 = vmatprep.subr.bf16.mxu0 %v1231_v6  ;;  %1226 = vmatprep.subr.bf16.mxu1 %v1231_v6  ;;  %v1241_v22 = vld [vmem:[%s2007_s0 + $0x48] sm:$0xff]   ;;  %v1255_v23 = vld [vmem:[%s2007_s0 + $0xb8] sm:$0xff]   ;;  %v1242_v24 = vld [vmem:[%s2007_s0 + $0x50] sm:$0xff]  }
   0x8   :  { %1193 = vmatprep.mubr.msk.bf16.mxu1 %vm254_vm2, %v1248_v11  ;;  %v1256_v25 = vld [vmem:[%s2007_s0 + $0xc0] sm:$0xff]   ;;  %v1243_v26 = vld [vmem:[%s2007_s0 + $0x58] sm:$0xff]   ;;  %v1257_v27 = vld [vmem:[%s2007_s0 + $0xc8] sm:$0xff]  }
   0x9   :  { %v1244_v28 = vld [vmem:[%s2007_s0 + $0x60] sm:$0xff]   ;;  %v1258_v29 = vld [vmem:[%s2007_s0 + $0xd0] sm:$0xff]   ;;  %v1245_v30 = vld [vmem:[%s2007_s0 + $0x68] sm:$0xff]  }
   0xa   :  { %1160 = vmatpush3.bf16.msra.mxu0 %v1231_v6  ;;  %1228 = vmatpush3.bf16.msra.mxu1 %v1231_v6  ;;  %v1259_v31 = vld [vmem:[%s2007_s0 + $0xd8] sm:$0xff]   ;;  %v1246_v32 = vld [vmem:[%s2007_s0 + $0x70] sm:$0xff]   ;;  %v1260_v33 = vld [vmem:[%s2007_s0 + $0xe0] sm:$0xff]  }
   0xb   :  { %v1247_v34 = vld [vmem:[%s2007_s0 + $0x78] sm:$0xff]   ;;  %v1261_v35 = vld [vmem:[%s2007_s0 + $0xe8] sm:$0xff]   ;;  %v1262_v36 = vld [vmem:[%s2007_s0 + $0xf0] sm:$0xff]  }
   0xc   :  { %v1263_v37 = vld [vmem:[%s2007_s0 + $0xf8] sm:$0xff]  }
   0xd   :  { %1162 = vmatmul.mubr.msk.bf16.vlgmr.msra.gmra.mxu0 %vm254_vm2, %v1233_v7  ;;  %1194 = vmatmul.mubr.msk.bf16.vlgmr.msra.gmra.mxu1 %vm254_vm2, %v1249_v12 }
   0xe   :  { %1165 = vmatprep.mubr.msk.bf16.mxu0 %vm254_vm2, %v1234_v8  ;;  %1197 = vmatprep.mubr.msk.bf16.mxu1 %vm254_vm2, %v1250_v13 }
  0x15   :  { %1166 = vmatmul.mubr.msk.bf16.gmra.mxu0 %vm254_vm2, %v1235_v9  ;;  %1198 = vmatmul.mubr.msk.bf16.gmra.mxu1 %vm254_vm2, %v1251_v16 }
  0x16   :  { %1169 = vmatprep.mubr.msk.bf16.mxu0 %vm254_vm2, %v1236_v10  ;;  %1201 = vmatprep.mubr.msk.bf16.mxu1 %vm254_vm2, %v1252_v17 }
  0x1d   :  { %1170 = vmatmul.mubr.msk.bf16.gmra.mxu0 %vm254_vm2, %v1237_v14  ;;  %1202 = vmatmul.mubr.msk.bf16.gmra.mxu1 %vm254_vm2, %v1253_v19 }
  0x1e   :  { %1173 = vmatprep.mubr.msk.bf16.mxu0 %vm254_vm2, %v1238_v15  ;;  %1205 = vmatprep.mubr.msk.bf16.mxu1 %vm254_vm2, %v1254_v21 }
  0x25   :  { %1174 = vmatmul.mubr.msk.bf16.gmra.mxu0 %vm254_vm2, %v1239_v18  ;;  %1206 = vmatmul.mubr.msk.bf16.gmra.mxu1 %vm254_vm2, %v1255_v23 }
  0x26   :  { %1177 = vmatprep.mubr.msk.bf16.mxu0 %vm254_vm2, %v1240_v20  ;;  %1209 = vmatprep.mubr.msk.bf16.mxu1 %vm254_vm2, %v1256_v25 }
  0x2d   :  { %1178 = vmatmul.mubr.msk.bf16.gmra.mxu0 %vm254_vm2, %v1241_v22  ;;  %1210 = vmatmul.mubr.msk.bf16.gmra.mxu1 %vm254_vm2, %v1257_v27 }
  0x2e   :  { %1181 = vmatprep.mubr.msk.bf16.mxu0 %vm254_vm2, %v1242_v24  ;;  %1213 = vmatprep.mubr.msk.bf16.mxu1 %vm254_vm2, %v1258_v29 }
  0x35   :  { %1182 = vmatmul.mubr.msk.bf16.gmra.mxu0 %vm254_vm2, %v1243_v26  ;;  %1214 = vmatmul.mubr.msk.bf16.gmra.mxu1 %vm254_vm2, %v1259_v31 }
  0x36   :  { %1185 = vmatprep.mubr.msk.bf16.mxu0 %vm254_vm2, %v1244_v28  ;;  %1217 = vmatprep.mubr.msk.bf16.mxu1 %vm254_vm2, %v1260_v33 }
  0x3d   :  { %1186 = vmatmul.mubr.msk.bf16.gmra.mxu0 %vm254_vm2, %v1245_v30  ;;  %1218 = vmatmul.mubr.msk.bf16.gmra.mxu1 %vm254_vm2, %v1261_v35 }
  0x3e   :  { %1189 = vmatprep.mubr.msk.bf16.mxu0 %vm254_vm2, %v1246_v32  ;;  %1221 = vmatprep.mubr.msk.bf16.mxu1 %vm254_vm2, %v1262_v36 }
  0x45   :  { %1190 = vmatmul.mubr.msk.bf16.gmra.mxu0 %vm254_vm2, %v1247_v34  ;;  %1222 = vmatmul.mubr.msk.bf16.gmra.mxu1 %vm254_vm2, %v1263_v37 }
  0xcd   :  { %v1163_v38 = vpop.f32.mrf.mxu0  ;;  %v1442_v49 = vpop.f32.mrf.mxu1 }
  0xce   :  { %650 = vst.msk [vmem:[%s2008_s2 + $0x10] sm:$0xff] %vm647_vm3, %v1163_v38  ;;  %v849_v43 = vmul.f32 %v1163_v38, %v1163_v38  ;;  %v715_v50 = vsel %vm647_vm3, %v1163_v38, 0.0  ;;  %682 = vst.msk [vmem:[%s2008_s2 + $0x110] sm:$0xff] %vm647_vm3, %v1442_v49 }
  0xcf   :  { %v392_v39 = vpop.f32.mrf.mxu0  ;;  %v1456_v57 = vpop.f32.mrf.mxu1 }
  0xd0   :  { %648 = vst.msk [vmem:[%s2008_s2] sm:$0xff] %vm647_vm3, %v392_v39  ;;  %v847_v41 = vmul.f32 %v392_v39, %v392_v39  ;;  %v712_v44 = vsel %vm647_vm3, %v392_v39, 0.0  ;;  %v914_v58 = vsel %vm647_vm3, %v849_v43, 0.0  ;;  %680 = vst.msk [vmem:[%s2008_s2 + $0x100] sm:$0xff] %vm647_vm3, %v1456_v57 }
  0xd1   :  { %v1164_v40 = vpop.f32.mrf.mxu0  ;;  %v1469_v0 = vpop.f32.mrf.mxu1 }
  0xd2   :  { %651 = vst.msk [vmem:[%s2008_s2 + $0x18] sm:$0xff] %vm647_vm3, %v1164_v40  ;;  %v911_v51 = vsel %vm647_vm3, %v847_v41, 0.0  ;;  %v850_v52 = vmul.f32 %v1164_v40, %v1164_v40  ;;  %v717_v59 = vsel %vm647_vm3, %v1164_v40, 0.0  ;;  %683 = vst.msk [vmem:[%s2008_s2 + $0x118] sm:$0xff] %vm647_vm3, %v1469_v0 }
  0xd3   :  { %v395_v42 = vpop.f32.mrf.mxu0  ;;  %v1482_v6 = vpop.f32.mrf.mxu1 }
  0xd4   :  { %649 = vst.msk [vmem:[%s2008_s2 + $0x8] sm:$0xff] %vm647_vm3, %v395_v42  ;;  %v713_v45 = vsel %vm647_vm3, %v395_v42, 0.0  ;;  %v848_v46 = vmul.f32 %v395_v42, %v395_v42  ;;  %v916_v1 = vsel %vm647_vm3, %v850_v52, 0.0  ;;  %681 = vst.msk [vmem:[%s2008_s2 + $0x108] sm:$0xff] %vm647_vm3, %v1482_v6 }
  0xd5   :  { %v714_v47 = vadd.f32 %v713_v45, %v712_v44  ;;  %v1167_v48 = vpop.f32.mrf.mxu0  ;;  %v1495_v14 = vpop.f32.mrf.mxu1 }
  0xd6   :  { %v912_v53 = vsel %vm647_vm3, %v848_v46, 0.0  ;;  %654 = vst.msk [vmem:[%s2008_s2 + $0x30] sm:$0xff] %vm647_vm3, %v1167_v48  ;;  %v853_v7 = vmul.f32 %v1167_v48, %v1167_v48  ;;  %v723_v15 = vsel %vm647_vm3, %v1167_v48, 0.0  ;;  %686 = vst.msk [vmem:[%s2008_s2 + $0x130] sm:$0xff] %vm647_vm3, %v1495_v14 }
  0xd7   :  { %v716_v54 = vadd.f32 %v715_v50, %v714_v47  ;;  %v913_v55 = vadd.f32 %v912_v53, %v911_v51  ;;  %v408_v56 = vpop.f32.mrf.mxu0  ;;  %v1508_v21 = vpop.f32.mrf.mxu1 }
  0xd8   :  { %652 = vst.msk [vmem:[%s2008_s2 + $0x20] sm:$0xff] %vm647_vm3, %v408_v56  ;;  %v851_v60 = vmul.f32 %v408_v56, %v408_v56  ;;  %v719_v2 = vsel %vm647_vm3, %v408_v56, 0.0  ;;  %v922_v22 = vsel %vm647_vm3, %v853_v7, 0.0  ;;  %684 = vst.msk [vmem:[%s2008_s2 + $0x120] sm:$0xff] %vm647_vm3, %v1508_v21 }
  0xd9   :  { %v915_v61 = vadd.f32 %v914_v58, %v913_v55  ;;  %v718_v62 = vadd.f32 %v717_v59, %v716_v54  ;;  %v1168_v63 = vpop.f32.mrf.mxu0  ;;  %v1521_v28 = vpop.f32.mrf.mxu1 }
  0xda   :  { %655 = vst.msk [vmem:[%s2008_s2 + $0x38] sm:$0xff] %vm647_vm3, %v1168_v63  ;;  %v918_v8 = vsel %vm647_vm3, %v851_v60, 0.0  ;;  %v854_v16 = vmul.f32 %v1168_v63, %v1168_v63  ;;  %v725_v23 = vsel %vm647_vm3, %v1168_v63, 0.0  ;;  %687 = vst.msk [vmem:[%s2008_s2 + $0x138] sm:$0xff] %vm647_vm3, %v1521_v28 }
  0xdb   :  { %v720_v3 = vadd.f32 %v719_v2, %v718_v62  ;;  %v917_v4 = vadd.f32 %v916_v1, %v915_v61  ;;  %v411_v5 = vpop.f32.mrf.mxu0  ;;  %v1534_v34 = vpop.f32.mrf.mxu1 }
  0xdc   :  { %653 = vst.msk [vmem:[%s2008_s2 + $0x28] sm:$0xff] %vm647_vm3, %v411_v5  ;;  %v721_v9 = vsel %vm647_vm3, %v411_v5, 0.0  ;;  %v852_v10 = vmul.f32 %v411_v5, %v411_v5  ;;  %v924_v29 = vsel %vm647_vm3, %v854_v16, 0.0  ;;  %685 = vst.msk [vmem:[%s2008_s2 + $0x128] sm:$0xff] %vm647_vm3, %v1534_v34 }
  0xdd   :  { %v919_v11 = vadd.f32 %v918_v8, %v917_v4  ;;  %v722_v12 = vadd.f32 %v721_v9, %v720_v3  ;;  %v1171_v13 = vpop.f32.mrf.mxu0  ;;  %v1547_v42 = vpop.f32.mrf.mxu1 }
  0xde   :  { %v920_v17 = vsel %vm647_vm3, %v852_v10, 0.0  ;;  %658 = vst.msk [vmem:[%s2008_s2 + $0x50] sm:$0xff] %vm647_vm3, %v1171_v13  ;;  %v857_v35 = vmul.f32 %v1171_v13, %v1171_v13  ;;  %v731_v43 = vsel %vm647_vm3, %v1171_v13, 0.0  ;;  %690 = vst.msk [vmem:[%s2008_s2 + $0x150] sm:$0xff] %vm647_vm3, %v1547_v42 }
  0xdf   :  { %v724_v18 = vadd.f32 %v723_v15, %v722_v12  ;;  %v921_v19 = vadd.f32 %v920_v17, %v919_v11  ;;  %v424_v20 = vpop.f32.mrf.mxu0  ;;  %v1560_v50 = vpop.f32.mrf.mxu1 }
  0xe0   :  { %656 = vst.msk [vmem:[%s2008_s2 + $0x40] sm:$0xff] %vm647_vm3, %v424_v20  ;;  %v855_v24 = vmul.f32 %v424_v20, %v424_v20  ;;  %v727_v30 = vsel %vm647_vm3, %v424_v20, 0.0  ;;  %v930_v51 = vsel %vm647_vm3, %v857_v35, 0.0  ;;  %688 = vst.msk [vmem:[%s2008_s2 + $0x140] sm:$0xff] %vm647_vm3, %v1560_v50 }
  0xe1   :  { %v923_v25 = vadd.f32 %v922_v22, %v921_v19  ;;  %v726_v26 = vadd.f32 %v725_v23, %v724_v18  ;;  %v1172_v27 = vpop.f32.mrf.mxu0  ;;  %v1573_v58 = vpop.f32.mrf.mxu1 }
  0xe2   :  { %659 = vst.msk [vmem:[%s2008_s2 + $0x58] sm:$0xff] %vm647_vm3, %v1172_v27  ;;  %v926_v36 = vsel %vm647_vm3, %v855_v24, 0.0  ;;  %v858_v44 = vmul.f32 %v1172_v27, %v1172_v27  ;;  %v733_v52 = vsel %vm647_vm3, %v1172_v27, 0.0  ;;  %691 = vst.msk [vmem:[%s2008_s2 + $0x158] sm:$0xff] %vm647_vm3, %v1573_v58 }
  0xe3   :  { %v728_v31 = vadd.f32 %v727_v30, %v726_v26  ;;  %v925_v32 = vadd.f32 %v924_v29, %v923_v25  ;;  %v427_v33 = vpop.f32.mrf.mxu0  ;;  %v1586_v1 = vpop.f32.mrf.mxu1 }
  0xe4   :  { %657 = vst.msk [vmem:[%s2008_s2 + $0x48] sm:$0xff] %vm647_vm3, %v427_v33  ;;  %v729_v37 = vsel %vm647_vm3, %v427_v33, 0.0  ;;  %v856_v38 = vmul.f32 %v427_v33, %v427_v33  ;;  %v932_v59 = vsel %vm647_vm3, %v858_v44, 0.0  ;;  %689 = vst.msk [vmem:[%s2008_s2 + $0x148] sm:$0xff] %vm647_vm3, %v1586_v1 }
  0xe5   :  { %v927_v39 = vadd.f32 %v926_v36, %v925_v32  ;;  %v730_v40 = vadd.f32 %v729_v37, %v728_v31  ;;  %v1175_v41 = vpop.f32.mrf.mxu0  ;;  %v1599_v10 = vpop.f32.mrf.mxu1 }
  0xe6   :  { %v928_v45 = vsel %vm647_vm3, %v856_v38, 0.0  ;;  %662 = vst.msk [vmem:[%s2008_s2 + $0x70] sm:$0xff] %vm647_vm3, %v1175_v41  ;;  %v861_v2 = vmul.f32 %v1175_v41, %v1175_v41  ;;  %v739_v11 = vsel %vm647_vm3, %v1175_v41, 0.0  ;;  %694 = vst.msk [vmem:[%s2008_s2 + $0x170] sm:$0xff] %vm647_vm3, %v1599_v10 }
  0xe7   :  { %v732_v46 = vadd.f32 %v731_v43, %v730_v40  ;;  %v929_v47 = vadd.f32 %v928_v45, %v927_v39  ;;  %v440_v48 = vpop.f32.mrf.mxu0  ;;  %v1612_v18 = vpop.f32.mrf.mxu1 }
  0xe8   :  { %660 = vst.msk [vmem:[%s2008_s2 + $0x60] sm:$0xff] %vm647_vm3, %v440_v48  ;;  %v859_v53 = vmul.f32 %v440_v48, %v440_v48  ;;  %v735_v60 = vsel %vm647_vm3, %v440_v48, 0.0  ;;  %v938_v19 = vsel %vm647_vm3, %v861_v2, 0.0  ;;  %692 = vst.msk [vmem:[%s2008_s2 + $0x160] sm:$0xff] %vm647_vm3, %v1612_v18 }
  0xe9   :  { %v931_v54 = vadd.f32 %v930_v51, %v929_v47  ;;  %v734_v55 = vadd.f32 %v733_v52, %v732_v46  ;;  %v1176_v56 = vpop.f32.mrf.mxu0  ;;  %v1625_v26 = vpop.f32.mrf.mxu1 }
  0xea   :  { %663 = vst.msk [vmem:[%s2008_s2 + $0x78] sm:$0xff] %vm647_vm3, %v1176_v56  ;;  %v934_v3 = vsel %vm647_vm3, %v859_v53, 0.0  ;;  %v862_v12 = vmul.f32 %v1176_v56, %v1176_v56  ;;  %v741_v20 = vsel %vm647_vm3, %v1176_v56, 0.0  ;;  %695 = vst.msk [vmem:[%s2008_s2 + $0x178] sm:$0xff] %vm647_vm3, %v1625_v26 }
  0xeb   :  { %v736_v61 = vadd.f32 %v735_v60, %v734_v55  ;;  %v933_v62 = vadd.f32 %v932_v59, %v931_v54  ;;  %v443_v63 = vpop.f32.mrf.mxu0  ;;  %v1638_v33 = vpop.f32.mrf.mxu1 }
  0xec   :  { %661 = vst.msk [vmem:[%s2008_s2 + $0x68] sm:$0xff] %vm647_vm3, %v443_v63  ;;  %v737_v4 = vsel %vm647_vm3, %v443_v63, 0.0  ;;  %v860_v5 = vmul.f32 %v443_v63, %v443_v63  ;;  %v940_v27 = vsel %vm647_vm3, %v862_v12, 0.0  ;;  %693 = vst.msk [vmem:[%s2008_s2 + $0x168] sm:$0xff] %vm647_vm3, %v1638_v33 }
  0xed   :  { %v935_v7 = vadd.f32 %v934_v3, %v933_v62  ;;  %v738_v8 = vadd.f32 %v737_v4, %v736_v61  ;;  %v1179_v9 = vpop.f32.mrf.mxu0  ;;  %v1651_v43 = vpop.f32.mrf.mxu1 }
  0xee   :  { %v936_v13 = vsel %vm647_vm3, %v860_v5, 0.0  ;;  %666 = vst.msk [vmem:[%s2008_s2 + $0x90] sm:$0xff] %vm647_vm3, %v1179_v9  ;;  %v865_v35 = vmul.f32 %v1179_v9, %v1179_v9  ;;  %v747_v44 = vsel %vm647_vm3, %v1179_v9, 0.0  ;;  %698 = vst.msk [vmem:[%s2008_s2 + $0x190] sm:$0xff] %vm647_vm3, %v1651_v43 }
  0xef   :  { %v740_v15 = vadd.f32 %v739_v11, %v738_v8  ;;  %v937_v16 = vadd.f32 %v936_v13, %v935_v7  ;;  %v456_v17 = vpop.f32.mrf.mxu0  ;;  %v1664_v52 = vpop.f32.mrf.mxu1 }
  0xf0   :  { %664 = vst.msk [vmem:[%s2008_s2 + $0x80] sm:$0xff] %vm647_vm3, %v456_v17  ;;  %v863_v22 = vmul.f32 %v456_v17, %v456_v17  ;;  %v743_v29 = vsel %vm647_vm3, %v456_v17, 0.0  ;;  %v946_v53 = vsel %vm647_vm3, %v865_v35, 0.0  ;;  %696 = vst.msk [vmem:[%s2008_s2 + $0x180] sm:$0xff] %vm647_vm3, %v1664_v52 }
  0xf1   :  { %v939_v23 = vadd.f32 %v938_v19, %v937_v16  ;;  %v742_v24 = vadd.f32 %v741_v20, %v740_v15  ;;  %v1180_v25 = vpop.f32.mrf.mxu0  ;;  %v1677_v61 = vpop.f32.mrf.mxu1 }
  0xf2   :  { %667 = vst.msk [vmem:[%s2008_s2 + $0x98] sm:$0xff] %vm647_vm3, %v1180_v25  ;;  %v942_v36 = vsel %vm647_vm3, %v863_v22, 0.0  ;;  %v866_v45 = vmul.f32 %v1180_v25, %v1180_v25  ;;  %v749_v54 = vsel %vm647_vm3, %v1180_v25, 0.0  ;;  %699 = vst.msk [vmem:[%s2008_s2 + $0x198] sm:$0xff] %vm647_vm3, %v1677_v61 }
  0xf3   :  { %v744_v30 = vadd.f32 %v743_v29, %v742_v24  ;;  %v941_v31 = vadd.f32 %v940_v27, %v939_v23  ;;  %v459_v32 = vpop.f32.mrf.mxu0  ;;  %v1690_v5 = vpop.f32.mrf.mxu1 }
  0xf4   :  { %665 = vst.msk [vmem:[%s2008_s2 + $0x88] sm:$0xff] %vm647_vm3, %v459_v32  ;;  %v745_v37 = vsel %vm647_vm3, %v459_v32, 0.0  ;;  %v864_v38 = vmul.f32 %v459_v32, %v459_v32  ;;  %v948_v62 = vsel %vm647_vm3, %v866_v45, 0.0  ;;  %697 = vst.msk [vmem:[%s2008_s2 + $0x188] sm:$0xff] %vm647_vm3, %v1690_v5 }
  0xf5   :  { %v943_v39 = vadd.f32 %v942_v36, %v941_v31  ;;  %v746_v40 = vadd.f32 %v745_v37, %v744_v30  ;;  %v1183_v41 = vpop.f32.mrf.mxu0  ;;  %v1703_v16 = vpop.f32.mrf.mxu1 }
  0xf6   :  { %v944_v46 = vsel %vm647_vm3, %v864_v38, 0.0  ;;  %670 = vst.msk [vmem:[%s2008_s2 + $0xb0] sm:$0xff] %vm647_vm3, %v1183_v41  ;;  %v869_v7 = vmul.f32 %v1183_v41, %v1183_v41  ;;  %v755_v17 = vsel %vm647_vm3, %v1183_v41, 0.0  ;;  %702 = vst.msk [vmem:[%s2008_s2 + $0x1b0] sm:$0xff] %vm647_vm3, %v1703_v16 }
  0xf7   :  { %v748_v47 = vadd.f32 %v747_v44, %v746_v40  ;;  %v945_v48 = vadd.f32 %v944_v46, %v943_v39  ;;  %v472_v51 = vpop.f32.mrf.mxu0  ;;  %v1716_v25 = vpop.f32.mrf.mxu1 }
  0xf8   :  { %668 = vst.msk [vmem:[%s2008_s2 + $0xa0] sm:$0xff] %vm647_vm3, %v472_v51  ;;  %v867_v55 = vmul.f32 %v472_v51, %v472_v51  ;;  %v751_v63 = vsel %vm647_vm3, %v472_v51, 0.0  ;;  %v954_v27 = vsel %vm647_vm3, %v869_v7, 0.0  ;;  %700 = vst.msk [vmem:[%s2008_s2 + $0x1a0] sm:$0xff] %vm647_vm3, %v1716_v25 }
  0xf9   :  { %v947_v56 = vadd.f32 %v946_v53, %v945_v48  ;;  %v750_v59 = vadd.f32 %v749_v54, %v748_v47  ;;  %v1184_v60 = vpop.f32.mrf.mxu0  ;;  %v1729_v36 = vpop.f32.mrf.mxu1 }
  0xfa   :  { %671 = vst.msk [vmem:[%s2008_s2 + $0xb8] sm:$0xff] %vm647_vm3, %v1184_v60  ;;  %v950_v8 = vsel %vm647_vm3, %v867_v55, 0.0  ;;  %v870_v19 = vmul.f32 %v1184_v60, %v1184_v60  ;;  %v757_v29 = vsel %vm647_vm3, %v1184_v60, 0.0  ;;  %703 = vst.msk [vmem:[%s2008_s2 + $0x1b8] sm:$0xff] %vm647_vm3, %v1729_v36 }
  0xfb   :  { %v752_v2 = vadd.f32 %v751_v63, %v750_v59  ;;  %v949_v3 = vadd.f32 %v948_v62, %v947_v56  ;;  %v475_v4 = vpop.f32.mrf.mxu0  ;;  %v1742_v44 = vpop.f32.mrf.mxu1 }
  0xfc   :  { %669 = vst.msk [vmem:[%s2008_s2 + $0xa8] sm:$0xff] %vm647_vm3, %v475_v4  ;;  %v753_v9 = vsel %vm647_vm3, %v475_v4, 0.0  ;;  %v868_v11 = vmul.f32 %v475_v4, %v475_v4  ;;  %v956_v37 = vsel %vm647_vm3, %v870_v19, 0.0  ;;  %701 = vst.msk [vmem:[%s2008_s2 + $0x1a8] sm:$0xff] %vm647_vm3, %v1742_v44 }
  0xfd   :  { %v951_v12 = vadd.f32 %v950_v8, %v949_v3  ;;  %v754_v13 = vadd.f32 %v753_v9, %v752_v2  ;;  %v1187_v15 = vpop.f32.mrf.mxu0  ;;  %v1755_v55 = vpop.f32.mrf.mxu1 }
  0xfe   :  { %v952_v20 = vsel %vm647_vm3, %v868_v11, 0.0  ;;  %674 = vst.msk [vmem:[%s2008_s2 + $0xd0] sm:$0xff] %vm647_vm3, %v1187_v15  ;;  %v873_v45 = vmul.f32 %v1187_v15, %v1187_v15  ;;  %v763_v56 = vsel %vm647_vm3, %v1187_v15, 0.0  ;;  %706 = vst.msk [vmem:[%s2008_s2 + $0x1d0] sm:$0xff] %vm647_vm3, %v1755_v55 }
  0xff   :  { %v756_v22 = vadd.f32 %v755_v17, %v754_v13  ;;  %v953_v23 = vadd.f32 %v952_v20, %v951_v12  ;;  %v488_v24 = vpop.f32.mrf.mxu0  ;;  %v1768_v3 = vpop.f32.mrf.mxu1 }
 0x100   :  { %672 = vst.msk [vmem:[%s2008_s2 + $0xc0] sm:$0xff] %vm647_vm3, %v488_v24  ;;  %v871_v30 = vmul.f32 %v488_v24, %v488_v24  ;;  %v759_v38 = vsel %vm647_vm3, %v488_v24, 0.0  ;;  %v962_v4 = vsel %vm647_vm3, %v873_v45, 0.0  ;;  %704 = vst.msk [vmem:[%s2008_s2 + $0x1c0] sm:$0xff] %vm647_vm3, %v1768_v3 }
 0x101   :  { %v955_v31 = vadd.f32 %v954_v27, %v953_v23  ;;  %v758_v32 = vadd.f32 %v757_v29, %v756_v22  ;;  %v1188_v35 = vpop.f32.mrf.mxu0  ;;  %v1781_v13 = vpop.f32.mrf.mxu1 }
 0x102   :  { %675 = vst.msk [vmem:[%s2008_s2 + $0xd8] sm:$0xff] %vm647_vm3, %v1188_v35  ;;  %v958_v46 = vsel %vm647_vm3, %v871_v30, 0.0  ;;  %v874_v59 = vmul.f32 %v1188_v35, %v1188_v35  ;;  %v765_v7 = vsel %vm647_vm3, %v1188_v35, 0.0  ;;  %707 = vst.msk [vmem:[%s2008_s2 + $0x1d8] sm:$0xff] %vm647_vm3, %v1781_v13 }
 0x103   :  { %v760_v39 = vadd.f32 %v759_v38, %v758_v32  ;;  %v957_v40 = vadd.f32 %v956_v37, %v955_v31  ;;  %v491_v41 = vpop.f32.mrf.mxu0  ;;  %v1794_v23 = vpop.f32.mrf.mxu1 }
 0x104   :  { %673 = vst.msk [vmem:[%s2008_s2 + $0xc8] sm:$0xff] %vm647_vm3, %v491_v41  ;;  %v761_v47 = vsel %vm647_vm3, %v491_v41, 0.0  ;;  %v872_v48 = vmul.f32 %v491_v41, %v491_v41  ;;  %v964_v15 = vsel %vm647_vm3, %v874_v59, 0.0  ;;  %705 = vst.msk [vmem:[%s2008_s2 + $0x1c8] sm:$0xff] %vm647_vm3, %v1794_v23  ;;  %v775_v59 = vsel %vm647_vm3, %v1456_v57, 0.0 }
 0x105   :  { %v959_v51 = vadd.f32 %v958_v46, %v957_v40  ;;  %v762_v53 = vadd.f32 %v761_v47, %v760_v39  ;;  %v1191_v54 = vpop.f32.mrf.mxu0  ;;  %v1807_v35 = vpop.f32.mrf.mxu1 }
 0x106   :  { %v960_v60 = vsel %vm647_vm3, %v872_v48, 0.0  ;;  %678 = vst.msk [vmem:[%s2008_s2 + $0xf0] sm:$0xff] %vm647_vm3, %v1191_v54  ;;  %v877_v24 = vmul.f32 %v1191_v54, %v1191_v54  ;;  %v771_v37 = vsel %vm647_vm3, %v1191_v54, 0.0  ;;  %710 = vst.msk [vmem:[%s2008_s2 + $0x1f0] sm:$0xff] %vm647_vm3, %v1807_v35  ;;  %v879_v48 = vmul.f32 %v1456_v57, %v1456_v57 }
 0x107   :  { %v764_v62 = vadd.f32 %v763_v56, %v762_v53  ;;  %v961_v63 = vadd.f32 %v960_v60, %v959_v51  ;;  %v504_v2 = vpop.f32.mrf.mxu0  ;;  %v1816_v45 = vpop.f32.mrf.mxu1  ;;  %v880_v60 = vmul.f32 %v1482_v6, %v1482_v6  ;;  %v777_v57 = vsel %vm647_vm3, %v1482_v6, 0.0 }
 0x108   :  { %676 = vst.msk [vmem:[%s2008_s2 + $0xe0] sm:$0xff] %vm647_vm3, %v504_v2  ;;  %v875_v8 = vmul.f32 %v504_v2, %v504_v2  ;;  %v767_v17 = vsel %vm647_vm3, %v504_v2, 0.0  ;;  %v970_v46 = vsel %vm647_vm3, %v877_v24, 0.0  ;;  %708 = vst.msk [vmem:[%s2008_s2 + $0x1e0] sm:$0xff] %vm647_vm3, %v1816_v45 }
 0x109   :  { %v963_v9 = vadd.f32 %v962_v4, %v961_v63  ;;  %v766_v11 = vadd.f32 %v765_v7, %v764_v62  ;;  %v1192_v12 = vpop.f32.mrf.mxu0  ;;  %v1827_v54 = vpop.f32.mrf.mxu1  ;;  %v881_v4 = vmul.f32 %v1442_v49, %v1442_v49  ;;  %v974_v7 = vsel %vm647_vm3, %v879_v48, 0.0 }
 0x10a   :  { %679 = vst.msk [vmem:[%s2008_s2 + $0xf8] sm:$0xff] %vm647_vm3, %v1192_v12  ;;  %v966_v27 = vsel %vm647_vm3, %v875_v8, 0.0  ;;  %v878_v38 = vmul.f32 %v1192_v12, %v1192_v12  ;;  %v773_v47 = vsel %vm647_vm3, %v1192_v12, 0.0  ;;  %711 = vst.msk [vmem:[%s2008_s2 + $0x1f8] sm:$0xff] %vm647_vm3, %v1827_v54  ;;  %v882_v12 = vmul.f32 %v1469_v0, %v1469_v0 }
 0x10b   :  { %v768_v19 = vadd.f32 %v767_v17, %v766_v11  ;;  %v965_v20 = vadd.f32 %v964_v15, %v963_v9  ;;  %v507_v22 = vpop.f32.mrf.mxu0  ;;  %v1839_v2 = vpop.f32.mrf.mxu1  ;;  %v779_v11 = vsel %vm647_vm3, %v1442_v49, 0.0  ;;  %v976_v15 = vsel %vm647_vm3, %v880_v60, 0.0 }
 0x10c   :  { %677 = vst.msk [vmem:[%s2008_s2 + $0xe8] sm:$0xff] %vm647_vm3, %v507_v22  ;;  %v769_v29 = vsel %vm647_vm3, %v507_v22, 0.0  ;;  %v876_v30 = vmul.f32 %v507_v22, %v507_v22  ;;  %v972_v56 = vsel %vm647_vm3, %v878_v38, 0.0  ;;  %709 = vst.msk [vmem:[%s2008_s2 + $0x1e8] sm:$0xff] %vm647_vm3, %v1839_v2  ;;  %v978_v6 = vsel %vm647_vm3, %v881_v4, 0.0 }
 0x10d   :  { %v967_v31 = vadd.f32 %v966_v27, %v965_v20  ;;  %v770_v32 = vadd.f32 %v769_v29, %v768_v19  ;;  %v781_v20 = vsel %vm647_vm3, %v1469_v0, 0.0  ;;  %v883_v22 = vmul.f32 %v1508_v21, %v1508_v21 }
 0x10e   :  { %v968_v39 = vsel %vm647_vm3, %v876_v30, 0.0  ;;  %v980_v29 = vsel %vm647_vm3, %v882_v12, 0.0  ;;  %v783_v49 = vsel %vm647_vm3, %v1508_v21, 0.0  ;;  %v884_v30 = vmul.f32 %v1534_v34, %v1534_v34 }
 0x10f   :  { %v772_v40 = vadd.f32 %v771_v37, %v770_v32  ;;  %v969_v41 = vadd.f32 %v968_v39, %v967_v31  ;;  %v885_v37 = vmul.f32 %v1495_v14, %v1495_v14  ;;  %v982_v0 = vsel %vm647_vm3, %v883_v22, 0.0 }
 0x110   :  { %v785_v38 = vsel %vm647_vm3, %v1534_v34, 0.0  ;;  %v886_v21 = vmul.f32 %v1521_v28, %v1521_v28  ;;  %v887_v34 = vmul.f32 %v1560_v50, %v1560_v50 }
 0x111   :  { %v774_v51 = vadd.f32 %v773_v47, %v772_v40  ;;  %v971_v53 = vadd.f32 %v970_v46, %v969_v41  ;;  %v787_v41 = vsel %vm647_vm3, %v1495_v14, 0.0  ;;  %v984_v46 = vsel %vm647_vm3, %v884_v30, 0.0 }
 0x112   :  { %v988_v60 = vsel %vm647_vm3, %v886_v21, 0.0  ;;  %v791_v14 = vsel %vm647_vm3, %v1560_v50, 0.0  ;;  %v890_v50 = vmul.f32 %v1573_v58, %v1573_v58  ;;  %v893_v30 = vmul.f32 %v1599_v10, %v1599_v10 }
 0x113   :  { %v973_v62 = vadd.f32 %v972_v56, %v971_v53  ;;  %v776_v63 = vadd.f32 %v775_v59, %v774_v51  ;;  %v986_v51 = vsel %vm647_vm3, %v885_v37, 0.0  ;;  %v789_v53 = vsel %vm647_vm3, %v1521_v28, 0.0 }
 0x114   :  { %v990_v28 = vsel %vm647_vm3, %v887_v34, 0.0  ;;  %v805_v21 = vsel %vm647_vm3, %v1625_v26, 0.0 }
 0x115   :  { %v778_v8 = vadd.f32 %v777_v57, %v776_v63  ;;  %v975_v9 = vadd.f32 %v974_v7, %v973_v62  ;;  %v888_v62 = vmul.f32 %v1586_v1, %v1586_v1  ;;  %v889_v7 = vmul.f32 %v1547_v42, %v1547_v42 }
 0x116   :  { %v793_v57 = vsel %vm647_vm3, %v1586_v1, 0.0  ;;  %v891_v1 = vmul.f32 %v1612_v18, %v1612_v18 }
 0x117   :  { %v780_v17 = vadd.f32 %v779_v11, %v778_v8  ;;  %v977_v19 = vadd.f32 %v976_v15, %v975_v9  ;;  %v795_v11 = vsel %vm647_vm3, %v1547_v42, 0.0  ;;  %v992_v12 = vsel %vm647_vm3, %v888_v62, 0.0 }
 0x118   :  { %v799_v42 = vsel %vm647_vm3, %v1612_v18, 0.0  ;;  %v894_v18 = vmul.f32 %v1625_v26, %v1625_v26  ;;  %v811_v62 = vsel %vm647_vm3, %v1651_v43, 0.0 }
 0x119   :  { %v979_v24 = vadd.f32 %v978_v6, %v977_v19  ;;  %v782_v27 = vadd.f32 %v781_v20, %v780_v17  ;;  %v994_v19 = vsel %vm647_vm3, %v889_v7, 0.0  ;;  %v797_v6 = vsel %vm647_vm3, %v1573_v58, 0.0 }
 0x11a   :  { %v998_v58 = vsel %vm647_vm3, %v891_v1, 0.0 }
 0x11b   :  { %v784_v31 = vadd.f32 %v783_v49, %v782_v27  ;;  %v981_v32 = vadd.f32 %v980_v29, %v979_v24  ;;  %v996_v24 = vsel %vm647_vm3, %v890_v50, 0.0  ;;  %v892_v27 = vmul.f32 %v1638_v33, %v1638_v33 }
 0x11c   :  { %v900_v50 = vmul.f32 %v1742_v44, %v1742_v44 }
 0x11d   :  { %v983_v39 = vadd.f32 %v982_v0, %v981_v32  ;;  %v786_v40 = vadd.f32 %v785_v38, %v784_v31  ;;  %v801_v31 = vsel %vm647_vm3, %v1638_v33, 0.0  ;;  %v803_v0 = vsel %vm647_vm3, %v1599_v10, 0.0 }
 0x11e   :  { %v1000_v38 = vsel %vm647_vm3, %v892_v27, 0.0  ;;  %v895_v33 = vmul.f32 %v1664_v52, %v1664_v52  ;;  %v807_v10 = vsel %vm647_vm3, %v1664_v52, 0.0  ;;  %v898_v52 = vmul.f32 %v1677_v61, %v1677_v61 }
 0x11f   :  { %v788_v47 = vadd.f32 %v787_v41, %v786_v40  ;;  %v985_v48 = vadd.f32 %v984_v46, %v983_v39  ;;  %v1002_v41 = vsel %vm647_vm3, %v893_v30, 0.0 }
 0x120   :  { %v1006_v26 = vsel %vm647_vm3, %v895_v33, 0.0 }
 0x121   :  { %v987_v56 = vadd.f32 %v986_v51, %v985_v48  ;;  %v790_v59 = vadd.f32 %v789_v53, %v788_v47  ;;  %v1004_v48 = vsel %vm647_vm3, %v894_v18, 0.0  ;;  %v896_v51 = vmul.f32 %v1690_v5, %v1690_v5 }
 0x122   :  { %v825_v18 = vsel %vm647_vm3, %v1794_v23, 0.0 }
 0x123   :  { %v792_v63 = vadd.f32 %v791_v14, %v790_v59  ;;  %v989_v4 = vadd.f32 %v988_v60, %v987_v56  ;;  %v897_v56 = vmul.f32 %v1651_v43, %v1651_v43  ;;  %v809_v59 = vsel %vm647_vm3, %v1690_v5, 0.0 }
 0x124   :  { %v899_v5 = vmul.f32 %v1716_v25, %v1716_v25  ;;  %v815_v43 = vsel %vm647_vm3, %v1716_v25, 0.0  ;;  %v902_v25 = vmul.f32 %v1729_v36, %v1729_v36 }
 0x125   :  { %v991_v8 = vadd.f32 %v990_v28, %v989_v4  ;;  %v794_v9 = vadd.f32 %v793_v57, %v792_v63  ;;  %v1008_v63 = vsel %vm647_vm3, %v896_v51, 0.0  ;;  %v1010_v28 = vsel %vm647_vm3, %v897_v56, 0.0 }
 0x126   :  { %v813_v57 = vsel %vm647_vm3, %v1677_v61, 0.0  ;;  %v1014_v61 = vsel %vm647_vm3, %v899_v5, 0.0 }
 0x127   :  { %v796_v15 = vadd.f32 %v795_v11, %v794_v9  ;;  %v993_v17 = vadd.f32 %v992_v12, %v991_v8  ;;  %v1012_v11 = vsel %vm647_vm3, %v898_v52, 0.0 }
 0x129   :  { %v995_v20 = vadd.f32 %v994_v19, %v993_v17  ;;  %v798_v22 = vadd.f32 %v797_v6, %v796_v15  ;;  %v901_v17 = vmul.f32 %v1703_v16, %v1703_v16  ;;  %v817_v19 = vsel %vm647_vm3, %v1742_v44, 0.0 }
 0x12a   :  { %v903_v44 = vmul.f32 %v1768_v3, %v1768_v3 }
 0x12b   :  { %v800_v29 = vadd.f32 %v799_v42, %v798_v22  ;;  %v997_v49 = vadd.f32 %v996_v24, %v995_v20  ;;  %v819_v20 = vsel %vm647_vm3, %v1703_v16, 0.0  ;;  %v1016_v22 = vsel %vm647_vm3, %v900_v50, 0.0 }
 0x12c   :  { %v1018_v27 = vsel %vm647_vm3, %v901_v17, 0.0  ;;  %v823_v16 = vsel %vm647_vm3, %v1768_v3, 0.0  ;;  %v906_v3 = vmul.f32 %v1781_v13, %v1781_v13 }
 0x12d   :  { %v999_v32 = vadd.f32 %v998_v58, %v997_v49  ;;  %v802_v37 = vadd.f32 %v801_v31, %v800_v29  ;;  %v821_v29 = vsel %vm647_vm3, %v1729_v36, 0.0  ;;  %v1020_v58 = vsel %vm647_vm3, %v902_v25, 0.0 }
 0x12e   :  { %v904_v31 = vmul.f32 %v1794_v23, %v1794_v23  ;;  %v1022_v36 = vsel %vm647_vm3, %v903_v44, 0.0  ;;  %v907_v23 = vmul.f32 %v1816_v45, %v1816_v45  ;;  %v1028_v51 = vsel %vm647_vm3, %v906_v3, 0.0 }
 0x12f   :  { %v804_v39 = vadd.f32 %v803_v0, %v802_v37  ;;  %v1001_v40 = vadd.f32 %v1000_v38, %v999_v32  ;;  %v905_v0 = vmul.f32 %v1755_v55, %v1755_v55 }
 0x131   :  { %v1003_v46 = vadd.f32 %v1002_v41, %v1001_v40  ;;  %v806_v47 = vadd.f32 %v805_v21, %v804_v39  ;;  %v827_v40 = vsel %vm647_vm3, %v1755_v55, 0.0  ;;  %v1024_v41 = vsel %vm647_vm3, %v904_v31, 0.0 }
 0x132   :  { %v831_v55 = vsel %vm647_vm3, %v1816_v45, 0.0  ;;  %v910_v45 = vmul.f32 %v1827_v54, %v1827_v54 }
 0x133   :  { %v808_v53 = vadd.f32 %v807_v10, %v806_v47  ;;  %v1005_v34 = vadd.f32 %v1004_v48, %v1003_v46  ;;  %v1026_v46 = vsel %vm647_vm3, %v905_v0, 0.0  ;;  %v829_v47 = vsel %vm647_vm3, %v1781_v13, 0.0 }
 0x134   :  { %v1030_v13 = vsel %vm647_vm3, %v907_v23, 0.0 }
 0x135   :  { %v1007_v60 = vadd.f32 %v1006_v26, %v1005_v34  ;;  %v810_v14 = vadd.f32 %v809_v59, %v808_v53  ;;  %v908_v53 = vmul.f32 %v1839_v2, %v1839_v2  ;;  %v909_v26 = vmul.f32 %v1807_v35, %v1807_v35 }
 0x136   :  { %v833_v59 = vsel %vm647_vm3, %v1839_v2, 0.0  ;;  %v1036_v2 = vsel %vm647_vm3, %v910_v45, 0.0 }
 0x137   :  { %v812_v4 = vadd.f32 %v811_v62, %v810_v14  ;;  %v1009_v7 = vadd.f32 %v1008_v63, %v1007_v60  ;;  %v835_v62 = vsel %vm647_vm3, %v1807_v35, 0.0  ;;  %v1032_v52 = vsel %vm647_vm3, %v908_v53, 0.0 }
 0x139   :  { %v1011_v8 = vadd.f32 %v1010_v28, %v1009_v7  ;;  %v814_v9 = vadd.f32 %v813_v57, %v812_v4  ;;  %v1034_v7 = vsel %vm647_vm3, %v909_v26, 0.0  ;;  %v837_v28 = vsel %vm647_vm3, %v1827_v54, 0.0 }
 0x13b   :  { %v816_v12 = vadd.f32 %v815_v43, %v814_v9  ;;  %v1013_v15 = vadd.f32 %v1012_v11, %v1011_v8 }
 0x13d   :  { %v1015_v6 = vadd.f32 %v1014_v61, %v1013_v15  ;;  %v818_v1 = vadd.f32 %v817_v19, %v816_v12 }
 0x13f   :  { %v820_v24 = vadd.f32 %v819_v20, %v818_v1  ;;  %v1017_v42 = vadd.f32 %v1016_v22, %v1015_v6 }
 0x141   :  { %v1019_v49 = vadd.f32 %v1018_v27, %v1017_v42  ;;  %v822_v30 = vadd.f32 %v821_v29, %v820_v24 }
 0x143   :  { %v824_v32 = vadd.f32 %v823_v16, %v822_v30  ;;  %v1021_v37 = vadd.f32 %v1020_v58, %v1019_v49 }
 0x145   :  { %v1023_v38 = vadd.f32 %v1022_v36, %v1021_v37  ;;  %v826_v39 = vadd.f32 %v825_v18, %v824_v32 }
 0x147   :  { %v828_v21 = vadd.f32 %v827_v40, %v826_v39  ;;  %v1025_v33 = vadd.f32 %v1024_v41, %v1023_v38 }
 0x149   :  { %v1027_v48 = vadd.f32 %v1026_v46, %v1025_v33  ;;  %v830_v10 = vadd.f32 %v829_v47, %v828_v21 }
 0x14b   :  { %v832_v34 = vadd.f32 %v831_v55, %v830_v10  ;;  %v1029_v56 = vadd.f32 %v1028_v51, %v1027_v48 }
 0x14d   :  { %v1031_v60 = vadd.f32 %v1030_v13, %v1029_v56  ;;  %v834_v14 = vadd.f32 %v833_v59, %v832_v34 }
 0x14f   :  { %v836_v63 = vadd.f32 %v835_v62, %v834_v14  ;;  %v1033_v4 = vadd.f32 %v1032_v52, %v1031_v60 }
 0x151   :  { %v838_v57 = vadd.f32 %v837_v28, %v836_v63  ;;  %v1035_v5 = vadd.f32 %v1034_v7, %v1033_v4 }
 0x153   :  { %v839_v8 = vrot.slane %v838_v57, 4  ;;  %v1037_v9 = vadd.f32 %v1036_v2, %v1035_v5 }
 0x155   :  { %v840_v11 = vadd.f32 %v839_v8, %v838_v57  ;;  %v1038_v35 = vrot.slane %v1037_v9, 4 }
 0x157   :  { %v841_v43 = vrot.slane %v840_v11, 2  ;;  %v1039_v50 = vadd.f32 %v1038_v35, %v1037_v9 }
 0x159   :  { %v842_v12 = vadd.f32 %v841_v43, %v840_v11  ;;  %v1040_v15 = vrot.slane %v1039_v50, 2 }
 0x15b   :  { %v843_v17 = vrot.slane %v842_v12, 1  ;;  %v1041_v61 = vadd.f32 %v1040_v15, %v1039_v50 }
 0x15d   :  { %v844_v19 = vadd.f32 %v843_v17, %v842_v12  ;;  %v1042_v6 = vrot.slane %v1041_v61, 1 }
 0x15f   :  { %846 = vst.msk [vmem:[%s2009_s3] sm:$0x1] %vm845_vm4, %v844_v19  ;;  %v1043_v54 = vadd.f32 %v1042_v6, %v1041_v61 }
 0x161   :  { %1044 = vst.msk [vmem:[%s2010_s4] sm:$0x1] %vm845_vm4, %v1043_v54 }

// kernel: unet2d_forward.49
= control target key start
LH: loop header
LB: loop body
LE: loop exit
PB: predicated region body
PF: predicated region fallthrough
CT: control target
= control target key end

     0   :  { %s175_s22 = smov 120   ;;  %vm137_vm0 = vcmask 60416   ;;  %s386_s0 = inlined_call_operand.vmem [shape: bf16[16,2,8,16], index: 0, kind: input, shape index: {}]   ;;  %s387_s1 = inlined_call_operand.vmem [shape: bf16[16,8,8], index: 1, kind: output, shape index: {}]  }
   0x1   :  { %v10_v0 = vld [vmem:[%s386_s0 + $0x10] sm:$0xf]  ;;  %v160_v1 = vld [vmem:[%s386_s0 + $0x14] sm:$0xf]  ;;  %v8_v2 = vld [vmem:[%s386_s0] sm:$0xf] }
   0x2   :  { %v195_v3 = vmax.bf16 %v160_v1, %v10_v0  ;;  %v158_v4 = vld [vmem:[%s386_s0 + $0x4] sm:$0xf]  ;;  %v11_v5 = vld [vmem:[%s386_s0 + $0x18] sm:$0xf]  ;;  %v161_v6 = vld [vmem:[%s386_s0 + $0x1c] sm:$0xf] }
   0x3   :  { %v206_v7 = vmax.bf16 %v158_v4, %v8_v2  ;;  %v9_v8 = vld [vmem:[%s386_s0 + $0x8] sm:$0xf]  ;;  %v159_v9 = vld [vmem:[%s386_s0 + $0xc] sm:$0xf]  ;;  %v216_v10 = vmax.bf16 %v161_v6, %v11_v5  ;;  %v12_v14 = vld [vmem:[%s386_s0 + $0x20] sm:$0xf] }
   0x4   :  { %77 = vrot.lane.b32.xlu1 %v195_v3, %s175_s22  ;;  %v220_v11 = vmax.bf16 %v159_v9, %v9_v8  ;;  %v13_v12 = vld [vmem:[%s386_s0 + $0x28] sm:$0xf]  ;;  %v163_v13 = vld [vmem:[%s386_s0 + $0x2c] sm:$0xf]  ;;  %v162_v15 = vld [vmem:[%s386_s0 + $0x24] sm:$0xf] }
   0x5   :  { %73 = vrot.lane.b32.xlu0 %v206_v7, %s175_s22  ;;  %v236_v16 = vmax.bf16 %v163_v13, %v13_v12  ;;  %v240_v17 = vmax.bf16 %v162_v15, %v12_v14  ;;  %v15_v18 = vld [vmem:[%s386_s0 + $0x38] sm:$0xf]  ;;  %v165_v19 = vld [vmem:[%s386_s0 + $0x3c] sm:$0xf]  ;;  %v14_v20 = vld [vmem:[%s386_s0 + $0x30] sm:$0xf] }
   0x6   :  { %v164_v21 = vld [vmem:[%s386_s0 + $0x34] sm:$0xf]  ;;  %v48_v22 = vmax.bf16 %v165_v19, %v15_v18  ;;  %v17_v24 = vld [vmem:[%s386_s0 + $0x48] sm:$0xf]  ;;  %v167_v25 = vld [vmem:[%s386_s0 + $0x4c] sm:$0xf] }
   0x7   :  { %v47_v23 = vmax.bf16 %v164_v21, %v14_v20  ;;  %v16_v26 = vld [vmem:[%s386_s0 + $0x40] sm:$0xf]  ;;  %v166_v27 = vld [vmem:[%s386_s0 + $0x44] sm:$0xf]  ;;  %v50_v28 = vmax.bf16 %v167_v25, %v17_v24  ;;  %v19_v30 = vld [vmem:[%s386_s0 + $0x58] sm:$0xf] }
   0x8   :  { %79 = vrot.lane.b32.xlu1 %v216_v10, %s175_s22  ;;  %v49_v29 = vmax.bf16 %v166_v27, %v16_v26  ;;  %v169_v31 = vld [vmem:[%s386_s0 + $0x5c] sm:$0xf]  ;;  %v18_v32 = vld [vmem:[%s386_s0 + $0x50] sm:$0xf]  ;;  %v168_v33 = vld [vmem:[%s386_s0 + $0x54] sm:$0xf] }
   0x9   :  { %75 = vrot.lane.b32.xlu0 %v220_v11, %s175_s22  ;;  %v52_v34 = vmax.bf16 %v169_v31, %v19_v30  ;;  %v51_v35 = vmax.bf16 %v168_v33, %v18_v32  ;;  %v21_v36 = vld [vmem:[%s386_s0 + $0x68] sm:$0xf]  ;;  %v171_v37 = vld [vmem:[%s386_s0 + $0x6c] sm:$0xf]  ;;  %v20_v38 = vld [vmem:[%s386_s0 + $0x60] sm:$0xf] }
   0xa   :  { %v170_v39 = vld [vmem:[%s386_s0 + $0x64] sm:$0xf]  ;;  %v54_v40 = vmax.bf16 %v171_v37, %v21_v36  ;;  %v23_v42 = vld [vmem:[%s386_s0 + $0x78] sm:$0xf]  ;;  %v173_v43 = vld [vmem:[%s386_s0 + $0x7c] sm:$0xf] }
   0xb   :  { %v53_v41 = vmax.bf16 %v170_v39, %v20_v38  ;;  %v22_v44 = vld [vmem:[%s386_s0 + $0x70] sm:$0xf]  ;;  %v172_v45 = vld [vmem:[%s386_s0 + $0x74] sm:$0xf]  ;;  %v56_v46 = vmax.bf16 %v173_v43, %v23_v42 }
   0xc   :  { %83 = vrot.lane.b32.xlu1 %v236_v16, %s175_s22  ;;  %v55_v47 = vmax.bf16 %v172_v45, %v22_v44 }
   0xd   :  { %81 = vrot.lane.b32.xlu0 %v240_v17, %s175_s22 }
  0x10   :  { %87 = vrot.lane.b32.xlu1 %v48_v22, %s175_s22 }
  0x11   :  { %85 = vrot.lane.b32.xlu0 %v47_v23, %s175_s22 }
  0x14   :  { %91 = vrot.lane.b32.xlu1 %v50_v28, %s175_s22 }
  0x15   :  { %89 = vrot.lane.b32.xlu0 %v49_v29, %s175_s22 }
  0x18   :  { %95 = vrot.lane.b32.xlu1 %v52_v34, %s175_s22 }
  0x19   :  { %93 = vrot.lane.b32.xlu0 %v51_v35, %s175_s22 }
  0x1c   :  { %99 = vrot.lane.b32.xlu1 %v54_v40, %s175_s22 }
  0x1d   :  { %97 = vrot.lane.b32.xlu0 %v53_v41, %s175_s22 }
  0x20   :  { %103 = vrot.lane.b32.xlu1 %v56_v46, %s175_s22 }
  0x21   :  { %101 = vrot.lane.b32.xlu0 %v55_v47, %s175_s22 }
  0x76   :  { %v78_v48 = vpop.permute.xlu1 %77 }
  0x77   :  { %v123_v49 = vmax.bf16 %v78_v48, %v195_v3  ;;  %v74_v50 = vpop.permute.xlu0 %73 }
  0x78   :  { %v121_v51 = vmax.bf16 %v74_v50, %v206_v7 }
  0x79   :  { %140 = vst.msk [vmem:[%s387_s1 + $0x8] sm:$0xf] %vm137_vm0, %v123_v49 }
  0x7a   :  { %138 = vst.msk [vmem:[%s387_s1] sm:$0xf] %vm137_vm0, %v121_v51  ;;  %v80_v52 = vpop.permute.xlu1 %79 }
  0x7b   :  { %v124_v53 = vmax.bf16 %v80_v52, %v216_v10  ;;  %v76_v54 = vpop.permute.xlu0 %75 }
  0x7c   :  { %v122_v55 = vmax.bf16 %v76_v54, %v220_v11 }
  0x7d   :  { %141 = vst.msk [vmem:[%s387_s1 + $0xc] sm:$0xf] %vm137_vm0, %v124_v53 }
  0x7e   :  { %139 = vst.msk [vmem:[%s387_s1 + $0x4] sm:$0xf] %vm137_vm0, %v122_v55  ;;  %v84_v56 = vpop.permute.xlu1 %83 }
  0x7f   :  { %v126_v57 = vmax.bf16 %v84_v56, %v236_v16  ;;  %v82_v58 = vpop.permute.xlu0 %81 }
  0x80   :  { %v125_v59 = vmax.bf16 %v82_v58, %v240_v17 }
  0x81   :  { %143 = vst.msk [vmem:[%s387_s1 + $0x14] sm:$0xf] %vm137_vm0, %v126_v57 }
  0x82   :  { %142 = vst.msk [vmem:[%s387_s1 + $0x10] sm:$0xf] %vm137_vm0, %v125_v59  ;;  %v88_v60 = vpop.permute.xlu1 %87 }
  0x83   :  { %v128_v61 = vmax.bf16 %v88_v60, %v48_v22  ;;  %v86_v62 = vpop.permute.xlu0 %85 }
  0x84   :  { %v127_v63 = vmax.bf16 %v86_v62, %v47_v23 }
  0x85   :  { %145 = vst.msk [vmem:[%s387_s1 + $0x1c] sm:$0xf] %vm137_vm0, %v128_v61 }
  0x86   :  { %144 = vst.msk [vmem:[%s387_s1 + $0x18] sm:$0xf] %vm137_vm0, %v127_v63  ;;  %v92_v0 = vpop.permute.xlu1 %91 }
  0x87   :  { %v130_v1 = vmax.bf16 %v92_v0, %v50_v28  ;;  %v90_v2 = vpop.permute.xlu0 %89 }
  0x88   :  { %v129_v3 = vmax.bf16 %v90_v2, %v49_v29 }
  0x89   :  { %147 = vst.msk [vmem:[%s387_s1 + $0x24] sm:$0xf] %vm137_vm0, %v130_v1 }
  0x8a   :  { %146 = vst.msk [vmem:[%s387_s1 + $0x20] sm:$0xf] %vm137_vm0, %v129_v3  ;;  %v96_v4 = vpop.permute.xlu1 %95 }
  0x8b   :  { %v132_v5 = vmax.bf16 %v96_v4, %v52_v34  ;;  %v94_v6 = vpop.permute.xlu0 %93 }
  0x8c   :  { %v131_v7 = vmax.bf16 %v94_v6, %v51_v35 }
  0x8d   :  { %149 = vst.msk [vmem:[%s387_s1 + $0x2c] sm:$0xf] %vm137_vm0, %v132_v5 }
  0x8e   :  { %148 = vst.msk [vmem:[%s387_s1 + $0x28] sm:$0xf] %vm137_vm0, %v131_v7  ;;  %v100_v8 = vpop.permute.xlu1 %99 }
  0x8f   :  { %v134_v9 = vmax.bf16 %v100_v8, %v54_v40  ;;  %v98_v10 = vpop.permute.xlu0 %97 }
  0x90   :  { %v133_v11 = vmax.bf16 %v98_v10, %v53_v41 }
  0x91   :  { %151 = vst.msk [vmem:[%s387_s1 + $0x34] sm:$0xf] %vm137_vm0, %v134_v9 }
  0x92   :  { %150 = vst.msk [vmem:[%s387_s1 + $0x30] sm:$0xf] %vm137_vm0, %v133_v11  ;;  %v104_v12 = vpop.permute.xlu1 %103 }
  0x93   :  { %v136_v13 = vmax.bf16 %v104_v12, %v56_v46  ;;  %v102_v14 = vpop.permute.xlu0 %101 }
  0x94   :  { %v135_v15 = vmax.bf16 %v102_v14, %v55_v47 }
  0x95   :  { %153 = vst.msk [vmem:[%s387_s1 + $0x3c] sm:$0xf] %vm137_vm0, %v136_v13 }
  0x96   :  { %152 = vst.msk [vmem:[%s387_s1 + $0x38] sm:$0xf] %vm137_vm0, %v135_v15 }

// kernel: unet2d_forward.47
= control target key start
LH: loop header
LB: loop body
LE: loop exit
PB: predicated region body
PF: predicated region fallthrough
CT: control target
= control target key end

     0   :  { %vm372_vm0 = vcmask 1043456   ;;  %vm275_vm1 = vcmask 588800   ;;  %vm665_vm2 = vcmask 64512   ;;  %vm863_vm3 = vcmask 57344   ;;  %s2054_s1 = inlined_call_operand.vmem [shape: bf16[72,8], index: 1, kind: input, shape index: {}]   ;;  %s2055_s0 = inlined_call_operand.vmem [shape: bf16[512,72], index: 0, kind: input, shape index: {}]   ;;  %s2056_s2 = inlined_call_operand.vmem [shape: f32[512,8], index: 2, kind: output, shape index: {0}]   ;;  %s2057_s3 = inlined_call_operand.vmem [shape: f32[1,1,8], index: 3, kind: output, shape index: {1}]   ;;  %s2058_s4 = inlined_call_operand.vmem [shape: f32[1,1,8], index: 4, kind: output, shape index: {2}]  }
   0x1   :  { %v1267_v0 = vld [vmem:[%s2054_s1 + $0x20] ss:$0 sps:$4 sm:$0xff]   ;;  %v1268_v1 = vld [vmem:[%s2054_s1 + $0x18] sm:$0xff]   ;;  %v1269_v3 = vld [vmem:[%s2054_s1 + $0x10] sm:$0xff]  }
   0x2   :  { %1265 = vmatprep.subr.msk.bf16.mxu0 %vm372_vm0, %v1267_v0  ;;  %v374_v2 = vsel %vm372_vm0, %v1267_v0, 0  ;;  %1266 = vmatprep.subr.msk.bf16.mxu1 %vm372_vm0, %v1267_v0  ;;  %v1272_v4 = vld [vmem:[%s2055_s0] sm:$0xff]   ;;  %v1270_v5 = vld [vmem:[%s2054_s1 + $0x8] sm:$0xff]   ;;  %v1274_v8 = vld [vmem:[%s2055_s0 + $0x10] sm:$0xff]  }
   0x3   :  { %1182 = vmatpush3.bf16.msra.mxu0 %v374_v2  ;;  %1260 = vmatpush3.bf16.msra.mxu1 %v374_v2  ;;  %v1271_v6 = vld [vmem:[%s2054_s1] sm:$0xff]   ;;  %v1273_v7 = vld [vmem:[%s2055_s0 + $0x8] sm:$0xff]   ;;  %v1290_v11 = vld [vmem:[%s2055_s0 + $0x90] sm:$0xff]  }
   0x4   :  { %1183 = vmatprep.subr.bf16.mxu0 %v1268_v1  ;;  %1256 = vmatprep.subr.bf16.mxu1 %v1268_v1  ;;  %v1288_v9 = vld [vmem:[%s2055_s0 + $0x80] sm:$0xff]   ;;  %v1289_v10 = vld [vmem:[%s2055_s0 + $0x88] sm:$0xff]   ;;  %v1275_v12 = vld [vmem:[%s2055_s0 + $0x18] sm:$0xff]  }
   0x5   :  { %1191 = vmatprep.mubr.msk.bf16.mxu0 %vm275_vm1, %v1272_v4  ;;  %1223 = vmatprep.mubr.msk.bf16.mxu1 %vm275_vm1, %v1288_v9  ;;  %v1276_v13 = vld [vmem:[%s2055_s0 + $0x20] sm:$0xff]   ;;  %v1291_v14 = vld [vmem:[%s2055_s0 + $0x98] sm:$0xff]   ;;  %v1277_v16 = vld [vmem:[%s2055_s0 + $0x28] sm:$0xff]  }
   0x6   :  { %v1292_v15 = vld [vmem:[%s2055_s0 + $0xa0] sm:$0xff]   ;;  %v1278_v17 = vld [vmem:[%s2055_s0 + $0x30] sm:$0xff]   ;;  %v1293_v18 = vld [vmem:[%s2055_s0 + $0xa8] sm:$0xff]  }
   0x7   :  { %1184 = vmatpush3.bf16.msra.mxu0 %v1268_v1  ;;  %1261 = vmatpush3.bf16.msra.mxu1 %v1268_v1  ;;  %v1294_v19 = vld [vmem:[%s2055_s0 + $0xb0] sm:$0xff]   ;;  %v1279_v20 = vld [vmem:[%s2055_s0 + $0x38] sm:$0xff]   ;;  %v1280_v21 = vld [vmem:[%s2055_s0 + $0x40] sm:$0xff]  }
   0x8   :  { %1185 = vmatprep.subr.bf16.mxu0 %v1269_v3  ;;  %1257 = vmatprep.subr.bf16.mxu1 %v1269_v3  ;;  %v1295_v22 = vld [vmem:[%s2055_s0 + $0xb8] sm:$0xff]   ;;  %v1296_v23 = vld [vmem:[%s2055_s0 + $0xc0] sm:$0xff]   ;;  %v1281_v24 = vld [vmem:[%s2055_s0 + $0x48] sm:$0xff]  }
   0x9   :  { %v1282_v25 = vld [vmem:[%s2055_s0 + $0x50] sm:$0xff]   ;;  %v1297_v26 = vld [vmem:[%s2055_s0 + $0xc8] sm:$0xff]   ;;  %v1283_v28 = vld [vmem:[%s2055_s0 + $0x58] sm:$0xff]  }
   0xa   :  { %v1298_v27 = vld [vmem:[%s2055_s0 + $0xd0] sm:$0xff]   ;;  %v1284_v29 = vld [vmem:[%s2055_s0 + $0x60] sm:$0xff]   ;;  %v1299_v30 = vld [vmem:[%s2055_s0 + $0xd8] sm:$0xff]  }
   0xb   :  { %1186 = vmatpush3.bf16.msra.mxu0 %v1269_v3  ;;  %1262 = vmatpush3.bf16.msra.mxu1 %v1269_v3  ;;  %v1300_v31 = vld [vmem:[%s2055_s0 + $0xe0] sm:$0xff]   ;;  %v1285_v32 = vld [vmem:[%s2055_s0 + $0x68] sm:$0xff]   ;;  %v1286_v33 = vld [vmem:[%s2055_s0 + $0x70] sm:$0xff]  }
   0xc   :  { %1187 = vmatprep.subr.bf16.mxu0 %v1270_v5  ;;  %1258 = vmatprep.subr.bf16.mxu1 %v1270_v5  ;;  %v1301_v34 = vld [vmem:[%s2055_s0 + $0xe8] sm:$0xff]   ;;  %v1302_v35 = vld [vmem:[%s2055_s0 + $0xf0] sm:$0xff]   ;;  %v1287_v36 = vld [vmem:[%s2055_s0 + $0x78] sm:$0xff]  }
   0xd   :  { %v1303_v37 = vld [vmem:[%s2055_s0 + $0xf8] sm:$0xff]  }
   0xf   :  { %1188 = vmatpush3.bf16.msra.mxu0 %v1270_v5  ;;  %1263 = vmatpush3.bf16.msra.mxu1 %v1270_v5 }
  0x10   :  { %1189 = vmatprep.subr.bf16.mxu0 %v1271_v6  ;;  %1259 = vmatprep.subr.bf16.mxu1 %v1271_v6 }
  0x13   :  { %1190 = vmatpush3.bf16.msra.mxu0 %v1271_v6  ;;  %1264 = vmatpush3.bf16.msra.mxu1 %v1271_v6 }
  0x16   :  { %1192 = vmatmul.mubr.msk.bf16.vlgmr.msra.gmra.mxu0 %vm275_vm1, %v1273_v7  ;;  %1224 = vmatmul.mubr.msk.bf16.vlgmr.msra.gmra.mxu1 %vm275_vm1, %v1289_v10 }
  0x17   :  { %1195 = vmatprep.mubr.msk.bf16.mxu0 %vm275_vm1, %v1274_v8  ;;  %1227 = vmatprep.mubr.msk.bf16.mxu1 %vm275_vm1, %v1290_v11 }
  0x1e   :  { %1196 = vmatmul.mubr.msk.bf16.gmra.mxu0 %vm275_vm1, %v1275_v12  ;;  %1228 = vmatmul.mubr.msk.bf16.gmra.mxu1 %vm275_vm1, %v1291_v14 }
  0x1f   :  { %1199 = vmatprep.mubr.msk.bf16.mxu0 %vm275_vm1, %v1276_v13  ;;  %1231 = vmatprep.mubr.msk.bf16.mxu1 %vm275_vm1, %v1292_v15 }
  0x26   :  { %1200 = vmatmul.mubr.msk.bf16.gmra.mxu0 %vm275_vm1, %v1277_v16  ;;  %1232 = vmatmul.mubr.msk.bf16.gmra.mxu1 %vm275_vm1, %v1293_v18 }
  0x27   :  { %1203 = vmatprep.mubr.msk.bf16.mxu0 %vm275_vm1, %v1278_v17  ;;  %1235 = vmatprep.mubr.msk.bf16.mxu1 %vm275_vm1, %v1294_v19 }
  0x2e   :  { %1204 = vmatmul.mubr.msk.bf16.gmra.mxu0 %vm275_vm1, %v1279_v20  ;;  %1236 = vmatmul.mubr.msk.bf16.gmra.mxu1 %vm275_vm1, %v1295_v22 }
  0x2f   :  { %1207 = vmatprep.mubr.msk.bf16.mxu0 %vm275_vm1, %v1280_v21  ;;  %1239 = vmatprep.mubr.msk.bf16.mxu1 %vm275_vm1, %v1296_v23 }
  0x36   :  { %1208 = vmatmul.mubr.msk.bf16.gmra.mxu0 %vm275_vm1, %v1281_v24  ;;  %1240 = vmatmul.mubr.msk.bf16.gmra.mxu1 %vm275_vm1, %v1297_v26 }
  0x37   :  { %1211 = vmatprep.mubr.msk.bf16.mxu0 %vm275_vm1, %v1282_v25  ;;  %1243 = vmatprep.mubr.msk.bf16.mxu1 %vm275_vm1, %v1298_v27 }
  0x3e   :  { %1212 = vmatmul.mubr.msk.bf16.gmra.mxu0 %vm275_vm1, %v1283_v28  ;;  %1244 = vmatmul.mubr.msk.bf16.gmra.mxu1 %vm275_vm1, %v1299_v30 }
  0x3f   :  { %1215 = vmatprep.mubr.msk.bf16.mxu0 %vm275_vm1, %v1284_v29  ;;  %1247 = vmatprep.mubr.msk.bf16.mxu1 %vm275_vm1, %v1300_v31 }
  0x46   :  { %1216 = vmatmul.mubr.msk.bf16.gmra.mxu0 %vm275_vm1, %v1285_v32  ;;  %1248 = vmatmul.mubr.msk.bf16.gmra.mxu1 %vm275_vm1, %v1301_v34 }
  0x47   :  { %1219 = vmatprep.mubr.msk.bf16.mxu0 %vm275_vm1, %v1286_v33  ;;  %1251 = vmatprep.mubr.msk.bf16.mxu1 %vm275_vm1, %v1302_v35 }
  0x4e   :  { %1220 = vmatmul.mubr.msk.bf16.gmra.mxu0 %vm275_vm1, %v1287_v36  ;;  %1252 = vmatmul.mubr.msk.bf16.gmra.mxu1 %vm275_vm1, %v1303_v37 }
  0xd6   :  { %v1193_v38 = vpop.f32.mrf.mxu0  ;;  %v1476_v40 = vpop.f32.mrf.mxu1 }
  0xd7   :  { %668 = vst.msk [vmem:[%s2056_s2 + $0x10] sm:$0xff] %vm665_vm2, %v1193_v38  ;;  %700 = vst.msk [vmem:[%s2056_s2 + $0x110] sm:$0xff] %vm665_vm2, %v1476_v40  ;;  %v867_v46 = vmul.f32 %v1193_v38, %v1193_v38  ;;  %v733_v53 = vsel %vm665_vm2, %v1193_v38, 0.0 }
  0xd8   :  { %v410_v39 = vpop.f32.mrf.mxu0  ;;  %v1487_v42 = vpop.f32.mrf.mxu1 }
  0xd9   :  { %666 = vst.msk [vmem:[%s2056_s2] sm:$0xff] %vm665_vm2, %v410_v39  ;;  %v865_v43 = vmul.f32 %v410_v39, %v410_v39  ;;  %698 = vst.msk [vmem:[%s2056_s2 + $0x100] sm:$0xff] %vm665_vm2, %v1487_v42  ;;  %v730_v47 = vsel %vm665_vm2, %v410_v39, 0.0  ;;  %v932_v61 = vsel %vm665_vm2, %v867_v46, 0.0 }
  0xda   :  { %v1194_v41 = vpop.f32.mrf.mxu0  ;;  %v1498_v45 = vpop.f32.mrf.mxu1 }
  0xdb   :  { %669 = vst.msk [vmem:[%s2056_s2 + $0x18] sm:$0xff] %vm665_vm2, %v1194_v41  ;;  %701 = vst.msk [vmem:[%s2056_s2 + $0x118] sm:$0xff] %vm665_vm2, %v1498_v45  ;;  %v929_v54 = vsel %vm665_vm2, %v865_v43, 0.0  ;;  %v868_v55 = vmul.f32 %v1194_v41, %v1194_v41  ;;  %v735_v62 = vsel %vm665_vm2, %v1194_v41, 0.0 }
  0xdc   :  { %v413_v44 = vpop.f32.mrf.mxu0  ;;  %v1511_v52 = vpop.f32.mrf.mxu1 }
  0xdd   :  { %667 = vst.msk [vmem:[%s2056_s2 + $0x8] sm:$0xff] %vm665_vm2, %v413_v44  ;;  %v731_v48 = vsel %vm665_vm2, %v413_v44, 0.0  ;;  %v866_v49 = vmul.f32 %v413_v44, %v413_v44  ;;  %699 = vst.msk [vmem:[%s2056_s2 + $0x108] sm:$0xff] %vm665_vm2, %v1511_v52  ;;  %v934_v4 = vsel %vm665_vm2, %v868_v55, 0.0 }
  0xde   :  { %v732_v50 = vadd.f32 %v731_v48, %v730_v47  ;;  %v1197_v51 = vpop.f32.mrf.mxu0  ;;  %v1525_v60 = vpop.f32.mrf.mxu1 }
  0xdf   :  { %v930_v56 = vsel %vm665_vm2, %v866_v49, 0.0  ;;  %672 = vst.msk [vmem:[%s2056_s2 + $0x30] sm:$0xff] %vm665_vm2, %v1197_v51  ;;  %704 = vst.msk [vmem:[%s2056_s2 + $0x130] sm:$0xff] %vm665_vm2, %v1525_v60  ;;  %v871_v10 = vmul.f32 %v1197_v51, %v1197_v51  ;;  %v741_v18 = vsel %vm665_vm2, %v1197_v51, 0.0 }
  0xe0   :  { %v734_v57 = vadd.f32 %v733_v53, %v732_v50  ;;  %v931_v58 = vadd.f32 %v930_v56, %v929_v54  ;;  %v426_v59 = vpop.f32.mrf.mxu0  ;;  %v1538_v3 = vpop.f32.mrf.mxu1 }
  0xe1   :  { %670 = vst.msk [vmem:[%s2056_s2 + $0x20] sm:$0xff] %vm665_vm2, %v426_v59  ;;  %v869_v63 = vmul.f32 %v426_v59, %v426_v59  ;;  %v737_v5 = vsel %vm665_vm2, %v426_v59, 0.0  ;;  %702 = vst.msk [vmem:[%s2056_s2 + $0x120] sm:$0xff] %vm665_vm2, %v1538_v3  ;;  %v940_v25 = vsel %vm665_vm2, %v871_v10, 0.0 }
  0xe2   :  { %v933_v0 = vadd.f32 %v932_v61, %v931_v58  ;;  %v736_v1 = vadd.f32 %v735_v62, %v734_v57  ;;  %v1198_v2 = vpop.f32.mrf.mxu0  ;;  %v1551_v9 = vpop.f32.mrf.mxu1 }
  0xe3   :  { %673 = vst.msk [vmem:[%s2056_s2 + $0x38] sm:$0xff] %vm665_vm2, %v1198_v2  ;;  %v936_v11 = vsel %vm665_vm2, %v869_v63, 0.0  ;;  %705 = vst.msk [vmem:[%s2056_s2 + $0x138] sm:$0xff] %vm665_vm2, %v1551_v9  ;;  %v872_v19 = vmul.f32 %v1198_v2, %v1198_v2  ;;  %v743_v26 = vsel %vm665_vm2, %v1198_v2, 0.0 }
  0xe4   :  { %v738_v6 = vadd.f32 %v737_v5, %v736_v1  ;;  %v935_v7 = vadd.f32 %v934_v4, %v933_v0  ;;  %v429_v8 = vpop.f32.mrf.mxu0  ;;  %v1564_v17 = vpop.f32.mrf.mxu1 }
  0xe5   :  { %671 = vst.msk [vmem:[%s2056_s2 + $0x28] sm:$0xff] %vm665_vm2, %v429_v8  ;;  %v739_v12 = vsel %vm665_vm2, %v429_v8, 0.0  ;;  %v870_v13 = vmul.f32 %v429_v8, %v429_v8  ;;  %703 = vst.msk [vmem:[%s2056_s2 + $0x128] sm:$0xff] %vm665_vm2, %v1564_v17  ;;  %v942_v32 = vsel %vm665_vm2, %v872_v19, 0.0 }
  0xe6   :  { %v937_v14 = vadd.f32 %v936_v11, %v935_v7  ;;  %v740_v15 = vadd.f32 %v739_v12, %v738_v6  ;;  %v1201_v16 = vpop.f32.mrf.mxu0  ;;  %v1577_v24 = vpop.f32.mrf.mxu1 }
  0xe7   :  { %v938_v20 = vsel %vm665_vm2, %v870_v13, 0.0  ;;  %676 = vst.msk [vmem:[%s2056_s2 + $0x50] sm:$0xff] %vm665_vm2, %v1201_v16  ;;  %708 = vst.msk [vmem:[%s2056_s2 + $0x150] sm:$0xff] %vm665_vm2, %v1577_v24  ;;  %v875_v38 = vmul.f32 %v1201_v16, %v1201_v16  ;;  %v749_v49 = vsel %vm665_vm2, %v1201_v16, 0.0 }
  0xe8   :  { %v742_v21 = vadd.f32 %v741_v18, %v740_v15  ;;  %v939_v22 = vadd.f32 %v938_v20, %v937_v14  ;;  %v442_v23 = vpop.f32.mrf.mxu0  ;;  %v1590_v31 = vpop.f32.mrf.mxu1 }
  0xe9   :  { %674 = vst.msk [vmem:[%s2056_s2 + $0x40] sm:$0xff] %vm665_vm2, %v442_v23  ;;  %v873_v27 = vmul.f32 %v442_v23, %v442_v23  ;;  %v745_v33 = vsel %vm665_vm2, %v442_v23, 0.0  ;;  %706 = vst.msk [vmem:[%s2056_s2 + $0x140] sm:$0xff] %vm665_vm2, %v1590_v31  ;;  %v948_v57 = vsel %vm665_vm2, %v875_v38, 0.0 }
  0xea   :  { %v941_v28 = vadd.f32 %v940_v25, %v939_v22  ;;  %v744_v29 = vadd.f32 %v743_v26, %v742_v21  ;;  %v1202_v30 = vpop.f32.mrf.mxu0  ;;  %v1603_v37 = vpop.f32.mrf.mxu1 }
  0xeb   :  { %677 = vst.msk [vmem:[%s2056_s2 + $0x58] sm:$0xff] %vm665_vm2, %v1202_v30  ;;  %v944_v39 = vsel %vm665_vm2, %v873_v27, 0.0  ;;  %709 = vst.msk [vmem:[%s2056_s2 + $0x158] sm:$0xff] %vm665_vm2, %v1603_v37  ;;  %v876_v50 = vmul.f32 %v1202_v30, %v1202_v30  ;;  %v751_v58 = vsel %vm665_vm2, %v1202_v30, 0.0 }
  0xec   :  { %v746_v34 = vadd.f32 %v745_v33, %v744_v29  ;;  %v943_v35 = vadd.f32 %v942_v32, %v941_v28  ;;  %v445_v36 = vpop.f32.mrf.mxu0  ;;  %v1616_v48 = vpop.f32.mrf.mxu1 }
  0xed   :  { %675 = vst.msk [vmem:[%s2056_s2 + $0x48] sm:$0xff] %vm665_vm2, %v445_v36  ;;  %v747_v41 = vsel %vm665_vm2, %v445_v36, 0.0  ;;  %v874_v43 = vmul.f32 %v445_v36, %v445_v36  ;;  %707 = vst.msk [vmem:[%s2056_s2 + $0x148] sm:$0xff] %vm665_vm2, %v1616_v48  ;;  %v950_v1 = vsel %vm665_vm2, %v876_v50, 0.0 }
  0xee   :  { %v945_v44 = vadd.f32 %v944_v39, %v943_v35  ;;  %v748_v46 = vadd.f32 %v747_v41, %v746_v34  ;;  %v1205_v47 = vpop.f32.mrf.mxu0  ;;  %v1629_v56 = vpop.f32.mrf.mxu1 }
  0xef   :  { %v946_v51 = vsel %vm665_vm2, %v874_v43, 0.0  ;;  %680 = vst.msk [vmem:[%s2056_s2 + $0x70] sm:$0xff] %vm665_vm2, %v1205_v47  ;;  %712 = vst.msk [vmem:[%s2056_s2 + $0x170] sm:$0xff] %vm665_vm2, %v1629_v56  ;;  %v879_v8 = vmul.f32 %v1205_v47, %v1205_v47  ;;  %v757_v18 = vsel %vm665_vm2, %v1205_v47, 0.0 }
  0xf0   :  { %v750_v53 = vadd.f32 %v749_v49, %v748_v46  ;;  %v947_v54 = vadd.f32 %v946_v51, %v945_v44  ;;  %v458_v55 = vpop.f32.mrf.mxu0  ;;  %v1642_v0 = vpop.f32.mrf.mxu1 }
  0xf1   :  { %678 = vst.msk [vmem:[%s2056_s2 + $0x60] sm:$0xff] %vm665_vm2, %v458_v55  ;;  %v877_v59 = vmul.f32 %v458_v55, %v458_v55  ;;  %v753_v2 = vsel %vm665_vm2, %v458_v55, 0.0  ;;  %710 = vst.msk [vmem:[%s2056_s2 + $0x160] sm:$0xff] %vm665_vm2, %v1642_v0  ;;  %v956_v26 = vsel %vm665_vm2, %v879_v8, 0.0 }
  0xf2   :  { %v949_v61 = vadd.f32 %v948_v57, %v947_v54  ;;  %v752_v62 = vadd.f32 %v751_v58, %v750_v53  ;;  %v1206_v63 = vpop.f32.mrf.mxu0  ;;  %v1655_v7 = vpop.f32.mrf.mxu1 }
  0xf3   :  { %681 = vst.msk [vmem:[%s2056_s2 + $0x78] sm:$0xff] %vm665_vm2, %v1206_v63  ;;  %v952_v10 = vsel %vm665_vm2, %v877_v59, 0.0  ;;  %713 = vst.msk [vmem:[%s2056_s2 + $0x178] sm:$0xff] %vm665_vm2, %v1655_v7  ;;  %v880_v19 = vmul.f32 %v1206_v63, %v1206_v63  ;;  %v759_v27 = vsel %vm665_vm2, %v1206_v63, 0.0 }
  0xf4   :  { %v754_v4 = vadd.f32 %v753_v2, %v752_v62  ;;  %v951_v5 = vadd.f32 %v950_v1, %v949_v61  ;;  %v461_v6 = vpop.f32.mrf.mxu0  ;;  %v1668_v16 = vpop.f32.mrf.mxu1 }
  0xf5   :  { %679 = vst.msk [vmem:[%s2056_s2 + $0x68] sm:$0xff] %vm665_vm2, %v461_v6  ;;  %v755_v11 = vsel %vm665_vm2, %v461_v6, 0.0  ;;  %v878_v12 = vmul.f32 %v461_v6, %v461_v6  ;;  %711 = vst.msk [vmem:[%s2056_s2 + $0x168] sm:$0xff] %vm665_vm2, %v1668_v16  ;;  %v958_v34 = vsel %vm665_vm2, %v880_v19, 0.0 }
  0xf6   :  { %v953_v13 = vadd.f32 %v952_v10, %v951_v5  ;;  %v756_v14 = vadd.f32 %v755_v11, %v754_v4  ;;  %v1209_v15 = vpop.f32.mrf.mxu0  ;;  %v1681_v25 = vpop.f32.mrf.mxu1 }
  0xf7   :  { %v954_v20 = vsel %vm665_vm2, %v878_v12, 0.0  ;;  %684 = vst.msk [vmem:[%s2056_s2 + $0x90] sm:$0xff] %vm665_vm2, %v1209_v15  ;;  %716 = vst.msk [vmem:[%s2056_s2 + $0x190] sm:$0xff] %vm665_vm2, %v1681_v25  ;;  %v883_v43 = vmul.f32 %v1209_v15, %v1209_v15  ;;  %v765_v54 = vsel %vm665_vm2, %v1209_v15, 0.0 }
  0xf8   :  { %v758_v21 = vadd.f32 %v757_v18, %v756_v14  ;;  %v955_v22 = vadd.f32 %v954_v20, %v953_v13  ;;  %v474_v23 = vpop.f32.mrf.mxu0  ;;  %v1694_v33 = vpop.f32.mrf.mxu1 }
  0xf9   :  { %682 = vst.msk [vmem:[%s2056_s2 + $0x80] sm:$0xff] %vm665_vm2, %v474_v23  ;;  %v881_v28 = vmul.f32 %v474_v23, %v474_v23  ;;  %v761_v35 = vsel %vm665_vm2, %v474_v23, 0.0  ;;  %714 = vst.msk [vmem:[%s2056_s2 + $0x180] sm:$0xff] %vm665_vm2, %v1694_v33  ;;  %v964_v63 = vsel %vm665_vm2, %v883_v43, 0.0 }
  0xfa   :  { %v957_v29 = vadd.f32 %v956_v26, %v955_v22  ;;  %v760_v30 = vadd.f32 %v759_v27, %v758_v21  ;;  %v1210_v32 = vpop.f32.mrf.mxu0  ;;  %v1707_v41 = vpop.f32.mrf.mxu1 }
  0xfb   :  { %685 = vst.msk [vmem:[%s2056_s2 + $0x98] sm:$0xff] %vm665_vm2, %v1210_v32  ;;  %v960_v44 = vsel %vm665_vm2, %v881_v28, 0.0  ;;  %717 = vst.msk [vmem:[%s2056_s2 + $0x198] sm:$0xff] %vm665_vm2, %v1707_v41  ;;  %v884_v55 = vmul.f32 %v1210_v32, %v1210_v32  ;;  %v767_v1 = vsel %vm665_vm2, %v1210_v32, 0.0 }
  0xfc   :  { %v762_v36 = vadd.f32 %v761_v35, %v760_v30  ;;  %v959_v38 = vadd.f32 %v958_v34, %v957_v29  ;;  %v477_v39 = vpop.f32.mrf.mxu0  ;;  %v1720_v53 = vpop.f32.mrf.mxu1 }
  0xfd   :  { %683 = vst.msk [vmem:[%s2056_s2 + $0x88] sm:$0xff] %vm665_vm2, %v477_v39  ;;  %v763_v46 = vsel %vm665_vm2, %v477_v39, 0.0  ;;  %v882_v47 = vmul.f32 %v477_v39, %v477_v39  ;;  %715 = vst.msk [vmem:[%s2056_s2 + $0x188] sm:$0xff] %vm665_vm2, %v1720_v53  ;;  %v966_v10 = vsel %vm665_vm2, %v884_v55, 0.0 }
  0xfe   :  { %v961_v49 = vadd.f32 %v960_v44, %v959_v38  ;;  %v764_v50 = vadd.f32 %v763_v46, %v762_v36  ;;  %v1213_v51 = vpop.f32.mrf.mxu0  ;;  %v1733_v62 = vpop.f32.mrf.mxu1 }
  0xff   :  { %v962_v57 = vsel %vm665_vm2, %v882_v47, 0.0  ;;  %688 = vst.msk [vmem:[%s2056_s2 + $0xb0] sm:$0xff] %vm665_vm2, %v1213_v51  ;;  %720 = vst.msk [vmem:[%s2056_s2 + $0x1b0] sm:$0xff] %vm665_vm2, %v1733_v62  ;;  %v887_v18 = vmul.f32 %v1213_v51, %v1213_v51  ;;  %v773_v28 = vsel %vm665_vm2, %v1213_v51, 0.0 }
 0x100   :  { %v766_v58 = vadd.f32 %v765_v54, %v764_v50  ;;  %v963_v59 = vadd.f32 %v962_v57, %v961_v49  ;;  %v490_v61 = vpop.f32.mrf.mxu0  ;;  %v1746_v8 = vpop.f32.mrf.mxu1 }
 0x101   :  { %686 = vst.msk [vmem:[%s2056_s2 + $0xa0] sm:$0xff] %vm665_vm2, %v490_v61  ;;  %v885_v2 = vmul.f32 %v490_v61, %v490_v61  ;;  %v769_v11 = vsel %vm665_vm2, %v490_v61, 0.0  ;;  %718 = vst.msk [vmem:[%s2056_s2 + $0x1a0] sm:$0xff] %vm665_vm2, %v1746_v8  ;;  %v972_v38 = vsel %vm665_vm2, %v887_v18, 0.0 }
 0x102   :  { %v965_v4 = vadd.f32 %v964_v63, %v963_v59  ;;  %v768_v5 = vadd.f32 %v767_v1, %v766_v58  ;;  %v1214_v6 = vpop.f32.mrf.mxu0  ;;  %v1759_v15 = vpop.f32.mrf.mxu1 }
 0x103   :  { %689 = vst.msk [vmem:[%s2056_s2 + $0xb8] sm:$0xff] %vm665_vm2, %v1214_v6  ;;  %v968_v19 = vsel %vm665_vm2, %v885_v2, 0.0  ;;  %721 = vst.msk [vmem:[%s2056_s2 + $0x1b8] sm:$0xff] %vm665_vm2, %v1759_v15  ;;  %v888_v29 = vmul.f32 %v1214_v6, %v1214_v6  ;;  %v775_v39 = vsel %vm665_vm2, %v1214_v6, 0.0 }
 0x104   :  { %v770_v12 = vadd.f32 %v769_v11, %v768_v5  ;;  %v967_v13 = vadd.f32 %v966_v10, %v965_v4  ;;  %v493_v14 = vpop.f32.mrf.mxu0  ;;  %v1772_v27 = vpop.f32.mrf.mxu1 }
 0x105   :  { %687 = vst.msk [vmem:[%s2056_s2 + $0xa8] sm:$0xff] %vm665_vm2, %v493_v14  ;;  %v771_v20 = vsel %vm665_vm2, %v493_v14, 0.0  ;;  %v886_v21 = vmul.f32 %v493_v14, %v493_v14  ;;  %719 = vst.msk [vmem:[%s2056_s2 + $0x1a8] sm:$0xff] %vm665_vm2, %v1772_v27  ;;  %v974_v50 = vsel %vm665_vm2, %v888_v29, 0.0 }
 0x106   :  { %v969_v22 = vadd.f32 %v968_v19, %v967_v13  ;;  %v772_v23 = vadd.f32 %v771_v20, %v770_v12  ;;  %v1217_v26 = vpop.f32.mrf.mxu0  ;;  %v1785_v36 = vpop.f32.mrf.mxu1 }
 0x107   :  { %v970_v30 = vsel %vm665_vm2, %v886_v21, 0.0  ;;  %692 = vst.msk [vmem:[%s2056_s2 + $0xd0] sm:$0xff] %vm665_vm2, %v1217_v26  ;;  %724 = vst.msk [vmem:[%s2056_s2 + $0x1d0] sm:$0xff] %vm665_vm2, %v1785_v36  ;;  %v891_v59 = vmul.f32 %v1217_v26, %v1217_v26  ;;  %v781_v10 = vsel %vm665_vm2, %v1217_v26, 0.0 }
 0x108   :  { %v774_v32 = vadd.f32 %v773_v28, %v772_v23  ;;  %v971_v34 = vadd.f32 %v970_v30, %v969_v22  ;;  %v506_v35 = vpop.f32.mrf.mxu0  ;;  %v1798_v49 = vpop.f32.mrf.mxu1 }
 0x109   :  { %690 = vst.msk [vmem:[%s2056_s2 + $0xc0] sm:$0xff] %vm665_vm2, %v506_v35  ;;  %v889_v43 = vmul.f32 %v506_v35, %v506_v35  ;;  %v777_v51 = vsel %vm665_vm2, %v506_v35, 0.0  ;;  %722 = vst.msk [vmem:[%s2056_s2 + $0x1c0] sm:$0xff] %vm665_vm2, %v1798_v49  ;;  %v980_v20 = vsel %vm665_vm2, %v891_v59, 0.0 }
 0x10a   :  { %v973_v44 = vadd.f32 %v972_v38, %v971_v34  ;;  %v776_v46 = vadd.f32 %v775_v39, %v774_v32  ;;  %v1218_v47 = vpop.f32.mrf.mxu0  ;;  %v1811_v58 = vpop.f32.mrf.mxu1 }
 0x10b   :  { %693 = vst.msk [vmem:[%s2056_s2 + $0xd8] sm:$0xff] %vm665_vm2, %v1218_v47  ;;  %v976_v61 = vsel %vm665_vm2, %v889_v43, 0.0  ;;  %725 = vst.msk [vmem:[%s2056_s2 + $0x1d8] sm:$0xff] %vm665_vm2, %v1811_v58  ;;  %v892_v11 = vmul.f32 %v1218_v47, %v1218_v47  ;;  %v783_v21 = vsel %vm665_vm2, %v1218_v47, 0.0 }
 0x10c   :  { %v778_v54 = vadd.f32 %v777_v51, %v776_v46  ;;  %v975_v55 = vadd.f32 %v974_v50, %v973_v44  ;;  %v509_v57 = vpop.f32.mrf.mxu0  ;;  %v1824_v6 = vpop.f32.mrf.mxu1 }
 0x10d   :  { %691 = vst.msk [vmem:[%s2056_s2 + $0xc8] sm:$0xff] %vm665_vm2, %v509_v57  ;;  %v779_v63 = vsel %vm665_vm2, %v509_v57, 0.0  ;;  %v890_v1 = vmul.f32 %v509_v57, %v509_v57  ;;  %723 = vst.msk [vmem:[%s2056_s2 + $0x1c8] sm:$0xff] %vm665_vm2, %v1824_v6  ;;  %v982_v30 = vsel %vm665_vm2, %v892_v11, 0.0 }
 0x10e   :  { %v977_v2 = vadd.f32 %v976_v61, %v975_v55  ;;  %v780_v4 = vadd.f32 %v779_v63, %v778_v54  ;;  %v1221_v5 = vpop.f32.mrf.mxu0  ;;  %v1837_v19 = vpop.f32.mrf.mxu1 }
 0x10f   :  { %v978_v12 = vsel %vm665_vm2, %v890_v1, 0.0  ;;  %696 = vst.msk [vmem:[%s2056_s2 + $0xf0] sm:$0xff] %vm665_vm2, %v1221_v5  ;;  %728 = vst.msk [vmem:[%s2056_s2 + $0x1f0] sm:$0xff] %vm665_vm2, %v1837_v19  ;;  %v895_v43 = vmul.f32 %v1221_v5, %v1221_v5  ;;  %v789_v55 = vsel %vm665_vm2, %v1221_v5, 0.0 }
 0x110   :  { %v782_v13 = vadd.f32 %v781_v10, %v780_v4  ;;  %v979_v14 = vadd.f32 %v978_v12, %v977_v2  ;;  %v522_v18 = vpop.f32.mrf.mxu0  ;;  %v1850_v29 = vpop.f32.mrf.mxu1  ;;  %v897_v4 = vmul.f32 %v1487_v42, %v1487_v42  ;;  %v793_v12 = vsel %vm665_vm2, %v1487_v42, 0.0 }
 0x111   :  { %694 = vst.msk [vmem:[%s2056_s2 + $0xe0] sm:$0xff] %vm665_vm2, %v522_v18  ;;  %v893_v22 = vmul.f32 %v522_v18, %v522_v18  ;;  %v785_v32 = vsel %vm665_vm2, %v522_v18, 0.0  ;;  %726 = vst.msk [vmem:[%s2056_s2 + $0x1e0] sm:$0xff] %vm665_vm2, %v1850_v29  ;;  %v988_v1 = vsel %vm665_vm2, %v895_v43, 0.0  ;;  %v900_v42 = vmul.f32 %v1498_v45, %v1498_v45 }
 0x112   :  { %v981_v23 = vadd.f32 %v980_v20, %v979_v14  ;;  %v784_v26 = vadd.f32 %v783_v21, %v782_v13  ;;  %v1222_v28 = vpop.f32.mrf.mxu0  ;;  %v1863_v39 = vpop.f32.mrf.mxu1  ;;  %v898_v13 = vmul.f32 %v1511_v52, %v1511_v52  ;;  %v899_v20 = vmul.f32 %v1476_v40, %v1476_v40 }
 0x113   :  { %697 = vst.msk [vmem:[%s2056_s2 + $0xf8] sm:$0xff] %vm665_vm2, %v1222_v28  ;;  %v984_v44 = vsel %vm665_vm2, %v893_v22, 0.0  ;;  %729 = vst.msk [vmem:[%s2056_s2 + $0x1f8] sm:$0xff] %vm665_vm2, %v1863_v39  ;;  %v896_v57 = vmul.f32 %v1222_v28, %v1222_v28  ;;  %v791_v2 = vsel %vm665_vm2, %v1222_v28, 0.0  ;;  %v992_v21 = vsel %vm665_vm2, %v897_v4, 0.0 }
 0x114   :  { %v786_v34 = vadd.f32 %v785_v32, %v784_v26  ;;  %v983_v35 = vadd.f32 %v982_v30, %v981_v23  ;;  %v525_v38 = vpop.f32.mrf.mxu0  ;;  %v1876_v54 = vpop.f32.mrf.mxu1  ;;  %v795_v22 = vsel %vm665_vm2, %v1511_v52, 0.0  ;;  %v797_v28 = vsel %vm665_vm2, %v1476_v40, 0.0 }
 0x115   :  { %695 = vst.msk [vmem:[%s2056_s2 + $0xe8] sm:$0xff] %vm665_vm2, %v525_v38  ;;  %v787_v46 = vsel %vm665_vm2, %v525_v38, 0.0  ;;  %v894_v47 = vmul.f32 %v525_v38, %v525_v38  ;;  %727 = vst.msk [vmem:[%s2056_s2 + $0x1e8] sm:$0xff] %vm665_vm2, %v1876_v54  ;;  %v990_v11 = vsel %vm665_vm2, %v896_v57, 0.0  ;;  %v994_v30 = vsel %vm665_vm2, %v898_v13, 0.0 }
 0x116   :  { %v985_v50 = vadd.f32 %v984_v44, %v983_v35  ;;  %v788_v51 = vadd.f32 %v787_v46, %v786_v34  ;;  %v996_v35 = vsel %vm665_vm2, %v899_v20, 0.0  ;;  %v799_v38 = vsel %vm665_vm2, %v1498_v45, 0.0 }
 0x117   :  { %v986_v59 = vsel %vm665_vm2, %v894_v47, 0.0  ;;  %v901_v52 = vmul.f32 %v1538_v3, %v1538_v3  ;;  %v998_v46 = vsel %vm665_vm2, %v900_v42, 0.0  ;;  %v801_v40 = vsel %vm665_vm2, %v1538_v3, 0.0 }
 0x118   :  { %v790_v61 = vadd.f32 %v789_v55, %v788_v51  ;;  %v987_v63 = vadd.f32 %v986_v59, %v985_v50  ;;  %v902_v47 = vmul.f32 %v1564_v17, %v1564_v17  ;;  %v903_v55 = vmul.f32 %v1525_v60, %v1525_v60 }
 0x119   :  { %v1000_v45 = vsel %vm665_vm2, %v901_v52, 0.0  ;;  %v803_v57 = vsel %vm665_vm2, %v1564_v17, 0.0  ;;  %v904_v3 = vmul.f32 %v1551_v9, %v1551_v9  ;;  %v905_v17 = vmul.f32 %v1590_v31, %v1590_v31 }
 0x11a   :  { %v792_v10 = vadd.f32 %v791_v2, %v790_v61  ;;  %v989_v5 = vadd.f32 %v988_v1, %v987_v63  ;;  %v805_v63 = vsel %vm665_vm2, %v1525_v60, 0.0  ;;  %v1002_v1 = vsel %vm665_vm2, %v902_v47, 0.0 }
 0x11b   :  { %v1006_v13 = vsel %vm665_vm2, %v904_v3, 0.0  ;;  %v809_v60 = vsel %vm665_vm2, %v1590_v31, 0.0  ;;  %v908_v31 = vmul.f32 %v1603_v37, %v1603_v37  ;;  %v911_v47 = vmul.f32 %v1629_v56, %v1629_v56 }
 0x11c   :  { %v991_v14 = vadd.f32 %v990_v11, %v989_v5  ;;  %v794_v18 = vadd.f32 %v793_v12, %v792_v10  ;;  %v1004_v10 = vsel %vm665_vm2, %v903_v55, 0.0  ;;  %v807_v5 = vsel %vm665_vm2, %v1551_v9, 0.0 }
 0x11d   :  { %v1008_v9 = vsel %vm665_vm2, %v905_v17, 0.0  ;;  %v823_v3 = vsel %vm665_vm2, %v1655_v7, 0.0 }
 0x11e   :  { %v796_v23 = vadd.f32 %v795_v22, %v794_v18  ;;  %v993_v26 = vadd.f32 %v992_v21, %v991_v14  ;;  %v906_v14 = vmul.f32 %v1616_v48, %v1616_v48  ;;  %v907_v21 = vmul.f32 %v1577_v24, %v1577_v24 }
 0x11f   :  { %v811_v22 = vsel %vm665_vm2, %v1616_v48, 0.0  ;;  %v909_v48 = vmul.f32 %v1642_v0, %v1642_v0 }
 0x120   :  { %v798_v32 = vadd.f32 %v797_v28, %v796_v23  ;;  %v995_v34 = vadd.f32 %v994_v30, %v993_v26  ;;  %v813_v28 = vsel %vm665_vm2, %v1577_v24, 0.0  ;;  %v1010_v42 = vsel %vm665_vm2, %v906_v14, 0.0 }
 0x121   :  { %v817_v24 = vsel %vm665_vm2, %v1642_v0, 0.0  ;;  %v912_v0 = vmul.f32 %v1655_v7, %v1655_v7  ;;  %v829_v14 = vsel %vm665_vm2, %v1681_v25, 0.0 }
 0x122   :  { %v997_v43 = vadd.f32 %v996_v35, %v995_v34  ;;  %v800_v44 = vadd.f32 %v799_v38, %v798_v32  ;;  %v1012_v34 = vsel %vm665_vm2, %v907_v21, 0.0  ;;  %v815_v35 = vsel %vm665_vm2, %v1603_v37, 0.0 }
 0x123   :  { %v1016_v37 = vsel %vm665_vm2, %v909_v48, 0.0 }
 0x124   :  { %v802_v50 = vadd.f32 %v801_v40, %v800_v44  ;;  %v999_v51 = vadd.f32 %v998_v46, %v997_v43  ;;  %v1014_v43 = vsel %vm665_vm2, %v908_v31, 0.0  ;;  %v910_v44 = vmul.f32 %v1668_v16, %v1668_v16 }
 0x125   :  { %v918_v31 = vmul.f32 %v1772_v27, %v1772_v27 }
 0x126   :  { %v1001_v59 = vadd.f32 %v1000_v45, %v999_v51  ;;  %v804_v61 = vadd.f32 %v803_v57, %v802_v50  ;;  %v819_v50 = vsel %vm665_vm2, %v1668_v16, 0.0  ;;  %v821_v45 = vsel %vm665_vm2, %v1629_v56, 0.0 }
 0x127   :  { %v1018_v57 = vsel %vm665_vm2, %v910_v44, 0.0  ;;  %v913_v16 = vmul.f32 %v1694_v33, %v1694_v33  ;;  %v825_v56 = vsel %vm665_vm2, %v1694_v33, 0.0  ;;  %v916_v33 = vmul.f32 %v1707_v41, %v1707_v41 }
 0x128   :  { %v806_v2 = vadd.f32 %v805_v63, %v804_v61  ;;  %v1003_v4 = vadd.f32 %v1002_v1, %v1001_v59  ;;  %v1020_v63 = vsel %vm665_vm2, %v911_v47, 0.0 }
 0x129   :  { %v1024_v7 = vsel %vm665_vm2, %v913_v16, 0.0 }
 0x12a   :  { %v1005_v11 = vadd.f32 %v1004_v10, %v1003_v4  ;;  %v808_v12 = vadd.f32 %v807_v5, %v806_v2  ;;  %v1022_v4 = vsel %vm665_vm2, %v912_v0, 0.0  ;;  %v914_v10 = vmul.f32 %v1720_v53, %v1720_v53 }
 0x12b   :  { %v843_v0 = vsel %vm665_vm2, %v1824_v6, 0.0 }
 0x12c   :  { %v810_v18 = vadd.f32 %v809_v60, %v808_v12  ;;  %v1007_v20 = vadd.f32 %v1006_v13, %v1005_v11  ;;  %v915_v11 = vmul.f32 %v1681_v25, %v1681_v25  ;;  %v827_v12 = vsel %vm665_vm2, %v1720_v53, 0.0 }
 0x12d   :  { %v917_v53 = vmul.f32 %v1746_v8, %v1746_v8  ;;  %v833_v25 = vsel %vm665_vm2, %v1746_v8, 0.0  ;;  %v920_v8 = vmul.f32 %v1759_v15, %v1759_v15 }
 0x12e   :  { %v1009_v23 = vadd.f32 %v1008_v9, %v1007_v20  ;;  %v812_v26 = vadd.f32 %v811_v22, %v810_v18  ;;  %v1026_v18 = vsel %vm665_vm2, %v914_v10, 0.0  ;;  %v1028_v9 = vsel %vm665_vm2, %v915_v11, 0.0 }
 0x12f   :  { %v831_v22 = vsel %vm665_vm2, %v1707_v41, 0.0  ;;  %v1032_v41 = vsel %vm665_vm2, %v917_v53, 0.0 }
 0x130   :  { %v814_v30 = vadd.f32 %v813_v28, %v812_v26  ;;  %v1011_v32 = vadd.f32 %v1010_v42, %v1009_v23  ;;  %v1030_v28 = vsel %vm665_vm2, %v916_v33, 0.0 }
 0x132   :  { %v1013_v38 = vadd.f32 %v1012_v34, %v1011_v32  ;;  %v816_v52 = vadd.f32 %v815_v35, %v814_v30  ;;  %v919_v32 = vmul.f32 %v1733_v62, %v1733_v62  ;;  %v835_v34 = vsel %vm665_vm2, %v1772_v27, 0.0 }
 0x133   :  { %v921_v27 = vmul.f32 %v1798_v49, %v1798_v49 }
 0x134   :  { %v818_v46 = vadd.f32 %v817_v24, %v816_v52  ;;  %v1015_v40 = vadd.f32 %v1014_v43, %v1013_v38  ;;  %v837_v38 = vsel %vm665_vm2, %v1733_v62, 0.0  ;;  %v1034_v52 = vsel %vm665_vm2, %v918_v31, 0.0 }
 0x135   :  { %v1036_v44 = vsel %vm665_vm2, %v919_v32, 0.0  ;;  %v841_v62 = vsel %vm665_vm2, %v1798_v49, 0.0  ;;  %v924_v49 = vmul.f32 %v1811_v58, %v1811_v58 }
 0x136   :  { %v1017_v51 = vadd.f32 %v1016_v37, %v1015_v40  ;;  %v820_v55 = vadd.f32 %v819_v50, %v818_v46  ;;  %v839_v46 = vsel %vm665_vm2, %v1759_v15, 0.0  ;;  %v1038_v37 = vsel %vm665_vm2, %v920_v8, 0.0 }
 0x137   :  { %v922_v50 = vmul.f32 %v1824_v6, %v1824_v6  ;;  %v1040_v15 = vsel %vm665_vm2, %v921_v27, 0.0  ;;  %v925_v6 = vmul.f32 %v1850_v29, %v1850_v29  ;;  %v1046_v10 = vsel %vm665_vm2, %v924_v49, 0.0 }
 0x138   :  { %v822_v59 = vadd.f32 %v821_v45, %v820_v55  ;;  %v1019_v61 = vadd.f32 %v1018_v57, %v1017_v51  ;;  %v923_v45 = vmul.f32 %v1785_v36, %v1785_v36 }
 0x13a   :  { %v1021_v1 = vadd.f32 %v1020_v63, %v1019_v61  ;;  %v824_v2 = vadd.f32 %v823_v3, %v822_v59  ;;  %v845_v61 = vsel %vm665_vm2, %v1785_v36, 0.0  ;;  %v1042_v63 = vsel %vm665_vm2, %v922_v50, 0.0 }
 0x13b   :  { %v849_v36 = vsel %vm665_vm2, %v1850_v29, 0.0  ;;  %v928_v29 = vmul.f32 %v1863_v39, %v1863_v39 }
 0x13c   :  { %v826_v5 = vadd.f32 %v825_v56, %v824_v2  ;;  %v1023_v17 = vadd.f32 %v1022_v4, %v1021_v1  ;;  %v1044_v1 = vsel %vm665_vm2, %v923_v45, 0.0  ;;  %v847_v2 = vsel %vm665_vm2, %v1811_v58, 0.0 }
 0x13d   :  { %v1048_v58 = vsel %vm665_vm2, %v925_v6, 0.0 }
 0x13e   :  { %v1025_v13 = vadd.f32 %v1024_v7, %v1023_v17  ;;  %v828_v60 = vadd.f32 %v827_v12, %v826_v5  ;;  %v926_v5 = vmul.f32 %v1876_v54, %v1876_v54  ;;  %v927_v7 = vmul.f32 %v1837_v19, %v1837_v19 }
 0x13f   :  { %v851_v12 = vsel %vm665_vm2, %v1876_v54, 0.0  ;;  %v1054_v54 = vsel %vm665_vm2, %v928_v29, 0.0 }
 0x140   :  { %v830_v20 = vadd.f32 %v829_v14, %v828_v60  ;;  %v1027_v21 = vadd.f32 %v1026_v18, %v1025_v13  ;;  %v853_v14 = vsel %vm665_vm2, %v1837_v19, 0.0  ;;  %v1050_v33 = vsel %vm665_vm2, %v926_v5, 0.0 }
 0x142   :  { %v1029_v23 = vadd.f32 %v1028_v9, %v1027_v21  ;;  %v832_v26 = vadd.f32 %v831_v22, %v830_v20  ;;  %v1052_v21 = vsel %vm665_vm2, %v927_v7, 0.0  ;;  %v855_v9 = vsel %vm665_vm2, %v1863_v39, 0.0 }
 0x144   :  { %v834_v42 = vadd.f32 %v833_v25, %v832_v26  ;;  %v1031_v30 = vadd.f32 %v1030_v28, %v1029_v23 }
 0x146   :  { %v1033_v35 = vadd.f32 %v1032_v41, %v1031_v30  ;;  %v836_v48 = vadd.f32 %v835_v34, %v834_v42 }
 0x148   :  { %v838_v43 = vadd.f32 %v837_v38, %v836_v48  ;;  %v1035_v24 = vadd.f32 %v1034_v52, %v1033_v35 }
 0x14a   :  { %v1037_v40 = vadd.f32 %v1036_v44, %v1035_v24  ;;  %v840_v47 = vadd.f32 %v839_v46, %v838_v43 }
 0x14c   :  { %v842_v51 = vadd.f32 %v841_v62, %v840_v47  ;;  %v1039_v55 = vadd.f32 %v1038_v37, %v1037_v40 }
 0x14e   :  { %v1041_v57 = vadd.f32 %v1040_v15, %v1039_v55  ;;  %v844_v59 = vadd.f32 %v843_v0, %v842_v51 }
 0x150   :  { %v846_v3 = vadd.f32 %v845_v61, %v844_v59  ;;  %v1043_v16 = vadd.f32 %v1042_v63, %v1041_v57 }
 0x152   :  { %v1045_v4 = vadd.f32 %v1044_v1, %v1043_v16  ;;  %v848_v56 = vadd.f32 %v847_v2, %v846_v3 }
 0x154   :  { %v850_v17 = vadd.f32 %v849_v36, %v848_v56  ;;  %v1047_v11 = vadd.f32 %v1046_v10, %v1045_v4 }
 0x156   :  { %v1049_v13 = vadd.f32 %v1048_v58, %v1047_v11  ;;  %v852_v60 = vadd.f32 %v851_v12, %v850_v17 }
 0x158   :  { %v854_v18 = vadd.f32 %v853_v14, %v852_v60  ;;  %v1051_v20 = vadd.f32 %v1050_v33, %v1049_v13 }
 0x15a   :  { %v856_v22 = vadd.f32 %v855_v9, %v854_v18  ;;  %v1053_v53 = vadd.f32 %v1052_v21, %v1051_v20 }
 0x15c   :  { %v857_v23 = vrot.slane %v856_v22, 4  ;;  %v1055_v26 = vadd.f32 %v1054_v54, %v1053_v53 }
 0x15e   :  { %v858_v28 = vadd.f32 %v857_v23, %v856_v22  ;;  %v1056_v19 = vrot.slane %v1055_v26, 4 }
 0x160   :  { %v859_v25 = vrot.slane %v858_v28, 2  ;;  %v1057_v31 = vadd.f32 %v1056_v19, %v1055_v26 }
 0x162   :  { %v860_v42 = vadd.f32 %v859_v25, %v858_v28  ;;  %v1058_v30 = vrot.slane %v1057_v31, 2 }
 0x164   :  { %v861_v32 = vrot.slane %v860_v42, 1  ;;  %v1059_v41 = vadd.f32 %v1058_v30, %v1057_v31 }
 0x166   :  { %v862_v34 = vadd.f32 %v861_v32, %v860_v42  ;;  %v1060_v35 = vrot.slane %v1059_v41, 1 }
 0x168   :  { %864 = vst.msk [vmem:[%s2057_s3] sm:$0x1] %vm863_vm3, %v862_v34  ;;  %v1061_v39 = vadd.f32 %v1060_v35, %v1059_v41 }
 0x16a   :  { %1062 = vst.msk [vmem:[%s2058_s4] sm:$0x1] %vm863_vm3, %v1061_v39 }

// kernel: tile.187
= control target key start
LH: loop header
LB: loop body
LE: loop exit
PB: predicated region body
PF: predicated region fallthrough
CT: control target
= control target key end

     0   :  { %s22_s0 = inlined_call_operand.vmem [shape: f32[16], index: 0, kind: input, shape index: {}]   ;;  %s23_s1 = inlined_call_operand.vmem [shape: f32[8,16], index: 1, kind: output, shape index: {}]  }
   0x1   :  { %v4_v0 = vld [vmem:[%s22_s0] ss:$0 sm:$0xff] }
   0x2   :  { %5 = vst [vmem:[%s23_s1] sm:$0xff] %v4_v0 }

// kernel: tile.188
= control target key start
LH: loop header
LB: loop body
LE: loop exit
PB: predicated region body
PF: predicated region fallthrough
CT: control target
= control target key end

     0   :  { %s69_s10 = smov 112   ;;  %s70_s11 = smov 80   ;;  %vm3_vm0 = vcmask 130048   ;;  %vm9_vm1 = vcmask 1048448   ;;  %vm15_vm2 = vcmask 917248   ;;  %vm21_vm3 = vcmask 786048   ;;  %s113_s0 = inlined_call_operand.vmem [shape: f32[8,16], index: 0, kind: input, shape index: {}]   ;;  %s114_s1 = inlined_call_operand.vmem [shape: f32[1,128], index: 1, kind: output, shape index: {}]  }
   0x1   :  { %v55_v0 = vld [vmem:[%s113_s0 + $0x7] sm:$0x1]   ;;  %v57_v1 = vld [vmem:[%s113_s0 + $0x5] sm:$0x1]   ;;  %v56_v2 = vld [vmem:[%s113_s0 + $0x6] sm:$0x1]  }
   0x2   :  { %7 = vrot.lane.b32.xlu0 %v55_v0, %s69_s10  ;;  %19 = vrot.lane.b32.xlu1 %v57_v1, %s70_s11  ;;  %v58_v3 = vld [vmem:[%s113_s0 + $0x4] sm:$0x1]   ;;  %v2_v4 = vld [vmem:[%s113_s0] sm:$0x1]   ;;  %s71_s18 = smov 96   ;;  %s72_s19 = smov 64  }
   0x3   :  { %4 = vst.msk [vmem:[#allocation0] sm:$0x1] %vm3_vm0, %v2_v4   ;;  %v59_v5 = vld [vmem:[%s113_s0 + $0x3] sm:$0x1]   ;;  %v60_v6 = vld [vmem:[%s113_s0 + $0x2] sm:$0x1]  }
   0x4   :  { %s73_s24 = smov 48   ;;  %s74_s25 = smov 32   ;;  %v61_v7 = vld [vmem:[%s113_s0 + $0x1] sm:$0x1]   ;;  %vm27_vm4 = vcmask 654848   ;;  %vm33_vm5 = vcmask 523648  }
   0x5   :  { %s75_s0 = smov 16   ;;  %vm39_vm6 = vcmask 392448   ;;  %vm45_vm7 = vcmask 261248  }
   0x6   :  { %13 = vrot.lane.b32.xlu0 %v56_v2, %s71_s18  ;;  %25 = vrot.lane.b32.xlu1 %v58_v3, %s72_s19 }
   0xa   :  { %31 = vrot.lane.b32.xlu0 %v59_v5, %s73_s24  ;;  %37 = vrot.lane.b32.xlu1 %v60_v6, %s74_s25 }
   0xe   :  { %43 = vrot.lane.b32.xlu0 %v61_v7, %s75_s0 }
  0x74   :  { %v8_v8 = vpop.permute.xlu0 %7   ;;  %v20_v9 = vpop.permute.xlu1 %19  }
  0x75   :  { %10 = vst.msk [vmem:[#allocation0] sm:$0x1] %vm9_vm1, %v8_v8  }
  0x78   :  { %v14_v10 = vpop.permute.xlu0 %13   ;;  %v26_v11 = vpop.permute.xlu1 %25  }
  0x79   :  { %16 = vst.msk [vmem:[#allocation0] sm:$0x1] %vm15_vm2, %v14_v10  }
  0x7a   :  { %22 = vst.msk [vmem:[#allocation0] sm:$0x1] %vm21_vm3, %v20_v9  }
  0x7b   :  { %28 = vst.msk [vmem:[#allocation0] sm:$0x1] %vm27_vm4, %v26_v11  }
  0x7c   :  { %v32_v12 = vpop.permute.xlu0 %31   ;;  %v38_v13 = vpop.permute.xlu1 %37  }
  0x7d   :  { %34 = vst.msk [vmem:[#allocation0] sm:$0x1] %vm33_vm5, %v32_v12  }
  0x7e   :  { %40 = vst.msk [vmem:[#allocation0] sm:$0x1] %vm39_vm6, %v38_v13  }
  0x80   :  { %v44_v14 = vpop.permute.xlu0 %43  }
  0x81   :  { %46 = vst.msk [vmem:[#allocation0] sm:$0x1] %vm45_vm7, %v44_v14  }
  0x88   :  { %v51_v15 = vld [vmem:[#allocation0] sm:$0x1] }
  0x89   :  { %54 = vst [vmem:[%s114_s1] sm:$0x1] %v51_v15 }

// kernel: unet2d_forward.50
= control target key start
LH: loop header
LB: loop body
LE: loop exit
PB: predicated region body
PF: predicated region fallthrough
CT: control target
= control target key end

     0   :  { %vm132_vm0 = vcmask 1043456   ;;  %vm107_vm1 = vcmask 588800   ;;  %vm233_vm2 = vcmask 130048   ;;  %vm287_vm3 = vcmask 122880   ;;  %s644_s1 = inlined_call_operand.vmem [shape: bf16[72,16], index: 1, kind: input, shape index: {}]   ;;  %s645_s0 = inlined_call_operand.vmem [shape: bf16[128,72], index: 0, kind: input, shape index: {}]   ;;  %s646_s2 = inlined_call_operand.vmem [shape: f32[128,16], index: 2, kind: output, shape index: {0}]   ;;  %s647_s3 = inlined_call_operand.vmem [shape: f32[1,1,16], index: 3, kind: output, shape index: {1}]   ;;  %s648_s4 = inlined_call_operand.vmem [shape: f32[1,1,16], index: 4, kind: output, shape index: {2}]  }
   0x1   :  { %v427_v0 = vld [vmem:[%s644_s1 + $0x20] ss:$0 sps:$4 sm:$0xff]   ;;  %v428_v1 = vld [vmem:[%s644_s1 + $0x18] sm:$0xff]   ;;  %v429_v3 = vld [vmem:[%s644_s1 + $0x10] sm:$0xff]  }
   0x2   :  { %425 = vmatprep.subr.msk.bf16.mxu0 %vm132_vm0, %v427_v0  ;;  %v134_v2 = vsel %vm132_vm0, %v427_v0, 0  ;;  %426 = vmatprep.subr.msk.bf16.mxu1 %vm132_vm0, %v427_v0  ;;  %v432_v4 = vld [vmem:[%s645_s0] sm:$0xff]   ;;  %v430_v5 = vld [vmem:[%s644_s1 + $0x8] sm:$0xff]   ;;  %v434_v10 = vld [vmem:[%s645_s0 + $0x10] sm:$0xff]  }
   0x3   :  { %390 = vmatpush3.bf16.msra.mxu0 %v134_v2  ;;  %420 = vmatpush3.bf16.msra.mxu1 %v134_v2  ;;  %v436_v6 = vld [vmem:[%s645_s0 + $0x20] sm:$0xff]   ;;  %v433_v8 = vld [vmem:[%s645_s0 + $0x8] sm:$0xff]   ;;  %v438_v11 = vld [vmem:[%s645_s0 + $0x30] sm:$0xff]  }
   0x4   :  { %391 = vmatprep.subr.bf16.mxu0 %v428_v1  ;;  %416 = vmatprep.subr.bf16.mxu1 %v428_v1  ;;  %v431_v7 = vld [vmem:[%s644_s1] sm:$0xff]   ;;  %v437_v9 = vld [vmem:[%s645_s0 + $0x28] sm:$0xff]   ;;  %v435_v12 = vld [vmem:[%s645_s0 + $0x18] sm:$0xff]  }
   0x5   :  { %399 = vmatprep.mubr.msk.bf16.mxu0 %vm107_vm1, %v432_v4  ;;  %407 = vmatprep.mubr.msk.bf16.mxu1 %vm107_vm1, %v436_v6  ;;  %v439_v13 = vld [vmem:[%s645_s0 + $0x38] sm:$0xff]  }
   0x7   :  { %392 = vmatpush3.bf16.msra.mxu0 %v428_v1  ;;  %421 = vmatpush3.bf16.msra.mxu1 %v428_v1 }
   0x8   :  { %393 = vmatprep.subr.bf16.mxu0 %v429_v3  ;;  %417 = vmatprep.subr.bf16.mxu1 %v429_v3 }
   0xb   :  { %394 = vmatpush3.bf16.msra.mxu0 %v429_v3  ;;  %422 = vmatpush3.bf16.msra.mxu1 %v429_v3 }
   0xc   :  { %395 = vmatprep.subr.bf16.mxu0 %v430_v5  ;;  %418 = vmatprep.subr.bf16.mxu1 %v430_v5 }
   0xf   :  { %396 = vmatpush3.bf16.msra.mxu0 %v430_v5  ;;  %423 = vmatpush3.bf16.msra.mxu1 %v430_v5 }
  0x10   :  { %397 = vmatprep.subr.bf16.mxu0 %v431_v7  ;;  %419 = vmatprep.subr.bf16.mxu1 %v431_v7 }
  0x13   :  { %398 = vmatpush3.bf16.msra.mxu0 %v431_v7  ;;  %424 = vmatpush3.bf16.msra.mxu1 %v431_v7 }
  0x16   :  { %400 = vmatmul.mubr.msk.bf16.vlgmr.msra.gmra.mxu0 %vm107_vm1, %v433_v8  ;;  %408 = vmatmul.mubr.msk.bf16.vlgmr.msra.gmra.mxu1 %vm107_vm1, %v437_v9 }
  0x17   :  { %403 = vmatprep.mubr.msk.bf16.mxu0 %vm107_vm1, %v434_v10  ;;  %411 = vmatprep.mubr.msk.bf16.mxu1 %vm107_vm1, %v438_v11 }
  0x1e   :  { %404 = vmatmul.mubr.msk.bf16.gmra.mxu0 %vm107_vm1, %v435_v12  ;;  %412 = vmatmul.mubr.msk.bf16.gmra.mxu1 %vm107_vm1, %v439_v13 }
  0xd6   :  { %v401_v14 = vpop.f32.mrf.mxu0  ;;  %v512_v15 = vpop.f32.mrf.mxu1 }
  0xd7   :  { %236 = vst.msk [vmem:[%s646_s2 + $0x10] sm:$0xff] %vm233_vm2, %v401_v14  ;;  %244 = vst.msk [vmem:[%s646_s2 + $0x50] sm:$0xff] %vm233_vm2, %v512_v15  ;;  %v291_v23 = vmul.f32 %v401_v14, %v401_v14  ;;  %v253_v30 = vsel %vm233_vm2, %v401_v14, 0.0  ;;  %v299_v8 = vmul.f32 %v512_v15, %v512_v15  ;;  %v269_v13 = vsel %vm233_vm2, %v512_v15, 0.0 }
  0xd8   :  { %v170_v16 = vpop.f32.mrf.mxu0  ;;  %v523_v17 = vpop.f32.mrf.mxu1 }
  0xd9   :  { %234 = vst.msk [vmem:[%s646_s2] sm:$0xff] %vm233_vm2, %v170_v16  ;;  %242 = vst.msk [vmem:[%s646_s2 + $0x40] sm:$0xff] %vm233_vm2, %v523_v17  ;;  %v289_v20 = vmul.f32 %v170_v16, %v170_v16  ;;  %v250_v24 = vsel %vm233_vm2, %v170_v16, 0.0  ;;  %v308_v38 = vsel %vm233_vm2, %v291_v23, 0.0  ;;  %v297_v0 = vmul.f32 %v523_v17, %v523_v17 }
  0xda   :  { %v402_v18 = vpop.f32.mrf.mxu0  ;;  %v534_v19 = vpop.f32.mrf.mxu1  ;;  %v265_v4 = vsel %vm233_vm2, %v523_v17, 0.0 }
  0xdb   :  { %237 = vst.msk [vmem:[%s646_s2 + $0x18] sm:$0xff] %vm233_vm2, %v402_v18  ;;  %245 = vst.msk [vmem:[%s646_s2 + $0x58] sm:$0xff] %vm233_vm2, %v534_v19  ;;  %v305_v31 = vsel %vm233_vm2, %v289_v20, 0.0  ;;  %v292_v32 = vmul.f32 %v402_v18, %v402_v18  ;;  %v255_v39 = vsel %vm233_vm2, %v402_v18, 0.0  ;;  %v320_v9 = vsel %vm233_vm2, %v297_v0, 0.0 }
  0xdc   :  { %v173_v21 = vpop.f32.mrf.mxu0  ;;  %v205_v22 = vpop.f32.mrf.mxu1  ;;  %v300_v14 = vmul.f32 %v534_v19, %v534_v19  ;;  %v324_v20 = vsel %vm233_vm2, %v299_v8, 0.0 }
  0xdd   :  { %235 = vst.msk [vmem:[%s646_s2 + $0x8] sm:$0xff] %vm233_vm2, %v173_v21  ;;  %v251_v25 = vsel %vm233_vm2, %v173_v21, 0.0  ;;  %v290_v26 = vmul.f32 %v173_v21, %v173_v21  ;;  %243 = vst.msk [vmem:[%s646_s2 + $0x48] sm:$0xff] %vm233_vm2, %v205_v22  ;;  %v310_v45 = vsel %vm233_vm2, %v292_v32, 0.0  ;;  %v298_v5 = vmul.f32 %v205_v22, %v205_v22 }
  0xde   :  { %v252_v27 = vadd.f32 %v251_v25, %v250_v24  ;;  %v405_v28 = vpop.f32.mrf.mxu0  ;;  %v555_v29 = vpop.f32.mrf.mxu1  ;;  %v267_v10 = vsel %vm233_vm2, %v205_v22, 0.0  ;;  %v271_v21 = vsel %vm233_vm2, %v534_v19, 0.0  ;;  %v326_v25 = vsel %vm233_vm2, %v300_v14, 0.0 }
  0xdf   :  { %v306_v33 = vsel %vm233_vm2, %v290_v26, 0.0  ;;  %240 = vst.msk [vmem:[%s646_s2 + $0x30] sm:$0xff] %vm233_vm2, %v405_v28  ;;  %248 = vst.msk [vmem:[%s646_s2 + $0x70] sm:$0xff] %vm233_vm2, %v555_v29  ;;  %v295_v51 = vmul.f32 %v405_v28, %v405_v28  ;;  %v261_v57 = vsel %vm233_vm2, %v405_v28, 0.0  ;;  %v322_v16 = vsel %vm233_vm2, %v298_v5, 0.0 }
  0xe0   :  { %v254_v34 = vadd.f32 %v253_v30, %v252_v27  ;;  %v307_v35 = vadd.f32 %v306_v33, %v305_v31  ;;  %v186_v36 = vpop.f32.mrf.mxu0  ;;  %v218_v37 = vpop.f32.mrf.mxu1  ;;  %v303_v30 = vmul.f32 %v555_v29, %v555_v29  ;;  %v277_v19 = vsel %vm233_vm2, %v555_v29, 0.0 }
  0xe1   :  { %238 = vst.msk [vmem:[%s646_s2 + $0x20] sm:$0xff] %vm233_vm2, %v186_v36  ;;  %v293_v40 = vmul.f32 %v186_v36, %v186_v36  ;;  %246 = vst.msk [vmem:[%s646_s2 + $0x60] sm:$0xff] %vm233_vm2, %v218_v37  ;;  %v257_v46 = vsel %vm233_vm2, %v186_v36, 0.0  ;;  %v316_v62 = vsel %vm233_vm2, %v295_v51, 0.0  ;;  %v301_v23 = vmul.f32 %v218_v37, %v218_v37 }
  0xe2   :  { %v309_v41 = vadd.f32 %v308_v38, %v307_v35  ;;  %v256_v42 = vadd.f32 %v255_v39, %v254_v34  ;;  %v406_v43 = vpop.f32.mrf.mxu0  ;;  %v579_v44 = vpop.f32.mrf.mxu1  ;;  %v273_v26 = vsel %vm233_vm2, %v218_v37, 0.0  ;;  %v332_v39 = vsel %vm233_vm2, %v303_v30, 0.0 }
  0xe3   :  { %241 = vst.msk [vmem:[%s646_s2 + $0x38] sm:$0xff] %vm233_vm2, %v406_v43  ;;  %249 = vst.msk [vmem:[%s646_s2 + $0x78] sm:$0xff] %vm233_vm2, %v579_v44  ;;  %v312_v52 = vsel %vm233_vm2, %v293_v40, 0.0  ;;  %v296_v58 = vmul.f32 %v406_v43, %v406_v43  ;;  %v263_v63 = vsel %vm233_vm2, %v406_v43, 0.0  ;;  %v328_v31 = vsel %vm233_vm2, %v301_v23, 0.0 }
  0xe4   :  { %v258_v47 = vadd.f32 %v257_v46, %v256_v42  ;;  %v311_v48 = vadd.f32 %v310_v45, %v309_v41  ;;  %v189_v49 = vpop.f32.mrf.mxu0  ;;  %v221_v50 = vpop.f32.mrf.mxu1  ;;  %v304_v35 = vmul.f32 %v579_v44, %v579_v44  ;;  %v279_v40 = vsel %vm233_vm2, %v579_v44, 0.0 }
  0xe5   :  { %239 = vst.msk [vmem:[%s646_s2 + $0x28] sm:$0xff] %vm233_vm2, %v189_v49  ;;  %v259_v53 = vsel %vm233_vm2, %v189_v49, 0.0  ;;  %v294_v54 = vmul.f32 %v189_v49, %v189_v49  ;;  %247 = vst.msk [vmem:[%s646_s2 + $0x68] sm:$0xff] %vm233_vm2, %v221_v50  ;;  %v318_v3 = vsel %vm233_vm2, %v296_v58, 0.0  ;;  %v302_v15 = vmul.f32 %v221_v50, %v221_v50 }
  0xe6   :  { %v313_v55 = vadd.f32 %v312_v52, %v311_v48  ;;  %v260_v56 = vadd.f32 %v259_v53, %v258_v47  ;;  %v275_v32 = vsel %vm233_vm2, %v221_v50, 0.0  ;;  %v334_v43 = vsel %vm233_vm2, %v304_v35, 0.0 }
  0xe7   :  { %v314_v59 = vsel %vm233_vm2, %v294_v54, 0.0  ;;  %v330_v36 = vsel %vm233_vm2, %v302_v15, 0.0 }
  0xe8   :  { %v262_v60 = vadd.f32 %v261_v57, %v260_v56  ;;  %v315_v61 = vadd.f32 %v314_v59, %v313_v55 }
  0xea   :  { %v264_v1 = vadd.f32 %v263_v63, %v262_v60  ;;  %v317_v2 = vadd.f32 %v316_v62, %v315_v61 }
  0xec   :  { %v319_v6 = vadd.f32 %v318_v3, %v317_v2  ;;  %v266_v7 = vadd.f32 %v265_v4, %v264_v1 }
  0xee   :  { %v268_v11 = vadd.f32 %v267_v10, %v266_v7  ;;  %v321_v12 = vadd.f32 %v320_v9, %v319_v6 }
  0xf0   :  { %v270_v17 = vadd.f32 %v269_v13, %v268_v11  ;;  %v323_v18 = vadd.f32 %v322_v16, %v321_v12 }
  0xf2   :  { %v325_v24 = vadd.f32 %v324_v20, %v323_v18  ;;  %v272_v22 = vadd.f32 %v271_v21, %v270_v17 }
  0xf4   :  { %v274_v27 = vadd.f32 %v273_v26, %v272_v22  ;;  %v327_v28 = vadd.f32 %v326_v25, %v325_v24 }
  0xf6   :  { %v329_v33 = vadd.f32 %v328_v31, %v327_v28  ;;  %v276_v34 = vadd.f32 %v275_v32, %v274_v27 }
  0xf8   :  { %v278_v37 = vadd.f32 %v277_v19, %v276_v34  ;;  %v331_v38 = vadd.f32 %v330_v36, %v329_v33 }
  0xfa   :  { %v280_v41 = vadd.f32 %v279_v40, %v278_v37  ;;  %v333_v42 = vadd.f32 %v332_v39, %v331_v38 }
  0xfc   :  { %v281_v45 = vrot.slane %v280_v41, 4  ;;  %v335_v46 = vadd.f32 %v334_v43, %v333_v42 }
  0xfe   :  { %v282_v47 = vadd.f32 %v281_v45, %v280_v41  ;;  %v336_v29 = vrot.slane %v335_v46, 4 }
 0x100   :  { %v283_v48 = vrot.slane %v282_v47, 2  ;;  %v337_v49 = vadd.f32 %v336_v29, %v335_v46 }
 0x102   :  { %v284_v50 = vadd.f32 %v283_v48, %v282_v47  ;;  %v338_v51 = vrot.slane %v337_v49, 2 }
 0x104   :  { %v285_v52 = vrot.slane %v284_v50, 1  ;;  %v339_v53 = vadd.f32 %v338_v51, %v337_v49 }
 0x106   :  { %v286_v54 = vadd.f32 %v285_v52, %v284_v50  ;;  %v340_v55 = vrot.slane %v339_v53, 1 }
 0x108   :  { %288 = vst.msk [vmem:[%s647_s3] sm:$0x1] %vm287_vm3, %v286_v54  ;;  %v341_v44 = vadd.f32 %v340_v55, %v339_v53 }
 0x10a   :  { %342 = vst.msk [vmem:[%s648_s4] sm:$0x1] %vm287_vm3, %v341_v44 }

// kernel: unet2d_forward.51
= control target key start
LH: loop header
LB: loop body
LE: loop exit
PB: predicated region body
PF: predicated region fallthrough
CT: control target
= control target key end

     0   :  { %s96_s0 = inlined_call_operand.vmem [shape: f32[16,128], index: 0, kind: input, shape index: {}]   ;;  %s97_s1 = inlined_call_operand.vmem [shape: f32[1,128], index: 1, kind: input, shape index: {}]   ;;  %s98_s2 = inlined_call_operand.vmem [shape: f32[1,128], index: 2, kind: input, shape index: {}]   ;;  %s99_s3 = inlined_call_operand.vmem [shape: bf16[16,128], index: 3, kind: output, shape index: {}]  }
   0x1   :  { %v14_v0 = vld [vmem:[%s96_s0] sm:$0xff]  ;;  %v15_v1 = vld [vmem:[%s96_s0 + $0x8] sm:$0xff] }
   0x2   :  { %v50_v2 = vld [vmem:[%s97_s1] ss:$0 sm:$0xff] }
   0x3   :  { %v23_v3 = vmul.f32 %v50_v2, %v14_v0  ;;  %v24_v4 = vmul.f32 %v50_v2, %v15_v1  ;;  %v51_v5 = vld [vmem:[%s98_s2] ss:$0 sm:$0xff] }
   0x5   :  { %v32_v6 = vadd.f32 %v51_v5, %v23_v3  ;;  %v33_v7 = vadd.f32 %v51_v5, %v24_v4 }
   0x7   :  { %v34_v8 = vmax.f32 %v32_v6, 0.0  ;;  %v35_v9 = vmax.f32 %v33_v7, 0.0 }
   0x9   :  { %v59_v10 = vpack.c.bf16 %v35_v9, %v34_v8 }
   0xb   :  { %60 = vst [vmem:[%s99_s3] sm:$0xff] %v59_v10  }

// kernel: unet2d_forward.54
= control target key start
LH: loop header
LB: loop body
LE: loop exit
PB: predicated region body
PF: predicated region fallthrough
CT: control target
= control target key end

     0   :  { %s95_s22 = smov 112   ;;  %vm73_vm0 = vcmask 123904   ;;  %s186_s0 = inlined_call_operand.vmem [shape: bf16[8,2,4,32], index: 0, kind: input, shape index: {}]   ;;  %s187_s1 = inlined_call_operand.vmem [shape: bf16[8,4,16], index: 1, kind: output, shape index: {}]  }
   0x1   :  { %v10_v0 = vld [vmem:[%s186_s0 + $0x8] sm:$0x3]  ;;  %v88_v1 = vld [vmem:[%s186_s0 + $0xa] sm:$0x3]  ;;  %v8_v2 = vld [vmem:[%s186_s0] sm:$0x3] }
   0x2   :  { %v27_v3 = vmax.bf16 %v88_v1, %v10_v0  ;;  %v86_v4 = vld [vmem:[%s186_s0 + $0x2] sm:$0x3]  ;;  %v11_v5 = vld [vmem:[%s186_s0 + $0xc] sm:$0x3]  ;;  %v89_v6 = vld [vmem:[%s186_s0 + $0xe] sm:$0x3] }
   0x3   :  { %v25_v7 = vmax.bf16 %v86_v4, %v8_v2  ;;  %v9_v8 = vld [vmem:[%s186_s0 + $0x4] sm:$0x3]  ;;  %v87_v9 = vld [vmem:[%s186_s0 + $0x6] sm:$0x3]  ;;  %v28_v10 = vmax.bf16 %v89_v6, %v11_v5  ;;  %v13_v12 = vld [vmem:[%s186_s0 + $0x14] sm:$0x3] }
   0x4   :  { %45 = vrot.lane.b32.xlu1 %v27_v3, %s95_s22  ;;  %v26_v11 = vmax.bf16 %v87_v9, %v9_v8  ;;  %v91_v13 = vld [vmem:[%s186_s0 + $0x16] sm:$0x3]  ;;  %v12_v14 = vld [vmem:[%s186_s0 + $0x10] sm:$0x3]  ;;  %v90_v15 = vld [vmem:[%s186_s0 + $0x12] sm:$0x3] }
   0x5   :  { %41 = vrot.lane.b32.xlu0 %v25_v7, %s95_s22  ;;  %v30_v16 = vmax.bf16 %v91_v13, %v13_v12  ;;  %v29_v17 = vmax.bf16 %v90_v15, %v12_v14  ;;  %v15_v18 = vld [vmem:[%s186_s0 + $0x1c] sm:$0x3]  ;;  %v93_v19 = vld [vmem:[%s186_s0 + $0x1e] sm:$0x3]  ;;  %v14_v20 = vld [vmem:[%s186_s0 + $0x18] sm:$0x3] }
   0x6   :  { %v92_v21 = vld [vmem:[%s186_s0 + $0x1a] sm:$0x3]  ;;  %v32_v22 = vmax.bf16 %v93_v19, %v15_v18 }
   0x7   :  { %v31_v23 = vmax.bf16 %v92_v21, %v14_v20 }
   0x8   :  { %47 = vrot.lane.b32.xlu1 %v28_v10, %s95_s22 }
   0x9   :  { %43 = vrot.lane.b32.xlu0 %v26_v11, %s95_s22 }
   0xc   :  { %51 = vrot.lane.b32.xlu1 %v30_v16, %s95_s22 }
   0xd   :  { %49 = vrot.lane.b32.xlu0 %v29_v17, %s95_s22 }
  0x10   :  { %55 = vrot.lane.b32.xlu1 %v32_v22, %s95_s22 }
  0x11   :  { %53 = vrot.lane.b32.xlu0 %v31_v23, %s95_s22 }
  0x76   :  { %v46_v24 = vpop.permute.xlu1 %45 }
  0x77   :  { %v67_v25 = vmax.bf16 %v46_v24, %v27_v3  ;;  %v42_v26 = vpop.permute.xlu0 %41 }
  0x78   :  { %v65_v27 = vmax.bf16 %v42_v26, %v25_v7 }
  0x79   :  { %76 = vst.msk [vmem:[%s187_s1 + $0x4] sm:$0x3] %vm73_vm0, %v67_v25 }
  0x7a   :  { %74 = vst.msk [vmem:[%s187_s1] sm:$0x3] %vm73_vm0, %v65_v27  ;;  %v48_v28 = vpop.permute.xlu1 %47 }
  0x7b   :  { %v68_v29 = vmax.bf16 %v48_v28, %v28_v10  ;;  %v44_v30 = vpop.permute.xlu0 %43 }
  0x7c   :  { %v66_v31 = vmax.bf16 %v44_v30, %v26_v11 }
  0x7d   :  { %77 = vst.msk [vmem:[%s187_s1 + $0x6] sm:$0x3] %vm73_vm0, %v68_v29 }
  0x7e   :  { %75 = vst.msk [vmem:[%s187_s1 + $0x2] sm:$0x3] %vm73_vm0, %v66_v31  ;;  %v52_v32 = vpop.permute.xlu1 %51 }
  0x7f   :  { %v70_v33 = vmax.bf16 %v52_v32, %v30_v16  ;;  %v50_v34 = vpop.permute.xlu0 %49 }
  0x80   :  { %v69_v35 = vmax.bf16 %v50_v34, %v29_v17 }
  0x81   :  { %79 = vst.msk [vmem:[%s187_s1 + $0xa] sm:$0x3] %vm73_vm0, %v70_v33 }
  0x82   :  { %78 = vst.msk [vmem:[%s187_s1 + $0x8] sm:$0x3] %vm73_vm0, %v69_v35  ;;  %v56_v36 = vpop.permute.xlu1 %55 }
  0x83   :  { %v72_v37 = vmax.bf16 %v56_v36, %v32_v22  ;;  %v54_v38 = vpop.permute.xlu0 %53 }
  0x84   :  { %v71_v39 = vmax.bf16 %v54_v38, %v31_v23 }
  0x85   :  { %81 = vst.msk [vmem:[%s187_s1 + $0xe] sm:$0x3] %vm73_vm0, %v72_v37 }
  0x86   :  { %80 = vst.msk [vmem:[%s187_s1 + $0xc] sm:$0x3] %vm73_vm0, %v71_v39 }

// kernel: tile.207
= control target key start
LH: loop header
LB: loop body
LE: loop exit
PB: predicated region body
PF: predicated region fallthrough
CT: control target
= control target key end

     0   :  { %s22_s0 = inlined_call_operand.vmem [shape: f32[32], index: 0, kind: input, shape index: {}]   ;;  %s23_s1 = inlined_call_operand.vmem [shape: f32[4,32], index: 1, kind: output, shape index: {}]  }
   0x1   :  { %v4_v0 = vld [vmem:[%s22_s0] ss:$0 sm:$0xff] }
   0x2   :  { %5 = vst [vmem:[%s23_s1] sm:$0xf] %v4_v0 }

// kernel: tile.208
= control target key start
LH: loop header
LB: loop body
LE: loop exit
PB: predicated region body
PF: predicated region fallthrough
CT: control target
= control target key end

     0   :  { %vm8_vm0 = vcmask 261120   ;;  %s40_s8 = smov 32   ;;  %s41_s9 = smov 64   ;;  %vm14_vm1 = vcmask 1048320   ;;  %vm20_vm2 = vcmask 785920   ;;  %vm26_vm3 = vcmask 523520   ;;  %s58_s0 = inlined_call_operand.vmem [shape: f32[4,32], index: 0, kind: input, shape index: {}]   ;;  %s59_s1 = inlined_call_operand.vmem [shape: f32[1,128], index: 1, kind: output, shape index: {}]  }
   0x1   :  { %v5_v0 = vld [vmem:[%s58_s0] sm:$0xf]  ;;  %s39_s0 = smov 96  }
   0x2   :  { %6 = vst [vmem:[#allocation1] sm:$0xf] %v5_v0 }
   0x9   :  { %v11_v1 = vld [vmem:[#allocation1 + $0x3] sm:$0x1]   ;;  %v23_v2 = vld [vmem:[#allocation1 + $0x1] sm:$0x1]   ;;  %v7_v3 = vld [vmem:[#allocation1] sm:$0x1]  }
   0xa   :  { %12 = vrot.lane.b32.xlu0 %v11_v1, %s39_s0  ;;  %24 = vrot.lane.b32.xlu1 %v23_v2, %s40_s8  ;;  %v17_v4 = vld [vmem:[#allocation1 + $0x2] sm:$0x1]   ;;  %9 = vst.msk [vmem:[#allocation0] sm:$0x1] %vm8_vm0, %v7_v3  }
   0xe   :  { %18 = vrot.lane.b32.xlu0 %v17_v4, %s41_s9 }
  0x7c   :  { %v13_v5 = vpop.permute.xlu0 %12   ;;  %v25_v6 = vpop.permute.xlu1 %24  }
  0x7d   :  { %15 = vst.msk [vmem:[#allocation0] sm:$0x1] %vm14_vm1, %v13_v5  }
  0x80   :  { %v19_v7 = vpop.permute.xlu0 %18  }
  0x81   :  { %21 = vst.msk [vmem:[#allocation0] sm:$0x1] %vm20_vm2, %v19_v7  }
  0x82   :  { %27 = vst.msk [vmem:[#allocation0] sm:$0x1] %vm26_vm3, %v25_v6  }
  0x89   :  { %v32_v8 = vld [vmem:[#allocation0] sm:$0x1] }
  0x8a   :  { %35 = vst [vmem:[%s59_s1] sm:$0x1] %v32_v8 }

// kernel: unet2d_forward.52
= control target key start
LH: loop header
LB: loop body
LE: loop exit
PB: predicated region body
PF: predicated region fallthrough
CT: control target
= control target key end

     0   :  { %v503_v0 = vmov 0   ;;  %vm175_vm0 = vcmask 130048   ;;  %vm350_vm1 = vcmask 122880   ;;  %s750_s1 = inlined_call_operand.vmem [shape: bf16[144,16], index: 1, kind: input, shape index: {}]   ;;  %s751_s0 = inlined_call_operand.vmem [shape: bf16[128,144], index: 0, kind: input, shape index: {}]   ;;  %s752_s2 = inlined_call_operand.vmem [shape: f32[128,16], index: 2, kind: output, shape index: {0}]   ;;  %s753_s3 = inlined_call_operand.vmem [shape: f32[1,1,16], index: 3, kind: output, shape index: {1}]   ;;  %s754_s4 = inlined_call_operand.vmem [shape: f32[1,1,16], index: 4, kind: output, shape index: {2}]  }
   0x1   :  { %200 = vmatprep.subr.bf16.mxu0 %v503_v0  ;;  %v470_v1 = vld [vmem:[%s750_s1 + $0x38] sm:$0xff]   ;;  %451 = vmatprep.subr.bf16.mxu1 %v503_v0  ;;  %v471_v2 = vld [vmem:[%s750_s1 + $0x30] sm:$0xff]   ;;  %v472_v3 = vld [vmem:[%s750_s1 + $0x28] sm:$0xff]  }
   0x2   :  { %201 = vmatpush1.bf16.msra.mxu0 %v470_v1  ;;  %460 = vmatpush1.bf16.msra.mxu1 %v470_v1  ;;  %v473_v4 = vld [vmem:[%s750_s1 + $0x20] sm:$0xff]   ;;  %v474_v7 = vld [vmem:[%s750_s1 + $0x18] sm:$0xff]   ;;  %v475_v8 = vld [vmem:[%s750_s1 + $0x10] sm:$0xff]  }
   0x3   :  { %202 = vmatprep.subr.bf16.mxu0 %v503_v0  ;;  %452 = vmatprep.subr.bf16.mxu1 %v503_v0  ;;  %v481_v5 = vld [vmem:[%s751_s0 + $0x4] ss:$8 sps:$4 sm:$0xff]   ;;  %v479_v12 = vld [vmem:[%s751_s0] ss:$8 sps:$4 sm:$0xff]   ;;  %v482_v14 = vld [vmem:[%s751_s0 + $0x14] ss:$8 sps:$4 sm:$0xff]  }
   0x4   :  { %443 = vmatprep.mubr.msk.bf16.mxu0 %vm175_vm0, %v481_v5  ;;  %v487_v6 = vld [vmem:[%s751_s0 + $0x44] ss:$8 sps:$4 sm:$0xff]   ;;  %v485_v13 = vld [vmem:[%s751_s0 + $0x40] ss:$8 sps:$4 sm:$0xff]   ;;  %v491_v15 = vld [vmem:[%s751_s0 + $0x54] ss:$8 sps:$4 sm:$0xff]  }
   0x5   :  { %447 = vmatprep.mubr.msk.bf16.mxu1 %vm175_vm0, %v487_v6  ;;  %v476_v9 = vld [vmem:[%s750_s1 + $0x8] sm:$0xff]   ;;  %v477_v10 = vld [vmem:[%s750_s1] sm:$0xff]   ;;  %v484_v16 = vld [vmem:[%s751_s0 + $0x10] ss:$8 sps:$4 sm:$0xff]  }
   0x6   :  { %203 = vmatpush1.bf16.msra.mxu0 %v471_v2  ;;  %461 = vmatpush1.bf16.msra.mxu1 %v471_v2  ;;  %v478_v11 = vld [vmem:[%s750_s1 + $0x40] sm:$0xff]   ;;  %v493_v17 = vld [vmem:[%s751_s0 + $0x50] ss:$8 sps:$4 sm:$0xff]   ;;  %v494_v22 = vld [vmem:[%s751_s0 + $0x34] ss:$8 sps:$4 sm:$0xff]  }
   0x7   :  { %204 = vmatprep.subr.bf16.mxu0 %v503_v0  ;;  %453 = vmatprep.subr.bf16.mxu1 %v503_v0  ;;  %v488_v18 = vld [vmem:[%s751_s0 + $0x24] ss:$8 sps:$4 sm:$0xff]   ;;  %v490_v20 = vld [vmem:[%s751_s0 + $0x20] ss:$8 sps:$4 sm:$0xff]   ;;  %v500_v23 = vld [vmem:[%s751_s0 + $0x74] ss:$8 sps:$4 sm:$0xff]  }
   0x8   :  { %v497_v19 = vld [vmem:[%s751_s0 + $0x64] ss:$8 sps:$4 sm:$0xff]   ;;  %v499_v21 = vld [vmem:[%s751_s0 + $0x60] ss:$8 sps:$4 sm:$0xff]   ;;  %v496_v24 = vld [vmem:[%s751_s0 + $0x30] ss:$8 sps:$4 sm:$0xff]  }
   0x9   :  { %v502_v25 = vld [vmem:[%s751_s0 + $0x70] ss:$8 sps:$4 sm:$0xff]  }
   0xa   :  { %205 = vmatpush1.bf16.msra.mxu0 %v472_v3  ;;  %462 = vmatpush1.bf16.msra.mxu1 %v472_v3 }
   0xb   :  { %206 = vmatprep.subr.bf16.mxu0 %v503_v0  ;;  %454 = vmatprep.subr.bf16.mxu1 %v503_v0 }
   0xe   :  { %207 = vmatpush1.bf16.msra.mxu0 %v473_v4  ;;  %463 = vmatpush1.bf16.msra.mxu1 %v473_v4 }
   0xf   :  { %208 = vmatprep.subr.bf16.mxu0 %v503_v0  ;;  %455 = vmatprep.subr.bf16.mxu1 %v503_v0 }
  0x12   :  { %209 = vmatpush1.bf16.msra.mxu0 %v474_v7  ;;  %464 = vmatpush1.bf16.msra.mxu1 %v474_v7 }
  0x13   :  { %210 = vmatprep.subr.bf16.mxu0 %v503_v0  ;;  %456 = vmatprep.subr.bf16.mxu1 %v503_v0 }
  0x16   :  { %211 = vmatpush1.bf16.msra.mxu0 %v475_v8  ;;  %465 = vmatpush1.bf16.msra.mxu1 %v475_v8 }
  0x17   :  { %212 = vmatprep.subr.bf16.mxu0 %v503_v0  ;;  %457 = vmatprep.subr.bf16.mxu1 %v503_v0 }
  0x1a   :  { %213 = vmatpush1.bf16.msra.mxu0 %v476_v9  ;;  %466 = vmatpush1.bf16.msra.mxu1 %v476_v9 }
  0x1b   :  { %214 = vmatprep.subr.bf16.mxu0 %v503_v0  ;;  %458 = vmatprep.subr.bf16.mxu1 %v503_v0 }
  0x1e   :  { %215 = vmatpush1.bf16.msra.mxu0 %v477_v10  ;;  %467 = vmatpush1.bf16.msra.mxu1 %v477_v10 }
  0x1f   :  { %230 = vmatprep.subr.bf16.mxu0 %v503_v0  ;;  %459 = vmatprep.subr.bf16.mxu1 %v503_v0 }
  0x22   :  { %231 = vmatpush2.bf16.msra.mxu0 %v478_v11  ;;  %468 = vmatpush2.bf16.msra.mxu1 %v478_v11 }
  0x25   :  { %233 = vmatmul.mubr.bf16.vlgmr.msra.gmra.mxu0 %v479_v12  ;;  %265 = vmatmul.mubr.bf16.vlgmr.msra.gmra.mxu1 %v485_v13 }
  0x26   :  { %444 = vmatprep.mubr.msk.bf16.mxu0 %vm175_vm0, %v482_v14  ;;  %448 = vmatprep.mubr.msk.bf16.mxu1 %vm175_vm0, %v491_v15 }
  0x2d   :  { %241 = vmatmul.mubr.bf16.gmra.mxu0 %v484_v16  ;;  %273 = vmatmul.mubr.bf16.gmra.mxu1 %v493_v17 }
  0x2e   :  { %445 = vmatprep.mubr.msk.bf16.mxu0 %vm175_vm0, %v488_v18  ;;  %449 = vmatprep.mubr.msk.bf16.mxu1 %vm175_vm0, %v497_v19 }
  0x35   :  { %249 = vmatmul.mubr.bf16.gmra.mxu0 %v490_v20  ;;  %281 = vmatmul.mubr.bf16.gmra.mxu1 %v499_v21 }
  0x36   :  { %446 = vmatprep.mubr.msk.bf16.mxu0 %vm175_vm0, %v494_v22  ;;  %450 = vmatprep.mubr.msk.bf16.mxu1 %vm175_vm0, %v500_v23 }
  0x3d   :  { %257 = vmatmul.mubr.bf16.gmra.mxu0 %v496_v24  ;;  %289 = vmatmul.mubr.bf16.gmra.mxu1 %v502_v25 }
  0xe5   :  { %v234_v26 = vpop.f32.mrf.mxu0  ;;  %v612_v27 = vpop.f32.mrf.mxu1 }
  0xe6   :  { %297 = vst.msk [vmem:[%s752_s2] sm:$0xff] %vm175_vm0, %v234_v26  ;;  %305 = vst.msk [vmem:[%s752_s2 + $0x40] sm:$0xff] %vm175_vm0, %v612_v27  ;;  %v352_v43 = vmul.f32 %v234_v26, %v234_v26  ;;  %v313_v48 = vsel %vm175_vm0, %v234_v26, 0.0  ;;  %v360_v24 = vmul.f32 %v612_v27, %v612_v27 }
  0xe7   :  { %v236_v28 = vpop.f32.mrf.mxu0  ;;  %v268_v29 = vpop.f32.mrf.mxu1 }
  0xe8   :  { %v368_v55 = vsel %vm175_vm0, %v352_v43, 0.0 }
  0xe9   :  { %v237_v30 = vpop.f32.mrf.mxu0  ;;  %v623_v31 = vpop.f32.mrf.mxu1 }
  0xea   :  { %298 = vst.msk [vmem:[%s752_s2 + $0x8] sm:$0xff] %vm175_vm0, %v237_v30  ;;  %306 = vst.msk [vmem:[%s752_s2 + $0x48] sm:$0xff] %vm175_vm0, %v623_v31  ;;  %v353_v40 = vmul.f32 %v237_v30, %v237_v30  ;;  %v314_v44 = vsel %vm175_vm0, %v237_v30, 0.0 }
  0xeb   :  { %v239_v32 = vpop.f32.mrf.mxu0  ;;  %v271_v33 = vpop.f32.mrf.mxu1  ;;  %v315_v52 = vadd.f32 %v314_v44, %v313_v48 }
  0xec   :  { %v369_v49 = vsel %vm175_vm0, %v353_v40, 0.0  ;;  %v328_v33 = vsel %vm175_vm0, %v612_v27, 0.0  ;;  %v383_v40 = vsel %vm175_vm0, %v360_v24, 0.0 }
  0xed   :  { %v242_v34 = vpop.f32.mrf.mxu0  ;;  %v634_v35 = vpop.f32.mrf.mxu1  ;;  %v370_v59 = vadd.f32 %v369_v49, %v368_v55 }
  0xee   :  { %299 = vst.msk [vmem:[%s752_s2 + $0x10] sm:$0xff] %vm175_vm0, %v242_v34  ;;  %307 = vst.msk [vmem:[%s752_s2 + $0x50] sm:$0xff] %vm175_vm0, %v634_v35  ;;  %v354_v45 = vmul.f32 %v242_v34, %v242_v34  ;;  %v316_v50 = vsel %vm175_vm0, %v242_v34, 0.0  ;;  %v361_v34 = vmul.f32 %v623_v31, %v623_v31  ;;  %v332_v27 = vsel %vm175_vm0, %v634_v35, 0.0 }
  0xef   :  { %v244_v36 = vpop.f32.mrf.mxu0  ;;  %v276_v37 = vpop.f32.mrf.mxu1  ;;  %v317_v60 = vadd.f32 %v316_v50, %v315_v52 }
  0xf0   :  { %v371_v56 = vsel %vm175_vm0, %v354_v45, 0.0  ;;  %v385_v45 = vsel %vm175_vm0, %v361_v34, 0.0 }
  0xf1   :  { %v245_v38 = vpop.f32.mrf.mxu0  ;;  %v645_v39 = vpop.f32.mrf.mxu1  ;;  %v372_v2 = vadd.f32 %v371_v56, %v370_v59 }
  0xf2   :  { %300 = vst.msk [vmem:[%s752_s2 + $0x18] sm:$0xff] %vm175_vm0, %v245_v38  ;;  %308 = vst.msk [vmem:[%s752_s2 + $0x58] sm:$0xff] %vm175_vm0, %v645_v39  ;;  %v355_v51 = vmul.f32 %v245_v38, %v245_v38  ;;  %v318_v57 = vsel %vm175_vm0, %v245_v38, 0.0 }
  0xf3   :  { %v247_v41 = vpop.f32.mrf.mxu0  ;;  %v279_v42 = vpop.f32.mrf.mxu1  ;;  %v319_v3 = vadd.f32 %v318_v57, %v317_v60 }
  0xf4   :  { %v373_v63 = vsel %vm175_vm0, %v355_v51, 0.0  ;;  %v330_v41 = vsel %vm175_vm0, %v623_v31, 0.0  ;;  %v362_v42 = vmul.f32 %v634_v35, %v634_v35  ;;  %v334_v31 = vsel %vm175_vm0, %v645_v39, 0.0 }
  0xf5   :  { %v250_v46 = vpop.f32.mrf.mxu0  ;;  %v657_v47 = vpop.f32.mrf.mxu1  ;;  %v374_v8 = vadd.f32 %v373_v63, %v372_v2 }
  0xf6   :  { %301 = vst.msk [vmem:[%s752_s2 + $0x20] sm:$0xff] %vm175_vm0, %v250_v46  ;;  %309 = vst.msk [vmem:[%s752_s2 + $0x60] sm:$0xff] %vm175_vm0, %v657_v47  ;;  %v356_v58 = vmul.f32 %v250_v46, %v250_v46  ;;  %v320_v0 = vsel %vm175_vm0, %v250_v46, 0.0  ;;  %v363_v46 = vmul.f32 %v645_v39, %v645_v39  ;;  %v387_v50 = vsel %vm175_vm0, %v362_v42, 0.0 }
  0xf7   :  { %v252_v53 = vpop.f32.mrf.mxu0  ;;  %v284_v54 = vpop.f32.mrf.mxu1  ;;  %v321_v9 = vadd.f32 %v320_v0, %v319_v3  ;;  %v364_v51 = vmul.f32 %v657_v47, %v657_v47  ;;  %v336_v35 = vsel %vm175_vm0, %v657_v47, 0.0 }
  0xf8   :  { %v375_v6 = vsel %vm175_vm0, %v356_v58, 0.0  ;;  %v389_v54 = vsel %vm175_vm0, %v363_v46, 0.0 }
  0xf9   :  { %v253_v61 = vpop.f32.mrf.mxu0  ;;  %v674_v62 = vpop.f32.mrf.mxu1  ;;  %v376_v15 = vadd.f32 %v375_v6, %v374_v8  ;;  %v391_v58 = vsel %vm175_vm0, %v364_v51, 0.0 }
  0xfa   :  { %302 = vst.msk [vmem:[%s752_s2 + $0x28] sm:$0xff] %vm175_vm0, %v253_v61  ;;  %v357_v1 = vmul.f32 %v253_v61, %v253_v61  ;;  %310 = vst.msk [vmem:[%s752_s2 + $0x68] sm:$0xff] %vm175_vm0, %v674_v62  ;;  %v322_v7 = vsel %vm175_vm0, %v253_v61, 0.0  ;;  %v365_v55 = vmul.f32 %v674_v62, %v674_v62  ;;  %v338_v39 = vsel %vm175_vm0, %v674_v62, 0.0 }
  0xfb   :  { %v255_v4 = vpop.f32.mrf.mxu0  ;;  %v287_v5 = vpop.f32.mrf.mxu1  ;;  %v323_v16 = vadd.f32 %v322_v7, %v321_v9 }
  0xfc   :  { %v377_v12 = vsel %vm175_vm0, %v357_v1, 0.0  ;;  %v393_v63 = vsel %vm175_vm0, %v365_v55, 0.0 }
  0xfd   :  { %v258_v10 = vpop.f32.mrf.mxu0  ;;  %v290_v11 = vpop.f32.mrf.mxu1  ;;  %v378_v20 = vadd.f32 %v377_v12, %v376_v15 }
  0xfe   :  { %303 = vst.msk [vmem:[%s752_s2 + $0x30] sm:$0xff] %vm175_vm0, %v258_v10  ;;  %v324_v13 = vsel %vm175_vm0, %v258_v10, 0.0  ;;  %v358_v14 = vmul.f32 %v258_v10, %v258_v10  ;;  %311 = vst.msk [vmem:[%s752_s2 + $0x70] sm:$0xff] %vm175_vm0, %v290_v11  ;;  %v366_v59 = vmul.f32 %v290_v11, %v290_v11  ;;  %v340_v0 = vsel %vm175_vm0, %v290_v11, 0.0 }
  0xff   :  { %v260_v17 = vpop.f32.mrf.mxu0  ;;  %v292_v18 = vpop.f32.mrf.mxu1  ;;  %v325_v21 = vadd.f32 %v324_v13, %v323_v16 }
 0x100   :  { %v379_v19 = vsel %vm175_vm0, %v358_v14, 0.0  ;;  %v395_v3 = vsel %vm175_vm0, %v366_v59, 0.0 }
 0x101   :  { %v261_v22 = vpop.f32.mrf.mxu0  ;;  %v293_v23 = vpop.f32.mrf.mxu1  ;;  %v380_v28 = vadd.f32 %v379_v19, %v378_v20 }
 0x102   :  { %304 = vst.msk [vmem:[%s752_s2 + $0x38] sm:$0xff] %vm175_vm0, %v261_v22  ;;  %v326_v25 = vsel %vm175_vm0, %v261_v22, 0.0  ;;  %v359_v26 = vmul.f32 %v261_v22, %v261_v22  ;;  %312 = vst.msk [vmem:[%s752_s2 + $0x78] sm:$0xff] %vm175_vm0, %v293_v23  ;;  %v367_v1 = vmul.f32 %v293_v23, %v293_v23  ;;  %v342_v4 = vsel %vm175_vm0, %v293_v23, 0.0 }
 0x103   :  { %v327_v29 = vadd.f32 %v326_v25, %v325_v21  ;;  %v263_v30 = vpop.f32.mrf.mxu0  ;;  %v295_v32 = vpop.f32.mrf.mxu1 }
 0x104   :  { %v381_v36 = vsel %vm175_vm0, %v359_v26, 0.0  ;;  %v397_v7 = vsel %vm175_vm0, %v367_v1, 0.0 }
 0x105   :  { %v329_v37 = vadd.f32 %v328_v33, %v327_v29  ;;  %v382_v38 = vadd.f32 %v381_v36, %v380_v28 }
 0x107   :  { %v331_v43 = vadd.f32 %v330_v41, %v329_v37  ;;  %v384_v44 = vadd.f32 %v383_v40, %v382_v38 }
 0x109   :  { %v386_v48 = vadd.f32 %v385_v45, %v384_v44  ;;  %v333_v49 = vadd.f32 %v332_v27, %v331_v43 }
 0x10b   :  { %v335_v52 = vadd.f32 %v334_v31, %v333_v49  ;;  %v388_v53 = vadd.f32 %v387_v50, %v386_v48 }
 0x10d   :  { %v337_v56 = vadd.f32 %v336_v35, %v335_v52  ;;  %v390_v57 = vadd.f32 %v389_v54, %v388_v53 }
 0x10f   :  { %v339_v60 = vadd.f32 %v338_v39, %v337_v56  ;;  %v392_v61 = vadd.f32 %v391_v58, %v390_v57 }
 0x111   :  { %v394_v2 = vadd.f32 %v393_v63, %v392_v61  ;;  %v341_v47 = vadd.f32 %v340_v0, %v339_v60 }
 0x113   :  { %v396_v5 = vadd.f32 %v395_v3, %v394_v2  ;;  %v343_v6 = vadd.f32 %v342_v4, %v341_v47 }
 0x115   :  { %v344_v8 = vrot.slane %v343_v6, 4  ;;  %v398_v62 = vadd.f32 %v397_v7, %v396_v5 }
 0x117   :  { %v345_v9 = vadd.f32 %v344_v8, %v343_v6  ;;  %v399_v10 = vrot.slane %v398_v62, 4 }
 0x119   :  { %v346_v12 = vrot.slane %v345_v9, 2  ;;  %v400_v13 = vadd.f32 %v399_v10, %v398_v62 }
 0x11b   :  { %v347_v14 = vadd.f32 %v346_v12, %v345_v9  ;;  %v401_v15 = vrot.slane %v400_v13, 2 }
 0x11d   :  { %v348_v11 = vrot.slane %v347_v14, 1  ;;  %v402_v16 = vadd.f32 %v401_v15, %v400_v13 }
 0x11f   :  { %v349_v17 = vadd.f32 %v348_v11, %v347_v14  ;;  %v403_v18 = vrot.slane %v402_v16, 1 }
 0x121   :  { %351 = vst.msk [vmem:[%s753_s3] sm:$0x1] %vm350_vm1, %v349_v17  ;;  %v404_v19 = vadd.f32 %v403_v18, %v402_v16 }
 0x123   :  { %405 = vst.msk [vmem:[%s754_s4] sm:$0x1] %vm350_vm1, %v404_v19 }

// kernel: unet2d_forward.55
= control target key start
LH: loop header
LB: loop body
LE: loop exit
PB: predicated region body
PF: predicated region fallthrough
CT: control target
= control target key end

     0   :  { %v264_v0 = vmov 0   ;;  %vm109_vm0 = vcmask 130048   ;;  %vm165_vm1 = vcmask 261120   ;;  %vm183_vm2 = vcmask 253952   ;;  %s359_s1 = inlined_call_operand.vmem [shape: bf16[144,32], index: 1, kind: input, shape index: {}]   ;;  %s360_s0 = inlined_call_operand.vmem [shape: bf16[32,144], index: 0, kind: input, shape index: {}]   ;;  %s361_s2 = inlined_call_operand.vmem [shape: f32[32,32], index: 2, kind: output, shape index: {0}]   ;;  %s362_s3 = inlined_call_operand.vmem [shape: f32[1,1,32], index: 3, kind: output, shape index: {1}]   ;;  %s363_s4 = inlined_call_operand.vmem [shape: f32[1,1,32], index: 4, kind: output, shape index: {2}]  }
   0x1   :  { %116 = vmatprep.subr.bf16.mxu0 %v264_v0  ;;  %230 = vmatprep.subr.bf16.mxu1 %v264_v0  ;;  %v249_v1 = vld [vmem:[%s359_s1 + $0x38] sm:$0xff]   ;;  %v250_v2 = vld [vmem:[%s359_s1 + $0x30] sm:$0xff]   ;;  %v251_v3 = vld [vmem:[%s359_s1 + $0x28] sm:$0xff]  }
   0x2   :  { %117 = vmatpush1.bf16.msra.mxu0 %v249_v1  ;;  %239 = vmatpush1.bf16.msra.mxu1 %v249_v1  ;;  %v252_v4 = vld [vmem:[%s359_s1 + $0x20] sm:$0xff]   ;;  %v263_v6 = vld [vmem:[%s360_s0 + $0x14] ss:$8 sps:$4 sm:$0xff]   ;;  %v255_v9 = vld [vmem:[%s359_s1 + $0x8] sm:$0xff]  }
   0x3   :  { %118 = vmatprep.subr.bf16.mxu0 %v264_v0  ;;  %231 = vmatprep.subr.bf16.mxu1 %v264_v0  ;;  %v260_v5 = vld [vmem:[%s360_s0 + $0x4] ss:$8 sps:$4 sm:$0xff]   ;;  %v253_v7 = vld [vmem:[%s359_s1 + $0x18] sm:$0xff]   ;;  %v254_v8 = vld [vmem:[%s359_s1 + $0x10] sm:$0xff]  }
   0x4   :  { %228 = vmatprep.mubr.msk.bf16.mxu0 %vm109_vm0, %v260_v5  ;;  %229 = vmatprep.mubr.msk.bf16.mxu1 %vm109_vm0, %v263_v6  ;;  %v256_v10 = vld [vmem:[%s359_s1] sm:$0xff]   ;;  %v261_v13 = vld [vmem:[%s360_s0 + $0x10] ss:$8 sps:$4 sm:$0xff]  }
   0x5   :  { %v257_v11 = vld [vmem:[%s359_s1 + $0x40] sm:$0xff]  }
   0x6   :  { %119 = vmatpush1.bf16.msra.mxu0 %v250_v2  ;;  %240 = vmatpush1.bf16.msra.mxu1 %v250_v2  ;;  %v258_v12 = vld [vmem:[%s360_s0] ss:$8 sps:$4 sm:$0xff]  }
   0x7   :  { %120 = vmatprep.subr.bf16.mxu0 %v264_v0  ;;  %232 = vmatprep.subr.bf16.mxu1 %v264_v0 }
   0xa   :  { %121 = vmatpush1.bf16.msra.mxu0 %v251_v3  ;;  %241 = vmatpush1.bf16.msra.mxu1 %v251_v3 }
   0xb   :  { %122 = vmatprep.subr.bf16.mxu0 %v264_v0  ;;  %233 = vmatprep.subr.bf16.mxu1 %v264_v0 }
   0xe   :  { %123 = vmatpush1.bf16.msra.mxu0 %v252_v4  ;;  %242 = vmatpush1.bf16.msra.mxu1 %v252_v4 }
   0xf   :  { %124 = vmatprep.subr.bf16.mxu0 %v264_v0  ;;  %234 = vmatprep.subr.bf16.mxu1 %v264_v0 }
  0x12   :  { %125 = vmatpush1.bf16.msra.mxu0 %v253_v7  ;;  %243 = vmatpush1.bf16.msra.mxu1 %v253_v7 }
  0x13   :  { %126 = vmatprep.subr.bf16.mxu0 %v264_v0  ;;  %235 = vmatprep.subr.bf16.mxu1 %v264_v0 }
  0x16   :  { %127 = vmatpush1.bf16.msra.mxu0 %v254_v8  ;;  %244 = vmatpush1.bf16.msra.mxu1 %v254_v8 }
  0x17   :  { %128 = vmatprep.subr.bf16.mxu0 %v264_v0  ;;  %236 = vmatprep.subr.bf16.mxu1 %v264_v0 }
  0x1a   :  { %129 = vmatpush1.bf16.msra.mxu0 %v255_v9  ;;  %245 = vmatpush1.bf16.msra.mxu1 %v255_v9 }
  0x1b   :  { %130 = vmatprep.subr.bf16.mxu0 %v264_v0  ;;  %237 = vmatprep.subr.bf16.mxu1 %v264_v0 }
  0x1e   :  { %131 = vmatpush1.bf16.msra.mxu0 %v256_v10  ;;  %246 = vmatpush1.bf16.msra.mxu1 %v256_v10 }
  0x1f   :  { %146 = vmatprep.subr.bf16.mxu0 %v264_v0  ;;  %238 = vmatprep.subr.bf16.mxu1 %v264_v0 }
  0x22   :  { %147 = vmatpush2.bf16.msra.mxu0 %v257_v11  ;;  %247 = vmatpush2.bf16.msra.mxu1 %v257_v11 }
  0x25   :  { %149 = vmatmul.mubr.bf16.vlgmr.msra.gmra.mxu0 %v258_v12  ;;  %157 = vmatmul.mubr.bf16.vlgmr.msra.gmra.mxu1 %v261_v13 }
  0xe5   :  { %v150_v14 = vpop.f32.mrf.mxu0  ;;  %v158_v15 = vpop.f32.mrf.mxu1 }
  0xe6   :  { %166 = vst.msk [vmem:[%s361_s2] sm:$0xff] %vm165_vm1, %v150_v14  ;;  %168 = vst.msk [vmem:[%s361_s2 + $0x10] sm:$0xff] %vm165_vm1, %v158_v15  ;;  %v185_v18 = vmul.f32 %v150_v14, %v150_v14  ;;  %v170_v21 = vsel %vm165_vm1, %v150_v14, 0.0  ;;  %v187_v22 = vmul.f32 %v158_v15, %v158_v15  ;;  %v173_v29 = vsel %vm165_vm1, %v158_v15, 0.0 }
  0xe7   :  { %v152_v16 = vpop.f32.mrf.mxu0  ;;  %v160_v17 = vpop.f32.mrf.mxu1 }
  0xe8   :  { %v189_v28 = vsel %vm165_vm1, %v185_v18, 0.0  ;;  %v192_v34 = vsel %vm165_vm1, %v187_v22, 0.0 }
  0xe9   :  { %v153_v19 = vpop.f32.mrf.mxu0  ;;  %v161_v20 = vpop.f32.mrf.mxu1 }
  0xea   :  { %167 = vst.msk [vmem:[%s361_s2 + $0x8] sm:$0xff] %vm165_vm1, %v153_v19  ;;  %v171_v23 = vsel %vm165_vm1, %v153_v19, 0.0  ;;  %v186_v24 = vmul.f32 %v153_v19, %v153_v19  ;;  %169 = vst.msk [vmem:[%s361_s2 + $0x18] sm:$0xff] %vm165_vm1, %v161_v20  ;;  %v188_v31 = vmul.f32 %v161_v20, %v161_v20  ;;  %v175_v35 = vsel %vm165_vm1, %v161_v20, 0.0 }
  0xeb   :  { %v172_v25 = vadd.f32 %v171_v23, %v170_v21  ;;  %v155_v26 = vpop.f32.mrf.mxu0  ;;  %v163_v27 = vpop.f32.mrf.mxu1 }
  0xec   :  { %v190_v30 = vsel %vm165_vm1, %v186_v24, 0.0  ;;  %v194_v38 = vsel %vm165_vm1, %v188_v31, 0.0 }
  0xed   :  { %v191_v32 = vadd.f32 %v190_v30, %v189_v28  ;;  %v174_v33 = vadd.f32 %v173_v29, %v172_v25 }
  0xef   :  { %v176_v36 = vadd.f32 %v175_v35, %v174_v33  ;;  %v193_v37 = vadd.f32 %v192_v34, %v191_v32 }
  0xf1   :  { %v177_v39 = vrot.slane %v176_v36, 4  ;;  %v195_v40 = vadd.f32 %v194_v38, %v193_v37 }
  0xf3   :  { %v178_v41 = vadd.f32 %v177_v39, %v176_v36  ;;  %v196_v42 = vrot.slane %v195_v40, 4 }
  0xf5   :  { %v179_v43 = vrot.slane %v178_v41, 2  ;;  %v197_v44 = vadd.f32 %v196_v42, %v195_v40 }
  0xf7   :  { %v180_v45 = vadd.f32 %v179_v43, %v178_v41  ;;  %v198_v46 = vrot.slane %v197_v44, 2 }
  0xf9   :  { %v181_v47 = vrot.slane %v180_v45, 1  ;;  %v199_v48 = vadd.f32 %v198_v46, %v197_v44 }
  0xfb   :  { %v182_v49 = vadd.f32 %v181_v47, %v180_v45  ;;  %v200_v50 = vrot.slane %v199_v48, 1 }
  0xfd   :  { %184 = vst.msk [vmem:[%s362_s3] sm:$0x1] %vm183_vm2, %v182_v49  ;;  %v201_v51 = vadd.f32 %v200_v50, %v199_v48 }
  0xff   :  { %202 = vst.msk [vmem:[%s363_s4] sm:$0x1] %vm183_vm2, %v201_v51 }

// kernel: unet2d_forward.56
= control target key start
LH: loop header
LB: loop body
LE: loop exit
PB: predicated region body
PF: predicated region fallthrough
CT: control target
= control target key end

     0   :  { %s72_s0 = inlined_call_operand.vmem [shape: f32[8,128], index: 0, kind: input, shape index: {}]   ;;  %s73_s1 = inlined_call_operand.vmem [shape: f32[1,128], index: 1, kind: input, shape index: {}]   ;;  %s74_s2 = inlined_call_operand.vmem [shape: f32[1,128], index: 2, kind: input, shape index: {}]   ;;  %s75_s3 = inlined_call_operand.vmem [shape: bf16[8,128], index: 3, kind: output, shape index: {}]  }
   0x1   :  { %v14_v0 = vld [vmem:[%s72_s0] sm:$0xff] }
   0x2   :  { %v38_v1 = vld [vmem:[%s73_s1] ss:$0 sm:$0xff] }
   0x3   :  { %v39_v2 = vld [vmem:[%s74_s2] ss:$0 sm:$0xff]  ;;  %v22_v3 = vmul.f32 %v38_v1, %v14_v0 }
   0x5   :  { %v30_v4 = vadd.f32 %v39_v2, %v22_v3 }
   0x7   :  { %v31_v5 = vmax.f32 %v30_v4, 0.0 }
   0x9   :  { %v32_v6 = vpack.c.bf16 %v31_v5, %v31_v5 }
   0xb   :  { %33 = vst [vmem:[%s75_s3] sm:$0xf] %v32_v6 }

// kernel: unet2d_forward.59
= control target key start
LH: loop header
LB: loop body
LE: loop exit
PB: predicated region body
PF: predicated region fallthrough
CT: control target
= control target key end

     0   :  { %s55_s22 = smov 96   ;;  %vm41_vm0 = vcmask 253952   ;;  %s102_s0 = inlined_call_operand.vmem [shape: bf16[4,2,2,64], index: 0, kind: input, shape index: {}]   ;;  %s103_s1 = inlined_call_operand.vmem [shape: bf16[4,2,32], index: 1, kind: output, shape index: {}]  }
   0x1   :  { %v10_v0 = vld [vmem:[%s102_s0 + $0x4] sm:$0x1]  ;;  %v52_v1 = vld [vmem:[%s102_s0 + $0x5] sm:$0x1]  ;;  %v8_v2 = vld [vmem:[%s102_s0] sm:$0x1] }
   0x2   :  { %v19_v3 = vmax.bf16 %v52_v1, %v10_v0  ;;  %v50_v4 = vld [vmem:[%s102_s0 + $0x1] sm:$0x1]  ;;  %v11_v5 = vld [vmem:[%s102_s0 + $0x6] sm:$0x1]  ;;  %v53_v6 = vld [vmem:[%s102_s0 + $0x7] sm:$0x1] }
   0x3   :  { %v17_v7 = vmax.bf16 %v50_v4, %v8_v2  ;;  %v9_v8 = vld [vmem:[%s102_s0 + $0x2] sm:$0x1]  ;;  %v51_v9 = vld [vmem:[%s102_s0 + $0x3] sm:$0x1]  ;;  %v20_v10 = vmax.bf16 %v53_v6, %v11_v5 }
   0x4   :  { %29 = vrot.lane.b32.xlu1 %v19_v3, %s55_s22  ;;  %v18_v11 = vmax.bf16 %v51_v9, %v9_v8 }
   0x5   :  { %25 = vrot.lane.b32.xlu0 %v17_v7, %s55_s22 }
   0x8   :  { %31 = vrot.lane.b32.xlu1 %v20_v10, %s55_s22 }
   0x9   :  { %27 = vrot.lane.b32.xlu0 %v18_v11, %s55_s22 }
  0x76   :  { %v30_v12 = vpop.permute.xlu1 %29 }
  0x77   :  { %v39_v13 = vmax.bf16 %v30_v12, %v19_v3  ;;  %v26_v14 = vpop.permute.xlu0 %25 }
  0x78   :  { %v37_v15 = vmax.bf16 %v26_v14, %v17_v7 }
  0x79   :  { %44 = vst.msk [vmem:[%s103_s1 + $0x2] sm:$0x1] %vm41_vm0, %v39_v13 }
  0x7a   :  { %42 = vst.msk [vmem:[%s103_s1] sm:$0x1] %vm41_vm0, %v37_v15  ;;  %v32_v16 = vpop.permute.xlu1 %31 }
  0x7b   :  { %v40_v17 = vmax.bf16 %v32_v16, %v20_v10  ;;  %v28_v18 = vpop.permute.xlu0 %27 }
  0x7c   :  { %v38_v19 = vmax.bf16 %v28_v18, %v18_v11 }
  0x7d   :  { %45 = vst.msk [vmem:[%s103_s1 + $0x3] sm:$0x1] %vm41_vm0, %v40_v17 }
  0x7e   :  { %43 = vst.msk [vmem:[%s103_s1 + $0x1] sm:$0x1] %vm41_vm0, %v38_v19 }

// kernel: tile.227
= control target key start
LH: loop header
LB: loop body
LE: loop exit
PB: predicated region body
PF: predicated region fallthrough
CT: control target
= control target key end

     0   :  { %s22_s0 = inlined_call_operand.vmem [shape: f32[64], index: 0, kind: input, shape index: {}]   ;;  %s23_s1 = inlined_call_operand.vmem [shape: f32[2,64], index: 1, kind: output, shape index: {}]  }
   0x1   :  { %v4_v0 = vld [vmem:[%s22_s0] ss:$0 sm:$0xff] }
   0x2   :  { %5 = vst [vmem:[%s23_s1] sm:$0x3] %v4_v0 }

// kernel: tile.228
= control target key start
LH: loop header
LB: loop body
LE: loop exit
PB: predicated region body
PF: predicated region fallthrough
CT: control target
= control target key end

     0   :  { %vm8_vm0 = vcmask 523264   ;;  %vm14_vm1 = vcmask 1048064   ;;  %s42_s0 = inlined_call_operand.vmem [shape: f32[2,64], index: 0, kind: input, shape index: {}]   ;;  %s43_s1 = inlined_call_operand.vmem [shape: f32[1,128], index: 1, kind: output, shape index: {}]  }
   0x1   :  { %v5_v0 = vld [vmem:[%s42_s0] sm:$0x3]  ;;  %s25_s0 = smov 64  }
   0x2   :  { %6 = vst [vmem:[#allocation1] sm:$0x3] %v5_v0 }
   0x9   :  { %v11_v1 = vld [vmem:[#allocation1 + $0x1] sm:$0x1]   ;;  %v7_v2 = vld [vmem:[#allocation1] sm:$0x1]  }
   0xa   :  { %12 = vrot.lane.b32.xlu0 %v11_v1, %s25_s0  ;;  %9 = vst.msk [vmem:[#allocation0] sm:$0x1] %vm8_vm0, %v7_v2  }
  0x7c   :  { %v13_v3 = vpop.permute.xlu0 %12  }
  0x7d   :  { %15 = vst.msk [vmem:[#allocation0] sm:$0x1] %vm14_vm1, %v13_v3  }
  0x84   :  { %v20_v4 = vld [vmem:[#allocation0] sm:$0x1] }
  0x85   :  { %23 = vst [vmem:[%s43_s1] sm:$0x1] %v20_v4 }

// kernel: unet2d_forward.57
= control target key start
LH: loop header
LB: loop body
LE: loop exit
PB: predicated region body
PF: predicated region fallthrough
CT: control target
= control target key end

     0   :  { %vm197_vm0 = vcmask 261120   ;;  %vm319_vm1 = vcmask 253952   ;;  %s572_s1 = inlined_call_operand.vmem [shape: bf16[288,32], index: 1, kind: input, shape index: {}]   ;;  %s573_s0 = inlined_call_operand.vmem [shape: bf16[32,288], index: 0, kind: input, shape index: {}]   ;;  %s574_s2 = inlined_call_operand.vmem [shape: f32[32,32], index: 2, kind: output, shape index: {0}]   ;;  %s575_s3 = inlined_call_operand.vmem [shape: f32[1,1,32], index: 3, kind: output, shape index: {1}]   ;;  %s576_s4 = inlined_call_operand.vmem [shape: f32[1,1,32], index: 4, kind: output, shape index: {2}]  }
   0x1   :  { %v417_v0 = vld [vmem:[%s572_s1 + $0x78] sm:$0xff]   ;;  %v419_v2 = vld [vmem:[%s572_s1 + $0x70] sm:$0xff]   ;;  %v421_v4 = vld [vmem:[%s572_s1 + $0x68] sm:$0xff]  }
   0x2   :  { %v418_v1 = vld [vmem:[%s572_s1 + $0x38] sm:$0xff]   ;;  %377 = vmatprep.subr.bf16.mxu0 %v417_v0  ;;  %v420_v3 = vld [vmem:[%s572_s1 + $0x30] sm:$0xff]   ;;  %v422_v5 = vld [vmem:[%s572_s1 + $0x28] sm:$0xff]  }
   0x3   :  { %378 = vmatpush3.bf16.msra.mxu0 %v418_v1  ;;  %v423_v6 = vld [vmem:[%s572_s1 + $0x60] sm:$0xff]   ;;  %v425_v8 = vld [vmem:[%s572_s1 + $0x58] sm:$0xff]   ;;  %v430_v9 = vld [vmem:[%s572_s1 + $0x88] sm:$0xff]  }
   0x4   :  { %379 = vmatprep.subr.bf16.mxu0 %v419_v2  ;;  %v424_v7 = vld [vmem:[%s572_s1 + $0x20] sm:$0xff]   ;;  %v426_v10 = vld [vmem:[%s572_s1 + $0x18] sm:$0xff]   ;;  %v427_v11 = vld [vmem:[%s572_s1 + $0x50] sm:$0xff]   ;;  %409 = vmatprep.subr.bf16.mxu1 %v430_v9 }
   0x5   :  { %410 = vmatpush3.bf16.msra.mxu1 %v430_v9  ;;  %v433_v12 = vld [vmem:[%s572_s1 + $0x80] sm:$0xff]   ;;  %v428_v13 = vld [vmem:[%s572_s1 + $0x10] sm:$0xff]   ;;  %v429_v14 = vld [vmem:[%s572_s1 + $0x48] sm:$0xff]  }
   0x6   :  { %411 = vmatprep.subr.bf16.mxu1 %v433_v12  ;;  %v437_v15 = vld [vmem:[%s573_s0 + $0x4] ss:$12 sps:$4 sm:$0xff]   ;;  %v438_v16 = vld [vmem:[%s573_s0 + $0x8] ss:$12 sps:$4 sm:$0xff]   ;;  %v439_v17 = vld [vmem:[%s573_s0 + $0x20] ss:$12 sps:$4 sm:$0xff]  }
   0x7   :  { %380 = vmatpush3.bf16.msra.mxu0 %v420_v3  ;;  %236 = vmatprep.mubr.bf16.mxu0 %v437_v15  ;;  %v431_v18 = vld [vmem:[%s572_s1 + $0x8] sm:$0xff]   ;;  %v432_v19 = vld [vmem:[%s572_s1 + $0x40] sm:$0xff]  }
   0x8   :  { %381 = vmatprep.subr.bf16.mxu0 %v421_v4  ;;  %413 = vmatprep.mubr.msk.bf16.mxu1 %vm197_vm0, %v438_v16  ;;  %v434_v20 = vld [vmem:[%s572_s1] sm:$0xff]   ;;  %v440_v22 = vld [vmem:[%s573_s0 + $0x1c] ss:$12 sps:$4 sm:$0xff]  }
   0x9   :  { %412 = vmatpush3.bf16.msra.mxu1 %v433_v12  ;;  %v435_v21 = vld [vmem:[%s573_s0] ss:$12 sps:$4 sm:$0xff]   ;;  %v442_v23 = vld [vmem:[%s573_s0 + $0x18] ss:$12 sps:$4 sm:$0xff]  }
   0xb   :  { %382 = vmatpush3.bf16.msra.mxu0 %v422_v5 }
   0xc   :  { %383 = vmatprep.subr.bf16.mxu0 %v423_v6  ;;  %414 = vmatmul.mubr.msk.bf16.vlgmr.msra.gmra.mxu1 %vm197_vm0, %v439_v17 }
   0xf   :  { %384 = vmatpush3.bf16.msra.mxu0 %v424_v7 }
  0x10   :  { %385 = vmatprep.subr.bf16.mxu0 %v425_v8 }
  0x13   :  { %386 = vmatpush3.bf16.msra.mxu0 %v426_v10 }
  0x14   :  { %387 = vmatprep.subr.bf16.mxu0 %v427_v11 }
  0x17   :  { %388 = vmatpush3.bf16.msra.mxu0 %v428_v13 }
  0x18   :  { %389 = vmatprep.subr.bf16.mxu0 %v429_v14 }
  0x1b   :  { %390 = vmatpush3.bf16.msra.mxu0 %v431_v18 }
  0x1c   :  { %391 = vmatprep.subr.bf16.mxu0 %v432_v19 }
  0x1f   :  { %392 = vmatpush3.bf16.msra.mxu0 %v434_v20 }
  0x22   :  { %237 = vmatmul.mubr.bf16.vlgmr.msra.gmra.mxu0 %v435_v21 }
  0x23   :  { %244 = vmatprep.mubr.bf16.mxu0 %v440_v22 }
  0x2a   :  { %245 = vmatmul.mubr.bf16.gmra.mxu0 %v442_v23 }
  0xcc   :  { %v415_v24 = vpop.f32.mrf.mxu1 }
  0xce   :  { %v287_v26 = vpop.f32.mrf.mxu1 }
  0xd0   :  { %v416_v30 = vpop.f32.mrf.mxu1 }
  0xd2   :  { %v290_v34 = vpop.f32.mrf.mxu1 }
  0xe2   :  { %v393_v25 = vpop.f32.mrf.mxu0 }
  0xe4   :  { %v394_v27 = vpop.f32.mrf.mxu0 }
  0xe5   :  { %v395_v28 = vadd.f32 %v394_v27, %v393_v25 }
  0xe6   :  { %v396_v29 = vpop.f32.mrf.mxu0 }
  0xe7   :  { %v288_v31 = vadd.f32 %v395_v28, %v287_v26 }
  0xe8   :  { %v397_v32 = vpop.f32.mrf.mxu0 }
  0xe9   :  { %302 = vst.msk [vmem:[%s574_s2] sm:$0xff] %vm197_vm0, %v288_v31  ;;  %v398_v33 = vadd.f32 %v397_v32, %v396_v29  ;;  %v321_v41 = vmul.f32 %v288_v31, %v288_v31  ;;  %v306_v44 = vsel %vm197_vm0, %v288_v31, 0.0 }
  0xea   :  { %v399_v35 = vpop.f32.mrf.mxu0 }
  0xeb   :  { %v291_v36 = vadd.f32 %v398_v33, %v290_v34  ;;  %v325_v51 = vsel %vm197_vm0, %v321_v41, 0.0 }
  0xec   :  { %v400_v37 = vpop.f32.mrf.mxu0 }
  0xed   :  { %303 = vst.msk [vmem:[%s574_s2 + $0x8] sm:$0xff] %vm197_vm0, %v291_v36  ;;  %v322_v38 = vmul.f32 %v291_v36, %v291_v36  ;;  %v401_v39 = vadd.f32 %v400_v37, %v399_v35  ;;  %v307_v42 = vsel %vm197_vm0, %v291_v36, 0.0 }
  0xee   :  { %v402_v40 = vpop.f32.mrf.mxu0  ;;  %v308_v50 = vadd.f32 %v307_v42, %v306_v44 }
  0xef   :  { %v296_v43 = vadd.f32 %v415_v24, %v401_v39  ;;  %v326_v46 = vsel %vm197_vm0, %v322_v38, 0.0 }
  0xf0   :  { %v403_v45 = vpop.f32.mrf.mxu0  ;;  %v327_v54 = vadd.f32 %v326_v46, %v325_v51 }
  0xf1   :  { %304 = vst.msk [vmem:[%s574_s2 + $0x10] sm:$0xff] %vm197_vm0, %v296_v43  ;;  %v309_v47 = vsel %vm197_vm0, %v296_v43, 0.0  ;;  %v323_v48 = vmul.f32 %v296_v43, %v296_v43  ;;  %v404_v49 = vadd.f32 %v403_v45, %v402_v40 }
  0xf2   :  { %v310_v55 = vadd.f32 %v309_v47, %v308_v50 }
  0xf3   :  { %v328_v52 = vsel %vm197_vm0, %v323_v48, 0.0  ;;  %v299_v53 = vadd.f32 %v416_v30, %v404_v49 }
  0xf4   :  { %v329_v58 = vadd.f32 %v328_v52, %v327_v54 }
  0xf5   :  { %305 = vst.msk [vmem:[%s574_s2 + $0x18] sm:$0xff] %vm197_vm0, %v299_v53  ;;  %v311_v56 = vsel %vm197_vm0, %v299_v53, 0.0  ;;  %v324_v57 = vmul.f32 %v299_v53, %v299_v53 }
  0xf6   :  { %v312_v59 = vadd.f32 %v311_v56, %v310_v55 }
  0xf7   :  { %v330_v60 = vsel %vm197_vm0, %v324_v57, 0.0 }
  0xf8   :  { %v313_v61 = vrot.slane %v312_v59, 4  ;;  %v331_v62 = vadd.f32 %v330_v60, %v329_v58 }
  0xfa   :  { %v314_v63 = vadd.f32 %v313_v61, %v312_v59  ;;  %v332_v0 = vrot.slane %v331_v62, 4 }
  0xfc   :  { %v315_v1 = vrot.slane %v314_v63, 2  ;;  %v333_v2 = vadd.f32 %v332_v0, %v331_v62 }
  0xfe   :  { %v316_v3 = vadd.f32 %v315_v1, %v314_v63  ;;  %v334_v4 = vrot.slane %v333_v2, 2 }
 0x100   :  { %v317_v5 = vrot.slane %v316_v3, 1  ;;  %v335_v6 = vadd.f32 %v334_v4, %v333_v2 }
 0x102   :  { %v318_v7 = vadd.f32 %v317_v5, %v316_v3  ;;  %v336_v8 = vrot.slane %v335_v6, 1 }
 0x104   :  { %320 = vst.msk [vmem:[%s575_s3] sm:$0x1] %vm319_vm1, %v318_v7  ;;  %v337_v9 = vadd.f32 %v336_v8, %v335_v6 }
 0x106   :  { %338 = vst.msk [vmem:[%s576_s4] sm:$0x1] %vm319_vm1, %v337_v9 }

// kernel: unet2d_forward.60
= control target key start
LH: loop header
LB: loop body
LE: loop exit
PB: predicated region body
PF: predicated region fallthrough
CT: control target
= control target key end

     0   :  { %v365_v1 = vmov 0.0   ;;  %vm366_vm0 = vmmov 0   ;;  %vm171_vm1 = vcmask 261120   ;;  %vm255_vm2 = vcmask 523264   ;;  %s461_s1 = inlined_call_operand.vmem [shape: bf16[288,64], index: 1, kind: input, shape index: {}]   ;;  %s462_s0 = inlined_call_operand.vmem [shape: bf16[8,288], index: 0, kind: input, shape index: {}]   ;;  %s463_s2 = inlined_call_operand.vmem [shape: f32[8,64], index: 2, kind: output, shape index: {0}]   ;;  %s464_s3 = inlined_call_operand.vmem [shape: f32[1,1,64], index: 3, kind: output, shape index: {1}]   ;;  %s465_s4 = inlined_call_operand.vmem [shape: f32[1,1,64], index: 4, kind: output, shape index: {2}]  }
   0x1   :  { %v344_v0 = vld [vmem:[%s461_s1 + $0x78] sm:$0xff]   ;;  %334 = vmatprep.subr.bf16.mxu1 %v365_v1  ;;  %338 = vmatprep.mubr.msk.bf16.mxu1 %vm366_vm0, %v365_v1  ;;  %v346_v3 = vld [vmem:[%s461_s1 + $0x70] sm:$0xff]   ;;  %v348_v5 = vld [vmem:[%s461_s1 + $0x68] sm:$0xff]   ;;  %vm264_vm3 = vcmask 516096  }
   0x2   :  { %v345_v2 = vld [vmem:[%s461_s1 + $0x38] sm:$0xff]   ;;  %309 = vmatprep.subr.bf16.mxu0 %v344_v0  ;;  %v347_v4 = vld [vmem:[%s461_s1 + $0x30] sm:$0xff]   ;;  %v349_v6 = vld [vmem:[%s461_s1 + $0x28] sm:$0xff]  }
   0x3   :  { %310 = vmatpush3.bf16.msra.mxu0 %v345_v2  ;;  %v350_v7 = vld [vmem:[%s461_s1 + $0x60] sm:$0xff]   ;;  %v352_v9 = vld [vmem:[%s461_s1 + $0x58] sm:$0xff]   ;;  %v356_v10 = vld [vmem:[%s461_s1 + $0x88] sm:$0xff]  }
   0x4   :  { %311 = vmatprep.subr.bf16.mxu0 %v346_v3  ;;  %v351_v8 = vld [vmem:[%s461_s1 + $0x20] sm:$0xff]   ;;  %v353_v11 = vld [vmem:[%s461_s1 + $0x18] sm:$0xff]   ;;  %335 = vmatpush3.bf16.msra.mxu1 %v356_v10  ;;  %v354_v13 = vld [vmem:[%s461_s1 + $0x50] sm:$0xff]  }
   0x5   :  { %336 = vmatprep.subr.bf16.mxu1 %v365_v1  ;;  %v359_v12 = vld [vmem:[%s461_s1 + $0x80] sm:$0xff]   ;;  %v362_v14 = vld [vmem:[%s462_s0 + $0x8] ss:$0 sps:$4 sm:$0xff]   ;;  %v355_v16 = vld [vmem:[%s461_s1 + $0x10] sm:$0xff]  }
   0x6   :  { %v15_v15 = vld [vmem:[%s462_s0] sm:$0xff]  ;;  %v357_v18 = vld [vmem:[%s461_s1 + $0x48] sm:$0xff]  }
   0x7   :  { %312 = vmatpush3.bf16.msra.mxu0 %v347_v4  ;;  %v288_v17 = vcombine.high %v15_v15, %v15_v15  ;;  %v358_v19 = vld [vmem:[%s461_s1 + $0x8] sm:$0xff]   ;;  %v360_v20 = vld [vmem:[%s461_s1 + $0x40] sm:$0xff]   ;;  %v287_v22 = vcombine.low %v15_v15, %v15_v15 }
   0x8   :  { %313 = vmatprep.subr.bf16.mxu0 %v348_v5  ;;  %337 = vmatpush3.bf16.msra.mxu1 %v359_v12  ;;  %v361_v21 = vld [vmem:[%s461_s1] sm:$0xff]  }
   0x9   :  { %207 = vmatprep.mubr.bf16.mxu0 %v288_v17 }
   0xb   :  { %314 = vmatpush3.bf16.msra.mxu0 %v349_v6  ;;  %339 = vmatmul.mubr.msk.bf16.vlgmr.msra.gmra.mxu1 %vm171_vm1, %v362_v14 }
   0xc   :  { %315 = vmatprep.subr.bf16.mxu0 %v350_v7 }
   0xf   :  { %316 = vmatpush3.bf16.msra.mxu0 %v351_v8 }
  0x10   :  { %317 = vmatprep.subr.bf16.mxu0 %v352_v9 }
  0x13   :  { %318 = vmatpush3.bf16.msra.mxu0 %v353_v11 }
  0x14   :  { %319 = vmatprep.subr.bf16.mxu0 %v354_v13 }
  0x17   :  { %320 = vmatpush3.bf16.msra.mxu0 %v355_v16 }
  0x18   :  { %321 = vmatprep.subr.bf16.mxu0 %v357_v18 }
  0x1b   :  { %322 = vmatpush3.bf16.msra.mxu0 %v358_v19 }
  0x1c   :  { %323 = vmatprep.subr.bf16.mxu0 %v360_v20 }
  0x1f   :  { %324 = vmatpush3.bf16.msra.mxu0 %v361_v21 }
  0x22   :  { %208 = vmatmul.mubr.bf16.vlgmr.msra.gmra.mxu0 %v287_v22 }
  0xcb   :  { %v249_v23 = vpop.f32.mrf.mxu1 }
  0xcd   :  { %v340_v24 = vpop.f32.mrf.mxu1 }
  0xcf   :  { %v252_v25 = vpop.f32.mrf.mxu1 }
  0xd1   :  { %v341_v26 = vpop.f32.mrf.mxu1 }
  0xe2   :  { %v325_v27 = vpop.f32.mrf.mxu0 }
  0xe4   :  { %v326_v28 = vpop.f32.mrf.mxu0 }
  0xe5   :  { %v327_v29 = vadd.f32 %v326_v28, %v325_v27 }
  0xe6   :  { %v328_v30 = vpop.f32.mrf.mxu0 }
  0xe7   :  { %v250_v31 = vadd.f32 %v327_v29, %v249_v23 }
  0xe8   :  { %v329_v32 = vpop.f32.mrf.mxu0 }
  0xe9   :  { %256 = vst.msk [vmem:[%s463_s2] sm:$0xff] %vm255_vm2, %v250_v31  ;;  %v257_v33 = vsel %vm255_vm2, %v250_v31, 0.0  ;;  %v266_v34 = vmul.f32 %v250_v31, %v250_v31 }
  0xea   :  { %v258_v35 = vrot.slane %v257_v33, 4 }
  0xeb   :  { %v267_v36 = vsel %vm255_vm2, %v266_v34, 0.0 }
  0xec   :  { %v259_v37 = vadd.f32 %v258_v35, %v257_v33  ;;  %v268_v38 = vrot.slane %v267_v36, 4 }
  0xee   :  { %v260_v39 = vrot.slane %v259_v37, 2  ;;  %v269_v40 = vadd.f32 %v268_v38, %v267_v36 }
  0xf0   :  { %v261_v41 = vadd.f32 %v260_v39, %v259_v37  ;;  %v270_v42 = vrot.slane %v269_v40, 2 }
  0xf2   :  { %v262_v43 = vrot.slane %v261_v41, 1  ;;  %v271_v44 = vadd.f32 %v270_v42, %v269_v40 }
  0xf4   :  { %v263_v45 = vadd.f32 %v262_v43, %v261_v41  ;;  %v272_v46 = vrot.slane %v271_v44, 1 }
  0xf6   :  { %265 = vst.msk [vmem:[%s464_s3] sm:$0x1] %vm264_vm3, %v263_v45  ;;  %v273_v47 = vadd.f32 %v272_v46, %v271_v44 }
  0xf8   :  { %274 = vst.msk [vmem:[%s465_s4] sm:$0x1] %vm264_vm3, %v273_v47 }

// kernel: unet2d_forward.61
= control target key start
LH: loop header
LB: loop body
LE: loop exit
PB: predicated region body
PF: predicated region fallthrough
CT: control target
= control target key end

     0   :  { %s72_s0 = inlined_call_operand.vmem [shape: f32[4,128], index: 0, kind: input, shape index: {}]   ;;  %s73_s1 = inlined_call_operand.vmem [shape: f32[1,128], index: 1, kind: input, shape index: {}]   ;;  %s74_s2 = inlined_call_operand.vmem [shape: f32[1,128], index: 2, kind: input, shape index: {}]   ;;  %s75_s3 = inlined_call_operand.vmem [shape: bf16[4,128], index: 3, kind: output, shape index: {}]  }
   0x1   :  { %v14_v0 = vld [vmem:[%s72_s0] sm:$0xf] }
   0x2   :  { %v38_v1 = vld [vmem:[%s73_s1] ss:$0 sm:$0xff] }
   0x3   :  { %v39_v2 = vld [vmem:[%s74_s2] ss:$0 sm:$0xff]  ;;  %v22_v3 = vmul.f32 %v38_v1, %v14_v0 }
   0x5   :  { %v30_v4 = vadd.f32 %v39_v2, %v22_v3 }
   0x7   :  { %v31_v5 = vmax.f32 %v30_v4, 0.0 }
   0x9   :  { %v32_v6 = vpack.c.bf16 %v31_v5, %v31_v5 }
   0xb   :  { %33 = vst [vmem:[%s75_s3] sm:$0x3] %v32_v6 }

// kernel: unet2d_forward.64
= control target key start
LH: loop header
LB: loop body
LE: loop exit
PB: predicated region body
PF: predicated region fallthrough
CT: control target
= control target key end

     0   :  { %s41_s14 = smov 64   ;;  %vm25_vm0 = vcmask 516096   ;;  %vm26_vm1 = vsmask.f32 256  ;;  %s76_s0 = inlined_call_operand.vmem [shape: bf16[2,2,1,128], index: 0, kind: input, shape index: {}]   ;;  %s77_s1 = inlined_call_operand.vmem [shape: bf16[2,1,64], index: 1, kind: output, shape index: {}]  }
   0x1   :  { %v8_v0 = vld [vmem:[%s76_s0] sm:$0x1]  ;;  %v38_v1 = vld [vmem:[%s76_s0 + $0x1] sm:$0x1]  ;;  %v9_v2 = vld [vmem:[%s76_s0 + $0x2] sm:$0x1] }
   0x2   :  { %v13_v3 = vmax.bf16 %v38_v1, %v8_v0  ;;  %v39_v4 = vld [vmem:[%s76_s0 + $0x3] sm:$0x1]  ;;  %vm27_vm2 = vmand %vm25_vm0, %vm26_vm1  ;;  %v28_v6 = vld [vmem:[%s77_s1] sm:$0x1] }
   0x3   :  { %v14_v5 = vmax.bf16 %v39_v4, %v9_v2  ;;  %v31_v10 = vld [vmem:[%s77_s1 + $0x1] sm:$0x1] }
   0x4   :  { %17 = vrot.lane.b32.xlu0 %v13_v3, %s41_s14 }
   0x8   :  { %19 = vrot.lane.b32.xlu0 %v14_v5, %s41_s14 }
  0x76   :  { %v18_v7 = vpop.permute.xlu0 %17 }
  0x77   :  { %v23_v8 = vmax.bf16 %v18_v7, %v13_v3 }
  0x79   :  { %v29_v9 = vsel %vm27_vm2, %v23_v8, %v28_v6 }
  0x7a   :  { %30 = vst [vmem:[%s77_s1] sm:$0x1] %v29_v9  ;;  %v20_v11 = vpop.permute.xlu0 %19 }
  0x7b   :  { %v24_v12 = vmax.bf16 %v20_v11, %v14_v5 }
  0x7d   :  { %v32_v13 = vsel %vm27_vm2, %v24_v12, %v31_v10 }
  0x7e   :  { %33 = vst [vmem:[%s77_s1 + $0x1] sm:$0x1] %v32_v13 }

// kernel: unet2d_forward.62
= control target key start
LH: loop header
LB: loop body
LE: loop exit
PB: predicated region body
PF: predicated region fallthrough
CT: control target
= control target key end

     0   :  { %v624_v36 = vmov 0.0   ;;  %vm625_vm0 = vmmov 0   ;;  %vm323_vm1 = vcmask 523264   ;;  %vm455_vm2 = vcmask 516096   ;;  %s781_s1 = inlined_call_operand.vmem [shape: bf16[576,64], index: 1, kind: input, shape index: {}]   ;;  %s782_s0 = inlined_call_operand.vmem [shape: bf16[8,576], index: 0, kind: input, shape index: {}]   ;;  %s783_s2 = inlined_call_operand.vmem [shape: f32[8,64], index: 2, kind: output, shape index: {0}]   ;;  %s784_s3 = inlined_call_operand.vmem [shape: f32[1,1,64], index: 3, kind: output, shape index: {1}]   ;;  %s785_s4 = inlined_call_operand.vmem [shape: f32[1,1,64], index: 4, kind: output, shape index: {2}]  }
   0x1   :  { %v583_v0 = vld [vmem:[%s781_s1 + $0x78] sm:$0xff]   ;;  %v587_v4 = vld [vmem:[%s781_s1 + $0x70] sm:$0xff]   ;;  %v591_v8 = vld [vmem:[%s781_s1 + $0x68] sm:$0xff]  }
   0x2   :  { %v584_v1 = vld [vmem:[%s781_s1 + $0xf8] sm:$0xff]   ;;  %520 = vmatprep.subr.bf16.mxu0 %v583_v0  ;;  %v588_v5 = vld [vmem:[%s781_s1 + $0xf0] sm:$0xff]   ;;  %v592_v9 = vld [vmem:[%s781_s1 + $0xe8] sm:$0xff]  }
   0x3   :  { %v585_v2 = vld [vmem:[%s781_s1 + $0x38] sm:$0xff]   ;;  %542 = vmatprep.subr.bf16.mxu1 %v584_v1  ;;  %v589_v6 = vld [vmem:[%s781_s1 + $0x30] sm:$0xff]   ;;  %v593_v10 = vld [vmem:[%s781_s1 + $0x28] sm:$0xff]  }
   0x4   :  { %v586_v3 = vld [vmem:[%s781_s1 + $0xb8] sm:$0xff]   ;;  %521 = vmatpush3.bf16.msra.mxu0 %v585_v2  ;;  %v590_v7 = vld [vmem:[%s781_s1 + $0xb0] sm:$0xff]   ;;  %v594_v11 = vld [vmem:[%s781_s1 + $0xa8] sm:$0xff]  }
   0x5   :  { %543 = vmatpush3.bf16.msra.mxu1 %v586_v3  ;;  %522 = vmatprep.subr.bf16.mxu0 %v587_v4  ;;  %v595_v12 = vld [vmem:[%s781_s1 + $0x60] sm:$0xff]   ;;  %v599_v16 = vld [vmem:[%s781_s1 + $0x58] sm:$0xff]   ;;  %v603_v20 = vld [vmem:[%s781_s1 + $0x50] sm:$0xff]  }
   0x6   :  { %544 = vmatprep.subr.bf16.mxu1 %v588_v5  ;;  %v596_v13 = vld [vmem:[%s781_s1 + $0xe0] sm:$0xff]   ;;  %v600_v17 = vld [vmem:[%s781_s1 + $0xd8] sm:$0xff]   ;;  %v604_v21 = vld [vmem:[%s781_s1 + $0xd0] sm:$0xff]  }
   0x7   :  { %v597_v14 = vld [vmem:[%s781_s1 + $0x20] sm:$0xff]   ;;  %v601_v18 = vld [vmem:[%s781_s1 + $0x18] sm:$0xff]   ;;  %v605_v22 = vld [vmem:[%s781_s1 + $0x10] sm:$0xff]  }
   0x8   :  { %523 = vmatpush3.bf16.msra.mxu0 %v589_v6  ;;  %v598_v15 = vld [vmem:[%s781_s1 + $0xa0] sm:$0xff]   ;;  %v602_v19 = vld [vmem:[%s781_s1 + $0x98] sm:$0xff]   ;;  %v606_v23 = vld [vmem:[%s781_s1 + $0x90] sm:$0xff]  }
   0x9   :  { %545 = vmatpush3.bf16.msra.mxu1 %v590_v7  ;;  %524 = vmatprep.subr.bf16.mxu0 %v591_v8  ;;  %v607_v24 = vld [vmem:[%s781_s1 + $0x48] sm:$0xff]   ;;  %v611_v28 = vld [vmem:[%s781_s1 + $0x40] sm:$0xff]   ;;  %v620_v39 = vld [vmem:[%s781_s1 + $0x118] sm:$0xff]  }
   0xa   :  { %546 = vmatprep.subr.bf16.mxu1 %v592_v9  ;;  %v608_v25 = vld [vmem:[%s781_s1 + $0xc8] sm:$0xff]   ;;  %v612_v29 = vld [vmem:[%s781_s1 + $0xc0] sm:$0xff]   ;;  %v621_v40 = vld [vmem:[%s781_s1 + $0x110] sm:$0xff]  }
   0xb   :  { %v609_v26 = vld [vmem:[%s781_s1 + $0x8] sm:$0xff]   ;;  %v613_v30 = vld [vmem:[%s781_s1] sm:$0xff]   ;;  %v617_v43 = vld [vmem:[%s782_s0 + $0x10] ss:$0 sps:$4 sm:$0xff]  }
   0xc   :  { %525 = vmatpush3.bf16.msra.mxu0 %v593_v10  ;;  %v610_v27 = vld [vmem:[%s781_s1 + $0x88] sm:$0xff]   ;;  %v614_v31 = vld [vmem:[%s781_s1 + $0x80] sm:$0xff]  }
   0xd   :  { %547 = vmatpush3.bf16.msra.mxu1 %v594_v11  ;;  %526 = vmatprep.subr.bf16.mxu0 %v595_v12  ;;  %v15_v32 = vld [vmem:[%s782_s0] sm:$0xff]  ;;  %v16_v35 = vld [vmem:[%s782_s0 + $0x8] sm:$0xff] }
   0xe   :  { %548 = vmatprep.subr.bf16.mxu1 %v596_v13  ;;  %v478_v33 = vcombine.low %v15_v32, %v15_v32  ;;  %v479_v34 = vcombine.high %v15_v32, %v15_v32  ;;  %v480_v37 = vcombine.low %v16_v35, %v16_v35  ;;  %v481_v38 = vcombine.high %v16_v35, %v16_v35  ;;  %v622_v41 = vld [vmem:[%s781_s1 + $0x108] sm:$0xff]   ;;  %v623_v42 = vld [vmem:[%s781_s1 + $0x100] sm:$0xff]  }
  0x10   :  { %527 = vmatpush3.bf16.msra.mxu0 %v597_v14  ;;  %359 = vmatprep.mubr.bf16.mxu0 %v479_v34 }
  0x11   :  { %549 = vmatpush3.bf16.msra.mxu1 %v598_v15  ;;  %528 = vmatprep.subr.bf16.mxu0 %v599_v16 }
  0x12   :  { %550 = vmatprep.subr.bf16.mxu1 %v600_v17  ;;  %399 = vmatprep.mubr.bf16.mxu1 %v481_v38 }
  0x14   :  { %529 = vmatpush3.bf16.msra.mxu0 %v601_v18 }
  0x15   :  { %551 = vmatpush3.bf16.msra.mxu1 %v602_v19  ;;  %530 = vmatprep.subr.bf16.mxu0 %v603_v20 }
  0x16   :  { %552 = vmatprep.subr.bf16.mxu1 %v604_v21 }
  0x18   :  { %531 = vmatpush3.bf16.msra.mxu0 %v605_v22 }
  0x19   :  { %553 = vmatpush3.bf16.msra.mxu1 %v606_v23  ;;  %532 = vmatprep.subr.bf16.mxu0 %v607_v24 }
  0x1a   :  { %554 = vmatprep.subr.bf16.mxu1 %v608_v25 }
  0x1c   :  { %533 = vmatpush3.bf16.msra.mxu0 %v609_v26 }
  0x1d   :  { %555 = vmatpush3.bf16.msra.mxu1 %v610_v27  ;;  %534 = vmatprep.subr.bf16.mxu0 %v611_v28 }
  0x1e   :  { %556 = vmatprep.subr.bf16.mxu1 %v612_v29 }
  0x20   :  { %535 = vmatpush3.bf16.msra.mxu0 %v613_v30 }
  0x21   :  { %557 = vmatpush3.bf16.msra.mxu1 %v614_v31  ;;  %569 = vmatprep.subr.bf16.mxu0 %v624_v36 }
  0x23   :  { %360 = vmatmul.mubr.bf16.vlgmr.msra.gmra.mxu0 %v478_v33 }
  0x24   :  { %400 = vmatmul.mubr.bf16.vlgmr.msra.gmra.mxu1 %v480_v37  ;;  %570 = vmatpush3.bf16.msra.mxu0 %v620_v39 }
  0x25   :  { %571 = vmatprep.subr.bf16.mxu0 %v624_v36  ;;  %577 = vmatprep.mubr.msk.bf16.mxu0 %vm625_vm0, %v624_v36 }
  0x28   :  { %572 = vmatpush3.bf16.msra.mxu0 %v621_v40 }
  0x29   :  { %573 = vmatprep.subr.bf16.mxu0 %v624_v36 }
  0x2c   :  { %574 = vmatpush3.bf16.msra.mxu0 %v622_v41 }
  0x2d   :  { %575 = vmatprep.subr.bf16.mxu0 %v624_v36 }
  0x30   :  { %576 = vmatpush3.bf16.msra.mxu0 %v623_v42 }
  0x33   :  { %578 = vmatmul.mubr.msk.bf16.vlgmr.msra.gmra.mxu0 %vm323_vm1, %v617_v43 }
  0xe3   :  { %v536_v44 = vpop.f32.mrf.mxu0 }
  0xe4   :  { %v558_v45 = vpop.f32.mrf.mxu1 }
  0xe5   :  { %v537_v46 = vpop.f32.mrf.mxu0 }
  0xe6   :  { %v559_v47 = vpop.f32.mrf.mxu1  ;;  %v538_v52 = vadd.f32 %v537_v46, %v536_v44 }
  0xe7   :  { %v539_v48 = vpop.f32.mrf.mxu0  ;;  %v560_v53 = vadd.f32 %v559_v47, %v558_v45 }
  0xe8   :  { %v561_v49 = vpop.f32.mrf.mxu1 }
  0xe9   :  { %v540_v50 = vpop.f32.mrf.mxu0  ;;  %v402_v54 = vadd.f32 %v560_v53, %v538_v52 }
  0xea   :  { %v562_v51 = vpop.f32.mrf.mxu1 }
  0xf3   :  { %v441_v55 = vpop.f32.mrf.mxu0 }
  0xf4   :  { %v442_v56 = vadd.f32 %v441_v55, %v402_v54 }
  0xf5   :  { %v579_v57 = vpop.f32.mrf.mxu0 }
  0xf6   :  { %447 = vst.msk [vmem:[%s783_s2] sm:$0xff] %vm323_vm1, %v442_v56  ;;  %v448_v58 = vsel %vm323_vm1, %v442_v56, 0.0  ;;  %v457_v59 = vmul.f32 %v442_v56, %v442_v56 }
  0xf7   :  { %v449_v60 = vrot.slane %v448_v58, 4  ;;  %v444_v61 = vpop.f32.mrf.mxu0 }
  0xf8   :  { %v458_v62 = vsel %vm323_vm1, %v457_v59, 0.0 }
  0xf9   :  { %v450_v63 = vadd.f32 %v449_v60, %v448_v58  ;;  %v459_v0 = vrot.slane %v458_v62, 4  ;;  %v580_v1 = vpop.f32.mrf.mxu0 }
  0xfb   :  { %v451_v2 = vrot.slane %v450_v63, 2  ;;  %v460_v3 = vadd.f32 %v459_v0, %v458_v62 }
  0xfd   :  { %v452_v4 = vadd.f32 %v451_v2, %v450_v63  ;;  %v461_v5 = vrot.slane %v460_v3, 2 }
  0xff   :  { %v453_v6 = vrot.slane %v452_v4, 1  ;;  %v462_v7 = vadd.f32 %v461_v5, %v460_v3 }
 0x101   :  { %v454_v8 = vadd.f32 %v453_v6, %v452_v4  ;;  %v463_v9 = vrot.slane %v462_v7, 1 }
 0x103   :  { %456 = vst.msk [vmem:[%s784_s3] sm:$0x1] %vm455_vm2, %v454_v8  ;;  %v464_v10 = vadd.f32 %v463_v9, %v462_v7 }
 0x105   :  { %465 = vst.msk [vmem:[%s785_s4] sm:$0x1] %vm455_vm2, %v464_v10 }

// kernel: unet2d_forward.66
= control target key start
LH: loop header
LB: loop body
LE: loop exit
PB: predicated region body
PF: predicated region fallthrough
CT: control target
= control target key end

     0   :  { %s72_s0 = inlined_call_operand.vmem [shape: f32[2,128], index: 0, kind: input, shape index: {}]   ;;  %s73_s1 = inlined_call_operand.vmem [shape: f32[1,128], index: 1, kind: input, shape index: {}]   ;;  %s74_s2 = inlined_call_operand.vmem [shape: f32[1,128], index: 2, kind: input, shape index: {}]   ;;  %s75_s3 = inlined_call_operand.vmem [shape: bf16[2,128], index: 3, kind: output, shape index: {}]  }
   0x1   :  { %v14_v0 = vld [vmem:[%s72_s0] sm:$0x3] }
   0x2   :  { %v38_v1 = vld [vmem:[%s73_s1] ss:$0 sm:$0xff] }
   0x3   :  { %v39_v2 = vld [vmem:[%s74_s2] ss:$0 sm:$0xff]  ;;  %v22_v3 = vmul.f32 %v38_v1, %v14_v0 }
   0x5   :  { %v30_v4 = vadd.f32 %v39_v2, %v22_v3 }
   0x7   :  { %v31_v5 = vmax.f32 %v30_v4, 0.0 }
   0x9   :  { %v32_v6 = vpack.c.bf16 %v31_v5, %v31_v5 }
   0xb   :  { %33 = vst [vmem:[%s75_s3] sm:$0x1] %v32_v6 }

// kernel: unet2d_forward.65
= control target key start
LH: loop header
LB: loop body
LE: loop exit
PB: predicated region body
PF: predicated region fallthrough
CT: control target
= control target key end

     0   :  { %v641_v22 = vmov 1966171168   ;;  %v93_v24 = vlaneseq  ;;  %v642_v40 = vmov 0.0   ;;  %vm643_vm0 = vmmov 0   ;;  %s789_s1 = inlined_call_operand.vmem [shape: bf16[576,128], index: 1, kind: input, shape index: {}]   ;;  %s790_s0 = inlined_call_operand.vmem [shape: bf16[2,576], index: 0, kind: input, shape index: {}]   ;;  %s791_s2 = inlined_call_operand.vmem [shape: f32[2,128], index: 2, kind: output, shape index: {0}]   ;;  %s792_s3 = inlined_call_operand.vmem [shape: f32[1,1,128], index: 3, kind: output, shape index: {1}]   ;;  %s793_s4 = inlined_call_operand.vmem [shape: f32[1,1,128], index: 4, kind: output, shape index: {2}]  }
   0x1   :  { %v604_v0 = vld [vmem:[%s789_s1 + $0x78] sm:$0xff]   ;;  %v608_v4 = vld [vmem:[%s789_s1 + $0x70] sm:$0xff]   ;;  %v612_v8 = vld [vmem:[%s789_s1 + $0x68] sm:$0xff]   ;;  %v91_v23 = vunpack.c.l.s4 %v641_v22  ;;  %vm348_vm1 = vcmask 523264   ;;  %vm473_vm2 = vcmask 1041408  }
   0x2   :  { %v605_v1 = vld [vmem:[%s789_s1 + $0xf8] sm:$0xff]   ;;  %540 = vmatprep.subr.bf16.mxu0 %v604_v0  ;;  %v609_v5 = vld [vmem:[%s789_s1 + $0xf0] sm:$0xff]   ;;  %v613_v9 = vld [vmem:[%s789_s1 + $0xe8] sm:$0xff]   ;;  %v94_v30 = vshrl.u32 %v93_v24, 7 }
   0x3   :  { %v606_v2 = vld [vmem:[%s789_s1 + $0x38] sm:$0xff]   ;;  %562 = vmatprep.subr.bf16.mxu1 %v605_v1  ;;  %v610_v6 = vld [vmem:[%s789_s1 + $0x30] sm:$0xff]   ;;  %v614_v10 = vld [vmem:[%s789_s1 + $0x28] sm:$0xff]   ;;  %v92_v29 = vunpack.c.0.s8 %v91_v23 }
   0x4   :  { %v607_v3 = vld [vmem:[%s789_s1 + $0xb8] sm:$0xff]   ;;  %541 = vmatpush3.bf16.msra.mxu0 %v606_v2  ;;  %v611_v7 = vld [vmem:[%s789_s1 + $0xb0] sm:$0xff]   ;;  %v615_v11 = vld [vmem:[%s789_s1 + $0xa8] sm:$0xff]  }
   0x5   :  { %563 = vmatpush3.bf16.msra.mxu1 %v607_v3  ;;  %542 = vmatprep.subr.bf16.mxu0 %v608_v4  ;;  %v616_v12 = vld [vmem:[%s789_s1 + $0x60] sm:$0xff]   ;;  %v620_v16 = vld [vmem:[%s789_s1 + $0x58] sm:$0xff]   ;;  %v624_v20 = vld [vmem:[%s789_s1 + $0x50] sm:$0xff]   ;;  %v95_v35 = vsub.s32 %v92_v29, %v94_v30 }
   0x6   :  { %564 = vmatprep.subr.bf16.mxu1 %v609_v5  ;;  %v617_v13 = vld [vmem:[%s789_s1 + $0xe0] sm:$0xff]   ;;  %v621_v17 = vld [vmem:[%s789_s1 + $0xd8] sm:$0xff]   ;;  %v625_v21 = vld [vmem:[%s789_s1 + $0xd0] sm:$0xff]  }
   0x7   :  { %v618_v14 = vld [vmem:[%s789_s1 + $0x20] sm:$0xff]   ;;  %v622_v18 = vld [vmem:[%s789_s1 + $0x18] sm:$0xff]   ;;  %v626_v25 = vld [vmem:[%s789_s1 + $0x10] sm:$0xff]  }
   0x8   :  { %543 = vmatpush3.bf16.msra.mxu0 %v610_v6  ;;  %v619_v15 = vld [vmem:[%s789_s1 + $0xa0] sm:$0xff]   ;;  %v623_v19 = vld [vmem:[%s789_s1 + $0x98] sm:$0xff]   ;;  %v627_v26 = vld [vmem:[%s789_s1 + $0x90] sm:$0xff]  }
   0x9   :  { %565 = vmatpush3.bf16.msra.mxu1 %v611_v7  ;;  %544 = vmatprep.subr.bf16.mxu0 %v612_v8  ;;  %v628_v27 = vld [vmem:[%s789_s1 + $0x48] sm:$0xff]   ;;  %v632_v33 = vld [vmem:[%s789_s1 + $0x40] sm:$0xff]   ;;  %v637_v44 = vld [vmem:[%s789_s1 + $0x118] sm:$0xff]  }
   0xa   :  { %566 = vmatprep.subr.bf16.mxu1 %v613_v9  ;;  %v629_v28 = vld [vmem:[%s789_s1 + $0xc8] sm:$0xff]   ;;  %v633_v34 = vld [vmem:[%s789_s1 + $0xc0] sm:$0xff]   ;;  %v638_v47 = vld [vmem:[%s789_s1 + $0x110] sm:$0xff]  }
   0xb   :  { %v630_v31 = vld [vmem:[%s789_s1 + $0x8] sm:$0xff]   ;;  %v634_v36 = vld [vmem:[%s789_s1] sm:$0xff]  }
   0xc   :  { %545 = vmatpush3.bf16.msra.mxu0 %v614_v10  ;;  %v631_v32 = vld [vmem:[%s789_s1 + $0x88] sm:$0xff]   ;;  %v635_v37 = vld [vmem:[%s789_s1 + $0x80] sm:$0xff]  }
   0xd   :  { %567 = vmatpush3.bf16.msra.mxu1 %v615_v11  ;;  %546 = vmatprep.subr.bf16.mxu0 %v616_v12  ;;  %v15_v38 = vld [vmem:[%s790_s0] sm:$0x1f]  ;;  %v639_v49 = vld [vmem:[%s789_s1 + $0x108] sm:$0xff]  }
   0xe   :  { %568 = vmatprep.subr.bf16.mxu1 %v617_v13  ;;  %v96_v39 = vrot.slane %v15_v38, %v95_v35  ;;  %v89_v48 = vcombine.high %v15_v38, %v15_v38  ;;  %v640_v51 = vld [vmem:[%s789_s1 + $0x100] sm:$0xff]  }
  0x10   :  { %547 = vmatpush3.bf16.msra.mxu0 %v618_v14  ;;  %v104_v41 = vcombine.high %v96_v39, %v96_v39  ;;  %v111_v42 = vrot.slane %v96_v39, %v95_v35  ;;  %v103_v50 = vrot.slane %v89_v48, %v95_v35 }
  0x11   :  { %569 = vmatpush3.bf16.msra.mxu1 %v619_v15  ;;  %548 = vmatprep.subr.bf16.mxu0 %v620_v16 }
  0x12   :  { %570 = vmatprep.subr.bf16.mxu1 %v621_v17  ;;  %v125_v43 = vrot.slane %v104_v41, %v95_v35  ;;  %v126_v45 = vcombine.high %v111_v42, %v111_v42  ;;  %v118_v52 = vrot.slane %v103_v50, %v95_v35 }
  0x14   :  { %549 = vmatpush3.bf16.msra.mxu0 %v622_v18  ;;  %384 = vmatprep.mubr.bf16.mxu0 %v125_v43  ;;  %v127_v46 = vcombine.high %v125_v43, %v125_v43 }
  0x15   :  { %571 = vmatpush3.bf16.msra.mxu1 %v623_v19  ;;  %550 = vmatprep.subr.bf16.mxu0 %v624_v20 }
  0x16   :  { %572 = vmatprep.subr.bf16.mxu1 %v625_v21  ;;  %424 = vmatprep.mubr.bf16.mxu1 %v127_v46 }
  0x18   :  { %551 = vmatpush3.bf16.msra.mxu0 %v626_v25 }
  0x19   :  { %573 = vmatpush3.bf16.msra.mxu1 %v627_v26  ;;  %552 = vmatprep.subr.bf16.mxu0 %v628_v27 }
  0x1a   :  { %574 = vmatprep.subr.bf16.mxu1 %v629_v28 }
  0x1c   :  { %553 = vmatpush3.bf16.msra.mxu0 %v630_v31 }
  0x1d   :  { %575 = vmatpush3.bf16.msra.mxu1 %v631_v32  ;;  %554 = vmatprep.subr.bf16.mxu0 %v632_v33 }
  0x1e   :  { %576 = vmatprep.subr.bf16.mxu1 %v633_v34 }
  0x20   :  { %555 = vmatpush3.bf16.msra.mxu0 %v634_v36 }
  0x21   :  { %577 = vmatpush3.bf16.msra.mxu1 %v635_v37  ;;  %589 = vmatprep.subr.bf16.mxu0 %v642_v40 }
  0x23   :  { %385 = vmatmul.mubr.bf16.vlgmr.msra.gmra.mxu0 %v111_v42 }
  0x24   :  { %590 = vmatpush3.bf16.msra.mxu0 %v637_v44  ;;  %425 = vmatmul.mubr.bf16.vlgmr.msra.gmra.mxu1 %v126_v45 }
  0x25   :  { %591 = vmatprep.subr.bf16.mxu0 %v642_v40  ;;  %597 = vmatprep.mubr.msk.bf16.mxu0 %vm643_vm0, %v642_v40 }
  0x28   :  { %592 = vmatpush3.bf16.msra.mxu0 %v638_v47 }
  0x29   :  { %593 = vmatprep.subr.bf16.mxu0 %v642_v40 }
  0x2c   :  { %594 = vmatpush3.bf16.msra.mxu0 %v639_v49 }
  0x2d   :  { %595 = vmatprep.subr.bf16.mxu0 %v642_v40 }
  0x30   :  { %596 = vmatpush3.bf16.msra.mxu0 %v640_v51 }
  0x33   :  { %598 = vmatmul.mubr.msk.bf16.vlgmr.msra.gmra.mxu0 %vm348_vm1, %v118_v52 }
  0xe3   :  { %v556_v53 = vpop.f32.mrf.mxu0 }
  0xe4   :  { %v578_v54 = vpop.f32.mrf.mxu1 }
  0xe5   :  { %v557_v55 = vpop.f32.mrf.mxu0 }
  0xe6   :  { %v579_v56 = vpop.f32.mrf.mxu1  ;;  %v558_v61 = vadd.f32 %v557_v55, %v556_v53 }
  0xe7   :  { %v559_v57 = vpop.f32.mrf.mxu0  ;;  %v580_v62 = vadd.f32 %v579_v56, %v578_v54 }
  0xe8   :  { %v581_v59 = vpop.f32.mrf.mxu1 }
  0xe9   :  { %v560_v58 = vpop.f32.mrf.mxu0  ;;  %v427_v63 = vadd.f32 %v580_v62, %v558_v61 }
  0xea   :  { %v582_v60 = vpop.f32.mrf.mxu1 }
  0xf3   :  { %v466_v0 = vpop.f32.mrf.mxu0 }
  0xf4   :  { %v467_v1 = vadd.f32 %v466_v0, %v427_v63 }
  0xf5   :  { %v599_v2 = vpop.f32.mrf.mxu0 }
  0xf6   :  { %472 = vst [vmem:[%s791_s2] sm:$0x3] %v467_v1  ;;  %v474_v3 = vsel %vm473_vm2, %v467_v1, 0.0  ;;  %v482_v4 = vmul.f32 %v467_v1, %v467_v1 }
  0xf7   :  { %v475_v5 = vrot.slane %v474_v3, 4  ;;  %v469_v6 = vpop.f32.mrf.mxu0 }
  0xf8   :  { %v483_v7 = vsel %vm473_vm2, %v482_v4, 0.0 }
  0xf9   :  { %v476_v8 = vadd.f32 %v475_v5, %v474_v3  ;;  %v484_v9 = vrot.slane %v483_v7, 4  ;;  %v600_v10 = vpop.f32.mrf.mxu0 }
  0xfb   :  { %v477_v11 = vrot.slane %v476_v8, 2  ;;  %v485_v12 = vadd.f32 %v484_v9, %v483_v7 }
  0xfd   :  { %v478_v13 = vadd.f32 %v477_v11, %v476_v8  ;;  %v486_v14 = vrot.slane %v485_v12, 2 }
  0xff   :  { %v479_v15 = vrot.slane %v478_v13, 1  ;;  %v487_v16 = vadd.f32 %v486_v14, %v485_v12 }
 0x101   :  { %v480_v17 = vadd.f32 %v479_v15, %v478_v13  ;;  %v488_v18 = vrot.slane %v487_v16, 1 }
 0x103   :  { %481 = vst [vmem:[%s792_s3] sm:$0x1] %v480_v17  ;;  %v489_v19 = vadd.f32 %v488_v18, %v487_v16 }
 0x105   :  { %490 = vst [vmem:[%s793_s4] sm:$0x1] %v489_v19 }

// kernel: unet2d_forward.69
= control target key start
LH: loop header
LB: loop body
LE: loop exit
PB: predicated region body
PF: predicated region fallthrough
CT: control target
= control target key end

     0   :  { %v219_v1 = vmov 0   ;;  %v220_v18 = vmov 1966171168   ;;  %v158_v20 = vlaneseq  ;;  %s290_s1 = inlined_call_operand.vmem [shape: bf16[128,256], index: 1, kind: input, shape index: {}]   ;;  %s291_s0 = inlined_call_operand.vmem [shape: bf16[2,128], index: 0, kind: input, shape index: {}]   ;;  %s292_s2 = inlined_call_operand.vmem [shape: bf16[2,256], index: 2, kind: output, shape index: {}]  }
   0x1   :  { %v195_v0 = vld [vmem:[%s290_s1 + $0x74] ss:$8 sps:$4 sm:$0xff]   ;;  %141 = vmatprep.mubr.bf16.mxu0 %v219_v1  ;;  %v197_v2 = vld [vmem:[%s290_s1 + $0x70] ss:$8 sps:$4 sm:$0xff]   ;;  %v198_v3 = vld [vmem:[%s290_s1 + $0x64] ss:$8 sps:$4 sm:$0xff]   ;;  %v156_v19 = vunpack.c.l.s4 %v220_v18 }
   0x2   :  { %109 = vmatprep.subr.bf16.mxu0 %v195_v0  ;;  %v200_v4 = vld [vmem:[%s290_s1 + $0x60] ss:$8 sps:$4 sm:$0xff]   ;;  %v201_v5 = vld [vmem:[%s290_s1 + $0x54] ss:$8 sps:$4 sm:$0xff]   ;;  %v203_v6 = vld [vmem:[%s290_s1 + $0x50] ss:$8 sps:$4 sm:$0xff]  }
   0x3   :  { %110 = vmatpush1.bf16.msra.mxu0 %v197_v2  ;;  %v204_v7 = vld [vmem:[%s290_s1 + $0x44] ss:$8 sps:$4 sm:$0xff]   ;;  %v206_v8 = vld [vmem:[%s290_s1 + $0x40] ss:$8 sps:$4 sm:$0xff]   ;;  %v207_v9 = vld [vmem:[%s290_s1 + $0x34] ss:$8 sps:$4 sm:$0xff]   ;;  %v157_v21 = vunpack.c.0.s8 %v156_v19 }
   0x4   :  { %111 = vmatprep.subr.bf16.mxu0 %v198_v3  ;;  %v209_v10 = vld [vmem:[%s290_s1 + $0x30] ss:$8 sps:$4 sm:$0xff]   ;;  %v210_v11 = vld [vmem:[%s290_s1 + $0x24] ss:$8 sps:$4 sm:$0xff]   ;;  %v212_v12 = vld [vmem:[%s290_s1 + $0x20] ss:$8 sps:$4 sm:$0xff]  }
   0x5   :  { %v213_v13 = vld [vmem:[%s290_s1 + $0x14] ss:$8 sps:$4 sm:$0xff]   ;;  %v215_v14 = vld [vmem:[%s290_s1 + $0x10] ss:$8 sps:$4 sm:$0xff]   ;;  %v216_v15 = vld [vmem:[%s290_s1 + $0x4] ss:$8 sps:$4 sm:$0xff]  }
   0x6   :  { %v218_v16 = vld [vmem:[%s290_s1] ss:$8 sps:$4 sm:$0xff]   ;;  %v159_v22 = vshrl.u32 %v158_v20, 7 }
   0x7   :  { %112 = vmatpush1.bf16.msra.mxu0 %v200_v4  ;;  %v12_v17 = vld [vmem:[%s291_s0] sm:$0x1] }
   0x8   :  { %113 = vmatprep.subr.bf16.mxu0 %v201_v5  ;;  %v160_v24 = vsub.s32 %v157_v21, %v159_v22 }
   0xb   :  { %114 = vmatpush1.bf16.msra.mxu0 %v203_v6 }
   0xc   :  { %115 = vmatprep.subr.bf16.mxu0 %v204_v7 }
   0xf   :  { %116 = vmatpush1.bf16.msra.mxu0 %v206_v8 }
  0x10   :  { %117 = vmatprep.subr.bf16.mxu0 %v207_v9 }
  0x13   :  { %118 = vmatpush1.bf16.msra.mxu0 %v209_v10 }
  0x14   :  { %119 = vmatprep.subr.bf16.mxu0 %v210_v11 }
  0x17   :  { %120 = vmatpush1.bf16.msra.mxu0 %v212_v12 }
  0x18   :  { %121 = vmatprep.subr.bf16.mxu0 %v213_v13 }
  0x1b   :  { %122 = vmatpush1.bf16.msra.mxu0 %v215_v14 }
  0x1c   :  { %123 = vmatprep.subr.bf16.mxu0 %v216_v15 }
  0x1f   :  { %124 = vmatpush1.bf16.msra.mxu0 %v218_v16 }
  0x22   :  { %142 = vmatmul.mubr.bf16.vlgmr.msra.gmra.mxu0 %v12_v17 }
  0xe2   :  { %v143_v23 = vpop.f32.mrf.mxu0 }
  0xe4   :  { %v145_v25 = vpop.f32.mrf.mxu0 }
  0xe5   :  { %v191_v26 = vpack.c.bf16 %v145_v25, %v143_v23 }
  0xe6   :  { %v147_v27 = vpop.f32.mrf.mxu0 }
  0xe7   :  { %v161_v28 = vrot.slane %v191_v26, %v160_v24 }
  0xe8   :  { %v148_v29 = vpop.f32.mrf.mxu0 }
  0xe9   :  { %192 = vst.sshfl [vmem:[%s292_s2] sm:$0x5 pattern:$0x73625140] %v161_v28 }

// kernel: unet2d_forward.67
= control target key start
LH: loop header
LB: loop body
LE: loop exit
PB: predicated region body
PF: predicated region fallthrough
CT: control target
= control target key end

     0   :  { %v1164_v22 = vmov 1966171168   ;;  %v167_v24 = vlaneseq  ;;  %vm1166_vm0 = vmmov 0   ;;  %vm868_vm1 = vcmask 1041408   ;;  %s1437_s1 = inlined_call_operand.vmem [shape: bf16[1152,128], index: 1, kind: input, shape index: {}]   ;;  %s1438_s0 = inlined_call_operand.vmem [shape: bf16[2,1152], index: 0, kind: input, shape index: {}]   ;;  %s1439_s2 = inlined_call_operand.vmem [shape: f32[2,128], index: 2, kind: output, shape index: {0}]   ;;  %s1440_s3 = inlined_call_operand.vmem [shape: f32[1,1,128], index: 3, kind: output, shape index: {1}]   ;;  %s1441_s4 = inlined_call_operand.vmem [shape: f32[1,1,128], index: 4, kind: output, shape index: {2}]  }
   0x1   :  { %v1091_v0 = vld [vmem:[%s1437_s1 + $0x78] sm:$0xff]   ;;  %v1095_v4 = vld [vmem:[%s1437_s1 + $0x70] sm:$0xff]   ;;  %v1099_v8 = vld [vmem:[%s1437_s1 + $0x68] sm:$0xff]   ;;  %v165_v23 = vunpack.c.l.s4 %v1164_v22 }
   0x2   :  { %v1092_v1 = vld [vmem:[%s1437_s1 + $0xf8] sm:$0xff]   ;;  %971 = vmatprep.subr.bf16.mxu0 %v1091_v0  ;;  %v1096_v5 = vld [vmem:[%s1437_s1 + $0xf0] sm:$0xff]   ;;  %v1100_v9 = vld [vmem:[%s1437_s1 + $0xe8] sm:$0xff]   ;;  %v168_v30 = vshrl.u32 %v167_v24, 7 }
   0x3   :  { %v1093_v2 = vld [vmem:[%s1437_s1 + $0x38] sm:$0xff]   ;;  %993 = vmatprep.subr.bf16.mxu1 %v1092_v1  ;;  %v1097_v6 = vld [vmem:[%s1437_s1 + $0x30] sm:$0xff]   ;;  %v1101_v10 = vld [vmem:[%s1437_s1 + $0x28] sm:$0xff]   ;;  %v166_v29 = vunpack.c.0.s8 %v165_v23 }
   0x4   :  { %v1094_v3 = vld [vmem:[%s1437_s1 + $0xb8] sm:$0xff]   ;;  %972 = vmatpush3.bf16.msra.mxu0 %v1093_v2  ;;  %v1098_v7 = vld [vmem:[%s1437_s1 + $0xb0] sm:$0xff]   ;;  %v1102_v11 = vld [vmem:[%s1437_s1 + $0xa8] sm:$0xff]  }
   0x5   :  { %994 = vmatpush3.bf16.msra.mxu1 %v1094_v3  ;;  %973 = vmatprep.subr.bf16.mxu0 %v1095_v4  ;;  %v1103_v12 = vld [vmem:[%s1437_s1 + $0x60] sm:$0xff]   ;;  %v1107_v16 = vld [vmem:[%s1437_s1 + $0x58] sm:$0xff]   ;;  %v1111_v20 = vld [vmem:[%s1437_s1 + $0x50] sm:$0xff]   ;;  %v1282_v35 = vsub.s32 %v166_v29, %v168_v30 }
   0x6   :  { %995 = vmatprep.subr.bf16.mxu1 %v1096_v5  ;;  %v1104_v13 = vld [vmem:[%s1437_s1 + $0xe0] sm:$0xff]   ;;  %v1108_v17 = vld [vmem:[%s1437_s1 + $0xd8] sm:$0xff]   ;;  %v1112_v21 = vld [vmem:[%s1437_s1 + $0xd0] sm:$0xff]  }
   0x7   :  { %v1105_v14 = vld [vmem:[%s1437_s1 + $0x20] sm:$0xff]   ;;  %v1109_v18 = vld [vmem:[%s1437_s1 + $0x18] sm:$0xff]   ;;  %v1113_v25 = vld [vmem:[%s1437_s1 + $0x10] sm:$0xff]  }
   0x8   :  { %974 = vmatpush3.bf16.msra.mxu0 %v1097_v6  ;;  %v1106_v15 = vld [vmem:[%s1437_s1 + $0xa0] sm:$0xff]   ;;  %v1110_v19 = vld [vmem:[%s1437_s1 + $0x98] sm:$0xff]   ;;  %v1114_v26 = vld [vmem:[%s1437_s1 + $0x90] sm:$0xff]  }
   0x9   :  { %996 = vmatpush3.bf16.msra.mxu1 %v1098_v7  ;;  %975 = vmatprep.subr.bf16.mxu0 %v1099_v8  ;;  %v1115_v27 = vld [vmem:[%s1437_s1 + $0x48] sm:$0xff]   ;;  %v1119_v33 = vld [vmem:[%s1437_s1 + $0x40] sm:$0xff]   ;;  %v1124_v41 = vld [vmem:[%s1437_s1 + $0x178] sm:$0xff]  }
   0xa   :  { %997 = vmatprep.subr.bf16.mxu1 %v1100_v9  ;;  %v1116_v28 = vld [vmem:[%s1437_s1 + $0xc8] sm:$0xff]   ;;  %v1120_v34 = vld [vmem:[%s1437_s1 + $0xc0] sm:$0xff]   ;;  %v1126_v44 = vld [vmem:[%s1437_s1 + $0x1f8] sm:$0xff]  }
   0xb   :  { %v1117_v31 = vld [vmem:[%s1437_s1 + $0x8] sm:$0xff]   ;;  %v1121_v36 = vld [vmem:[%s1437_s1] sm:$0xff]   ;;  %v1125_v47 = vld [vmem:[%s1437_s1 + $0x138] sm:$0xff]  }
   0xc   :  { %976 = vmatpush3.bf16.msra.mxu0 %v1101_v10  ;;  %v1118_v32 = vld [vmem:[%s1437_s1 + $0x88] sm:$0xff]   ;;  %v1122_v37 = vld [vmem:[%s1437_s1 + $0x80] sm:$0xff]   ;;  %v1128_v50 = vld [vmem:[%s1437_s1 + $0x170] sm:$0xff]  }
   0xd   :  { %998 = vmatpush3.bf16.msra.mxu1 %v1102_v11  ;;  %977 = vmatprep.subr.bf16.mxu0 %v1103_v12  ;;  %v15_v38 = vld [vmem:[%s1438_s0] sm:$0xff]  ;;  %v1127_v52 = vld [vmem:[%s1437_s1 + $0x1b8] sm:$0xff]   ;;  %v1130_v54 = vld [vmem:[%s1437_s1 + $0x1f0] sm:$0xff]  }
   0xe   :  { %999 = vmatprep.subr.bf16.mxu1 %v1104_v13  ;;  %v163_v39 = vcombine.high %v15_v38, %v15_v38  ;;  %v170_v40 = vrot.slane %v15_v38, %v1282_v35  ;;  %v1129_v55 = vld [vmem:[%s1437_s1 + $0x130] sm:$0xff]   ;;  %v1132_v57 = vld [vmem:[%s1437_s1 + $0x168] sm:$0xff]   ;;  %v1136_v61 = vld [vmem:[%s1437_s1 + $0x160] sm:$0xff]  }
   0xf   :  { %v1131_v58 = vld [vmem:[%s1437_s1 + $0x1b0] sm:$0xff]   ;;  %v1134_v59 = vld [vmem:[%s1437_s1 + $0x1e8] sm:$0xff]   ;;  %v1138_v63 = vld [vmem:[%s1437_s1 + $0x1e0] sm:$0xff]  }
  0x10   :  { %978 = vmatpush3.bf16.msra.mxu0 %v1105_v14  ;;  %v178_v42 = vcombine.high %v170_v40, %v170_v40  ;;  %v186_v43 = vrot.slane %v170_v40, %v1282_v35  ;;  %v1302_v45 = vrot.slane %v163_v39, %v1282_v35  ;;  %v1133_v60 = vld [vmem:[%s1437_s1 + $0x128] sm:$0xff]   ;;  %v1137_v0 = vld [vmem:[%s1437_s1 + $0x120] sm:$0xff]   ;;  %v1140_v1 = vld [vmem:[%s1437_s1 + $0x158] sm:$0xff]  }
  0x11   :  { %1000 = vmatpush3.bf16.msra.mxu1 %v1106_v15  ;;  %979 = vmatprep.subr.bf16.mxu0 %v1107_v16  ;;  %v1135_v62 = vld [vmem:[%s1437_s1 + $0x1a8] sm:$0xff]   ;;  %v1139_v2 = vld [vmem:[%s1437_s1 + $0x1a0] sm:$0xff]   ;;  %v1142_v3 = vld [vmem:[%s1437_s1 + $0x1d8] sm:$0xff]  }
  0x12   :  { %1001 = vmatprep.subr.bf16.mxu1 %v1108_v17  ;;  %v200_v46 = vrot.slane %v178_v42, %v1282_v35  ;;  %v179_v48 = vcombine.high %v1302_v45, %v1302_v45  ;;  %v208_v49 = vcombine.high %v186_v43, %v186_v43  ;;  %v1141_v4 = vld [vmem:[%s1437_s1 + $0x118] sm:$0xff]   ;;  %v1144_v5 = vld [vmem:[%s1437_s1 + $0x150] sm:$0xff]   ;;  %v1148_v9 = vld [vmem:[%s1437_s1 + $0x148] sm:$0xff]   ;;  %v193_v17 = vrot.slane %v1302_v45, %v1282_v35 }
  0x13   :  { %v1143_v6 = vld [vmem:[%s1437_s1 + $0x198] sm:$0xff]   ;;  %v1146_v7 = vld [vmem:[%s1437_s1 + $0x1d0] sm:$0xff]   ;;  %v1150_v11 = vld [vmem:[%s1437_s1 + $0x1c8] sm:$0xff]  }
  0x14   :  { %980 = vmatpush3.bf16.msra.mxu0 %v1109_v18  ;;  %699 = vmatprep.mubr.bf16.mxu0 %v200_v46  ;;  %v210_v51 = vcombine.high %v200_v46, %v200_v46  ;;  %v207_v53 = vrot.slane %v179_v48, %v1282_v35  ;;  %v1145_v8 = vld [vmem:[%s1437_s1 + $0x110] sm:$0xff]   ;;  %v1149_v12 = vld [vmem:[%s1437_s1 + $0x108] sm:$0xff]   ;;  %v1152_v13 = vld [vmem:[%s1437_s1 + $0x140] sm:$0xff]  }
  0x15   :  { %1002 = vmatpush3.bf16.msra.mxu1 %v1110_v19  ;;  %981 = vmatprep.subr.bf16.mxu0 %v1111_v20  ;;  %v1147_v10 = vld [vmem:[%s1437_s1 + $0x190] sm:$0xff]   ;;  %v1151_v14 = vld [vmem:[%s1437_s1 + $0x188] sm:$0xff]   ;;  %v1154_v15 = vld [vmem:[%s1437_s1 + $0x1c0] sm:$0xff]   ;;  %v1165_v20 = vmov 0.0  }
  0x16   :  { %1003 = vmatprep.subr.bf16.mxu1 %v1112_v21  ;;  %739 = vmatprep.mubr.bf16.mxu1 %v210_v51  ;;  %v211_v56 = vcombine.high %v207_v53, %v207_v53  ;;  %v1153_v16 = vld [vmem:[%s1437_s1 + $0x100] sm:$0xff]   ;;  %v1156_v19 = vld [vmem:[%s1437_s1 + $0x238] sm:$0xff]   ;;  %v209_v21 = vcombine.high %v193_v17, %v193_v17  ;;  %v898_v22 = vld.sshfl [vmem:[%s1438_s0 + $0x8] sm:$0x1 pattern:$0x75316420] }
  0x17   :  { %v1155_v18 = vld [vmem:[%s1437_s1 + $0x180] sm:$0xff]   ;;  %v1157_v23 = vld [vmem:[%s1437_s1 + $0x230] sm:$0xff]   ;;  %v225_v24 = vrot.slane %v898_v22, %v1282_v35  ;;  %v1162_v29 = vld [vmem:[%s1437_s1 + $0x208] sm:$0xff]  }
  0x18   :  { %982 = vmatpush3.bf16.msra.mxu0 %v1113_v25  ;;  %v1158_v25 = vld [vmem:[%s1437_s1 + $0x228] sm:$0xff]   ;;  %v1163_v30 = vld [vmem:[%s1437_s1 + $0x200] sm:$0xff]  }
  0x19   :  { %1004 = vmatpush3.bf16.msra.mxu1 %v1114_v26  ;;  %983 = vmatprep.subr.bf16.mxu0 %v1115_v27  ;;  %v1159_v26 = vld [vmem:[%s1437_s1 + $0x220] sm:$0xff]   ;;  %v1160_v27 = vld [vmem:[%s1437_s1 + $0x218] sm:$0xff]  }
  0x1a   :  { %1005 = vmatprep.subr.bf16.mxu1 %v1116_v28  ;;  %v1161_v28 = vld [vmem:[%s1437_s1 + $0x210] sm:$0xff]  }
  0x1c   :  { %984 = vmatpush3.bf16.msra.mxu0 %v1117_v31 }
  0x1d   :  { %1006 = vmatpush3.bf16.msra.mxu1 %v1118_v32  ;;  %985 = vmatprep.subr.bf16.mxu0 %v1119_v33 }
  0x1e   :  { %1007 = vmatprep.subr.bf16.mxu1 %v1120_v34 }
  0x20   :  { %986 = vmatpush3.bf16.msra.mxu0 %v1121_v36 }
  0x21   :  { %1008 = vmatpush3.bf16.msra.mxu1 %v1122_v37  ;;  %1015 = vmatprep.subr.bf16.mxu0 %v1124_v41 }
  0x22   :  { %1037 = vmatprep.subr.bf16.mxu1 %v1126_v44 }
  0x23   :  { %700 = vmatmul.mubr.bf16.vlgmr.msra.gmra.mxu0 %v186_v43 }
  0x24   :  { %1016 = vmatpush3.bf16.msra.mxu0 %v1125_v47  ;;  %740 = vmatmul.mubr.bf16.vlgmr.msra.gmra.mxu1 %v208_v49 }
  0x25   :  { %1017 = vmatprep.subr.bf16.mxu0 %v1128_v50  ;;  %1038 = vmatpush3.bf16.msra.mxu1 %v1127_v52 }
  0x26   :  { %779 = vmatprep.mubr.bf16.mxu0 %v207_v53  ;;  %1039 = vmatprep.subr.bf16.mxu1 %v1130_v54 }
  0x27   :  { %819 = vmatprep.mubr.bf16.mxu1 %v211_v56 }
  0x28   :  { %1018 = vmatpush3.bf16.msra.mxu0 %v1129_v55 }
  0x29   :  { %1019 = vmatprep.subr.bf16.mxu0 %v1132_v57  ;;  %1040 = vmatpush3.bf16.msra.mxu1 %v1131_v58 }
  0x2a   :  { %1041 = vmatprep.subr.bf16.mxu1 %v1134_v59 }
  0x2c   :  { %1020 = vmatpush3.bf16.msra.mxu0 %v1133_v60 }
  0x2d   :  { %1021 = vmatprep.subr.bf16.mxu0 %v1136_v61  ;;  %1042 = vmatpush3.bf16.msra.mxu1 %v1135_v62 }
  0x2e   :  { %1043 = vmatprep.subr.bf16.mxu1 %v1138_v63 }
  0x30   :  { %1022 = vmatpush3.bf16.msra.mxu0 %v1137_v0 }
  0x31   :  { %1023 = vmatprep.subr.bf16.mxu0 %v1140_v1  ;;  %1044 = vmatpush3.bf16.msra.mxu1 %v1139_v2 }
  0x32   :  { %1045 = vmatprep.subr.bf16.mxu1 %v1142_v3 }
  0x34   :  { %1024 = vmatpush3.bf16.msra.mxu0 %v1141_v4 }
  0x35   :  { %1025 = vmatprep.subr.bf16.mxu0 %v1144_v5  ;;  %1046 = vmatpush3.bf16.msra.mxu1 %v1143_v6 }
  0x36   :  { %1047 = vmatprep.subr.bf16.mxu1 %v1146_v7 }
  0x38   :  { %1026 = vmatpush3.bf16.msra.mxu0 %v1145_v8 }
  0x39   :  { %1027 = vmatprep.subr.bf16.mxu0 %v1148_v9  ;;  %1048 = vmatpush3.bf16.msra.mxu1 %v1147_v10 }
  0x3a   :  { %1049 = vmatprep.subr.bf16.mxu1 %v1150_v11 }
  0x3c   :  { %1028 = vmatpush3.bf16.msra.mxu0 %v1149_v12 }
  0x3d   :  { %1029 = vmatprep.subr.bf16.mxu0 %v1152_v13  ;;  %1050 = vmatpush3.bf16.msra.mxu1 %v1151_v14 }
  0x3e   :  { %1051 = vmatprep.subr.bf16.mxu1 %v1154_v15 }
  0x40   :  { %1030 = vmatpush3.bf16.msra.mxu0 %v1153_v16 }
  0x41   :  { %1068 = vmatprep.subr.bf16.mxu0 %v1165_v20  ;;  %1052 = vmatpush3.bf16.msra.mxu1 %v1155_v18 }
  0x43   :  { %780 = vmatmul.mubr.bf16.vlgmr.msra.gmra.mxu0 %v193_v17 }
  0x44   :  { %1069 = vmatpush3.bf16.msra.mxu0 %v1156_v19  ;;  %1084 = vmatprep.mubr.msk.bf16.mxu0 %vm1166_vm0, %v1165_v20 }
  0x45   :  { %820 = vmatmul.mubr.bf16.vlgmr.msra.gmra.mxu1 %v209_v21  ;;  %1070 = vmatprep.subr.bf16.mxu0 %v1165_v20 }
  0x48   :  { %1071 = vmatpush3.bf16.msra.mxu0 %v1157_v23 }
  0x49   :  { %1072 = vmatprep.subr.bf16.mxu0 %v1165_v20 }
  0x4c   :  { %1073 = vmatpush3.bf16.msra.mxu0 %v1158_v25 }
  0x4d   :  { %1074 = vmatprep.subr.bf16.mxu0 %v1165_v20 }
  0x50   :  { %1075 = vmatpush3.bf16.msra.mxu0 %v1159_v26 }
  0x51   :  { %1076 = vmatprep.subr.bf16.mxu0 %v1165_v20 }
  0x54   :  { %1077 = vmatpush3.bf16.msra.mxu0 %v1160_v27 }
  0x55   :  { %1078 = vmatprep.subr.bf16.mxu0 %v1165_v20 }
  0x58   :  { %1079 = vmatpush3.bf16.msra.mxu0 %v1161_v28 }
  0x59   :  { %1080 = vmatprep.subr.bf16.mxu0 %v1165_v20 }
  0x5c   :  { %1081 = vmatpush3.bf16.msra.mxu0 %v1162_v29 }
  0x5d   :  { %1082 = vmatprep.subr.bf16.mxu0 %v1165_v20 }
  0x60   :  { %1083 = vmatpush3.bf16.msra.mxu0 %v1163_v30 }
  0x63   :  { %1085 = vmatmul.mubr.bf16.vlgmr.msra.gmra.mxu0 %v225_v24 }
  0xe3   :  { %v987_v31 = vpop.f32.mrf.mxu0 }
  0xe4   :  { %v1009_v32 = vpop.f32.mrf.mxu1 }
  0xe5   :  { %v988_v33 = vpop.f32.mrf.mxu0 }
  0xe6   :  { %v1010_v34 = vpop.f32.mrf.mxu1  ;;  %v989_v47 = vadd.f32 %v988_v33, %v987_v31 }
  0xe7   :  { %v990_v35 = vpop.f32.mrf.mxu0  ;;  %v1011_v48 = vadd.f32 %v1010_v34, %v1009_v32 }
  0xe8   :  { %v1012_v37 = vpop.f32.mrf.mxu1 }
  0xe9   :  { %v991_v36 = vpop.f32.mrf.mxu0  ;;  %v742_v50 = vadd.f32 %v1011_v48, %v989_v47 }
  0xea   :  { %v1013_v38 = vpop.f32.mrf.mxu1 }
 0x103   :  { %v1031_v39 = vpop.f32.mrf.mxu0 }
 0x105   :  { %v1032_v40 = vpop.f32.mrf.mxu0  ;;  %v1053_v41 = vpop.f32.mrf.mxu1 }
 0x106   :  { %v1033_v49 = vadd.f32 %v1032_v40, %v1031_v39 }
 0x107   :  { %v1034_v42 = vpop.f32.mrf.mxu0  ;;  %v1054_v43 = vpop.f32.mrf.mxu1 }
 0x108   :  { %v782_v51 = vadd.f32 %v1033_v49, %v742_v50  ;;  %v1055_v52 = vadd.f32 %v1054_v43, %v1053_v41 }
 0x109   :  { %v1035_v44 = vpop.f32.mrf.mxu0  ;;  %v1056_v45 = vpop.f32.mrf.mxu1 }
 0x10a   :  { %v822_v53 = vadd.f32 %v1055_v52, %v782_v51 }
 0x10b   :  { %v1057_v46 = vpop.f32.mrf.mxu1 }
 0x123   :  { %v861_v54 = vpop.f32.mrf.mxu0 }
 0x124   :  { %v862_v55 = vadd.f32 %v861_v54, %v822_v53 }
 0x125   :  { %v1086_v56 = vpop.f32.mrf.mxu0 }
 0x126   :  { %867 = vst [vmem:[%s1439_s2] sm:$0x3] %v862_v55  ;;  %v869_v57 = vsel %vm868_vm1, %v862_v55, 0.0  ;;  %v877_v58 = vmul.f32 %v862_v55, %v862_v55 }
 0x127   :  { %v870_v59 = vrot.slane %v869_v57, 4  ;;  %v864_v60 = vpop.f32.mrf.mxu0 }
 0x128   :  { %v878_v61 = vsel %vm868_vm1, %v877_v58, 0.0 }
 0x129   :  { %v871_v62 = vadd.f32 %v870_v59, %v869_v57  ;;  %v879_v63 = vrot.slane %v878_v61, 4  ;;  %v1087_v0 = vpop.f32.mrf.mxu0 }
 0x12b   :  { %v872_v1 = vrot.slane %v871_v62, 2  ;;  %v880_v2 = vadd.f32 %v879_v63, %v878_v61 }
 0x12d   :  { %v873_v3 = vadd.f32 %v872_v1, %v871_v62  ;;  %v881_v4 = vrot.slane %v880_v2, 2 }
 0x12f   :  { %v874_v5 = vrot.slane %v873_v3, 1  ;;  %v882_v6 = vadd.f32 %v881_v4, %v880_v2 }
 0x131   :  { %v875_v7 = vadd.f32 %v874_v5, %v873_v3  ;;  %v883_v8 = vrot.slane %v882_v6, 1 }
 0x133   :  { %876 = vst [vmem:[%s1440_s3] sm:$0x1] %v875_v7  ;;  %v884_v9 = vadd.f32 %v883_v8, %v882_v6 }
 0x135   :  { %885 = vst [vmem:[%s1441_s4] sm:$0x1] %v884_v9 }

// kernel: unet2d_forward.70
= control target key start
LH: loop header
LB: loop body
LE: loop exit
PB: predicated region body
PF: predicated region fallthrough
CT: control target
= control target key end

     0   :  { %vm1142_vm0 = vmmov 0   ;;  %vm828_vm1 = vcmask 523264   ;;  %vm837_vm2 = vcmask 516096   ;;  %s1408_s1 = inlined_call_operand.vmem [shape: bf16[1152,64], index: 1, kind: input, shape index: {}]   ;;  %s1409_s0 = inlined_call_operand.vmem [shape: bf16[8,1152], index: 0, kind: input, shape index: {}]   ;;  %s1410_s2 = inlined_call_operand.vmem [shape: f32[8,64], index: 2, kind: output, shape index: {0}]   ;;  %s1411_s3 = inlined_call_operand.vmem [shape: f32[1,1,64], index: 3, kind: output, shape index: {1}]   ;;  %s1412_s4 = inlined_call_operand.vmem [shape: f32[1,1,64], index: 4, kind: output, shape index: {2}]  }
   0x1   :  { %v1060_v0 = vld [vmem:[%s1408_s1 + $0x78] sm:$0xff]   ;;  %v1064_v4 = vld [vmem:[%s1408_s1 + $0x70] sm:$0xff]   ;;  %v1068_v8 = vld [vmem:[%s1408_s1 + $0x68] sm:$0xff]  }
   0x2   :  { %v1061_v1 = vld [vmem:[%s1408_s1 + $0xf8] sm:$0xff]   ;;  %941 = vmatprep.subr.bf16.mxu0 %v1060_v0  ;;  %v1065_v5 = vld [vmem:[%s1408_s1 + $0xf0] sm:$0xff]   ;;  %v1069_v9 = vld [vmem:[%s1408_s1 + $0xe8] sm:$0xff]  }
   0x3   :  { %v1062_v2 = vld [vmem:[%s1408_s1 + $0x38] sm:$0xff]   ;;  %963 = vmatprep.subr.bf16.mxu1 %v1061_v1  ;;  %v1066_v6 = vld [vmem:[%s1408_s1 + $0x30] sm:$0xff]   ;;  %v1070_v10 = vld [vmem:[%s1408_s1 + $0x28] sm:$0xff]  }
   0x4   :  { %v1063_v3 = vld [vmem:[%s1408_s1 + $0xb8] sm:$0xff]   ;;  %942 = vmatpush3.bf16.msra.mxu0 %v1062_v2  ;;  %v1067_v7 = vld [vmem:[%s1408_s1 + $0xb0] sm:$0xff]   ;;  %v1071_v11 = vld [vmem:[%s1408_s1 + $0xa8] sm:$0xff]  }
   0x5   :  { %964 = vmatpush3.bf16.msra.mxu1 %v1063_v3  ;;  %943 = vmatprep.subr.bf16.mxu0 %v1064_v4  ;;  %v1072_v12 = vld [vmem:[%s1408_s1 + $0x60] sm:$0xff]   ;;  %v1076_v16 = vld [vmem:[%s1408_s1 + $0x58] sm:$0xff]   ;;  %v1080_v20 = vld [vmem:[%s1408_s1 + $0x50] sm:$0xff]  }
   0x6   :  { %965 = vmatprep.subr.bf16.mxu1 %v1065_v5  ;;  %v1073_v13 = vld [vmem:[%s1408_s1 + $0xe0] sm:$0xff]   ;;  %v1077_v17 = vld [vmem:[%s1408_s1 + $0xd8] sm:$0xff]   ;;  %v1081_v21 = vld [vmem:[%s1408_s1 + $0xd0] sm:$0xff]  }
   0x7   :  { %v1074_v14 = vld [vmem:[%s1408_s1 + $0x20] sm:$0xff]   ;;  %v1078_v18 = vld [vmem:[%s1408_s1 + $0x18] sm:$0xff]   ;;  %v1082_v22 = vld [vmem:[%s1408_s1 + $0x10] sm:$0xff]  }
   0x8   :  { %944 = vmatpush3.bf16.msra.mxu0 %v1066_v6  ;;  %v1075_v15 = vld [vmem:[%s1408_s1 + $0xa0] sm:$0xff]   ;;  %v1079_v19 = vld [vmem:[%s1408_s1 + $0x98] sm:$0xff]   ;;  %v1083_v23 = vld [vmem:[%s1408_s1 + $0x90] sm:$0xff]  }
   0x9   :  { %966 = vmatpush3.bf16.msra.mxu1 %v1067_v7  ;;  %945 = vmatprep.subr.bf16.mxu0 %v1068_v8  ;;  %v1084_v24 = vld [vmem:[%s1408_s1 + $0x48] sm:$0xff]   ;;  %v1088_v28 = vld [vmem:[%s1408_s1 + $0x40] sm:$0xff]   ;;  %v1096_v38 = vld [vmem:[%s1408_s1 + $0x178] sm:$0xff]  }
   0xa   :  { %967 = vmatprep.subr.bf16.mxu1 %v1069_v9  ;;  %v1085_v25 = vld [vmem:[%s1408_s1 + $0xc8] sm:$0xff]   ;;  %v1089_v29 = vld [vmem:[%s1408_s1 + $0xc0] sm:$0xff]   ;;  %v1097_v39 = vld [vmem:[%s1408_s1 + $0x138] sm:$0xff]  }
   0xb   :  { %v1086_v26 = vld [vmem:[%s1408_s1 + $0x8] sm:$0xff]   ;;  %v1090_v30 = vld [vmem:[%s1408_s1] sm:$0xff]   ;;  %v1098_v40 = vld [vmem:[%s1408_s1 + $0x1f8] sm:$0xff]  }
   0xc   :  { %946 = vmatpush3.bf16.msra.mxu0 %v1070_v10  ;;  %v1087_v27 = vld [vmem:[%s1408_s1 + $0x88] sm:$0xff]   ;;  %v1091_v31 = vld [vmem:[%s1408_s1 + $0x80] sm:$0xff]   ;;  %v1099_v41 = vld [vmem:[%s1408_s1 + $0x1b8] sm:$0xff]  }
   0xd   :  { %968 = vmatpush3.bf16.msra.mxu1 %v1071_v11  ;;  %947 = vmatprep.subr.bf16.mxu0 %v1072_v12  ;;  %v15_v32 = vld [vmem:[%s1409_s0] sm:$0xff]  ;;  %v16_v33 = vld [vmem:[%s1409_s0 + $0x8] sm:$0xff]  ;;  %v1100_v42 = vld [vmem:[%s1408_s1 + $0x170] sm:$0xff]  }
   0xe   :  { %969 = vmatprep.subr.bf16.mxu1 %v1073_v13  ;;  %v860_v34 = vcombine.low %v15_v32, %v15_v32  ;;  %v861_v35 = vcombine.high %v15_v32, %v15_v32  ;;  %v862_v36 = vcombine.low %v16_v33, %v16_v33  ;;  %v863_v37 = vcombine.high %v16_v33, %v16_v33  ;;  %v1101_v43 = vld [vmem:[%s1408_s1 + $0x130] sm:$0xff]   ;;  %v1104_v46 = vld [vmem:[%s1408_s1 + $0x168] sm:$0xff]   ;;  %v1108_v50 = vld [vmem:[%s1408_s1 + $0x160] sm:$0xff]  }
   0xf   :  { %v1102_v44 = vld [vmem:[%s1408_s1 + $0x1f0] sm:$0xff]   ;;  %v1105_v47 = vld [vmem:[%s1408_s1 + $0x128] sm:$0xff]   ;;  %v1109_v51 = vld [vmem:[%s1408_s1 + $0x120] sm:$0xff]   ;;  %v1141_v13 = vmov 0.0  }
  0x10   :  { %948 = vmatpush3.bf16.msra.mxu0 %v1074_v14  ;;  %660 = vmatprep.mubr.bf16.mxu0 %v861_v35  ;;  %v1103_v45 = vld [vmem:[%s1408_s1 + $0x1b0] sm:$0xff]   ;;  %v1106_v48 = vld [vmem:[%s1408_s1 + $0x1e8] sm:$0xff]   ;;  %v1110_v52 = vld [vmem:[%s1408_s1 + $0x1e0] sm:$0xff]  }
  0x11   :  { %970 = vmatpush3.bf16.msra.mxu1 %v1075_v15  ;;  %949 = vmatprep.subr.bf16.mxu0 %v1076_v16  ;;  %v1107_v49 = vld [vmem:[%s1408_s1 + $0x1a8] sm:$0xff]   ;;  %v1111_v53 = vld [vmem:[%s1408_s1 + $0x1a0] sm:$0xff]   ;;  %v1112_v54 = vld [vmem:[%s1408_s1 + $0x158] sm:$0xff]  }
  0x12   :  { %971 = vmatprep.subr.bf16.mxu1 %v1077_v17  ;;  %700 = vmatprep.mubr.bf16.mxu1 %v863_v37  ;;  %v1113_v55 = vld [vmem:[%s1408_s1 + $0x118] sm:$0xff]   ;;  %v1116_v58 = vld [vmem:[%s1408_s1 + $0x150] sm:$0xff]   ;;  %v1120_v62 = vld [vmem:[%s1408_s1 + $0x148] sm:$0xff]  }
  0x13   :  { %v1114_v56 = vld [vmem:[%s1408_s1 + $0x1d8] sm:$0xff]   ;;  %v1117_v59 = vld [vmem:[%s1408_s1 + $0x110] sm:$0xff]   ;;  %v1121_v63 = vld [vmem:[%s1408_s1 + $0x108] sm:$0xff]  }
  0x14   :  { %950 = vmatpush3.bf16.msra.mxu0 %v1078_v18  ;;  %v1115_v57 = vld [vmem:[%s1408_s1 + $0x198] sm:$0xff]   ;;  %v1118_v60 = vld [vmem:[%s1408_s1 + $0x1d0] sm:$0xff]   ;;  %v1122_v0 = vld [vmem:[%s1408_s1 + $0x1c8] sm:$0xff]  }
  0x15   :  { %972 = vmatpush3.bf16.msra.mxu1 %v1079_v19  ;;  %951 = vmatprep.subr.bf16.mxu0 %v1080_v20  ;;  %v1119_v61 = vld [vmem:[%s1408_s1 + $0x190] sm:$0xff]   ;;  %v1123_v1 = vld [vmem:[%s1408_s1 + $0x188] sm:$0xff]   ;;  %v1124_v2 = vld [vmem:[%s1408_s1 + $0x140] sm:$0xff]  }
  0x16   :  { %973 = vmatprep.subr.bf16.mxu1 %v1081_v21  ;;  %v1125_v3 = vld [vmem:[%s1408_s1 + $0x100] sm:$0xff]   ;;  %v17_v5 = vld [vmem:[%s1409_s0 + $0x10] sm:$0xff]  ;;  %v18_v9 = vld [vmem:[%s1409_s0 + $0x18] sm:$0xff] }
  0x17   :  { %v1126_v4 = vld [vmem:[%s1408_s1 + $0x1c0] sm:$0xff]   ;;  %v865_v6 = vcombine.high %v17_v5, %v17_v5  ;;  %v864_v8 = vcombine.low %v17_v5, %v17_v5  ;;  %v866_v10 = vcombine.low %v18_v9, %v18_v9  ;;  %v867_v11 = vcombine.high %v18_v9, %v18_v9  ;;  %v1132_v12 = vld [vmem:[%s1408_s1 + $0x238] sm:$0xff]   ;;  %v1133_v14 = vld [vmem:[%s1408_s1 + $0x230] sm:$0xff]  }
  0x18   :  { %952 = vmatpush3.bf16.msra.mxu0 %v1082_v22  ;;  %v1129_v7 = vld [vmem:[%s1408_s1 + $0x180] sm:$0xff]   ;;  %v1134_v15 = vld [vmem:[%s1408_s1 + $0x228] sm:$0xff]   ;;  %v1136_v17 = vld [vmem:[%s1408_s1 + $0x218] sm:$0xff]  }
  0x19   :  { %974 = vmatpush3.bf16.msra.mxu1 %v1083_v23  ;;  %953 = vmatprep.subr.bf16.mxu0 %v1084_v24  ;;  %v1135_v16 = vld [vmem:[%s1408_s1 + $0x220] sm:$0xff]   ;;  %v1137_v18 = vld [vmem:[%s1408_s1 + $0x210] sm:$0xff]   ;;  %v1138_v19 = vld [vmem:[%s1408_s1 + $0x208] sm:$0xff]  }
  0x1a   :  { %975 = vmatprep.subr.bf16.mxu1 %v1085_v25  ;;  %v1139_v20 = vld [vmem:[%s1408_s1 + $0x200] sm:$0xff]  }
  0x1b   :  { %v1140_v21 = vld [vmem:[%s1409_s0 + $0x20] ss:$0 sps:$4 sm:$0xff]  }
  0x1c   :  { %954 = vmatpush3.bf16.msra.mxu0 %v1086_v26 }
  0x1d   :  { %976 = vmatpush3.bf16.msra.mxu1 %v1087_v27  ;;  %955 = vmatprep.subr.bf16.mxu0 %v1088_v28 }
  0x1e   :  { %977 = vmatprep.subr.bf16.mxu1 %v1089_v29 }
  0x20   :  { %956 = vmatpush3.bf16.msra.mxu0 %v1090_v30 }
  0x21   :  { %978 = vmatpush3.bf16.msra.mxu1 %v1091_v31  ;;  %985 = vmatprep.subr.bf16.mxu0 %v1096_v38 }
  0x22   :  { %1007 = vmatprep.subr.bf16.mxu1 %v1098_v40 }
  0x23   :  { %661 = vmatmul.mubr.bf16.vlgmr.msra.gmra.mxu0 %v860_v34 }
  0x24   :  { %701 = vmatmul.mubr.bf16.vlgmr.msra.gmra.mxu1 %v862_v36  ;;  %986 = vmatpush3.bf16.msra.mxu0 %v1097_v39 }
  0x25   :  { %1008 = vmatpush3.bf16.msra.mxu1 %v1099_v41  ;;  %987 = vmatprep.subr.bf16.mxu0 %v1100_v42 }
  0x26   :  { %1009 = vmatprep.subr.bf16.mxu1 %v1102_v44  ;;  %740 = vmatprep.mubr.bf16.mxu0 %v865_v6 }
  0x27   :  { %780 = vmatprep.mubr.bf16.mxu1 %v867_v11 }
  0x28   :  { %988 = vmatpush3.bf16.msra.mxu0 %v1101_v43 }
  0x29   :  { %1010 = vmatpush3.bf16.msra.mxu1 %v1103_v45  ;;  %989 = vmatprep.subr.bf16.mxu0 %v1104_v46 }
  0x2a   :  { %1011 = vmatprep.subr.bf16.mxu1 %v1106_v48 }
  0x2c   :  { %990 = vmatpush3.bf16.msra.mxu0 %v1105_v47 }
  0x2d   :  { %1012 = vmatpush3.bf16.msra.mxu1 %v1107_v49  ;;  %991 = vmatprep.subr.bf16.mxu0 %v1108_v50 }
  0x2e   :  { %1013 = vmatprep.subr.bf16.mxu1 %v1110_v52 }
  0x30   :  { %992 = vmatpush3.bf16.msra.mxu0 %v1109_v51 }
  0x31   :  { %1014 = vmatpush3.bf16.msra.mxu1 %v1111_v53  ;;  %993 = vmatprep.subr.bf16.mxu0 %v1112_v54 }
  0x32   :  { %1015 = vmatprep.subr.bf16.mxu1 %v1114_v56 }
  0x34   :  { %994 = vmatpush3.bf16.msra.mxu0 %v1113_v55 }
  0x35   :  { %1016 = vmatpush3.bf16.msra.mxu1 %v1115_v57  ;;  %995 = vmatprep.subr.bf16.mxu0 %v1116_v58 }
  0x36   :  { %1017 = vmatprep.subr.bf16.mxu1 %v1118_v60 }
  0x38   :  { %996 = vmatpush3.bf16.msra.mxu0 %v1117_v59 }
  0x39   :  { %1018 = vmatpush3.bf16.msra.mxu1 %v1119_v61  ;;  %997 = vmatprep.subr.bf16.mxu0 %v1120_v62 }
  0x3a   :  { %1019 = vmatprep.subr.bf16.mxu1 %v1122_v0 }
  0x3c   :  { %998 = vmatpush3.bf16.msra.mxu0 %v1121_v63 }
  0x3d   :  { %1020 = vmatpush3.bf16.msra.mxu1 %v1123_v1  ;;  %999 = vmatprep.subr.bf16.mxu0 %v1124_v2 }
  0x3e   :  { %1021 = vmatprep.subr.bf16.mxu1 %v1126_v4 }
  0x40   :  { %1000 = vmatpush3.bf16.msra.mxu0 %v1125_v3 }
  0x41   :  { %1022 = vmatpush3.bf16.msra.mxu1 %v1129_v7  ;;  %1038 = vmatprep.subr.bf16.mxu0 %v1141_v13 }
  0x43   :  { %741 = vmatmul.mubr.bf16.vlgmr.msra.gmra.mxu0 %v864_v8 }
  0x44   :  { %1039 = vmatpush3.bf16.msra.mxu0 %v1132_v12  ;;  %781 = vmatmul.mubr.bf16.vlgmr.msra.gmra.mxu1 %v866_v10 }
  0x45   :  { %1040 = vmatprep.subr.bf16.mxu0 %v1141_v13  ;;  %1054 = vmatprep.mubr.msk.bf16.mxu0 %vm1142_vm0, %v1141_v13 }
  0x48   :  { %1041 = vmatpush3.bf16.msra.mxu0 %v1133_v14 }
  0x49   :  { %1042 = vmatprep.subr.bf16.mxu0 %v1141_v13 }
  0x4c   :  { %1043 = vmatpush3.bf16.msra.mxu0 %v1134_v15 }
  0x4d   :  { %1044 = vmatprep.subr.bf16.mxu0 %v1141_v13 }
  0x50   :  { %1045 = vmatpush3.bf16.msra.mxu0 %v1135_v16 }
  0x51   :  { %1046 = vmatprep.subr.bf16.mxu0 %v1141_v13 }
  0x54   :  { %1047 = vmatpush3.bf16.msra.mxu0 %v1136_v17 }
  0x55   :  { %1048 = vmatprep.subr.bf16.mxu0 %v1141_v13 }
  0x58   :  { %1049 = vmatpush3.bf16.msra.mxu0 %v1137_v18 }
  0x59   :  { %1050 = vmatprep.subr.bf16.mxu0 %v1141_v13 }
  0x5c   :  { %1051 = vmatpush3.bf16.msra.mxu0 %v1138_v19 }
  0x5d   :  { %1052 = vmatprep.subr.bf16.mxu0 %v1141_v13 }
  0x60   :  { %1053 = vmatpush3.bf16.msra.mxu0 %v1139_v20 }
  0x63   :  { %1055 = vmatmul.mubr.bf16.vlgmr.msra.gmra.mxu0 %v1140_v21 }
  0xe3   :  { %v957_v22 = vpop.f32.mrf.mxu0 }
  0xe4   :  { %v979_v23 = vpop.f32.mrf.mxu1 }
  0xe5   :  { %v958_v24 = vpop.f32.mrf.mxu0 }
  0xe6   :  { %v980_v25 = vpop.f32.mrf.mxu1  ;;  %v959_v38 = vadd.f32 %v958_v24, %v957_v22 }
  0xe7   :  { %v960_v26 = vpop.f32.mrf.mxu0  ;;  %v981_v39 = vadd.f32 %v980_v25, %v979_v23 }
  0xe8   :  { %v982_v27 = vpop.f32.mrf.mxu1 }
  0xe9   :  { %v961_v28 = vpop.f32.mrf.mxu0  ;;  %v703_v41 = vadd.f32 %v981_v39, %v959_v38 }
  0xea   :  { %v983_v29 = vpop.f32.mrf.mxu1 }
 0x103   :  { %v1001_v30 = vpop.f32.mrf.mxu0 }
 0x104   :  { %v1023_v31 = vpop.f32.mrf.mxu1 }
 0x105   :  { %v1002_v32 = vpop.f32.mrf.mxu0 }
 0x106   :  { %v1024_v33 = vpop.f32.mrf.mxu1  ;;  %v1003_v40 = vadd.f32 %v1002_v32, %v1001_v30 }
 0x107   :  { %v1004_v34 = vpop.f32.mrf.mxu0  ;;  %v1025_v43 = vadd.f32 %v1024_v33, %v1023_v31 }
 0x108   :  { %v1026_v35 = vpop.f32.mrf.mxu1  ;;  %v743_v42 = vadd.f32 %v1003_v40, %v703_v41 }
 0x109   :  { %v1005_v36 = vpop.f32.mrf.mxu0 }
 0x10a   :  { %v1027_v37 = vpop.f32.mrf.mxu1  ;;  %v783_v44 = vadd.f32 %v1025_v43, %v743_v42 }
 0x123   :  { %v822_v45 = vpop.f32.mrf.mxu0 }
 0x124   :  { %v823_v46 = vadd.f32 %v822_v45, %v783_v44 }
 0x125   :  { %v1056_v47 = vpop.f32.mrf.mxu0 }
 0x126   :  { %829 = vst.msk [vmem:[%s1410_s2] sm:$0xff] %vm828_vm1, %v823_v46  ;;  %v830_v48 = vsel %vm828_vm1, %v823_v46, 0.0  ;;  %v839_v49 = vmul.f32 %v823_v46, %v823_v46 }
 0x127   :  { %v831_v50 = vrot.slane %v830_v48, 4  ;;  %v825_v51 = vpop.f32.mrf.mxu0 }
 0x128   :  { %v840_v52 = vsel %vm828_vm1, %v839_v49, 0.0 }
 0x129   :  { %v832_v53 = vadd.f32 %v831_v50, %v830_v48  ;;  %v841_v54 = vrot.slane %v840_v52, 4  ;;  %v1057_v55 = vpop.f32.mrf.mxu0 }
 0x12b   :  { %v833_v56 = vrot.slane %v832_v53, 2  ;;  %v842_v57 = vadd.f32 %v841_v54, %v840_v52 }
 0x12d   :  { %v834_v58 = vadd.f32 %v833_v56, %v832_v53  ;;  %v843_v59 = vrot.slane %v842_v57, 2 }
 0x12f   :  { %v835_v60 = vrot.slane %v834_v58, 1  ;;  %v844_v61 = vadd.f32 %v843_v59, %v842_v57 }
 0x131   :  { %v836_v62 = vadd.f32 %v835_v60, %v834_v58  ;;  %v845_v63 = vrot.slane %v844_v61, 1 }
 0x133   :  { %838 = vst.msk [vmem:[%s1411_s3] sm:$0x1] %vm837_vm2, %v836_v62  ;;  %v846_v0 = vadd.f32 %v845_v63, %v844_v61 }
 0x135   :  { %847 = vst.msk [vmem:[%s1412_s4] sm:$0x1] %vm837_vm2, %v846_v0 }

// kernel: unet2d_forward.74
= control target key start
LH: loop header
LB: loop body
LE: loop exit
PB: predicated region body
PF: predicated region fallthrough
CT: control target
= control target key end

     0   :  { %v123_v0 = vmov 0.0   ;;  %vm124_vm0 = vmmov 0   ;;  %vm45_vm1 = vcmask 523264   ;;  %s158_s1 = inlined_call_operand.vmem [shape: bf16[64,128], index: 1, kind: input, shape index: {}]   ;;  %s159_s0 = inlined_call_operand.vmem [shape: bf16[8,64], index: 0, kind: input, shape index: {}]   ;;  %s160_s2 = inlined_call_operand.vmem [shape: bf16[8,128], index: 2, kind: output, shape index: {}]  }
   0x1   :  { %105 = vmatprep.subr.bf16.mxu0 %v123_v0  ;;  %v119_v1 = vld [vmem:[%s158_s1 + $0x18] sm:$0xff]   ;;  %113 = vmatprep.mubr.msk.bf16.mxu0 %vm124_vm0, %v123_v0  ;;  %v120_v2 = vld [vmem:[%s158_s1 + $0x10] sm:$0xff]   ;;  %v121_v3 = vld [vmem:[%s158_s1 + $0x8] sm:$0xff]  }
   0x2   :  { %106 = vmatpush3.bf16.msra.mxu0 %v119_v1  ;;  %v122_v4 = vld [vmem:[%s158_s1] sm:$0xff]  }
   0x3   :  { %107 = vmatprep.subr.bf16.mxu0 %v123_v0  ;;  %v12_v5 = vld [vmem:[%s159_s0] sm:$0xf] }
   0x6   :  { %108 = vmatpush3.bf16.msra.mxu0 %v120_v2 }
   0x7   :  { %109 = vmatprep.subr.bf16.mxu0 %v123_v0 }
   0xa   :  { %110 = vmatpush3.bf16.msra.mxu0 %v121_v3 }
   0xb   :  { %111 = vmatprep.subr.bf16.mxu0 %v123_v0 }
   0xe   :  { %112 = vmatpush3.bf16.msra.mxu0 %v122_v4 }
  0x11   :  { %114 = vmatmul.mubr.msk.bf16.vlgmr.msra.gmra.mxu0 %vm45_vm1, %v12_v5 }
  0xd1   :  { %v83_v6 = vpop.f32.mrf.mxu0 }
  0xd2   :  { %v89_v7 = vpack.c.bf16 %v83_v6, %v83_v6 }
  0xd3   :  { %v115_v8 = vpop.f32.mrf.mxu0 }
  0xd4   :  { %90 = vst [vmem:[%s160_s2] sm:$0xf] %v89_v7 }
  0xd5   :  { %v86_v9 = vpop.f32.mrf.mxu0 }
  0xd7   :  { %v116_v10 = vpop.f32.mrf.mxu0 }

// kernel: unet2d_forward.79
= control target key start
LH: loop header
LB: loop body
LE: loop exit
PB: predicated region body
PF: predicated region fallthrough
CT: control target
= control target key end

     0   :  { %vm42_vm0 = vcmask 261120   ;;  %vm114_vm1 = vcmask 519168   ;;  %s192_s1 = inlined_call_operand.vmem [shape: bf16[32,64], index: 1, kind: input, shape index: {}]   ;;  %s193_s0 = inlined_call_operand.vmem [shape: bf16[32,32], index: 0, kind: input, shape index: {}]   ;;  %s194_s2 = inlined_call_operand.vmem [shape: bf16[32,64], index: 2, kind: output, shape index: {}]  }
   0x1   :  { %v149_v0 = vld [vmem:[%s192_s1 + $0x8] sm:$0xff]   ;;  %v150_v1 = vld [vmem:[%s192_s1] sm:$0xff]  }
   0x2   :  { %141 = vmatprep.subr.bf16.mxu0 %v149_v0  ;;  %v151_v2 = vld [vmem:[%s193_s0] sm:$0xff]   ;;  %v152_v3 = vld [vmem:[%s193_s0 + $0x8] sm:$0xff]  }
   0x3   :  { %142 = vmatpush3.bf16.msra.mxu0 %v149_v0  ;;  %145 = vmatprep.mubr.msk.bf16.mxu0 %vm42_vm0, %v151_v2 }
   0x4   :  { %143 = vmatprep.subr.bf16.mxu0 %v150_v1 }
   0x7   :  { %144 = vmatpush3.bf16.msra.mxu0 %v150_v1 }
   0xa   :  { %146 = vmatmul.mubr.msk.bf16.vlgmr.msra.gmra.mxu0 %vm42_vm0, %v152_v3 }
  0xca   :  { %v147_v4 = vpop.f32.mrf.mxu0 }
  0xcb   :  { %v135_v5 = vpack.c.bf16 %v147_v4, %v147_v4 }
  0xcc   :  { %v83_v6 = vpop.f32.mrf.mxu0 }
  0xcd   :  { %117 = vst.msk [vmem:[%s194_s2 + $0x8] sm:$0xf] %vm114_vm1, %v135_v5  ;;  %v133_v7 = vpack.c.bf16 %v83_v6, %v83_v6 }
  0xce   :  { %v148_v8 = vpop.f32.mrf.mxu0 }
  0xcf   :  { %115 = vst.msk [vmem:[%s194_s2] sm:$0xf] %vm114_vm1, %v133_v7  ;;  %v136_v9 = vpack.c.bf16 %v148_v8, %v148_v8 }
  0xd0   :  { %v86_v10 = vpop.f32.mrf.mxu0 }
  0xd1   :  { %118 = vst.msk [vmem:[%s194_s2 + $0xc] sm:$0xf] %vm114_vm1, %v136_v9  ;;  %v134_v11 = vpack.c.bf16 %v86_v10, %v86_v10 }
  0xd3   :  { %116 = vst.msk [vmem:[%s194_s2 + $0x4] sm:$0xf] %vm114_vm1, %v134_v11 }

// kernel: unet2d_forward.75
= control target key start
LH: loop header
LB: loop body
LE: loop exit
PB: predicated region body
PF: predicated region fallthrough
CT: control target
= control target key end

     0   :  { %vm365_vm0 = vcmask 523264   ;;  %vm519_vm1 = vcmask 261120   ;;  %vm537_vm2 = vcmask 253952   ;;  %s934_s1 = inlined_call_operand.vmem [shape: bf16[576,32], index: 1, kind: input, shape index: {}]   ;;  %s935_s0 = inlined_call_operand.vmem [shape: bf16[32,576], index: 0, kind: input, shape index: {}]   ;;  %s936_s2 = inlined_call_operand.vmem [shape: f32[32,32], index: 2, kind: output, shape index: {0}]   ;;  %s937_s3 = inlined_call_operand.vmem [shape: f32[1,1,32], index: 3, kind: output, shape index: {1}]   ;;  %s938_s4 = inlined_call_operand.vmem [shape: f32[1,1,32], index: 4, kind: output, shape index: {2}]  }
   0x1   :  { %v691_v0 = vld [vmem:[%s934_s1 + $0x78] sm:$0xff]   ;;  %v695_v4 = vld [vmem:[%s934_s1 + $0x70] sm:$0xff]   ;;  %v699_v8 = vld [vmem:[%s934_s1 + $0x68] sm:$0xff]  }
   0x2   :  { %v692_v1 = vld [vmem:[%s934_s1 + $0xf8] sm:$0xff]   ;;  %617 = vmatprep.subr.bf16.mxu0 %v691_v0  ;;  %v696_v5 = vld [vmem:[%s934_s1 + $0xf0] sm:$0xff]   ;;  %v700_v9 = vld [vmem:[%s934_s1 + $0xe8] sm:$0xff]  }
   0x3   :  { %v693_v2 = vld [vmem:[%s934_s1 + $0x38] sm:$0xff]   ;;  %645 = vmatprep.subr.bf16.mxu1 %v692_v1  ;;  %v697_v6 = vld [vmem:[%s934_s1 + $0x30] sm:$0xff]   ;;  %v701_v10 = vld [vmem:[%s934_s1 + $0x28] sm:$0xff]  }
   0x4   :  { %v694_v3 = vld [vmem:[%s934_s1 + $0xb8] sm:$0xff]   ;;  %618 = vmatpush3.bf16.msra.mxu0 %v693_v2  ;;  %v698_v7 = vld [vmem:[%s934_s1 + $0xb0] sm:$0xff]   ;;  %v702_v11 = vld [vmem:[%s934_s1 + $0xa8] sm:$0xff]  }
   0x5   :  { %646 = vmatpush3.bf16.msra.mxu1 %v694_v3  ;;  %619 = vmatprep.subr.bf16.mxu0 %v695_v4  ;;  %v703_v12 = vld [vmem:[%s934_s1 + $0x60] sm:$0xff]   ;;  %v707_v16 = vld [vmem:[%s934_s1 + $0x58] sm:$0xff]   ;;  %v711_v20 = vld [vmem:[%s934_s1 + $0x50] sm:$0xff]  }
   0x6   :  { %647 = vmatprep.subr.bf16.mxu1 %v696_v5  ;;  %v704_v13 = vld [vmem:[%s934_s1 + $0xe0] sm:$0xff]   ;;  %v708_v17 = vld [vmem:[%s934_s1 + $0xd8] sm:$0xff]   ;;  %v712_v21 = vld [vmem:[%s934_s1 + $0xd0] sm:$0xff]  }
   0x7   :  { %v705_v14 = vld [vmem:[%s934_s1 + $0x20] sm:$0xff]   ;;  %v709_v18 = vld [vmem:[%s934_s1 + $0x18] sm:$0xff]   ;;  %v713_v22 = vld [vmem:[%s934_s1 + $0x10] sm:$0xff]  }
   0x8   :  { %620 = vmatpush3.bf16.msra.mxu0 %v697_v6  ;;  %v706_v15 = vld [vmem:[%s934_s1 + $0xa0] sm:$0xff]   ;;  %v710_v19 = vld [vmem:[%s934_s1 + $0x98] sm:$0xff]   ;;  %v714_v23 = vld [vmem:[%s934_s1 + $0x90] sm:$0xff]  }
   0x9   :  { %648 = vmatpush3.bf16.msra.mxu1 %v698_v7  ;;  %621 = vmatprep.subr.bf16.mxu0 %v699_v8  ;;  %v715_v24 = vld [vmem:[%s934_s1 + $0x48] sm:$0xff]   ;;  %v719_v28 = vld [vmem:[%s934_s1 + $0x40] sm:$0xff]   ;;  %v729_v36 = vld [vmem:[%s934_s1 + $0x118] sm:$0xff]  }
   0xa   :  { %649 = vmatprep.subr.bf16.mxu1 %v700_v9  ;;  %v716_v25 = vld [vmem:[%s934_s1 + $0xc8] sm:$0xff]   ;;  %v720_v29 = vld [vmem:[%s934_s1 + $0xc0] sm:$0xff]   ;;  %v730_v37 = vld [vmem:[%s934_s1 + $0x110] sm:$0xff]  }
   0xb   :  { %v717_v26 = vld [vmem:[%s934_s1 + $0x8] sm:$0xff]   ;;  %v721_v30 = vld [vmem:[%s934_s1] sm:$0xff]  }
   0xc   :  { %622 = vmatpush3.bf16.msra.mxu0 %v701_v10  ;;  %v718_v27 = vld [vmem:[%s934_s1 + $0x88] sm:$0xff]   ;;  %v722_v31 = vld [vmem:[%s934_s1 + $0x80] sm:$0xff]  }
   0xd   :  { %650 = vmatpush3.bf16.msra.mxu1 %v702_v11  ;;  %623 = vmatprep.subr.bf16.mxu0 %v703_v12  ;;  %v723_v32 = vld [vmem:[%s935_s0] ss:$20 sps:$4 sm:$0xff]   ;;  %v725_v33 = vld [vmem:[%s935_s0 + $0x4] ss:$20 sps:$4 sm:$0xff]   ;;  %v726_v34 = vld [vmem:[%s935_s0 + $0x8] ss:$20 sps:$4 sm:$0xff]  }
   0xe   :  { %651 = vmatprep.subr.bf16.mxu1 %v704_v13  ;;  %v728_v35 = vld [vmem:[%s935_s0 + $0xc] ss:$20 sps:$4 sm:$0xff]   ;;  %404 = vmatprep.mubr.bf16.mxu0 %v725_v33  ;;  %v733_v39 = vld [vmem:[%s935_s0 + $0x34] ss:$20 sps:$4 sm:$0xff]   ;;  %v736_v42 = vld [vmem:[%s935_s0 + $0x30] ss:$20 sps:$4 sm:$0xff]  }
   0xf   :  { %453 = vmatprep.mubr.bf16.mxu1 %v728_v35  ;;  %v731_v38 = vld [vmem:[%s935_s0 + $0x2c] ss:$20 sps:$4 sm:$0xff]   ;;  %v735_v40 = vld [vmem:[%s935_s0 + $0x28] ss:$20 sps:$4 sm:$0xff]   ;;  %v739_v43 = vld [vmem:[%s935_s0 + $0x10] ss:$20 sps:$4 sm:$0xff]  }
  0x10   :  { %624 = vmatpush3.bf16.msra.mxu0 %v705_v14  ;;  %v737_v41 = vld [vmem:[%s934_s1 + $0x108] sm:$0xff]   ;;  %v738_v44 = vld [vmem:[%s934_s1 + $0x100] sm:$0xff]  }
  0x11   :  { %652 = vmatpush3.bf16.msra.mxu1 %v706_v15  ;;  %625 = vmatprep.subr.bf16.mxu0 %v707_v16  ;;  %v740_v45 = vld [vmem:[%s935_s0 + $0x38] ss:$20 sps:$4 sm:$0xff]  }
  0x12   :  { %653 = vmatprep.subr.bf16.mxu1 %v708_v17 }
  0x14   :  { %626 = vmatpush3.bf16.msra.mxu0 %v709_v18 }
  0x15   :  { %654 = vmatpush3.bf16.msra.mxu1 %v710_v19  ;;  %627 = vmatprep.subr.bf16.mxu0 %v711_v20 }
  0x16   :  { %655 = vmatprep.subr.bf16.mxu1 %v712_v21 }
  0x18   :  { %628 = vmatpush3.bf16.msra.mxu0 %v713_v22 }
  0x19   :  { %656 = vmatpush3.bf16.msra.mxu1 %v714_v23  ;;  %629 = vmatprep.subr.bf16.mxu0 %v715_v24 }
  0x1a   :  { %657 = vmatprep.subr.bf16.mxu1 %v716_v25 }
  0x1c   :  { %630 = vmatpush3.bf16.msra.mxu0 %v717_v26 }
  0x1d   :  { %658 = vmatpush3.bf16.msra.mxu1 %v718_v27  ;;  %631 = vmatprep.subr.bf16.mxu0 %v719_v28 }
  0x1e   :  { %659 = vmatprep.subr.bf16.mxu1 %v720_v29 }
  0x20   :  { %632 = vmatpush3.bf16.msra.mxu0 %v721_v30 }
  0x21   :  { %660 = vmatpush3.bf16.msra.mxu1 %v722_v31  ;;  %679 = vmatprep.subr.bf16.mxu0 %v729_v36 }
  0x23   :  { %405 = vmatmul.mubr.bf16.vlgmr.msra.gmra.mxu0 %v723_v32 }
  0x24   :  { %454 = vmatmul.mubr.bf16.vlgmr.msra.gmra.mxu1 %v726_v34  ;;  %680 = vmatpush3.bf16.msra.mxu0 %v729_v36 }
  0x25   :  { %681 = vmatprep.subr.bf16.mxu0 %v730_v37  ;;  %412 = vmatprep.mubr.bf16.mxu0 %v731_v38 }
  0x26   :  { %461 = vmatprep.mubr.bf16.mxu1 %v733_v39 }
  0x28   :  { %682 = vmatpush3.bf16.msra.mxu0 %v730_v37 }
  0x29   :  { %683 = vmatprep.subr.bf16.mxu0 %v737_v41 }
  0x2b   :  { %413 = vmatmul.mubr.bf16.gmra.mxu0 %v735_v40 }
  0x2c   :  { %462 = vmatmul.mubr.bf16.gmra.mxu1 %v736_v42  ;;  %687 = vmatprep.mubr.msk.bf16.mxu0 %vm365_vm0, %v739_v43 }
  0x2d   :  { %684 = vmatpush3.bf16.msra.mxu0 %v737_v41 }
  0x2e   :  { %685 = vmatprep.subr.bf16.mxu0 %v738_v44 }
  0x31   :  { %686 = vmatpush3.bf16.msra.mxu0 %v738_v44 }
  0x34   :  { %688 = vmatmul.mubr.msk.bf16.vlgmr.msra.gmra.mxu0 %vm365_vm0, %v740_v45 }
  0xe3   :  { %v633_v46 = vpop.f32.mrf.mxu0 }
  0xe4   :  { %v661_v47 = vpop.f32.mrf.mxu1 }
  0xe5   :  { %v634_v48 = vpop.f32.mrf.mxu0 }
  0xe6   :  { %v662_v49 = vpop.f32.mrf.mxu1  ;;  %v635_v62 = vadd.f32 %v634_v48, %v633_v46 }
  0xe7   :  { %v636_v50 = vpop.f32.mrf.mxu0  ;;  %v663_v63 = vadd.f32 %v662_v49, %v661_v47 }
  0xe8   :  { %v664_v51 = vpop.f32.mrf.mxu1 }
  0xe9   :  { %v637_v52 = vpop.f32.mrf.mxu0  ;;  %v456_v9 = vadd.f32 %v663_v63, %v635_v62 }
  0xea   :  { %v665_v53 = vpop.f32.mrf.mxu1  ;;  %v638_v6 = vadd.f32 %v637_v52, %v636_v50 }
  0xeb   :  { %v639_v54 = vpop.f32.mrf.mxu0  ;;  %v666_v7 = vadd.f32 %v665_v53, %v664_v51 }
  0xec   :  { %v667_v55 = vpop.f32.mrf.mxu1 }
  0xed   :  { %v640_v56 = vpop.f32.mrf.mxu0  ;;  %v459_v15 = vadd.f32 %v666_v7, %v638_v6 }
  0xee   :  { %v668_v57 = vpop.f32.mrf.mxu1  ;;  %v641_v58 = vadd.f32 %v640_v56, %v639_v54 }
  0xef   :  { %v669_v59 = vadd.f32 %v668_v57, %v667_v55  ;;  %v642_v60 = vpop.f32.mrf.mxu0 }
  0xf0   :  { %v670_v61 = vpop.f32.mrf.mxu1 }
  0xf1   :  { %v643_v0 = vpop.f32.mrf.mxu0  ;;  %v464_v4 = vadd.f32 %v669_v59, %v641_v58 }
  0xf2   :  { %v671_v1 = vpop.f32.mrf.mxu1  ;;  %v644_v2 = vadd.f32 %v643_v0, %v642_v60 }
  0xf3   :  { %v672_v3 = vadd.f32 %v671_v1, %v670_v61 }
  0xf4   :  { %v689_v5 = vpop.f32.mrf.mxu0 }
  0xf5   :  { %v513_v8 = vadd.f32 %v689_v5, %v464_v4  ;;  %v467_v12 = vadd.f32 %v672_v3, %v644_v2 }
  0xf6   :  { %v504_v10 = vpop.f32.mrf.mxu0 }
  0xf7   :  { %522 = vst.msk [vmem:[%s936_s2 + $0x10] sm:$0xff] %vm519_vm1, %v513_v8  ;;  %v505_v11 = vadd.f32 %v504_v10, %v456_v9  ;;  %v541_v19 = vmul.f32 %v513_v8, %v513_v8  ;;  %v527_v24 = vsel %vm519_vm1, %v513_v8, 0.0 }
  0xf8   :  { %v690_v13 = vpop.f32.mrf.mxu0 }
  0xf9   :  { %520 = vst.msk [vmem:[%s936_s2] sm:$0xff] %vm519_vm1, %v505_v11  ;;  %v516_v14 = vadd.f32 %v690_v13, %v467_v12  ;;  %v539_v17 = vmul.f32 %v505_v11, %v505_v11  ;;  %v524_v20 = vsel %vm519_vm1, %v505_v11, 0.0  ;;  %v546_v30 = vsel %vm519_vm1, %v541_v19, 0.0 }
  0xfa   :  { %v507_v16 = vpop.f32.mrf.mxu0 }
  0xfb   :  { %523 = vst.msk [vmem:[%s936_s2 + $0x18] sm:$0xff] %vm519_vm1, %v516_v14  ;;  %v508_v18 = vadd.f32 %v507_v16, %v459_v15  ;;  %v543_v25 = vsel %vm519_vm1, %v539_v17, 0.0  ;;  %v542_v26 = vmul.f32 %v516_v14, %v516_v14  ;;  %v529_v31 = vsel %vm519_vm1, %v516_v14, 0.0 }
  0xfd   :  { %521 = vst.msk [vmem:[%s936_s2 + $0x8] sm:$0xff] %vm519_vm1, %v508_v18  ;;  %v525_v21 = vsel %vm519_vm1, %v508_v18, 0.0  ;;  %v540_v22 = vmul.f32 %v508_v18, %v508_v18  ;;  %v548_v34 = vsel %vm519_vm1, %v542_v26, 0.0 }
  0xfe   :  { %v526_v23 = vadd.f32 %v525_v21, %v524_v20 }
  0xff   :  { %v544_v27 = vsel %vm519_vm1, %v540_v22, 0.0 }
 0x100   :  { %v528_v28 = vadd.f32 %v527_v24, %v526_v23  ;;  %v545_v29 = vadd.f32 %v544_v27, %v543_v25 }
 0x102   :  { %v530_v32 = vadd.f32 %v529_v31, %v528_v28  ;;  %v547_v33 = vadd.f32 %v546_v30, %v545_v29 }
 0x104   :  { %v531_v35 = vrot.slane %v530_v32, 4  ;;  %v549_v36 = vadd.f32 %v548_v34, %v547_v33 }
 0x106   :  { %v532_v37 = vadd.f32 %v531_v35, %v530_v32  ;;  %v550_v38 = vrot.slane %v549_v36, 4 }
 0x108   :  { %v533_v39 = vrot.slane %v532_v37, 2  ;;  %v551_v40 = vadd.f32 %v550_v38, %v549_v36 }
 0x10a   :  { %v534_v41 = vadd.f32 %v533_v39, %v532_v37  ;;  %v552_v42 = vrot.slane %v551_v40, 2 }
 0x10c   :  { %v535_v43 = vrot.slane %v534_v41, 1  ;;  %v553_v44 = vadd.f32 %v552_v42, %v551_v40 }
 0x10e   :  { %v536_v45 = vadd.f32 %v535_v43, %v534_v41  ;;  %v554_v46 = vrot.slane %v553_v44, 1 }
 0x110   :  { %538 = vst.msk [vmem:[%s937_s3] sm:$0x1] %vm537_vm2, %v536_v45  ;;  %v555_v47 = vadd.f32 %v554_v46, %v553_v44 }
 0x112   :  { %556 = vst.msk [vmem:[%s938_s4] sm:$0x1] %vm537_vm2, %v555_v47 }

// kernel: unet2d_forward.84
= control target key start
LH: loop header
LB: loop body
LE: loop exit
PB: predicated region body
PF: predicated region fallthrough
CT: control target
= control target key end

     0   :  { %vm76_vm0 = vcmask 130048   ;;  %vm262_vm1 = vcmask 257024   ;;  %s484_s1 = inlined_call_operand.vmem [shape: bf16[16,32], index: 1, kind: input, shape index: {}]   ;;  %s485_s0 = inlined_call_operand.vmem [shape: bf16[128,16], index: 0, kind: input, shape index: {}]   ;;  %s486_s2 = inlined_call_operand.vmem [shape: bf16[128,32], index: 2, kind: output, shape index: {}]  }
   0x1   :  { %v361_v0 = vld [vmem:[%s484_s1] sm:$0xff]   ;;  %v364_v3 = vld [vmem:[%s485_s0 + $0x8] sm:$0xff]   ;;  %v366_v5 = vld [vmem:[%s485_s0 + $0x10] sm:$0xff]  }
   0x2   :  { %v362_v1 = vld [vmem:[%s485_s0] sm:$0xff]   ;;  %341 = vmatprep.subr.bf16.mxu0 %v361_v0  ;;  %359 = vmatprep.subr.bf16.mxu1 %v361_v0  ;;  %v365_v4 = vld [vmem:[%s485_s0 + $0x28] sm:$0xff]   ;;  %v367_v6 = vld [vmem:[%s485_s0 + $0x30] sm:$0xff]  }
   0x3   :  { %v363_v2 = vld [vmem:[%s485_s0 + $0x20] sm:$0xff]   ;;  %342 = vmatpush3.bf16.msra.mxu0 %v361_v0  ;;  %360 = vmatpush3.bf16.msra.mxu1 %v361_v0  ;;  %v368_v7 = vld [vmem:[%s485_s0 + $0x18] sm:$0xff]  }
   0x4   :  { %343 = vmatprep.mubr.msk.bf16.mxu0 %vm76_vm0, %v362_v1  ;;  %351 = vmatprep.mubr.msk.bf16.mxu1 %vm76_vm0, %v363_v2  ;;  %v369_v8 = vld [vmem:[%s485_s0 + $0x38] sm:$0xff]  }
   0x6   :  { %344 = vmatmul.mubr.msk.bf16.vlgmr.msra.gmra.mxu0 %vm76_vm0, %v364_v3  ;;  %352 = vmatmul.mubr.msk.bf16.vlgmr.msra.gmra.mxu1 %vm76_vm0, %v365_v4 }
   0x7   :  { %347 = vmatprep.mubr.msk.bf16.mxu0 %vm76_vm0, %v366_v5  ;;  %355 = vmatprep.mubr.msk.bf16.mxu1 %vm76_vm0, %v367_v6 }
   0xe   :  { %348 = vmatmul.mubr.msk.bf16.gmra.mxu0 %vm76_vm0, %v368_v7  ;;  %356 = vmatmul.mubr.msk.bf16.gmra.mxu1 %vm76_vm0, %v369_v8 }
  0xc6   :  { %v345_v9 = vpop.f32.mrf.mxu0  ;;  %v353_v10 = vpop.f32.mrf.mxu1 }
  0xc7   :  { %v318_v11 = vpack.c.bf16 %v345_v9, %v345_v9  ;;  %v326_v12 = vpack.c.bf16 %v353_v10, %v353_v10 }
  0xc8   :  { %v135_v13 = vpop.f32.mrf.mxu0  ;;  %v167_v14 = vpop.f32.mrf.mxu1 }
  0xc9   :  { %265 = vst.msk [vmem:[%s486_s2 + $0x8] sm:$0xf] %vm262_vm1, %v318_v11  ;;  %273 = vst.msk [vmem:[%s486_s2 + $0x28] sm:$0xf] %vm262_vm1, %v326_v12  ;;  %v316_v15 = vpack.c.bf16 %v135_v13, %v135_v13  ;;  %v324_v16 = vpack.c.bf16 %v167_v14, %v167_v14 }
  0xca   :  { %v346_v17 = vpop.f32.mrf.mxu0  ;;  %v354_v18 = vpop.f32.mrf.mxu1 }
  0xcb   :  { %263 = vst.msk [vmem:[%s486_s2] sm:$0xf] %vm262_vm1, %v316_v15  ;;  %271 = vst.msk [vmem:[%s486_s2 + $0x20] sm:$0xf] %vm262_vm1, %v324_v16  ;;  %v319_v19 = vpack.c.bf16 %v346_v17, %v346_v17  ;;  %v327_v20 = vpack.c.bf16 %v354_v18, %v354_v18 }
  0xcc   :  { %v138_v21 = vpop.f32.mrf.mxu0  ;;  %v170_v22 = vpop.f32.mrf.mxu1 }
  0xcd   :  { %266 = vst.msk [vmem:[%s486_s2 + $0xc] sm:$0xf] %vm262_vm1, %v319_v19  ;;  %274 = vst.msk [vmem:[%s486_s2 + $0x2c] sm:$0xf] %vm262_vm1, %v327_v20  ;;  %v317_v23 = vpack.c.bf16 %v138_v21, %v138_v21  ;;  %v325_v24 = vpack.c.bf16 %v170_v22, %v170_v22 }
  0xce   :  { %v349_v25 = vpop.f32.mrf.mxu0  ;;  %v357_v26 = vpop.f32.mrf.mxu1 }
  0xcf   :  { %264 = vst.msk [vmem:[%s486_s2 + $0x4] sm:$0xf] %vm262_vm1, %v317_v23  ;;  %272 = vst.msk [vmem:[%s486_s2 + $0x24] sm:$0xf] %vm262_vm1, %v325_v24  ;;  %v322_v27 = vpack.c.bf16 %v349_v25, %v349_v25  ;;  %v330_v28 = vpack.c.bf16 %v357_v26, %v357_v26 }
  0xd0   :  { %v151_v29 = vpop.f32.mrf.mxu0  ;;  %v183_v30 = vpop.f32.mrf.mxu1 }
  0xd1   :  { %269 = vst.msk [vmem:[%s486_s2 + $0x18] sm:$0xf] %vm262_vm1, %v322_v27  ;;  %277 = vst.msk [vmem:[%s486_s2 + $0x38] sm:$0xf] %vm262_vm1, %v330_v28  ;;  %v320_v31 = vpack.c.bf16 %v151_v29, %v151_v29  ;;  %v328_v32 = vpack.c.bf16 %v183_v30, %v183_v30 }
  0xd2   :  { %v350_v33 = vpop.f32.mrf.mxu0  ;;  %v358_v34 = vpop.f32.mrf.mxu1 }
  0xd3   :  { %267 = vst.msk [vmem:[%s486_s2 + $0x10] sm:$0xf] %vm262_vm1, %v320_v31  ;;  %275 = vst.msk [vmem:[%s486_s2 + $0x30] sm:$0xf] %vm262_vm1, %v328_v32  ;;  %v323_v35 = vpack.c.bf16 %v350_v33, %v350_v33  ;;  %v331_v36 = vpack.c.bf16 %v358_v34, %v358_v34 }
  0xd4   :  { %v154_v37 = vpop.f32.mrf.mxu0  ;;  %v186_v38 = vpop.f32.mrf.mxu1 }
  0xd5   :  { %270 = vst.msk [vmem:[%s486_s2 + $0x1c] sm:$0xf] %vm262_vm1, %v323_v35  ;;  %278 = vst.msk [vmem:[%s486_s2 + $0x3c] sm:$0xf] %vm262_vm1, %v331_v36  ;;  %v321_v39 = vpack.c.bf16 %v154_v37, %v154_v37  ;;  %v329_v40 = vpack.c.bf16 %v186_v38, %v186_v38 }
  0xd7   :  { %268 = vst.msk [vmem:[%s486_s2 + $0x14] sm:$0xf] %vm262_vm1, %v321_v39  ;;  %276 = vst.msk [vmem:[%s486_s2 + $0x34] sm:$0xf] %vm262_vm1, %v329_v40 }

// kernel: unet2d_forward.80
= control target key start
LH: loop header
LB: loop body
LE: loop exit
PB: predicated region body
PF: predicated region fallthrough
CT: control target
= control target key end

     0   :  { %vm311_vm0 = vcmask 261120   ;;  %vm530_vm1 = vcmask 130048   ;;  %vm584_vm2 = vcmask 122880   ;;  %s1147_s1 = inlined_call_operand.vmem [shape: bf16[288,16], index: 1, kind: input, shape index: {}]   ;;  %s1148_s0 = inlined_call_operand.vmem [shape: bf16[128,288], index: 0, kind: input, shape index: {}]   ;;  %s1149_s2 = inlined_call_operand.vmem [shape: f32[128,16], index: 2, kind: output, shape index: {0}]   ;;  %s1150_s3 = inlined_call_operand.vmem [shape: f32[1,1,16], index: 3, kind: output, shape index: {1}]   ;;  %s1151_s4 = inlined_call_operand.vmem [shape: f32[1,1,16], index: 4, kind: output, shape index: {2}]  }
   0x1   :  { %v812_v0 = vld [vmem:[%s1147_s1 + $0x78] sm:$0xff]   ;;  %v814_v2 = vld [vmem:[%s1147_s1 + $0x70] sm:$0xff]   ;;  %v816_v4 = vld [vmem:[%s1147_s1 + $0x68] sm:$0xff]  }
   0x2   :  { %v813_v1 = vld [vmem:[%s1147_s1 + $0x38] sm:$0xff]   ;;  %702 = vmatprep.subr.bf16.mxu0 %v812_v0  ;;  %796 = vmatprep.subr.bf16.mxu1 %v812_v0  ;;  %v815_v3 = vld [vmem:[%s1147_s1 + $0x30] sm:$0xff]   ;;  %v817_v5 = vld [vmem:[%s1147_s1 + $0x28] sm:$0xff]  }
   0x3   :  { %703 = vmatpush3.bf16.msra.mxu0 %v813_v1  ;;  %804 = vmatpush3.bf16.msra.mxu1 %v813_v1  ;;  %v818_v6 = vld [vmem:[%s1147_s1 + $0x60] sm:$0xff]   ;;  %v820_v8 = vld [vmem:[%s1147_s1 + $0x58] sm:$0xff]   ;;  %v822_v10 = vld [vmem:[%s1147_s1 + $0x50] sm:$0xff]  }
   0x4   :  { %704 = vmatprep.subr.bf16.mxu0 %v814_v2  ;;  %797 = vmatprep.subr.bf16.mxu1 %v814_v2  ;;  %v819_v7 = vld [vmem:[%s1147_s1 + $0x20] sm:$0xff]   ;;  %v821_v9 = vld [vmem:[%s1147_s1 + $0x18] sm:$0xff]   ;;  %v823_v13 = vld [vmem:[%s1147_s1 + $0x10] sm:$0xff]  }
   0x5   :  { %v830_v11 = vld [vmem:[%s1148_s0 + $0x4] ss:$12 sps:$4 sm:$0xff]   ;;  %v833_v12 = vld [vmem:[%s1148_s0 + $0x94] ss:$12 sps:$4 sm:$0xff]   ;;  %v824_v14 = vld [vmem:[%s1147_s1 + $0x48] sm:$0xff]  }
   0x6   :  { %368 = vmatprep.mubr.bf16.mxu0 %v830_v11  ;;  %416 = vmatprep.mubr.bf16.mxu1 %v833_v12  ;;  %v825_v15 = vld [vmem:[%s1147_s1 + $0x8] sm:$0xff]   ;;  %v826_v16 = vld [vmem:[%s1147_s1 + $0x40] sm:$0xff]   ;;  %v831_v20 = vld [vmem:[%s1148_s0 + $0x90] ss:$12 sps:$4 sm:$0xff]  }
   0x7   :  { %705 = vmatpush3.bf16.msra.mxu0 %v815_v3  ;;  %805 = vmatpush3.bf16.msra.mxu1 %v815_v3  ;;  %v827_v17 = vld [vmem:[%s1147_s1] sm:$0xff]   ;;  %v834_v19 = vld [vmem:[%s1147_s1 + $0x88] sm:$0xff]   ;;  %v845_v28 = vld [vmem:[%s1148_s0 + $0x30] ss:$12 sps:$4 sm:$0xff]  }
   0x8   :  { %706 = vmatprep.subr.bf16.mxu0 %v816_v4  ;;  %798 = vmatprep.subr.bf16.mxu1 %v816_v4  ;;  %v828_v18 = vld [vmem:[%s1148_s0] ss:$12 sps:$4 sm:$0xff]   ;;  %v835_v21 = vld [vmem:[%s1148_s0 + $0x1c] ss:$12 sps:$4 sm:$0xff]   ;;  %v839_v24 = vld [vmem:[%s1148_s0 + $0x18] ss:$12 sps:$4 sm:$0xff]  }
   0x9   :  { %v837_v22 = vld [vmem:[%s1148_s0 + $0xac] ss:$12 sps:$4 sm:$0xff]   ;;  %v841_v23 = vld [vmem:[%s1147_s1 + $0x80] sm:$0xff]   ;;  %v840_v25 = vld [vmem:[%s1148_s0 + $0xa8] ss:$12 sps:$4 sm:$0xff]  }
   0xa   :  { %v842_v26 = vld [vmem:[%s1148_s0 + $0x34] ss:$12 sps:$4 sm:$0xff]   ;;  %v847_v30 = vld [vmem:[%s1148_s0 + $0x4c] ss:$12 sps:$4 sm:$0xff]   ;;  %v851_v33 = vld [vmem:[%s1148_s0 + $0x50] ss:$12 sps:$4 sm:$0xff]  }
   0xb   :  { %707 = vmatpush3.bf16.msra.mxu0 %v817_v5  ;;  %806 = vmatpush3.bf16.msra.mxu1 %v817_v5  ;;  %v844_v27 = vld [vmem:[%s1148_s0 + $0x8] ss:$12 sps:$4 sm:$0xff]   ;;  %v846_v29 = vld [vmem:[%s1148_s0 + $0x20] ss:$12 sps:$4 sm:$0xff]   ;;  %v849_v31 = vld [vmem:[%s1148_s0 + $0x38] ss:$12 sps:$4 sm:$0xff]  }
   0xc   :  { %708 = vmatprep.subr.bf16.mxu0 %v818_v6  ;;  %799 = vmatprep.subr.bf16.mxu1 %v818_v6  ;;  %v850_v32 = vld [vmem:[%s1148_s0 + $0x48] ss:$12 sps:$4 sm:$0xff]   ;;  %v852_v34 = vld [vmem:[%s1148_s0 + $0x64] ss:$12 sps:$4 sm:$0xff]   ;;  %v855_v36 = vld [vmem:[%s1148_s0 + $0x60] ss:$12 sps:$4 sm:$0xff]  }
   0xd   :  { %v854_v35 = vld [vmem:[%s1148_s0 + $0x68] ss:$12 sps:$4 sm:$0xff]   ;;  %v856_v37 = vld [vmem:[%s1148_s0 + $0x80] ss:$12 sps:$4 sm:$0xff]   ;;  %v859_v39 = vld [vmem:[%s1148_s0 + $0x98] ss:$12 sps:$4 sm:$0xff]  }
   0xe   :  { %v857_v38 = vld [vmem:[%s1148_s0 + $0x7c] ss:$12 sps:$4 sm:$0xff]   ;;  %v860_v40 = vld [vmem:[%s1148_s0 + $0x78] ss:$12 sps:$4 sm:$0xff]  }
   0xf   :  { %709 = vmatpush3.bf16.msra.mxu0 %v819_v7  ;;  %807 = vmatpush3.bf16.msra.mxu1 %v819_v7  ;;  %v861_v41 = vld [vmem:[%s1148_s0 + $0xb0] ss:$12 sps:$4 sm:$0xff]  }
  0x10   :  { %710 = vmatprep.subr.bf16.mxu0 %v820_v8  ;;  %800 = vmatprep.subr.bf16.mxu1 %v820_v8 }
  0x13   :  { %711 = vmatpush3.bf16.msra.mxu0 %v821_v9  ;;  %808 = vmatpush3.bf16.msra.mxu1 %v821_v9 }
  0x14   :  { %712 = vmatprep.subr.bf16.mxu0 %v822_v10  ;;  %801 = vmatprep.subr.bf16.mxu1 %v822_v10 }
  0x17   :  { %713 = vmatpush3.bf16.msra.mxu0 %v823_v13  ;;  %809 = vmatpush3.bf16.msra.mxu1 %v823_v13 }
  0x18   :  { %714 = vmatprep.subr.bf16.mxu0 %v824_v14  ;;  %802 = vmatprep.subr.bf16.mxu1 %v824_v14 }
  0x1b   :  { %715 = vmatpush3.bf16.msra.mxu0 %v825_v15  ;;  %810 = vmatpush3.bf16.msra.mxu1 %v825_v15 }
  0x1c   :  { %716 = vmatprep.subr.bf16.mxu0 %v826_v16  ;;  %803 = vmatprep.subr.bf16.mxu1 %v826_v16 }
  0x1f   :  { %717 = vmatpush3.bf16.msra.mxu0 %v827_v17  ;;  %811 = vmatpush3.bf16.msra.mxu1 %v827_v17 }
  0x20   :  { %776 = vmatprep.subr.bf16.mxu1 %v834_v19 }
  0x22   :  { %369 = vmatmul.mubr.bf16.vlgmr.msra.gmra.mxu0 %v828_v18  ;;  %417 = vmatmul.mubr.bf16.vlgmr.msra.gmra.mxu1 %v831_v20 }
  0x23   :  { %777 = vmatpush3.bf16.msra.mxu1 %v834_v19  ;;  %376 = vmatprep.mubr.bf16.mxu0 %v835_v21 }
  0x24   :  { %424 = vmatprep.mubr.bf16.mxu1 %v837_v22  ;;  %778 = vmatprep.subr.bf16.mxu1 %v841_v23 }
  0x27   :  { %779 = vmatpush3.bf16.msra.mxu1 %v841_v23 }
  0x2a   :  { %377 = vmatmul.mubr.bf16.gmra.mxu0 %v839_v24  ;;  %425 = vmatmul.mubr.bf16.gmra.mxu1 %v840_v25 }
  0x2b   :  { %384 = vmatprep.mubr.bf16.mxu0 %v842_v26  ;;  %780 = vmatprep.mubr.msk.bf16.mxu1 %vm311_vm0, %v844_v27 }
  0x32   :  { %385 = vmatmul.mubr.bf16.gmra.mxu0 %v845_v28  ;;  %781 = vmatmul.mubr.msk.bf16.vlgmr.msra.gmra.mxu1 %vm311_vm0, %v846_v29 }
  0x33   :  { %392 = vmatprep.mubr.bf16.mxu0 %v847_v30  ;;  %784 = vmatprep.mubr.msk.bf16.mxu1 %vm311_vm0, %v849_v31 }
  0x3a   :  { %393 = vmatmul.mubr.bf16.gmra.mxu0 %v850_v32  ;;  %785 = vmatmul.mubr.msk.bf16.gmra.mxu1 %vm311_vm0, %v851_v33 }
  0x3b   :  { %400 = vmatprep.mubr.bf16.mxu0 %v852_v34  ;;  %788 = vmatprep.mubr.msk.bf16.mxu1 %vm311_vm0, %v854_v35 }
  0x42   :  { %401 = vmatmul.mubr.bf16.gmra.mxu0 %v855_v36  ;;  %789 = vmatmul.mubr.msk.bf16.gmra.mxu1 %vm311_vm0, %v856_v37 }
  0x43   :  { %408 = vmatprep.mubr.bf16.mxu0 %v857_v38  ;;  %792 = vmatprep.mubr.msk.bf16.mxu1 %vm311_vm0, %v859_v39 }
  0x4a   :  { %409 = vmatmul.mubr.bf16.gmra.mxu0 %v860_v40  ;;  %793 = vmatmul.mubr.msk.bf16.gmra.mxu1 %vm311_vm0, %v861_v41 }
  0xe2   :  { %v718_v42 = vpop.f32.mrf.mxu0  ;;  %v1021_v43 = vpop.f32.mrf.mxu1 }
  0xe4   :  { %v719_v44 = vpop.f32.mrf.mxu0  ;;  %v1023_v45 = vpop.f32.mrf.mxu1 }
  0xe5   :  { %v720_v61 = vadd.f32 %v719_v44, %v718_v42 }
  0xe6   :  { %v721_v46 = vpop.f32.mrf.mxu0  ;;  %v1025_v47 = vpop.f32.mrf.mxu1 }
  0xe8   :  { %v722_v48 = vpop.f32.mrf.mxu0  ;;  %v1027_v49 = vpop.f32.mrf.mxu1 }
  0xe9   :  { %v723_v6 = vadd.f32 %v722_v48, %v721_v46 }
  0xea   :  { %v724_v50 = vpop.f32.mrf.mxu0  ;;  %v1029_v51 = vpop.f32.mrf.mxu1 }
  0xec   :  { %v725_v52 = vpop.f32.mrf.mxu0  ;;  %v1031_v53 = vpop.f32.mrf.mxu1 }
  0xed   :  { %v726_v58 = vadd.f32 %v725_v52, %v724_v50 }
  0xee   :  { %v727_v54 = vpop.f32.mrf.mxu0  ;;  %v1033_v55 = vpop.f32.mrf.mxu1 }
  0xf0   :  { %v728_v56 = vpop.f32.mrf.mxu0  ;;  %v1035_v57 = vpop.f32.mrf.mxu1 }
  0xf1   :  { %v729_v1 = vadd.f32 %v728_v56, %v727_v54 }
  0xf2   :  { %v730_v59 = vpop.f32.mrf.mxu0  ;;  %v782_v60 = vpop.f32.mrf.mxu1 }
  0xf3   :  { %v476_v62 = vadd.f32 %v782_v60, %v726_v58 }
  0xf4   :  { %v731_v63 = vpop.f32.mrf.mxu0  ;;  %v467_v0 = vpop.f32.mrf.mxu1 }
  0xf5   :  { %533 = vst.msk [vmem:[%s1149_s2 + $0x10] sm:$0xff] %vm530_vm1, %v476_v62  ;;  %v468_v2 = vadd.f32 %v720_v61, %v467_v0  ;;  %v732_v13 = vadd.f32 %v731_v63, %v730_v59  ;;  %v588_v14 = vmul.f32 %v476_v62, %v476_v62  ;;  %v550_v23 = vsel %vm530_vm1, %v476_v62, 0.0 }
  0xf6   :  { %v733_v3 = vpop.f32.mrf.mxu0  ;;  %v783_v4 = vpop.f32.mrf.mxu1 }
  0xf7   :  { %531 = vst.msk [vmem:[%s1149_s2] sm:$0xff] %vm530_vm1, %v468_v2  ;;  %v479_v5 = vadd.f32 %v783_v4, %v729_v1  ;;  %v586_v9 = vmul.f32 %v468_v2, %v468_v2  ;;  %v547_v15 = vsel %vm530_vm1, %v468_v2, 0.0  ;;  %v605_v32 = vsel %vm530_vm1, %v588_v14, 0.0 }
  0xf8   :  { %v734_v7 = vpop.f32.mrf.mxu0  ;;  %v470_v8 = vpop.f32.mrf.mxu1 }
  0xf9   :  { %534 = vst.msk [vmem:[%s1149_s2 + $0x18] sm:$0xff] %vm530_vm1, %v479_v5  ;;  %v471_v10 = vadd.f32 %v723_v6, %v470_v8  ;;  %v602_v24 = vsel %vm530_vm1, %v586_v9, 0.0  ;;  %v589_v25 = vmul.f32 %v479_v5, %v479_v5  ;;  %v552_v33 = vsel %vm530_vm1, %v479_v5, 0.0 }
  0xfa   :  { %v736_v11 = vpop.f32.mrf.mxu0  ;;  %v786_v12 = vpop.f32.mrf.mxu1  ;;  %v735_v34 = vadd.f32 %v734_v7, %v733_v3 }
  0xfb   :  { %532 = vst.msk [vmem:[%s1149_s2 + $0x8] sm:$0xff] %vm530_vm1, %v471_v10  ;;  %v548_v16 = vsel %vm530_vm1, %v471_v10, 0.0  ;;  %v587_v17 = vmul.f32 %v471_v10, %v471_v10  ;;  %v607_v40 = vsel %vm530_vm1, %v589_v25, 0.0  ;;  %v762_v10 = vadd.f32 %v1031_v53, %v1029_v51 }
  0xfc   :  { %v737_v18 = vpop.f32.mrf.mxu0  ;;  %v483_v19 = vpop.f32.mrf.mxu1  ;;  %v549_v20 = vadd.f32 %v548_v16, %v547_v15 }
  0xfd   :  { %v738_v21 = vadd.f32 %v737_v18, %v736_v11  ;;  %v484_v22 = vadd.f32 %v732_v13, %v483_v19  ;;  %v603_v26 = vsel %vm530_vm1, %v587_v17, 0.0  ;;  %v756_v19 = vadd.f32 %v1023_v45, %v1021_v43 }
  0xfe   :  { %v739_v27 = vpop.f32.mrf.mxu0  ;;  %v787_v28 = vpop.f32.mrf.mxu1  ;;  %v551_v29 = vadd.f32 %v550_v23, %v549_v20  ;;  %v604_v30 = vadd.f32 %v603_v26, %v602_v24  ;;  %v765_v23 = vadd.f32 %v1035_v57, %v1033_v55 }
  0xff   :  { %v492_v31 = vadd.f32 %v786_v12, %v738_v21  ;;  %535 = vst.msk [vmem:[%s1149_s2 + $0x20] sm:$0xff] %vm530_vm1, %v484_v22  ;;  %v590_v35 = vmul.f32 %v484_v22, %v484_v22  ;;  %v554_v41 = vsel %vm530_vm1, %v484_v22, 0.0 }
 0x100   :  { %v740_v36 = vpop.f32.mrf.mxu0  ;;  %v486_v37 = vpop.f32.mrf.mxu1  ;;  %v606_v38 = vadd.f32 %v605_v32, %v604_v30  ;;  %v553_v39 = vadd.f32 %v552_v33, %v551_v29 }
 0x101   :  { %537 = vst.msk [vmem:[%s1149_s2 + $0x30] sm:$0xff] %vm530_vm1, %v492_v31  ;;  %v741_v42 = vadd.f32 %v740_v36, %v739_v27  ;;  %v487_v44 = vadd.f32 %v735_v34, %v486_v37  ;;  %v609_v54 = vsel %vm530_vm1, %v590_v35, 0.0  ;;  %v592_v1 = vmul.f32 %v492_v31, %v492_v31 }
 0x102   :  { %v742_v46 = vpop.f32.mrf.mxu0  ;;  %v790_v48 = vpop.f32.mrf.mxu1  ;;  %v555_v50 = vadd.f32 %v554_v41, %v553_v39  ;;  %v608_v52 = vadd.f32 %v607_v40, %v606_v38  ;;  %v558_v7 = vsel %vm530_vm1, %v492_v31, 0.0  ;;  %v759_v35 = vadd.f32 %v1027_v49, %v1025_v47 }
 0x103   :  { %v495_v56 = vadd.f32 %v787_v28, %v741_v42  ;;  %536 = vst.msk [vmem:[%s1149_s2 + $0x28] sm:$0xff] %vm530_vm1, %v487_v44  ;;  %v556_v58 = vsel %vm530_vm1, %v487_v44, 0.0  ;;  %v591_v59 = vmul.f32 %v487_v44, %v487_v44  ;;  %v613_v12 = vsel %vm530_vm1, %v592_v1, 0.0 }
 0x104   :  { %v743_v60 = vpop.f32.mrf.mxu0  ;;  %v499_v61 = vpop.f32.mrf.mxu1  ;;  %v610_v62 = vadd.f32 %v609_v54, %v608_v52  ;;  %v557_v63 = vadd.f32 %v556_v58, %v555_v50 }
 0x105   :  { %v744_v0 = vadd.f32 %v743_v60, %v742_v46  ;;  %538 = vst.msk [vmem:[%s1149_s2 + $0x38] sm:$0xff] %vm530_vm1, %v495_v56  ;;  %v611_v2 = vsel %vm530_vm1, %v591_v59, 0.0  ;;  %v593_v13 = vmul.f32 %v495_v56, %v495_v56  ;;  %v560_v20 = vsel %vm530_vm1, %v495_v56, 0.0 }
 0x106   :  { %v745_v3 = vpop.f32.mrf.mxu0  ;;  %v791_v4 = vpop.f32.mrf.mxu1  ;;  %v612_v5 = vadd.f32 %v611_v2, %v610_v62  ;;  %v559_v11 = vadd.f32 %v558_v7, %v557_v63 }
 0x107   :  { %v500_v6 = vadd.f32 %v744_v0, %v499_v61  ;;  %v615_v26 = vsel %vm530_vm1, %v593_v13, 0.0 }
 0x108   :  { %v746_v8 = vpop.f32.mrf.mxu0  ;;  %v502_v9 = vpop.f32.mrf.mxu1  ;;  %v614_v17 = vadd.f32 %v613_v12, %v612_v5  ;;  %v561_v24 = vadd.f32 %v560_v20, %v559_v11 }
 0x109   :  { %539 = vst.msk [vmem:[%s1149_s2 + $0x40] sm:$0xff] %vm530_vm1, %v500_v6  ;;  %v747_v14 = vadd.f32 %v746_v8, %v745_v3  ;;  %v594_v51 = vmul.f32 %v500_v6, %v500_v6  ;;  %v562_v43 = vsel %vm530_vm1, %v500_v6, 0.0 }
 0x10a   :  { %v748_v15 = vpop.f32.mrf.mxu0  ;;  %v794_v16 = vpop.f32.mrf.mxu1  ;;  %v616_v57 = vadd.f32 %v615_v26, %v614_v17  ;;  %v563_v36 = vadd.f32 %v562_v43, %v561_v24 }
 0x10b   :  { %v524_v18 = vadd.f32 %v794_v16, %v762_v10  ;;  %v503_v53 = vadd.f32 %v747_v14, %v502_v9  ;;  %v617_v31 = vsel %vm530_vm1, %v594_v51, 0.0 }
 0x10c   :  { %v749_v21 = vpop.f32.mrf.mxu0  ;;  %v515_v22 = vpop.f32.mrf.mxu1  ;;  %v618_v41 = vadd.f32 %v617_v31, %v616_v57 }
 0x10d   :  { %545 = vst.msk [vmem:[%s1149_s2 + $0x70] sm:$0xff] %vm530_vm1, %v524_v18  ;;  %v750_v25 = vadd.f32 %v749_v21, %v748_v15  ;;  %540 = vst.msk [vmem:[%s1149_s2 + $0x48] sm:$0xff] %vm530_vm1, %v503_v53  ;;  %v595_v45 = vmul.f32 %v503_v53, %v503_v53  ;;  %v516_v27 = vadd.f32 %v756_v19, %v515_v22  ;;  %v564_v32 = vsel %vm530_vm1, %v503_v53, 0.0 }
 0x10e   :  { %v751_v28 = vpop.f32.mrf.mxu0  ;;  %v795_v55 = vpop.f32.mrf.mxu1  ;;  %v565_v42 = vadd.f32 %v564_v32, %v563_v36  ;;  %v600_v0 = vmul.f32 %v524_v18, %v524_v18  ;;  %v574_v5 = vsel %vm530_vm1, %v524_v18, 0.0 }
 0x10f   :  { %v508_v29 = vadd.f32 %v790_v48, %v750_v25  ;;  %v527_v30 = vadd.f32 %v795_v55, %v765_v23  ;;  %543 = vst.msk [vmem:[%s1149_s2 + $0x60] sm:$0xff] %vm530_vm1, %v516_v27  ;;  %v619_v38 = vsel %vm530_vm1, %v595_v45, 0.0  ;;  %v598_v50 = vmul.f32 %v516_v27, %v516_v27 }
 0x110   :  { %v752_v33 = vpop.f32.mrf.mxu0  ;;  %v518_v34 = vpop.f32.mrf.mxu1  ;;  %v620_v46 = vadd.f32 %v619_v38, %v618_v41  ;;  %v570_v59 = vsel %vm530_vm1, %v516_v27, 0.0  ;;  %v629_v10 = vsel %vm530_vm1, %v600_v0, 0.0 }
 0x111   :  { %541 = vst.msk [vmem:[%s1149_s2 + $0x50] sm:$0xff] %vm530_vm1, %v508_v29  ;;  %v596_v37 = vmul.f32 %v508_v29, %v508_v29  ;;  %546 = vst.msk [vmem:[%s1149_s2 + $0x78] sm:$0xff] %vm530_vm1, %v527_v30  ;;  %v566_v39 = vsel %vm530_vm1, %v508_v29, 0.0  ;;  %v753_v40 = vadd.f32 %v752_v33, %v751_v28  ;;  %v519_v47 = vadd.f32 %v759_v35, %v518_v34 }
 0x112   :  { %v567_v48 = vadd.f32 %v566_v39, %v565_v42  ;;  %v625_v1 = vsel %vm530_vm1, %v598_v50, 0.0  ;;  %v601_v6 = vmul.f32 %v527_v30, %v527_v30  ;;  %v576_v11 = vsel %vm530_vm1, %v527_v30, 0.0 }
 0x113   :  { %v621_v49 = vsel %vm530_vm1, %v596_v37, 0.0  ;;  %v511_v44 = vadd.f32 %v791_v4, %v753_v40  ;;  %544 = vst.msk [vmem:[%s1149_s2 + $0x68] sm:$0xff] %vm530_vm1, %v519_v47  ;;  %v599_v61 = vmul.f32 %v519_v47, %v519_v47  ;;  %v572_v2 = vsel %vm530_vm1, %v519_v47, 0.0 }
 0x114   :  { %v622_v56 = vadd.f32 %v621_v49, %v620_v46  ;;  %v631_v14 = vsel %vm530_vm1, %v601_v6, 0.0 }
 0x115   :  { %542 = vst.msk [vmem:[%s1149_s2 + $0x58] sm:$0xff] %vm530_vm1, %v511_v44  ;;  %v568_v52 = vsel %vm530_vm1, %v511_v44, 0.0  ;;  %v597_v54 = vmul.f32 %v511_v44, %v511_v44  ;;  %v627_v7 = vsel %vm530_vm1, %v599_v61, 0.0 }
 0x116   :  { %v569_v58 = vadd.f32 %v568_v52, %v567_v48 }
 0x117   :  { %v623_v60 = vsel %vm530_vm1, %v597_v54, 0.0 }
 0x118   :  { %v624_v62 = vadd.f32 %v623_v60, %v622_v56  ;;  %v571_v63 = vadd.f32 %v570_v59, %v569_v58 }
 0x11a   :  { %v573_v3 = vadd.f32 %v572_v2, %v571_v63  ;;  %v626_v4 = vadd.f32 %v625_v1, %v624_v62 }
 0x11c   :  { %v575_v8 = vadd.f32 %v574_v5, %v573_v3  ;;  %v628_v9 = vadd.f32 %v627_v7, %v626_v4 }
 0x11e   :  { %v577_v12 = vadd.f32 %v576_v11, %v575_v8  ;;  %v630_v13 = vadd.f32 %v629_v10, %v628_v9 }
 0x120   :  { %v578_v15 = vrot.slane %v577_v12, 4  ;;  %v632_v16 = vadd.f32 %v631_v14, %v630_v13 }
 0x122   :  { %v579_v17 = vadd.f32 %v578_v15, %v577_v12  ;;  %v633_v19 = vrot.slane %v632_v16, 4 }
 0x124   :  { %v580_v20 = vrot.slane %v579_v17, 2  ;;  %v634_v51 = vadd.f32 %v633_v19, %v632_v16 }
 0x126   :  { %v581_v18 = vadd.f32 %v580_v20, %v579_v17  ;;  %v635_v53 = vrot.slane %v634_v51, 2 }
 0x128   :  { %v582_v21 = vrot.slane %v581_v18, 1  ;;  %v636_v22 = vadd.f32 %v635_v53, %v634_v51 }
 0x12a   :  { %v583_v23 = vadd.f32 %v582_v21, %v581_v18  ;;  %v637_v24 = vrot.slane %v636_v22, 1 }
 0x12c   :  { %585 = vst.msk [vmem:[%s1150_s3] sm:$0x1] %vm584_vm2, %v583_v23  ;;  %v638_v25 = vadd.f32 %v637_v24, %v636_v22 }
 0x12e   :  { %639 = vst.msk [vmem:[%s1151_s4] sm:$0x1] %vm584_vm2, %v638_v25 }

// kernel: unet2d_forward.85
= control target key start
LH: loop header
LB: loop body
LE: loop exit
PB: predicated region body
PF: predicated region fallthrough
CT: control target
= control target key end

     0   :  { %v1464_v0 = vmov 0   ;;  %vm439_vm0 = vcmask 130048   ;;  %vm825_vm1 = vcmask 64512   ;;  %vm1023_vm2 = vcmask 57344   ;;  %s2461_s1 = inlined_call_operand.vmem [shape: bf16[144,8], index: 1, kind: input, shape index: {}]   ;;  %s2462_s0 = inlined_call_operand.vmem [shape: bf16[512,144], index: 0, kind: input, shape index: {}]   ;;  %s2463_s2 = inlined_call_operand.vmem [shape: f32[512,8], index: 2, kind: output, shape index: {0}]   ;;  %s2464_s3 = inlined_call_operand.vmem [shape: f32[1,1,8], index: 3, kind: output, shape index: {1}]   ;;  %s2465_s4 = inlined_call_operand.vmem [shape: f32[1,1,8], index: 4, kind: output, shape index: {2}]  }
   0x1   :  { %536 = vmatprep.subr.bf16.mxu0 %v1464_v0  ;;  %v1359_v1 = vld [vmem:[%s2461_s1 + $0x38] sm:$0xff]   ;;  %1340 = vmatprep.subr.bf16.mxu1 %v1464_v0  ;;  %v1360_v2 = vld [vmem:[%s2461_s1 + $0x30] sm:$0xff]   ;;  %v1361_v3 = vld [vmem:[%s2461_s1 + $0x28] sm:$0xff]  }
   0x2   :  { %537 = vmatpush1.bf16.msra.mxu0 %v1359_v1  ;;  %1349 = vmatpush1.bf16.msra.mxu1 %v1359_v1  ;;  %v1362_v4 = vld [vmem:[%s2461_s1 + $0x20] sm:$0xff]   ;;  %v1363_v6 = vld [vmem:[%s2461_s1 + $0x18] sm:$0xff]   ;;  %v1364_v7 = vld [vmem:[%s2461_s1 + $0x10] sm:$0xff]  }
   0x3   :  { %538 = vmatprep.subr.bf16.mxu0 %v1464_v0  ;;  %1341 = vmatprep.subr.bf16.mxu1 %v1464_v0  ;;  %v1370_v5 = vld [vmem:[%s2462_s0 + $0x4] ss:$8 sps:$4 sm:$0xff]   ;;  %v1368_v12 = vld [vmem:[%s2462_s0] ss:$8 sps:$4 sm:$0xff]   ;;  %v1371_v13 = vld [vmem:[%s2462_s0 + $0x14] ss:$8 sps:$4 sm:$0xff]  }
   0x4   :  { %1308 = vmatprep.mubr.msk.bf16.mxu0 %vm439_vm0, %v1370_v5  ;;  %v1394_v8 = vld [vmem:[%s2462_s0 + $0x104] ss:$8 sps:$4 sm:$0xff]   ;;  %v1392_v14 = vld [vmem:[%s2462_s0 + $0x100] ss:$8 sps:$4 sm:$0xff]   ;;  %v1398_v15 = vld [vmem:[%s2462_s0 + $0x114] ss:$8 sps:$4 sm:$0xff]  }
   0x5   :  { %v1365_v9 = vld [vmem:[%s2461_s1 + $0x8] sm:$0xff]   ;;  %1324 = vmatprep.mubr.msk.bf16.mxu1 %vm439_vm0, %v1394_v8  ;;  %v1366_v10 = vld [vmem:[%s2461_s1] sm:$0xff]   ;;  %v1373_v16 = vld [vmem:[%s2462_s0 + $0x10] ss:$8 sps:$4 sm:$0xff]  }
   0x6   :  { %539 = vmatpush1.bf16.msra.mxu0 %v1360_v2  ;;  %1350 = vmatpush1.bf16.msra.mxu1 %v1360_v2  ;;  %v1367_v11 = vld [vmem:[%s2461_s1 + $0x40] sm:$0xff]   ;;  %v1400_v18 = vld [vmem:[%s2462_s0 + $0x110] ss:$8 sps:$4 sm:$0xff]   ;;  %v1377_v21 = vld [vmem:[%s2462_s0 + $0x34] ss:$8 sps:$4 sm:$0xff]  }
   0x7   :  { %540 = vmatprep.subr.bf16.mxu0 %v1464_v0  ;;  %1342 = vmatprep.subr.bf16.mxu1 %v1464_v0  ;;  %v1374_v17 = vld [vmem:[%s2462_s0 + $0x24] ss:$8 sps:$4 sm:$0xff]   ;;  %v1376_v20 = vld [vmem:[%s2462_s0 + $0x20] ss:$8 sps:$4 sm:$0xff]   ;;  %v1410_v23 = vld [vmem:[%s2462_s0 + $0x134] ss:$8 sps:$4 sm:$0xff]  }
   0x8   :  { %v1404_v19 = vld [vmem:[%s2462_s0 + $0x124] ss:$8 sps:$4 sm:$0xff]   ;;  %v1406_v22 = vld [vmem:[%s2462_s0 + $0x120] ss:$8 sps:$4 sm:$0xff]   ;;  %v1379_v24 = vld [vmem:[%s2462_s0 + $0x30] ss:$8 sps:$4 sm:$0xff]  }
   0x9   :  { %v1412_v25 = vld [vmem:[%s2462_s0 + $0x130] ss:$8 sps:$4 sm:$0xff]   ;;  %v1380_v26 = vld [vmem:[%s2462_s0 + $0x44] ss:$8 sps:$4 sm:$0xff]   ;;  %v1382_v28 = vld [vmem:[%s2462_s0 + $0x40] ss:$8 sps:$4 sm:$0xff]  }
   0xa   :  { %541 = vmatpush1.bf16.msra.mxu0 %v1361_v3  ;;  %1351 = vmatpush1.bf16.msra.mxu1 %v1361_v3  ;;  %v1416_v27 = vld [vmem:[%s2462_s0 + $0x144] ss:$8 sps:$4 sm:$0xff]   ;;  %v1418_v29 = vld [vmem:[%s2462_s0 + $0x140] ss:$8 sps:$4 sm:$0xff]   ;;  %v1383_v30 = vld [vmem:[%s2462_s0 + $0x54] ss:$8 sps:$4 sm:$0xff]  }
   0xb   :  { %542 = vmatprep.subr.bf16.mxu0 %v1464_v0  ;;  %1343 = vmatprep.subr.bf16.mxu1 %v1464_v0  ;;  %v1422_v31 = vld [vmem:[%s2462_s0 + $0x154] ss:$8 sps:$4 sm:$0xff]   ;;  %v1385_v32 = vld [vmem:[%s2462_s0 + $0x50] ss:$8 sps:$4 sm:$0xff]   ;;  %v1386_v34 = vld [vmem:[%s2462_s0 + $0x64] ss:$8 sps:$4 sm:$0xff]  }
   0xc   :  { %v1424_v33 = vld [vmem:[%s2462_s0 + $0x150] ss:$8 sps:$4 sm:$0xff]   ;;  %v1428_v35 = vld [vmem:[%s2462_s0 + $0x164] ss:$8 sps:$4 sm:$0xff]   ;;  %v1388_v36 = vld [vmem:[%s2462_s0 + $0x60] ss:$8 sps:$4 sm:$0xff]  }
   0xd   :  { %v1430_v37 = vld [vmem:[%s2462_s0 + $0x160] ss:$8 sps:$4 sm:$0xff]   ;;  %v1389_v38 = vld [vmem:[%s2462_s0 + $0x74] ss:$8 sps:$4 sm:$0xff]   ;;  %v1391_v40 = vld [vmem:[%s2462_s0 + $0x70] ss:$8 sps:$4 sm:$0xff]  }
   0xe   :  { %543 = vmatpush1.bf16.msra.mxu0 %v1362_v4  ;;  %1352 = vmatpush1.bf16.msra.mxu1 %v1362_v4  ;;  %v1434_v39 = vld [vmem:[%s2462_s0 + $0x174] ss:$8 sps:$4 sm:$0xff]   ;;  %v1436_v41 = vld [vmem:[%s2462_s0 + $0x170] ss:$8 sps:$4 sm:$0xff]   ;;  %v1395_v42 = vld [vmem:[%s2462_s0 + $0x84] ss:$8 sps:$4 sm:$0xff]  }
   0xf   :  { %544 = vmatprep.subr.bf16.mxu0 %v1464_v0  ;;  %1344 = vmatprep.subr.bf16.mxu1 %v1464_v0  ;;  %v1440_v43 = vld [vmem:[%s2462_s0 + $0x184] ss:$8 sps:$4 sm:$0xff]   ;;  %v1397_v44 = vld [vmem:[%s2462_s0 + $0x80] ss:$8 sps:$4 sm:$0xff]   ;;  %v1401_v46 = vld [vmem:[%s2462_s0 + $0x94] ss:$8 sps:$4 sm:$0xff]  }
  0x10   :  { %v1442_v45 = vld [vmem:[%s2462_s0 + $0x180] ss:$8 sps:$4 sm:$0xff]   ;;  %v1443_v47 = vld [vmem:[%s2462_s0 + $0x194] ss:$8 sps:$4 sm:$0xff]   ;;  %v1403_v48 = vld [vmem:[%s2462_s0 + $0x90] ss:$8 sps:$4 sm:$0xff]  }
  0x11   :  { %v1445_v49 = vld [vmem:[%s2462_s0 + $0x190] ss:$8 sps:$4 sm:$0xff]   ;;  %v1407_v50 = vld [vmem:[%s2462_s0 + $0xa4] ss:$8 sps:$4 sm:$0xff]   ;;  %v1409_v52 = vld [vmem:[%s2462_s0 + $0xa0] ss:$8 sps:$4 sm:$0xff]  }
  0x12   :  { %545 = vmatpush1.bf16.msra.mxu0 %v1363_v6  ;;  %1353 = vmatpush1.bf16.msra.mxu1 %v1363_v6  ;;  %v1446_v51 = vld [vmem:[%s2462_s0 + $0x1a4] ss:$8 sps:$4 sm:$0xff]   ;;  %v1448_v53 = vld [vmem:[%s2462_s0 + $0x1a0] ss:$8 sps:$4 sm:$0xff]   ;;  %v1413_v54 = vld [vmem:[%s2462_s0 + $0xb4] ss:$8 sps:$4 sm:$0xff]  }
  0x13   :  { %546 = vmatprep.subr.bf16.mxu0 %v1464_v0  ;;  %1345 = vmatprep.subr.bf16.mxu1 %v1464_v0  ;;  %v1449_v55 = vld [vmem:[%s2462_s0 + $0x1b4] ss:$8 sps:$4 sm:$0xff]   ;;  %v1415_v56 = vld [vmem:[%s2462_s0 + $0xb0] ss:$8 sps:$4 sm:$0xff]   ;;  %v1419_v58 = vld [vmem:[%s2462_s0 + $0xc4] ss:$8 sps:$4 sm:$0xff]  }
  0x14   :  { %v1451_v57 = vld [vmem:[%s2462_s0 + $0x1b0] ss:$8 sps:$4 sm:$0xff]   ;;  %v1452_v59 = vld [vmem:[%s2462_s0 + $0x1c4] ss:$8 sps:$4 sm:$0xff]   ;;  %v1421_v60 = vld [vmem:[%s2462_s0 + $0xc0] ss:$8 sps:$4 sm:$0xff]  }
  0x15   :  { %v1454_v61 = vld [vmem:[%s2462_s0 + $0x1c0] ss:$8 sps:$4 sm:$0xff]   ;;  %v1425_v62 = vld [vmem:[%s2462_s0 + $0xd4] ss:$8 sps:$4 sm:$0xff]   ;;  %v1457_v1 = vld [vmem:[%s2462_s0 + $0x1d0] ss:$8 sps:$4 sm:$0xff]  }
  0x16   :  { %547 = vmatpush1.bf16.msra.mxu0 %v1364_v7  ;;  %1354 = vmatpush1.bf16.msra.mxu1 %v1364_v7  ;;  %v1455_v63 = vld [vmem:[%s2462_s0 + $0x1d4] ss:$8 sps:$4 sm:$0xff]   ;;  %v1431_v2 = vld [vmem:[%s2462_s0 + $0xe4] ss:$8 sps:$4 sm:$0xff]   ;;  %v1433_v4 = vld [vmem:[%s2462_s0 + $0xe0] ss:$8 sps:$4 sm:$0xff]  }
  0x17   :  { %548 = vmatprep.subr.bf16.mxu0 %v1464_v0  ;;  %1346 = vmatprep.subr.bf16.mxu1 %v1464_v0  ;;  %v1458_v3 = vld [vmem:[%s2462_s0 + $0x1e4] ss:$8 sps:$4 sm:$0xff]   ;;  %v1460_v5 = vld [vmem:[%s2462_s0 + $0x1e0] ss:$8 sps:$4 sm:$0xff]   ;;  %v1437_v6 = vld [vmem:[%s2462_s0 + $0xf4] ss:$8 sps:$4 sm:$0xff]  }
  0x18   :  { %v1461_v7 = vld [vmem:[%s2462_s0 + $0x1f4] ss:$8 sps:$4 sm:$0xff]   ;;  %v1439_v8 = vld [vmem:[%s2462_s0 + $0xf0] ss:$8 sps:$4 sm:$0xff]  }
  0x1a   :  { %549 = vmatpush1.bf16.msra.mxu0 %v1365_v9  ;;  %1355 = vmatpush1.bf16.msra.mxu1 %v1365_v9  ;;  %v1463_v9 = vld [vmem:[%s2462_s0 + $0x1f0] ss:$8 sps:$4 sm:$0xff]  }
  0x1b   :  { %550 = vmatprep.subr.bf16.mxu0 %v1464_v0  ;;  %1347 = vmatprep.subr.bf16.mxu1 %v1464_v0 }
  0x1e   :  { %551 = vmatpush1.bf16.msra.mxu0 %v1366_v10  ;;  %1356 = vmatpush1.bf16.msra.mxu1 %v1366_v10 }
  0x1f   :  { %566 = vmatprep.subr.bf16.mxu0 %v1464_v0  ;;  %1348 = vmatprep.subr.bf16.mxu1 %v1464_v0  ;;  %v1427_v0 = vld [vmem:[%s2462_s0 + $0xd0] ss:$8 sps:$4 sm:$0xff]  }
  0x22   :  { %567 = vmatpush2.bf16.msra.mxu0 %v1367_v11  ;;  %1357 = vmatpush2.bf16.msra.mxu1 %v1367_v11 }
  0x25   :  { %569 = vmatmul.mubr.bf16.vlgmr.msra.gmra.mxu0 %v1368_v12  ;;  %697 = vmatmul.mubr.bf16.vlgmr.msra.gmra.mxu1 %v1392_v14 }
  0x26   :  { %1309 = vmatprep.mubr.msk.bf16.mxu0 %vm439_vm0, %v1371_v13  ;;  %1325 = vmatprep.mubr.msk.bf16.mxu1 %vm439_vm0, %v1398_v15 }
  0x2d   :  { %577 = vmatmul.mubr.bf16.gmra.mxu0 %v1373_v16  ;;  %705 = vmatmul.mubr.bf16.gmra.mxu1 %v1400_v18 }
  0x2e   :  { %1310 = vmatprep.mubr.msk.bf16.mxu0 %vm439_vm0, %v1374_v17  ;;  %1326 = vmatprep.mubr.msk.bf16.mxu1 %vm439_vm0, %v1404_v19 }
  0x35   :  { %585 = vmatmul.mubr.bf16.gmra.mxu0 %v1376_v20  ;;  %713 = vmatmul.mubr.bf16.gmra.mxu1 %v1406_v22 }
  0x36   :  { %1311 = vmatprep.mubr.msk.bf16.mxu0 %vm439_vm0, %v1377_v21  ;;  %1327 = vmatprep.mubr.msk.bf16.mxu1 %vm439_vm0, %v1410_v23 }
  0x3d   :  { %593 = vmatmul.mubr.bf16.gmra.mxu0 %v1379_v24  ;;  %721 = vmatmul.mubr.bf16.gmra.mxu1 %v1412_v25 }
  0x3e   :  { %1312 = vmatprep.mubr.msk.bf16.mxu0 %vm439_vm0, %v1380_v26  ;;  %1328 = vmatprep.mubr.msk.bf16.mxu1 %vm439_vm0, %v1416_v27 }
  0x45   :  { %601 = vmatmul.mubr.bf16.gmra.mxu0 %v1382_v28  ;;  %729 = vmatmul.mubr.bf16.gmra.mxu1 %v1418_v29 }
  0x46   :  { %1313 = vmatprep.mubr.msk.bf16.mxu0 %vm439_vm0, %v1383_v30  ;;  %1329 = vmatprep.mubr.msk.bf16.mxu1 %vm439_vm0, %v1422_v31 }
  0x4d   :  { %609 = vmatmul.mubr.bf16.gmra.mxu0 %v1385_v32  ;;  %737 = vmatmul.mubr.bf16.gmra.mxu1 %v1424_v33 }
  0x4e   :  { %1314 = vmatprep.mubr.msk.bf16.mxu0 %vm439_vm0, %v1386_v34  ;;  %1330 = vmatprep.mubr.msk.bf16.mxu1 %vm439_vm0, %v1428_v35 }
  0x55   :  { %617 = vmatmul.mubr.bf16.gmra.mxu0 %v1388_v36  ;;  %745 = vmatmul.mubr.bf16.gmra.mxu1 %v1430_v37 }
  0x56   :  { %1315 = vmatprep.mubr.msk.bf16.mxu0 %vm439_vm0, %v1389_v38  ;;  %1331 = vmatprep.mubr.msk.bf16.mxu1 %vm439_vm0, %v1434_v39 }
  0x5d   :  { %625 = vmatmul.mubr.bf16.gmra.mxu0 %v1391_v40  ;;  %753 = vmatmul.mubr.bf16.gmra.mxu1 %v1436_v41 }
  0x5e   :  { %1316 = vmatprep.mubr.msk.bf16.mxu0 %vm439_vm0, %v1395_v42  ;;  %1332 = vmatprep.mubr.msk.bf16.mxu1 %vm439_vm0, %v1440_v43 }
  0x65   :  { %633 = vmatmul.mubr.bf16.gmra.mxu0 %v1397_v44  ;;  %761 = vmatmul.mubr.bf16.gmra.mxu1 %v1442_v45 }
  0x66   :  { %1317 = vmatprep.mubr.msk.bf16.mxu0 %vm439_vm0, %v1401_v46  ;;  %1333 = vmatprep.mubr.msk.bf16.mxu1 %vm439_vm0, %v1443_v47 }
  0x6d   :  { %641 = vmatmul.mubr.bf16.gmra.mxu0 %v1403_v48  ;;  %769 = vmatmul.mubr.bf16.gmra.mxu1 %v1445_v49 }
  0x6e   :  { %1318 = vmatprep.mubr.msk.bf16.mxu0 %vm439_vm0, %v1407_v50  ;;  %1334 = vmatprep.mubr.msk.bf16.mxu1 %vm439_vm0, %v1446_v51 }
  0x75   :  { %649 = vmatmul.mubr.bf16.gmra.mxu0 %v1409_v52  ;;  %777 = vmatmul.mubr.bf16.gmra.mxu1 %v1448_v53 }
  0x76   :  { %1319 = vmatprep.mubr.msk.bf16.mxu0 %vm439_vm0, %v1413_v54  ;;  %1335 = vmatprep.mubr.msk.bf16.mxu1 %vm439_vm0, %v1449_v55 }
  0x7d   :  { %657 = vmatmul.mubr.bf16.gmra.mxu0 %v1415_v56  ;;  %785 = vmatmul.mubr.bf16.gmra.mxu1 %v1451_v57 }
  0x7e   :  { %1320 = vmatprep.mubr.msk.bf16.mxu0 %vm439_vm0, %v1419_v58  ;;  %1336 = vmatprep.mubr.msk.bf16.mxu1 %vm439_vm0, %v1452_v59 }
  0x85   :  { %665 = vmatmul.mubr.bf16.gmra.mxu0 %v1421_v60  ;;  %793 = vmatmul.mubr.bf16.gmra.mxu1 %v1454_v61 }
  0x86   :  { %1321 = vmatprep.mubr.msk.bf16.mxu0 %vm439_vm0, %v1425_v62  ;;  %1337 = vmatprep.mubr.msk.bf16.mxu1 %vm439_vm0, %v1455_v63 }
  0x8d   :  { %673 = vmatmul.mubr.bf16.gmra.mxu0 %v1427_v0  ;;  %801 = vmatmul.mubr.bf16.gmra.mxu1 %v1457_v1 }
  0x8e   :  { %1322 = vmatprep.mubr.msk.bf16.mxu0 %vm439_vm0, %v1431_v2  ;;  %1338 = vmatprep.mubr.msk.bf16.mxu1 %vm439_vm0, %v1458_v3 }
  0x95   :  { %681 = vmatmul.mubr.bf16.gmra.mxu0 %v1433_v4  ;;  %809 = vmatmul.mubr.bf16.gmra.mxu1 %v1460_v5 }
  0x96   :  { %1323 = vmatprep.mubr.msk.bf16.mxu0 %vm439_vm0, %v1437_v6  ;;  %1339 = vmatprep.mubr.msk.bf16.mxu1 %vm439_vm0, %v1461_v7 }
  0x9d   :  { %689 = vmatmul.mubr.bf16.gmra.mxu0 %v1439_v8  ;;  %817 = vmatmul.mubr.bf16.gmra.mxu1 %v1463_v9 }
  0xe5   :  { %v1741_v10 = vpop.f32.mrf.mxu0  ;;  %v1743_v11 = vpop.f32.mrf.mxu1 }
  0xe6   :  { %826 = vst.msk [vmem:[%s2463_s2] sm:$0xff] %vm825_vm1, %v1741_v10  ;;  %858 = vst.msk [vmem:[%s2463_s2 + $0x100] sm:$0xff] %vm825_vm1, %v1743_v11 }
  0xe7   :  { %v572_v12 = vpop.f32.mrf.mxu0  ;;  %v700_v13 = vpop.f32.mrf.mxu1 }
  0xe8   :  { %v1025_v13 = vmul.f32 %v1741_v10, %v1741_v10 }
  0xe9   :  { %v1755_v14 = vpop.f32.mrf.mxu0  ;;  %v1757_v15 = vpop.f32.mrf.mxu1 }
  0xea   :  { %827 = vst.msk [vmem:[%s2463_s2 + $0x8] sm:$0xff] %vm825_vm1, %v1755_v14  ;;  %859 = vst.msk [vmem:[%s2463_s2 + $0x108] sm:$0xff] %vm825_vm1, %v1757_v15  ;;  %v1026_v8 = vmul.f32 %v1755_v14, %v1755_v14 }
  0xeb   :  { %v575_v16 = vpop.f32.mrf.mxu0  ;;  %v703_v17 = vpop.f32.mrf.mxu1 }
  0xec   :  { %v891_v16 = vsel %vm825_vm1, %v1755_v14, 0.0 }
  0xed   :  { %v1769_v18 = vpop.f32.mrf.mxu0  ;;  %v1771_v19 = vpop.f32.mrf.mxu1 }
  0xee   :  { %828 = vst.msk [vmem:[%s2463_s2 + $0x10] sm:$0xff] %vm825_vm1, %v1769_v18  ;;  %860 = vst.msk [vmem:[%s2463_s2 + $0x110] sm:$0xff] %vm825_vm1, %v1771_v19  ;;  %v1027_v17 = vmul.f32 %v1769_v18, %v1769_v18 }
  0xef   :  { %v580_v20 = vpop.f32.mrf.mxu0  ;;  %v708_v21 = vpop.f32.mrf.mxu1 }
  0xf1   :  { %v1783_v22 = vpop.f32.mrf.mxu0  ;;  %v1785_v23 = vpop.f32.mrf.mxu1 }
  0xf2   :  { %829 = vst.msk [vmem:[%s2463_s2 + $0x18] sm:$0xff] %vm825_vm1, %v1783_v22  ;;  %861 = vst.msk [vmem:[%s2463_s2 + $0x118] sm:$0xff] %vm825_vm1, %v1785_v23 }
  0xf3   :  { %v583_v24 = vpop.f32.mrf.mxu0  ;;  %v711_v25 = vpop.f32.mrf.mxu1 }
  0xf4   :  { %v890_v24 = vsel %vm825_vm1, %v1741_v10, 0.0  ;;  %v1090_v25 = vsel %vm825_vm1, %v1026_v8, 0.0 }
  0xf5   :  { %v1797_v26 = vpop.f32.mrf.mxu0  ;;  %v1799_v27 = vpop.f32.mrf.mxu1  ;;  %v892_v10 = vadd.f32 %v891_v16, %v890_v24 }
  0xf6   :  { %830 = vst.msk [vmem:[%s2463_s2 + $0x20] sm:$0xff] %vm825_vm1, %v1797_v26  ;;  %862 = vst.msk [vmem:[%s2463_s2 + $0x120] sm:$0xff] %vm825_vm1, %v1799_v27 }
  0xf7   :  { %v588_v28 = vpop.f32.mrf.mxu0  ;;  %v716_v29 = vpop.f32.mrf.mxu1 }
  0xf8   :  { %v893_v28 = vsel %vm825_vm1, %v1769_v18, 0.0  ;;  %v1028_v29 = vmul.f32 %v1783_v22, %v1783_v22  ;;  %v1089_v18 = vsel %vm825_vm1, %v1025_v13, 0.0 }
  0xf9   :  { %v1811_v30 = vpop.f32.mrf.mxu0  ;;  %v1813_v31 = vpop.f32.mrf.mxu1 }
  0xfa   :  { %831 = vst.msk [vmem:[%s2463_s2 + $0x28] sm:$0xff] %vm825_vm1, %v1811_v30  ;;  %863 = vst.msk [vmem:[%s2463_s2 + $0x128] sm:$0xff] %vm825_vm1, %v1813_v31 }
  0xfb   :  { %v591_v32 = vpop.f32.mrf.mxu0  ;;  %v719_v33 = vpop.f32.mrf.mxu1 }
  0xfc   :  { %v1092_v33 = vsel %vm825_vm1, %v1027_v17, 0.0 }
  0xfd   :  { %v1825_v34 = vpop.f32.mrf.mxu0  ;;  %v1827_v35 = vpop.f32.mrf.mxu1 }
  0xfe   :  { %832 = vst.msk [vmem:[%s2463_s2 + $0x30] sm:$0xff] %vm825_vm1, %v1825_v34  ;;  %864 = vst.msk [vmem:[%s2463_s2 + $0x130] sm:$0xff] %vm825_vm1, %v1827_v35 }
  0xff   :  { %v596_v36 = vpop.f32.mrf.mxu0  ;;  %v724_v37 = vpop.f32.mrf.mxu1 }
 0x100   :  { %v895_v36 = vsel %vm825_vm1, %v1783_v22, 0.0  ;;  %v1029_v37 = vmul.f32 %v1797_v26, %v1797_v26 }
 0x101   :  { %v1839_v38 = vpop.f32.mrf.mxu0  ;;  %v1841_v39 = vpop.f32.mrf.mxu1 }
 0x102   :  { %833 = vst.msk [vmem:[%s2463_s2 + $0x38] sm:$0xff] %vm825_vm1, %v1839_v38  ;;  %865 = vst.msk [vmem:[%s2463_s2 + $0x138] sm:$0xff] %vm825_vm1, %v1841_v39  ;;  %v903_v24 = vsel %vm825_vm1, %v1839_v38, 0.0 }
 0x103   :  { %v599_v40 = vpop.f32.mrf.mxu0  ;;  %v727_v41 = vpop.f32.mrf.mxu1 }
 0x104   :  { %v1091_v40 = vadd.f32 %v1090_v25, %v1089_v18  ;;  %v894_v41 = vadd.f32 %v893_v28, %v892_v10 }
 0x105   :  { %v1853_v42 = vpop.f32.mrf.mxu0  ;;  %v1855_v43 = vpop.f32.mrf.mxu1 }
 0x106   :  { %834 = vst.msk [vmem:[%s2463_s2 + $0x40] sm:$0xff] %vm825_vm1, %v1853_v42  ;;  %866 = vst.msk [vmem:[%s2463_s2 + $0x140] sm:$0xff] %vm825_vm1, %v1855_v43  ;;  %v1093_v22 = vadd.f32 %v1092_v33, %v1091_v40  ;;  %v1033_v25 = vmul.f32 %v1853_v42, %v1853_v42  ;;  %v905_v18 = vsel %vm825_vm1, %v1853_v42, 0.0 }
 0x107   :  { %v604_v44 = vpop.f32.mrf.mxu0  ;;  %v732_v45 = vpop.f32.mrf.mxu1 }
 0x108   :  { %v1104_v42 = vsel %vm825_vm1, %v1033_v25, 0.0 }
 0x109   :  { %v1867_v46 = vpop.f32.mrf.mxu0  ;;  %v1869_v47 = vpop.f32.mrf.mxu1 }
 0x10a   :  { %835 = vst.msk [vmem:[%s2463_s2 + $0x48] sm:$0xff] %vm825_vm1, %v1867_v46  ;;  %867 = vst.msk [vmem:[%s2463_s2 + $0x148] sm:$0xff] %vm825_vm1, %v1869_v47  ;;  %v1034_v33 = vmul.f32 %v1867_v46, %v1867_v46 }
 0x10b   :  { %v607_v48 = vpop.f32.mrf.mxu0  ;;  %v735_v49 = vpop.f32.mrf.mxu1 }
 0x10c   :  { %v1094_v48 = vsel %vm825_vm1, %v1028_v29, 0.0  ;;  %v897_v49 = vsel %vm825_vm1, %v1797_v26, 0.0  ;;  %v1096_v26 = vsel %vm825_vm1, %v1029_v37, 0.0 }
 0x10d   :  { %v1881_v50 = vpop.f32.mrf.mxu0  ;;  %v1883_v51 = vpop.f32.mrf.mxu1 }
 0x10e   :  { %836 = vst.msk [vmem:[%s2463_s2 + $0x50] sm:$0xff] %vm825_vm1, %v1881_v50  ;;  %868 = vst.msk [vmem:[%s2463_s2 + $0x150] sm:$0xff] %vm825_vm1, %v1883_v51 }
 0x10f   :  { %v612_v52 = vpop.f32.mrf.mxu0  ;;  %v740_v53 = vpop.f32.mrf.mxu1 }
 0x110   :  { %v1030_v52 = vmul.f32 %v1811_v30, %v1811_v30  ;;  %v896_v53 = vadd.f32 %v895_v36, %v894_v41  ;;  %v907_v41 = vsel %vm825_vm1, %v1867_v46, 0.0 }
 0x111   :  { %v1895_v54 = vpop.f32.mrf.mxu0  ;;  %v1897_v55 = vpop.f32.mrf.mxu1 }
 0x112   :  { %837 = vst.msk [vmem:[%s2463_s2 + $0x58] sm:$0xff] %vm825_vm1, %v1895_v54  ;;  %869 = vst.msk [vmem:[%s2463_s2 + $0x158] sm:$0xff] %vm825_vm1, %v1897_v55  ;;  %v1098_v8 = vsel %vm825_vm1, %v1030_v52, 0.0 }
 0x113   :  { %v615_v56 = vpop.f32.mrf.mxu0  ;;  %v743_v57 = vpop.f32.mrf.mxu1 }
 0x115   :  { %v1909_v58 = vpop.f32.mrf.mxu0  ;;  %v1911_v59 = vpop.f32.mrf.mxu1 }
 0x116   :  { %838 = vst.msk [vmem:[%s2463_s2 + $0x60] sm:$0xff] %vm825_vm1, %v1909_v58  ;;  %870 = vst.msk [vmem:[%s2463_s2 + $0x160] sm:$0xff] %vm825_vm1, %v1911_v59 }
 0x117   :  { %v620_v60 = vpop.f32.mrf.mxu0  ;;  %v748_v61 = vpop.f32.mrf.mxu1 }
 0x118   :  { %v899_v60 = vsel %vm825_vm1, %v1811_v30, 0.0  ;;  %v1031_v61 = vmul.f32 %v1825_v34, %v1825_v34 }
 0x119   :  { %v1923_v62 = vpop.f32.mrf.mxu0  ;;  %v1925_v63 = vpop.f32.mrf.mxu1 }
 0x11a   :  { %839 = vst.msk [vmem:[%s2463_s2 + $0x68] sm:$0xff] %vm825_vm1, %v1923_v62  ;;  %871 = vst.msk [vmem:[%s2463_s2 + $0x168] sm:$0xff] %vm825_vm1, %v1925_v63 }
 0x11b   :  { %v623_v0 = vpop.f32.mrf.mxu0  ;;  %v751_v1 = vpop.f32.mrf.mxu1 }
 0x11c   :  { %v1095_v0 = vadd.f32 %v1094_v48, %v1093_v22  ;;  %v898_v1 = vadd.f32 %v897_v49, %v896_v53  ;;  %v1035_v48 = vmul.f32 %v1881_v50, %v1881_v50 }
 0x11d   :  { %v1937_v2 = vpop.f32.mrf.mxu0  ;;  %v1939_v3 = vpop.f32.mrf.mxu1 }
 0x11e   :  { %840 = vst.msk [vmem:[%s2463_s2 + $0x70] sm:$0xff] %vm825_vm1, %v1937_v2  ;;  %872 = vst.msk [vmem:[%s2463_s2 + $0x170] sm:$0xff] %vm825_vm1, %v1939_v3  ;;  %v1097_v30 = vadd.f32 %v1096_v26, %v1095_v0  ;;  %v900_v13 = vadd.f32 %v899_v60, %v898_v1  ;;  %v1036_v26 = vmul.f32 %v1895_v54, %v1895_v54  ;;  %v911_v1 = vsel %vm825_vm1, %v1895_v54, 0.0 }
 0x11f   :  { %v628_v4 = vpop.f32.mrf.mxu0  ;;  %v756_v5 = vpop.f32.mrf.mxu1 }
 0x120   :  { %v1099_v28 = vadd.f32 %v1098_v8, %v1097_v30  ;;  %v1037_v8 = vmul.f32 %v1909_v58, %v1909_v58 }
 0x121   :  { %v1951_v6 = vpop.f32.mrf.mxu0  ;;  %v1953_v7 = vpop.f32.mrf.mxu1 }
 0x122   :  { %841 = vst.msk [vmem:[%s2463_s2 + $0x78] sm:$0xff] %vm825_vm1, %v1951_v6  ;;  %873 = vst.msk [vmem:[%s2463_s2 + $0x178] sm:$0xff] %vm825_vm1, %v1953_v7 }
 0x123   :  { %v631_v9 = vpop.f32.mrf.mxu0  ;;  %v759_v12 = vpop.f32.mrf.mxu1 }
 0x124   :  { %v901_v9 = vsel %vm825_vm1, %v1825_v34, 0.0  ;;  %v1032_v12 = vmul.f32 %v1839_v38, %v1839_v38  ;;  %v1100_v34 = vsel %vm825_vm1, %v1031_v61, 0.0 }
 0x125   :  { %v1973_v20 = vpop.f32.mrf.mxu0  ;;  %v1975_v21 = vpop.f32.mrf.mxu1  ;;  %v902_v29 = vadd.f32 %v901_v9, %v900_v13  ;;  %v1101_v38 = vadd.f32 %v1100_v34, %v1099_v28  ;;  %v1038_v34 = vmul.f32 %v1923_v62, %v1923_v62 }
 0x126   :  { %842 = vst.msk [vmem:[%s2463_s2 + $0x80] sm:$0xff] %vm825_vm1, %v1973_v20  ;;  %874 = vst.msk [vmem:[%s2463_s2 + $0x180] sm:$0xff] %vm825_vm1, %v1975_v21 }
 0x127   :  { %v636_v14 = vpop.f32.mrf.mxu0  ;;  %v764_v32 = vpop.f32.mrf.mxu1  ;;  %v904_v36 = vadd.f32 %v903_v24, %v902_v29  ;;  %v915_v29 = vsel %vm825_vm1, %v1923_v62, 0.0 }
 0x128   :  { %v1102_v32 = vsel %vm825_vm1, %v1032_v12, 0.0 }
 0x129   :  { %v2000_v44 = vpop.f32.mrf.mxu0  ;;  %v2002_v45 = vpop.f32.mrf.mxu1  ;;  %v1103_v49 = vadd.f32 %v1102_v32, %v1101_v38  ;;  %v906_v52 = vadd.f32 %v905_v18, %v904_v36  ;;  %v1039_v32 = vmul.f32 %v1937_v2, %v1937_v2 }
 0x12a   :  { %843 = vst.msk [vmem:[%s2463_s2 + $0x88] sm:$0xff] %vm825_vm1, %v2000_v44  ;;  %875 = vst.msk [vmem:[%s2463_s2 + $0x188] sm:$0xff] %vm825_vm1, %v2002_v45 }
 0x12b   :  { %v639_v56 = vpop.f32.mrf.mxu0  ;;  %v767_v57 = vpop.f32.mrf.mxu1  ;;  %v1105_v46 = vadd.f32 %v1104_v42, %v1103_v49  ;;  %v908_v60 = vadd.f32 %v907_v41, %v906_v52  ;;  %v1040_v42 = vmul.f32 %v1951_v6, %v1951_v6  ;;  %v919_v52 = vsel %vm825_vm1, %v1951_v6, 0.0 }
 0x12c   :  { %v1106_v56 = vsel %vm825_vm1, %v1034_v33, 0.0  ;;  %v909_v57 = vsel %vm825_vm1, %v1881_v50, 0.0  ;;  %v1108_v50 = vsel %vm825_vm1, %v1035_v48, 0.0 }
 0x12d   :  { %v2024_v4 = vpop.f32.mrf.mxu0  ;;  %v2026_v5 = vpop.f32.mrf.mxu1  ;;  %v1107_v9 = vadd.f32 %v1106_v56, %v1105_v46  ;;  %v910_v12 = vadd.f32 %v909_v57, %v908_v60  ;;  %v1041_v56 = vmul.f32 %v1973_v20, %v1973_v20 }
 0x12e   :  { %844 = vst.msk [vmem:[%s2463_s2 + $0x90] sm:$0xff] %vm825_vm1, %v2024_v4  ;;  %876 = vst.msk [vmem:[%s2463_s2 + $0x190] sm:$0xff] %vm825_vm1, %v2026_v5 }
 0x12f   :  { %v644_v16 = vpop.f32.mrf.mxu0  ;;  %v772_v17 = vpop.f32.mrf.mxu1  ;;  %v1109_v54 = vadd.f32 %v1108_v50, %v1107_v9  ;;  %v912_v24 = vadd.f32 %v911_v1, %v910_v12  ;;  %v1042_v50 = vmul.f32 %v2000_v44, %v2000_v44  ;;  %v923_v12 = vsel %vm825_vm1, %v2000_v44, 0.0 }
 0x130   :  { %v1110_v16 = vsel %vm825_vm1, %v1036_v26, 0.0  ;;  %v913_v17 = vsel %vm825_vm1, %v1909_v58, 0.0  ;;  %v1112_v58 = vsel %vm825_vm1, %v1037_v8, 0.0 }
 0x131   :  { %v2048_v10 = vpop.f32.mrf.mxu0  ;;  %v2050_v14 = vpop.f32.mrf.mxu1  ;;  %v1111_v18 = vadd.f32 %v1110_v16, %v1109_v54  ;;  %v914_v33 = vadd.f32 %v913_v17, %v912_v24  ;;  %v1043_v16 = vmul.f32 %v2024_v4, %v2024_v4 }
 0x132   :  { %845 = vst.msk [vmem:[%s2463_s2 + $0x98] sm:$0xff] %vm825_vm1, %v2048_v10  ;;  %877 = vst.msk [vmem:[%s2463_s2 + $0x198] sm:$0xff] %vm825_vm1, %v2050_v14 }
 0x133   :  { %v647_v37 = vpop.f32.mrf.mxu0  ;;  %v775_v40 = vpop.f32.mrf.mxu1  ;;  %v1113_v62 = vadd.f32 %v1112_v58, %v1111_v18  ;;  %v916_v41 = vadd.f32 %v915_v29, %v914_v33  ;;  %v1044_v58 = vmul.f32 %v2048_v10, %v2048_v10  ;;  %v927_v33 = vsel %vm825_vm1, %v2048_v10, 0.0 }
 0x134   :  { %v1114_v37 = vsel %vm825_vm1, %v1038_v34, 0.0  ;;  %v917_v40 = vsel %vm825_vm1, %v1937_v2, 0.0  ;;  %v1116_v2 = vsel %vm825_vm1, %v1039_v32, 0.0 }
 0x135   :  { %v2072_v22 = vpop.f32.mrf.mxu0  ;;  %v2074_v53 = vpop.f32.mrf.mxu1  ;;  %v1115_v57 = vadd.f32 %v1114_v37, %v1113_v62  ;;  %v918_v26 = vadd.f32 %v917_v40, %v916_v41 }
 0x136   :  { %846 = vst.msk [vmem:[%s2463_s2 + $0xa0] sm:$0xff] %vm825_vm1, %v2072_v22  ;;  %878 = vst.msk [vmem:[%s2463_s2 + $0x1a0] sm:$0xff] %vm825_vm1, %v2074_v53  ;;  %v1045_v37 = vmul.f32 %v2072_v22, %v2072_v22 }
 0x137   :  { %v652_v61 = vpop.f32.mrf.mxu0  ;;  %v780_v0 = vpop.f32.mrf.mxu1  ;;  %v1117_v6 = vadd.f32 %v1116_v2, %v1115_v57  ;;  %v920_v1 = vadd.f32 %v919_v52, %v918_v26 }
 0x138   :  { %v1118_v61 = vsel %vm825_vm1, %v1040_v42, 0.0  ;;  %v921_v0 = vsel %vm825_vm1, %v1973_v20, 0.0  ;;  %v1120_v20 = vsel %vm825_vm1, %v1041_v56, 0.0 }
 0x139   :  { %v2096_v30 = vpop.f32.mrf.mxu0  ;;  %v2098_v13 = vpop.f32.mrf.mxu1  ;;  %v1119_v17 = vadd.f32 %v1118_v61, %v1117_v6  ;;  %v922_v34 = vadd.f32 %v921_v0, %v920_v1 }
 0x13a   :  { %847 = vst.msk [vmem:[%s2463_s2 + $0xa8] sm:$0xff] %vm825_vm1, %v2096_v30  ;;  %879 = vst.msk [vmem:[%s2463_s2 + $0x1a8] sm:$0xff] %vm825_vm1, %v2098_v13  ;;  %v1046_v2 = vmul.f32 %v2096_v30, %v2096_v30  ;;  %v931_v26 = vsel %vm825_vm1, %v2096_v30, 0.0 }
 0x13b   :  { %v655_v25 = vpop.f32.mrf.mxu0  ;;  %v783_v28 = vpop.f32.mrf.mxu1  ;;  %v1121_v44 = vadd.f32 %v1120_v20, %v1119_v17  ;;  %v924_v29 = vadd.f32 %v923_v12, %v922_v34 }
 0x13c   :  { %v1122_v25 = vsel %vm825_vm1, %v1042_v50, 0.0  ;;  %v925_v28 = vsel %vm825_vm1, %v2024_v4, 0.0  ;;  %v1124_v4 = vsel %vm825_vm1, %v1043_v16, 0.0 }
 0x13d   :  { %v2120_v38 = vpop.f32.mrf.mxu0  ;;  %v2122_v36 = vpop.f32.mrf.mxu1  ;;  %v1123_v40 = vadd.f32 %v1122_v25, %v1121_v44  ;;  %v926_v42 = vadd.f32 %v925_v28, %v924_v29 }
 0x13e   :  { %848 = vst.msk [vmem:[%s2463_s2 + $0xb0] sm:$0xff] %vm825_vm1, %v2120_v38  ;;  %880 = vst.msk [vmem:[%s2463_s2 + $0x1b0] sm:$0xff] %vm825_vm1, %v2122_v36  ;;  %v1047_v61 = vmul.f32 %v2120_v38, %v2120_v38 }
 0x13f   :  { %v660_v48 = vpop.f32.mrf.mxu0  ;;  %v788_v49 = vpop.f32.mrf.mxu1  ;;  %v1125_v10 = vadd.f32 %v1124_v4, %v1123_v40  ;;  %v928_v52 = vadd.f32 %v927_v33, %v926_v42 }
 0x140   :  { %v1126_v48 = vsel %vm825_vm1, %v1044_v58, 0.0  ;;  %v929_v49 = vsel %vm825_vm1, %v2072_v22, 0.0  ;;  %v1128_v22 = vsel %vm825_vm1, %v1045_v37, 0.0  ;;  %v1132_v34 = vsel %vm825_vm1, %v1047_v61, 0.0 }
 0x141   :  { %v661_v46 = vpop.f32.mrf.mxu0  ;;  %v2144_v60 = vpop.f32.mrf.mxu1  ;;  %v1127_v0 = vadd.f32 %v1126_v48, %v1125_v10  ;;  %v930_v50 = vadd.f32 %v929_v49, %v928_v52 }
 0x142   :  { %849 = vst.msk [vmem:[%s2463_s2 + $0xb8] sm:$0xff] %vm825_vm1, %v661_v46  ;;  %881 = vst.msk [vmem:[%s2463_s2 + $0x1b8] sm:$0xff] %vm825_vm1, %v2144_v60  ;;  %v1048_v20 = vmul.f32 %v661_v46, %v661_v46 }
 0x143   :  { %v663_v8 = vpop.f32.mrf.mxu0  ;;  %v791_v9 = vpop.f32.mrf.mxu1  ;;  %v1129_v30 = vadd.f32 %v1128_v22, %v1127_v0  ;;  %v932_v12 = vadd.f32 %v931_v26, %v930_v50 }
 0x144   :  { %v1130_v8 = vsel %vm825_vm1, %v1046_v2, 0.0  ;;  %v933_v9 = vsel %vm825_vm1, %v2120_v38, 0.0  ;;  %v935_v38 = vsel %vm825_vm1, %v661_v46, 0.0 }
 0x145   :  { %v666_v54 = vpop.f32.mrf.mxu0  ;;  %v2165_v24 = vpop.f32.mrf.mxu1  ;;  %v1131_v28 = vadd.f32 %v1130_v8, %v1129_v30  ;;  %v934_v58 = vadd.f32 %v933_v9, %v932_v12 }
 0x146   :  { %850 = vst.msk [vmem:[%s2463_s2 + $0xc0] sm:$0xff] %vm825_vm1, %v666_v54  ;;  %882 = vst.msk [vmem:[%s2463_s2 + $0x1c0] sm:$0xff] %vm825_vm1, %v2165_v24  ;;  %v1049_v25 = vmul.f32 %v666_v54, %v666_v54 }
 0x147   :  { %v668_v32 = vpop.f32.mrf.mxu0  ;;  %v796_v18 = vpop.f32.mrf.mxu1  ;;  %v1133_v46 = vadd.f32 %v1132_v34, %v1131_v28  ;;  %v936_v33 = vadd.f32 %v935_v38, %v934_v58 }
 0x148   :  { %v1134_v32 = vsel %vm825_vm1, %v1048_v20, 0.0  ;;  %v937_v18 = vsel %vm825_vm1, %v666_v54, 0.0  ;;  %v1136_v42 = vsel %vm825_vm1, %v1049_v25, 0.0 }
 0x149   :  { %v669_v62 = vpop.f32.mrf.mxu0  ;;  %v2186_v41 = vpop.f32.mrf.mxu1  ;;  %v1135_v49 = vadd.f32 %v1134_v32, %v1133_v46  ;;  %v938_v2 = vadd.f32 %v937_v18, %v936_v33 }
 0x14a   :  { %851 = vst.msk [vmem:[%s2463_s2 + $0xc8] sm:$0xff] %vm825_vm1, %v669_v62  ;;  %883 = vst.msk [vmem:[%s2463_s2 + $0x1c8] sm:$0xff] %vm825_vm1, %v2186_v41  ;;  %v1050_v4 = vmul.f32 %v669_v62, %v669_v62  ;;  %v939_v54 = vsel %vm825_vm1, %v669_v62, 0.0 }
 0x14b   :  { %v671_v56 = vpop.f32.mrf.mxu0  ;;  %v799_v57 = vpop.f32.mrf.mxu1  ;;  %v1137_v62 = vadd.f32 %v1136_v42, %v1135_v49  ;;  %v940_v26 = vadd.f32 %v939_v54, %v938_v2 }
 0x14c   :  { %v1138_v56 = vsel %vm825_vm1, %v1050_v4, 0.0 }
 0x14d   :  { %v674_v6 = vpop.f32.mrf.mxu0  ;;  %v2207_v1 = vpop.f32.mrf.mxu1  ;;  %v1139_v9 = vadd.f32 %v1138_v56, %v1137_v62 }
 0x14e   :  { %852 = vst.msk [vmem:[%s2463_s2 + $0xd0] sm:$0xff] %vm825_vm1, %v674_v6  ;;  %884 = vst.msk [vmem:[%s2463_s2 + $0x1d0] sm:$0xff] %vm825_vm1, %v2207_v1  ;;  %v1051_v48 = vmul.f32 %v674_v6, %v674_v6  ;;  %v941_v57 = vsel %vm825_vm1, %v674_v6, 0.0 }
 0x14f   :  { %v676_v16 = vpop.f32.mrf.mxu0  ;;  %v804_v17 = vpop.f32.mrf.mxu1  ;;  %v942_v20 = vadd.f32 %v941_v57, %v940_v26  ;;  %v1057_v26 = vmul.f32 %v1743_v11, %v1743_v11 }
 0x150   :  { %v1140_v50 = vsel %vm825_vm1, %v1051_v48, 0.0 }
 0x151   :  { %v677_v44 = vpop.f32.mrf.mxu0  ;;  %v2223_v29 = vpop.f32.mrf.mxu1  ;;  %v1141_v38 = vadd.f32 %v1140_v50, %v1139_v9 }
 0x152   :  { %853 = vst.msk [vmem:[%s2463_s2 + $0xd8] sm:$0xff] %vm825_vm1, %v677_v44  ;;  %885 = vst.msk [vmem:[%s2463_s2 + $0x1d8] sm:$0xff] %vm825_vm1, %v2223_v29  ;;  %v1052_v22 = vmul.f32 %v677_v44, %v677_v44  ;;  %v943_v6 = vsel %vm825_vm1, %v677_v44, 0.0 }
 0x153   :  { %v679_v37 = vpop.f32.mrf.mxu0  ;;  %v807_v40 = vpop.f32.mrf.mxu1  ;;  %v944_v25 = vadd.f32 %v943_v6, %v942_v20  ;;  %v953_v20 = vsel %vm825_vm1, %v1743_v11, 0.0  ;;  %v957_v11 = vsel %vm825_vm1, %v1771_v19, 0.0 }
 0x154   :  { %v1142_v16 = vsel %vm825_vm1, %v1052_v22, 0.0 }
 0x155   :  { %v682_v10 = vpop.f32.mrf.mxu0  ;;  %v2238_v52 = vpop.f32.mrf.mxu1  ;;  %v1143_v18 = vadd.f32 %v1142_v16, %v1141_v38  ;;  %v1152_v38 = vsel %vm825_vm1, %v1057_v26, 0.0 }
 0x156   :  { %854 = vst.msk [vmem:[%s2463_s2 + $0xe0] sm:$0xff] %vm825_vm1, %v682_v10  ;;  %886 = vst.msk [vmem:[%s2463_s2 + $0x1e0] sm:$0xff] %vm825_vm1, %v2238_v52  ;;  %v1053_v8 = vmul.f32 %v682_v10, %v682_v10  ;;  %v945_v17 = vsel %vm825_vm1, %v682_v10, 0.0 }
 0x157   :  { %v684_v61 = vpop.f32.mrf.mxu0  ;;  %v812_v0 = vpop.f32.mrf.mxu1  ;;  %v946_v4 = vadd.f32 %v945_v17, %v944_v25  ;;  %v955_v25 = vsel %vm825_vm1, %v1757_v15, 0.0 }
 0x158   :  { %v1144_v44 = vsel %vm825_vm1, %v1053_v8, 0.0 }
 0x159   :  { %v685_v30 = vpop.f32.mrf.mxu0  ;;  %v2253_v12 = vpop.f32.mrf.mxu1  ;;  %v1145_v54 = vadd.f32 %v1144_v44, %v1143_v18  ;;  %v1060_v18 = vmul.f32 %v1785_v23, %v1785_v23 }
 0x15a   :  { %855 = vst.msk [vmem:[%s2463_s2 + $0xe8] sm:$0xff] %vm825_vm1, %v685_v30  ;;  %v1054_v34 = vmul.f32 %v685_v30, %v685_v30  ;;  %887 = vst.msk [vmem:[%s2463_s2 + $0x1e8] sm:$0xff] %vm825_vm1, %v2253_v12  ;;  %v947_v32 = vsel %vm825_vm1, %v685_v30, 0.0  ;;  %v1058_v30 = vmul.f32 %v1757_v15, %v1757_v15  ;;  %v959_v15 = vsel %vm825_vm1, %v1785_v23, 0.0 }
 0x15b   :  { %v687_v28 = vpop.f32.mrf.mxu0  ;;  %v815_v58 = vpop.f32.mrf.mxu1  ;;  %v948_v48 = vadd.f32 %v947_v32, %v946_v4  ;;  %v963_v23 = vsel %vm825_vm1, %v1813_v31, 0.0 }
 0x15c   :  { %v1146_v37 = vsel %vm825_vm1, %v1054_v34, 0.0  ;;  %v1059_v28 = vmul.f32 %v1771_v19, %v1771_v19  ;;  %v1154_v32 = vsel %vm825_vm1, %v1058_v30, 0.0  ;;  %v961_v19 = vsel %vm825_vm1, %v1799_v27, 0.0 }
 0x15d   :  { %v690_v46 = vpop.f32.mrf.mxu0  ;;  %v2268_v33 = vpop.f32.mrf.mxu1  ;;  %v1147_v56 = vadd.f32 %v1146_v37, %v1145_v54 }
 0x15e   :  { %856 = vst.msk [vmem:[%s2463_s2 + $0xf0] sm:$0xff] %vm825_vm1, %v690_v46  ;;  %v949_v40 = vsel %vm825_vm1, %v690_v46, 0.0  ;;  %v1055_v42 = vmul.f32 %v690_v46, %v690_v46  ;;  %888 = vst.msk [vmem:[%s2463_s2 + $0x1f0] sm:$0xff] %vm825_vm1, %v2268_v33  ;;  %v1156_v37 = vsel %vm825_vm1, %v1059_v28, 0.0  ;;  %v1067_v28 = vmul.f32 %v1883_v51, %v1883_v51 }
 0x15f   :  { %v692_v49 = vpop.f32.mrf.mxu0  ;;  %v820_v2 = vpop.f32.mrf.mxu1  ;;  %v950_v57 = vadd.f32 %v949_v40, %v948_v48  ;;  %v1061_v40 = vmul.f32 %v1799_v27, %v1799_v27  ;;  %v1158_v48 = vsel %vm825_vm1, %v1060_v18, 0.0  ;;  %v965_v27 = vsel %vm825_vm1, %v1827_v35, 0.0 }
 0x160   :  { %v1148_v10 = vsel %vm825_vm1, %v1055_v42, 0.0  ;;  %v1062_v49 = vmul.f32 %v1813_v31, %v1813_v31  ;;  %v967_v31 = vsel %vm825_vm1, %v1841_v39, 0.0 }
 0x161   :  { %v693_v22 = vpop.f32.mrf.mxu0  ;;  %v2282_v62 = vpop.f32.mrf.mxu1  ;;  %v1149_v50 = vadd.f32 %v1148_v10, %v1147_v56  ;;  %v1160_v56 = vsel %vm825_vm1, %v1061_v40, 0.0 }
 0x162   :  { %857 = vst.msk [vmem:[%s2463_s2 + $0xf8] sm:$0xff] %vm825_vm1, %v693_v22  ;;  %v951_v61 = vsel %vm825_vm1, %v693_v22, 0.0  ;;  %v1056_v0 = vmul.f32 %v693_v22, %v693_v22  ;;  %889 = vst.msk [vmem:[%s2463_s2 + $0x1f8] sm:$0xff] %vm825_vm1, %v2282_v62 }
 0x163   :  { %v952_v6 = vadd.f32 %v951_v61, %v950_v57  ;;  %v695_v8 = vpop.f32.mrf.mxu0  ;;  %v823_v9 = vpop.f32.mrf.mxu1  ;;  %v1063_v57 = vmul.f32 %v1827_v35, %v1827_v35  ;;  %v1162_v61 = vsel %vm825_vm1, %v1062_v49, 0.0  ;;  %v969_v35 = vsel %vm825_vm1, %v1855_v43, 0.0 }
 0x164   :  { %v1150_v16 = vsel %vm825_vm1, %v1056_v0, 0.0  ;;  %v1064_v0 = vmul.f32 %v1841_v39, %v1841_v39  ;;  %v1065_v9 = vmul.f32 %v1855_v43, %v1855_v43  ;;  %v971_v39 = vsel %vm825_vm1, %v1869_v47, 0.0 }
 0x165   :  { %v954_v17 = vadd.f32 %v953_v20, %v952_v6  ;;  %v1151_v34 = vadd.f32 %v1150_v16, %v1149_v50  ;;  %v1164_v8 = vsel %vm825_vm1, %v1063_v57, 0.0  ;;  %v973_v43 = vsel %vm825_vm1, %v1883_v51, 0.0 }
 0x166   :  { %v1166_v16 = vsel %vm825_vm1, %v1064_v0, 0.0  ;;  %v977_v51 = vsel %vm825_vm1, %v1911_v59, 0.0  ;;  %v1072_v57 = vmul.f32 %v1953_v7, %v1953_v7 }
 0x167   :  { %v956_v58 = vadd.f32 %v955_v25, %v954_v17  ;;  %v1153_v44 = vadd.f32 %v1152_v38, %v1151_v34  ;;  %v1066_v17 = vmul.f32 %v1869_v47, %v1869_v47  ;;  %v1168_v25 = vsel %vm825_vm1, %v1065_v9, 0.0 }
 0x168   :  { %v975_v47 = vsel %vm825_vm1, %v1897_v55, 0.0 }
 0x169   :  { %v958_v4 = vadd.f32 %v957_v11, %v956_v58  ;;  %v1155_v46 = vadd.f32 %v1154_v32, %v1153_v44  ;;  %v1170_v32 = vsel %vm825_vm1, %v1066_v17, 0.0  ;;  %v1068_v11 = vmul.f32 %v1897_v55, %v1897_v55 }
 0x16a   :  { %v979_v55 = vsel %vm825_vm1, %v1925_v63, 0.0 }
 0x16b   :  { %v960_v42 = vadd.f32 %v959_v15, %v958_v4  ;;  %v1157_v54 = vadd.f32 %v1156_v37, %v1155_v46  ;;  %v1172_v46 = vsel %vm825_vm1, %v1067_v28, 0.0  ;;  %v1069_v37 = vmul.f32 %v1911_v59, %v1911_v59 }
 0x16c   :  { %v981_v59 = vsel %vm825_vm1, %v1939_v3, 0.0  ;;  %v1077_v28 = vmul.f32 %v2074_v53, %v2074_v53 }
 0x16d   :  { %v962_v2 = vadd.f32 %v961_v19, %v960_v42  ;;  %v1159_v10 = vadd.f32 %v1158_v48, %v1157_v54  ;;  %v1174_v42 = vsel %vm825_vm1, %v1068_v11, 0.0  ;;  %v1070_v54 = vmul.f32 %v1925_v63, %v1925_v63 }
 0x16e   :  { %v1176_v49 = vsel %vm825_vm1, %v1069_v37, 0.0  ;;  %v983_v63 = vsel %vm825_vm1, %v1953_v7, 0.0  ;;  %v987_v7 = vsel %vm825_vm1, %v2002_v45, 0.0 }
 0x16f   :  { %v964_v22 = vadd.f32 %v963_v23, %v962_v2  ;;  %v1161_v26 = vadd.f32 %v1160_v56, %v1159_v10  ;;  %v1071_v2 = vmul.f32 %v1939_v3, %v1939_v3  ;;  %v1178_v23 = vsel %vm825_vm1, %v1070_v54, 0.0 }
 0x170   :  { %v985_v3 = vsel %vm825_vm1, %v1975_v21, 0.0 }
 0x171   :  { %v966_v50 = vadd.f32 %v965_v27, %v964_v22  ;;  %v1163_v6 = vadd.f32 %v1162_v61, %v1161_v26  ;;  %v1180_v61 = vsel %vm825_vm1, %v1071_v2, 0.0  ;;  %v1073_v27 = vmul.f32 %v1975_v21, %v1975_v21 }
 0x172   :  { %v989_v21 = vsel %vm825_vm1, %v2026_v5, 0.0  ;;  %v1082_v2 = vmul.f32 %v2186_v41, %v2186_v41 }
 0x173   :  { %v968_v20 = vadd.f32 %v967_v31, %v966_v50  ;;  %v1165_v30 = vadd.f32 %v1164_v8, %v1163_v6  ;;  %v1182_v6 = vsel %vm825_vm1, %v1072_v57, 0.0  ;;  %v1074_v8 = vmul.f32 %v2002_v45, %v2002_v45 }
 0x174   :  { %v991_v45 = vsel %vm825_vm1, %v2050_v14, 0.0 }
 0x175   :  { %v1167_v34 = vadd.f32 %v1166_v16, %v1165_v30  ;;  %v970_v38 = vadd.f32 %v969_v35, %v968_v20  ;;  %v1184_v20 = vsel %vm825_vm1, %v1073_v27, 0.0  ;;  %v1075_v30 = vmul.f32 %v2026_v5, %v2026_v5 }
 0x176   :  { %v1186_v17 = vsel %vm825_vm1, %v1074_v8, 0.0  ;;  %v993_v5 = vsel %vm825_vm1, %v2074_v53, 0.0  ;;  %v997_v53 = vsel %vm825_vm1, %v2122_v36, 0.0 }
 0x177   :  { %v972_v58 = vadd.f32 %v971_v39, %v970_v38  ;;  %v1169_v44 = vadd.f32 %v1168_v25, %v1167_v34  ;;  %v1076_v34 = vmul.f32 %v2050_v14, %v2050_v14  ;;  %v1188_v39 = vsel %vm825_vm1, %v1075_v30, 0.0 }
 0x178   :  { %v995_v14 = vsel %vm825_vm1, %v2098_v13, 0.0  ;;  %v1087_v30 = vmul.f32 %v2268_v33, %v2268_v33 }
 0x179   :  { %v974_v18 = vadd.f32 %v973_v43, %v972_v58  ;;  %v1171_v4 = vadd.f32 %v1170_v32, %v1169_v44  ;;  %v1190_v32 = vsel %vm825_vm1, %v1076_v34, 0.0  ;;  %v1078_v43 = vmul.f32 %v2098_v13, %v2098_v13 }
 0x17a   :  { %v999_v13 = vsel %vm825_vm1, %v2144_v60, 0.0 }
 0x17b   :  { %v976_v15 = vadd.f32 %v975_v47, %v974_v18  ;;  %v1173_v40 = vadd.f32 %v1172_v46, %v1171_v4  ;;  %v1192_v4 = vsel %vm825_vm1, %v1077_v28, 0.0  ;;  %v1079_v46 = vmul.f32 %v2122_v36, %v2122_v36 }
 0x17c   :  { %v1001_v36 = vsel %vm825_vm1, %v2165_v24, 0.0 }
 0x17d   :  { %v978_v48 = vadd.f32 %v977_v51, %v976_v15  ;;  %v1175_v19 = vadd.f32 %v1174_v42, %v1173_v40  ;;  %v1194_v15 = vsel %vm825_vm1, %v1078_v43, 0.0  ;;  %v1080_v40 = vmul.f32 %v2144_v60, %v2144_v60 }
 0x17e   :  { %v1196_v54 = vsel %vm825_vm1, %v1079_v46, 0.0  ;;  %v1003_v60 = vsel %vm825_vm1, %v2186_v41, 0.0  ;;  %v1007_v41 = vsel %vm825_vm1, %v2223_v29, 0.0 }
 0x17f   :  { %v980_v10 = vadd.f32 %v979_v55, %v978_v48  ;;  %v1177_v56 = vadd.f32 %v1176_v49, %v1175_v19  ;;  %v1081_v48 = vmul.f32 %v2165_v24, %v2165_v24  ;;  %v1198_v55 = vsel %vm825_vm1, %v1080_v40, 0.0 }
 0x180   :  { %v1005_v24 = vsel %vm825_vm1, %v2207_v1, 0.0 }
 0x181   :  { %v982_v22 = vadd.f32 %v981_v59, %v980_v10  ;;  %v1179_v26 = vadd.f32 %v1178_v23, %v1177_v56  ;;  %v1200_v23 = vsel %vm825_vm1, %v1081_v48, 0.0  ;;  %v1083_v59 = vmul.f32 %v2207_v1, %v2207_v1 }
 0x182   :  { %v1009_v1 = vsel %vm825_vm1, %v2238_v52, 0.0 }
 0x183   :  { %v984_v0 = vadd.f32 %v983_v63, %v982_v22  ;;  %v1181_v50 = vadd.f32 %v1180_v61, %v1179_v26  ;;  %v1202_v26 = vsel %vm825_vm1, %v1082_v2, 0.0  ;;  %v1084_v61 = vmul.f32 %v2223_v29, %v2223_v29 }
 0x184   :  { %v1011_v29 = vsel %vm825_vm1, %v2253_v12, 0.0 }
 0x185   :  { %v986_v31 = vadd.f32 %v985_v3, %v984_v0  ;;  %v1183_v9 = vadd.f32 %v1182_v6, %v1181_v50  ;;  %v1204_v0 = vsel %vm825_vm1, %v1083_v59, 0.0  ;;  %v1085_v50 = vmul.f32 %v2238_v52, %v2238_v52 }
 0x186   :  { %v1206_v8 = vsel %vm825_vm1, %v1084_v61, 0.0  ;;  %v1013_v52 = vsel %vm825_vm1, %v2268_v33, 0.0 }
 0x187   :  { %v988_v16 = vadd.f32 %v987_v7, %v986_v31  ;;  %v1185_v35 = vadd.f32 %v1184_v20, %v1183_v9  ;;  %v1086_v31 = vmul.f32 %v2253_v12, %v2253_v12  ;;  %v1208_v7 = vsel %vm825_vm1, %v1085_v50, 0.0 }
 0x188   :  { %v1015_v12 = vsel %vm825_vm1, %v2282_v62, 0.0 }
 0x189   :  { %v1187_v38 = vadd.f32 %v1186_v17, %v1185_v35  ;;  %v990_v25 = vadd.f32 %v989_v21, %v988_v16  ;;  %v1210_v17 = vsel %vm825_vm1, %v1086_v31, 0.0  ;;  %v1088_v21 = vmul.f32 %v2282_v62, %v2282_v62 }
 0x18b   :  { %v1189_v58 = vadd.f32 %v1188_v39, %v1187_v38  ;;  %v992_v44 = vadd.f32 %v991_v45, %v990_v25  ;;  %v1212_v25 = vsel %vm825_vm1, %v1087_v30, 0.0  ;;  %v1214_v28 = vsel %vm825_vm1, %v1088_v21, 0.0 }
 0x18d   :  { %v1191_v11 = vadd.f32 %v1190_v32, %v1189_v58  ;;  %v994_v18 = vadd.f32 %v993_v5, %v992_v44 }
 0x18f   :  { %v1193_v47 = vadd.f32 %v1192_v4, %v1191_v11  ;;  %v996_v37 = vadd.f32 %v995_v14, %v994_v18 }
 0x191   :  { %v1195_v42 = vadd.f32 %v1194_v15, %v1193_v47  ;;  %v998_v51 = vadd.f32 %v997_v53, %v996_v37 }
 0x193   :  { %v1197_v19 = vadd.f32 %v1196_v54, %v1195_v42  ;;  %v1000_v49 = vadd.f32 %v999_v13, %v998_v51 }
 0x195   :  { %v1199_v10 = vadd.f32 %v1198_v55, %v1197_v19  ;;  %v1002_v56 = vadd.f32 %v1001_v36, %v1000_v49 }
 0x197   :  { %v1201_v57 = vadd.f32 %v1200_v23, %v1199_v10  ;;  %v1004_v22 = vadd.f32 %v1003_v60, %v1002_v56 }
 0x199   :  { %v1203_v63 = vadd.f32 %v1202_v26, %v1201_v57  ;;  %v1006_v27 = vadd.f32 %v1005_v24, %v1004_v22 }
 0x19b   :  { %v1205_v6 = vadd.f32 %v1204_v0, %v1203_v63  ;;  %v1008_v3 = vadd.f32 %v1007_v41, %v1006_v27 }
 0x19d   :  { %v1207_v9 = vadd.f32 %v1206_v8, %v1205_v6  ;;  %v1010_v20 = vadd.f32 %v1009_v1, %v1008_v3 }
 0x19f   :  { %v1209_v16 = vadd.f32 %v1208_v7, %v1207_v9  ;;  %v1012_v35 = vadd.f32 %v1011_v29, %v1010_v20 }
 0x1a1   :  { %v1211_v34 = vadd.f32 %v1210_v17, %v1209_v16  ;;  %v1014_v38 = vadd.f32 %v1013_v52, %v1012_v35 }
 0x1a3   :  { %v1213_v39 = vadd.f32 %v1212_v25, %v1211_v34  ;;  %v1016_v45 = vadd.f32 %v1015_v12, %v1014_v38 }
 0x1a5   :  { %v1017_v58 = vrot.slane %v1016_v45, 4  ;;  %v1215_v44 = vadd.f32 %v1214_v28, %v1213_v39 }
 0x1a7   :  { %v1018_v32 = vadd.f32 %v1017_v58, %v1016_v45  ;;  %v1216_v5 = vrot.slane %v1215_v44, 4 }
 0x1a9   :  { %v1019_v43 = vrot.slane %v1018_v32, 2  ;;  %v1217_v33 = vadd.f32 %v1216_v5, %v1215_v44 }
 0x1ab   :  { %v1020_v11 = vadd.f32 %v1019_v43, %v1018_v32  ;;  %v1218_v18 = vrot.slane %v1217_v33, 2 }
 0x1ad   :  { %v1021_v4 = vrot.slane %v1020_v11, 1  ;;  %v1219_v14 = vadd.f32 %v1218_v18, %v1217_v33 }
 0x1af   :  { %v1022_v46 = vadd.f32 %v1021_v4, %v1020_v11  ;;  %v1220_v47 = vrot.slane %v1219_v14, 1 }
 0x1b1   :  { %1024 = vst.msk [vmem:[%s2464_s3] sm:$0x1] %vm1023_vm2, %v1022_v46  ;;  %v1221_v62 = vadd.f32 %v1220_v47, %v1219_v14 }
 0x1b3   :  { %1222 = vst.msk [vmem:[%s2465_s4] sm:$0x1] %vm1023_vm2, %v1221_v62 }

// kernel: unet2d_forward.89
= control target key start
LH: loop header
LB: loop body
LE: loop exit
PB: predicated region body
PF: predicated region fallthrough
CT: control target
= control target key end

     0   :  { %vm385_vm0 = vcmask 1040384   ;;  %vm386_vm1 = vcmask 1041408   ;;  %v992_v1 = vmov 65535   ;;  %vm288_vm2 = vcmask 809984   ;;  %s1413_s1 = inlined_call_operand.vmem [shape: bf16[99,3], index: 1, kind: input, shape index: {}]   ;;  %s1414_s0 = inlined_call_operand.vmem [shape: bf16[512,99], index: 0, kind: input, shape index: {}]   ;;  %s1415_s2 = inlined_call_operand.vmem [shape: f32[512,3], index: 2, kind: output, shape index: {}]  }
   0x1   :  { %v953_v0 = vld [vmem:[%s1413_s1 + $0x30] ss:$0 sps:$4 sm:$0x33]   ;;  %v387_v2 = vsel %vm385_vm0, 4294967295, %v992_v1  ;;  %v954_v5 = vld [vmem:[%s1413_s1 + $0x28] sm:$0xff]   ;;  %v955_v6 = vld [vmem:[%s1413_s1 + $0x20] sm:$0xff]  }
   0x2   :  { %v388_v3 = vsel %vm386_vm1, %v387_v2, 0  ;;  %v960_v7 = vld [vmem:[%s1414_s0] sm:$0xff]   ;;  %v956_v9 = vld [vmem:[%s1413_s1 + $0x18] sm:$0xff]   ;;  %v957_v10 = vld [vmem:[%s1413_s1 + $0x10] sm:$0xff]   ;;  %vm681_vm3 = vcmask 23552  }
   0x3   :  { %v390_v4 = vand.u32 %v953_v0, %v388_v3  ;;  %v961_v8 = vld [vmem:[%s1414_s0 + $0x80] sm:$0xff]   ;;  %874 = vmatprep.mubr.msk.bf16.mxu0 %vm288_vm2, %v960_v7  ;;  %v958_v11 = vld [vmem:[%s1413_s1 + $0x8] sm:$0xff]   ;;  %v964_v15 = vld [vmem:[%s1414_s0 + $0x10] sm:$0xff]  }
   0x4   :  { %906 = vmatprep.mubr.msk.bf16.mxu1 %vm288_vm2, %v961_v8  ;;  %v959_v12 = vld [vmem:[%s1413_s1] sm:$0xff]   ;;  %v962_v13 = vld [vmem:[%s1414_s0 + $0x8] sm:$0xff]   ;;  %v965_v16 = vld [vmem:[%s1414_s0 + $0x90] sm:$0xff]  }
   0x5   :  { %860 = vmatprep.subr.bf16.mxu0 %v390_v4  ;;  %938 = vmatprep.subr.bf16.mxu1 %v390_v4  ;;  %v963_v14 = vld [vmem:[%s1414_s0 + $0x88] sm:$0xff]   ;;  %v966_v17 = vld [vmem:[%s1414_s0 + $0x18] sm:$0xff]   ;;  %v968_v19 = vld [vmem:[%s1414_s0 + $0x20] sm:$0xff]  }
   0x6   :  { %861 = vmatpush3.bf16.msra.mxu0 %v390_v4  ;;  %945 = vmatpush3.bf16.msra.mxu1 %v390_v4  ;;  %v967_v18 = vld [vmem:[%s1414_s0 + $0x98] sm:$0xff]   ;;  %v969_v20 = vld [vmem:[%s1414_s0 + $0xa0] sm:$0xff]   ;;  %v970_v21 = vld [vmem:[%s1414_s0 + $0x28] sm:$0xff]  }
   0x7   :  { %862 = vmatprep.subr.bf16.mxu0 %v954_v5  ;;  %939 = vmatprep.subr.bf16.mxu1 %v954_v5  ;;  %v971_v22 = vld [vmem:[%s1414_s0 + $0xa8] sm:$0xff]   ;;  %v972_v23 = vld [vmem:[%s1414_s0 + $0x30] sm:$0xff]   ;;  %v974_v25 = vld [vmem:[%s1414_s0 + $0x38] sm:$0xff]  }
   0x8   :  { %v973_v24 = vld [vmem:[%s1414_s0 + $0xb0] sm:$0xff]   ;;  %v975_v26 = vld [vmem:[%s1414_s0 + $0xb8] sm:$0xff]   ;;  %v976_v27 = vld [vmem:[%s1414_s0 + $0x40] sm:$0xff]  }
   0x9   :  { %v977_v28 = vld [vmem:[%s1414_s0 + $0xc0] sm:$0xff]   ;;  %v978_v29 = vld [vmem:[%s1414_s0 + $0x48] sm:$0xff]   ;;  %v980_v31 = vld [vmem:[%s1414_s0 + $0x50] sm:$0xff]  }
   0xa   :  { %863 = vmatpush3.bf16.msra.mxu0 %v954_v5  ;;  %946 = vmatpush3.bf16.msra.mxu1 %v954_v5  ;;  %v979_v30 = vld [vmem:[%s1414_s0 + $0xc8] sm:$0xff]   ;;  %v981_v32 = vld [vmem:[%s1414_s0 + $0xd0] sm:$0xff]   ;;  %v982_v33 = vld [vmem:[%s1414_s0 + $0x58] sm:$0xff]  }
   0xb   :  { %864 = vmatprep.subr.bf16.mxu0 %v955_v6  ;;  %940 = vmatprep.subr.bf16.mxu1 %v955_v6  ;;  %v983_v34 = vld [vmem:[%s1414_s0 + $0xd8] sm:$0xff]   ;;  %v984_v35 = vld [vmem:[%s1414_s0 + $0x60] sm:$0xff]   ;;  %v986_v37 = vld [vmem:[%s1414_s0 + $0x68] sm:$0xff]  }
   0xc   :  { %v985_v36 = vld [vmem:[%s1414_s0 + $0xe0] sm:$0xff]   ;;  %v987_v38 = vld [vmem:[%s1414_s0 + $0xe8] sm:$0xff]   ;;  %v988_v39 = vld [vmem:[%s1414_s0 + $0x70] sm:$0xff]  }
   0xd   :  { %v989_v40 = vld [vmem:[%s1414_s0 + $0xf0] sm:$0xff]   ;;  %v990_v41 = vld [vmem:[%s1414_s0 + $0x78] sm:$0xff]  }
   0xe   :  { %865 = vmatpush3.bf16.msra.mxu0 %v955_v6  ;;  %947 = vmatpush3.bf16.msra.mxu1 %v955_v6  ;;  %v991_v42 = vld [vmem:[%s1414_s0 + $0xf8] sm:$0xff]  }
   0xf   :  { %866 = vmatprep.subr.bf16.mxu0 %v956_v9  ;;  %941 = vmatprep.subr.bf16.mxu1 %v956_v9 }
  0x12   :  { %867 = vmatpush3.bf16.msra.mxu0 %v956_v9  ;;  %948 = vmatpush3.bf16.msra.mxu1 %v956_v9 }
  0x13   :  { %868 = vmatprep.subr.bf16.mxu0 %v957_v10  ;;  %942 = vmatprep.subr.bf16.mxu1 %v957_v10 }
  0x16   :  { %869 = vmatpush3.bf16.msra.mxu0 %v957_v10  ;;  %949 = vmatpush3.bf16.msra.mxu1 %v957_v10 }
  0x17   :  { %870 = vmatprep.subr.bf16.mxu0 %v958_v11  ;;  %943 = vmatprep.subr.bf16.mxu1 %v958_v11 }
  0x1a   :  { %871 = vmatpush3.bf16.msra.mxu0 %v958_v11  ;;  %950 = vmatpush3.bf16.msra.mxu1 %v958_v11 }
  0x1b   :  { %872 = vmatprep.subr.bf16.mxu0 %v959_v12  ;;  %944 = vmatprep.subr.bf16.mxu1 %v959_v12 }
  0x1e   :  { %873 = vmatpush3.bf16.msra.mxu0 %v959_v12  ;;  %951 = vmatpush3.bf16.msra.mxu1 %v959_v12 }
  0x21   :  { %875 = vmatmul.mubr.msk.bf16.vlgmr.msra.gmra.mxu0 %vm288_vm2, %v962_v13  ;;  %907 = vmatmul.mubr.msk.bf16.vlgmr.msra.gmra.mxu1 %vm288_vm2, %v963_v14 }
  0x22   :  { %878 = vmatprep.mubr.msk.bf16.mxu0 %vm288_vm2, %v964_v15  ;;  %910 = vmatprep.mubr.msk.bf16.mxu1 %vm288_vm2, %v965_v16 }
  0x29   :  { %879 = vmatmul.mubr.msk.bf16.gmra.mxu0 %vm288_vm2, %v966_v17  ;;  %911 = vmatmul.mubr.msk.bf16.gmra.mxu1 %vm288_vm2, %v967_v18 }
  0x2a   :  { %882 = vmatprep.mubr.msk.bf16.mxu0 %vm288_vm2, %v968_v19  ;;  %914 = vmatprep.mubr.msk.bf16.mxu1 %vm288_vm2, %v969_v20 }
  0x31   :  { %883 = vmatmul.mubr.msk.bf16.gmra.mxu0 %vm288_vm2, %v970_v21  ;;  %915 = vmatmul.mubr.msk.bf16.gmra.mxu1 %vm288_vm2, %v971_v22 }
  0x32   :  { %886 = vmatprep.mubr.msk.bf16.mxu0 %vm288_vm2, %v972_v23  ;;  %918 = vmatprep.mubr.msk.bf16.mxu1 %vm288_vm2, %v973_v24 }
  0x39   :  { %887 = vmatmul.mubr.msk.bf16.gmra.mxu0 %vm288_vm2, %v974_v25  ;;  %919 = vmatmul.mubr.msk.bf16.gmra.mxu1 %vm288_vm2, %v975_v26 }
  0x3a   :  { %890 = vmatprep.mubr.msk.bf16.mxu0 %vm288_vm2, %v976_v27  ;;  %922 = vmatprep.mubr.msk.bf16.mxu1 %vm288_vm2, %v977_v28 }
  0x41   :  { %891 = vmatmul.mubr.msk.bf16.gmra.mxu0 %vm288_vm2, %v978_v29  ;;  %923 = vmatmul.mubr.msk.bf16.gmra.mxu1 %vm288_vm2, %v979_v30 }
  0x42   :  { %894 = vmatprep.mubr.msk.bf16.mxu0 %vm288_vm2, %v980_v31  ;;  %926 = vmatprep.mubr.msk.bf16.mxu1 %vm288_vm2, %v981_v32 }
  0x49   :  { %895 = vmatmul.mubr.msk.bf16.gmra.mxu0 %vm288_vm2, %v982_v33  ;;  %927 = vmatmul.mubr.msk.bf16.gmra.mxu1 %vm288_vm2, %v983_v34 }
  0x4a   :  { %898 = vmatprep.mubr.msk.bf16.mxu0 %vm288_vm2, %v984_v35  ;;  %930 = vmatprep.mubr.msk.bf16.mxu1 %vm288_vm2, %v985_v36 }
  0x51   :  { %899 = vmatmul.mubr.msk.bf16.gmra.mxu0 %vm288_vm2, %v986_v37  ;;  %931 = vmatmul.mubr.msk.bf16.gmra.mxu1 %vm288_vm2, %v987_v38 }
  0x52   :  { %902 = vmatprep.mubr.msk.bf16.mxu0 %vm288_vm2, %v988_v39  ;;  %934 = vmatprep.mubr.msk.bf16.mxu1 %vm288_vm2, %v989_v40 }
  0x59   :  { %903 = vmatmul.mubr.msk.bf16.gmra.mxu0 %vm288_vm2, %v990_v41  ;;  %935 = vmatmul.mubr.msk.bf16.gmra.mxu1 %vm288_vm2, %v991_v42 }
  0xe1   :  { %v876_v43 = vpop.f32.mrf.mxu0  ;;  %v908_v44 = vpop.f32.mrf.mxu1 }
  0xe2   :  { %684 = vst.msk [vmem:[%s1415_s2 + $0x10] sm:$0xff] %vm681_vm3, %v876_v43  ;;  %716 = vst.msk [vmem:[%s1415_s2 + $0x110] sm:$0xff] %vm681_vm3, %v908_v44 }
  0xe3   :  { %v426_v45 = vpop.f32.mrf.mxu0  ;;  %v554_v46 = vpop.f32.mrf.mxu1 }
  0xe4   :  { %682 = vst.msk [vmem:[%s1415_s2] sm:$0xff] %vm681_vm3, %v426_v45  ;;  %714 = vst.msk [vmem:[%s1415_s2 + $0x100] sm:$0xff] %vm681_vm3, %v554_v46 }
  0xe5   :  { %v877_v47 = vpop.f32.mrf.mxu0  ;;  %v909_v48 = vpop.f32.mrf.mxu1 }
  0xe6   :  { %685 = vst.msk [vmem:[%s1415_s2 + $0x18] sm:$0xff] %vm681_vm3, %v877_v47  ;;  %717 = vst.msk [vmem:[%s1415_s2 + $0x118] sm:$0xff] %vm681_vm3, %v909_v48 }
  0xe7   :  { %v429_v49 = vpop.f32.mrf.mxu0  ;;  %v557_v50 = vpop.f32.mrf.mxu1 }
  0xe8   :  { %683 = vst.msk [vmem:[%s1415_s2 + $0x8] sm:$0xff] %vm681_vm3, %v429_v49  ;;  %715 = vst.msk [vmem:[%s1415_s2 + $0x108] sm:$0xff] %vm681_vm3, %v557_v50 }
  0xe9   :  { %v880_v51 = vpop.f32.mrf.mxu0  ;;  %v912_v52 = vpop.f32.mrf.mxu1 }
  0xea   :  { %688 = vst.msk [vmem:[%s1415_s2 + $0x30] sm:$0xff] %vm681_vm3, %v880_v51  ;;  %720 = vst.msk [vmem:[%s1415_s2 + $0x130] sm:$0xff] %vm681_vm3, %v912_v52 }
  0xeb   :  { %v442_v53 = vpop.f32.mrf.mxu0  ;;  %v570_v54 = vpop.f32.mrf.mxu1 }
  0xec   :  { %686 = vst.msk [vmem:[%s1415_s2 + $0x20] sm:$0xff] %vm681_vm3, %v442_v53  ;;  %718 = vst.msk [vmem:[%s1415_s2 + $0x120] sm:$0xff] %vm681_vm3, %v570_v54 }
  0xed   :  { %v881_v55 = vpop.f32.mrf.mxu0  ;;  %v913_v56 = vpop.f32.mrf.mxu1 }
  0xee   :  { %689 = vst.msk [vmem:[%s1415_s2 + $0x38] sm:$0xff] %vm681_vm3, %v881_v55  ;;  %721 = vst.msk [vmem:[%s1415_s2 + $0x138] sm:$0xff] %vm681_vm3, %v913_v56 }
  0xef   :  { %v445_v57 = vpop.f32.mrf.mxu0  ;;  %v573_v58 = vpop.f32.mrf.mxu1 }
  0xf0   :  { %687 = vst.msk [vmem:[%s1415_s2 + $0x28] sm:$0xff] %vm681_vm3, %v445_v57  ;;  %719 = vst.msk [vmem:[%s1415_s2 + $0x128] sm:$0xff] %vm681_vm3, %v573_v58 }
  0xf1   :  { %v884_v59 = vpop.f32.mrf.mxu0  ;;  %v916_v60 = vpop.f32.mrf.mxu1 }
  0xf2   :  { %692 = vst.msk [vmem:[%s1415_s2 + $0x50] sm:$0xff] %vm681_vm3, %v884_v59  ;;  %724 = vst.msk [vmem:[%s1415_s2 + $0x150] sm:$0xff] %vm681_vm3, %v916_v60 }
  0xf3   :  { %v458_v61 = vpop.f32.mrf.mxu0  ;;  %v586_v62 = vpop.f32.mrf.mxu1 }
  0xf4   :  { %690 = vst.msk [vmem:[%s1415_s2 + $0x40] sm:$0xff] %vm681_vm3, %v458_v61  ;;  %722 = vst.msk [vmem:[%s1415_s2 + $0x140] sm:$0xff] %vm681_vm3, %v586_v62 }
  0xf5   :  { %v885_v63 = vpop.f32.mrf.mxu0  ;;  %v917_v0 = vpop.f32.mrf.mxu1 }
  0xf6   :  { %693 = vst.msk [vmem:[%s1415_s2 + $0x58] sm:$0xff] %vm681_vm3, %v885_v63  ;;  %725 = vst.msk [vmem:[%s1415_s2 + $0x158] sm:$0xff] %vm681_vm3, %v917_v0 }
  0xf7   :  { %v461_v1 = vpop.f32.mrf.mxu0  ;;  %v589_v2 = vpop.f32.mrf.mxu1 }
  0xf8   :  { %691 = vst.msk [vmem:[%s1415_s2 + $0x48] sm:$0xff] %vm681_vm3, %v461_v1  ;;  %723 = vst.msk [vmem:[%s1415_s2 + $0x148] sm:$0xff] %vm681_vm3, %v589_v2 }
  0xf9   :  { %v888_v3 = vpop.f32.mrf.mxu0  ;;  %v920_v4 = vpop.f32.mrf.mxu1 }
  0xfa   :  { %696 = vst.msk [vmem:[%s1415_s2 + $0x70] sm:$0xff] %vm681_vm3, %v888_v3  ;;  %728 = vst.msk [vmem:[%s1415_s2 + $0x170] sm:$0xff] %vm681_vm3, %v920_v4 }
  0xfb   :  { %v474_v5 = vpop.f32.mrf.mxu0  ;;  %v602_v6 = vpop.f32.mrf.mxu1 }
  0xfc   :  { %694 = vst.msk [vmem:[%s1415_s2 + $0x60] sm:$0xff] %vm681_vm3, %v474_v5  ;;  %726 = vst.msk [vmem:[%s1415_s2 + $0x160] sm:$0xff] %vm681_vm3, %v602_v6 }
  0xfd   :  { %v889_v7 = vpop.f32.mrf.mxu0  ;;  %v921_v8 = vpop.f32.mrf.mxu1 }
  0xfe   :  { %697 = vst.msk [vmem:[%s1415_s2 + $0x78] sm:$0xff] %vm681_vm3, %v889_v7  ;;  %729 = vst.msk [vmem:[%s1415_s2 + $0x178] sm:$0xff] %vm681_vm3, %v921_v8 }
  0xff   :  { %v477_v9 = vpop.f32.mrf.mxu0  ;;  %v605_v10 = vpop.f32.mrf.mxu1 }
 0x100   :  { %695 = vst.msk [vmem:[%s1415_s2 + $0x68] sm:$0xff] %vm681_vm3, %v477_v9  ;;  %727 = vst.msk [vmem:[%s1415_s2 + $0x168] sm:$0xff] %vm681_vm3, %v605_v10 }
 0x101   :  { %v892_v11 = vpop.f32.mrf.mxu0  ;;  %v924_v12 = vpop.f32.mrf.mxu1 }
 0x102   :  { %700 = vst.msk [vmem:[%s1415_s2 + $0x90] sm:$0xff] %vm681_vm3, %v892_v11  ;;  %732 = vst.msk [vmem:[%s1415_s2 + $0x190] sm:$0xff] %vm681_vm3, %v924_v12 }
 0x103   :  { %v490_v13 = vpop.f32.mrf.mxu0  ;;  %v618_v14 = vpop.f32.mrf.mxu1 }
 0x104   :  { %698 = vst.msk [vmem:[%s1415_s2 + $0x80] sm:$0xff] %vm681_vm3, %v490_v13  ;;  %730 = vst.msk [vmem:[%s1415_s2 + $0x180] sm:$0xff] %vm681_vm3, %v618_v14 }
 0x105   :  { %v893_v15 = vpop.f32.mrf.mxu0  ;;  %v925_v16 = vpop.f32.mrf.mxu1 }
 0x106   :  { %701 = vst.msk [vmem:[%s1415_s2 + $0x98] sm:$0xff] %vm681_vm3, %v893_v15  ;;  %733 = vst.msk [vmem:[%s1415_s2 + $0x198] sm:$0xff] %vm681_vm3, %v925_v16 }
 0x107   :  { %v493_v17 = vpop.f32.mrf.mxu0  ;;  %v621_v18 = vpop.f32.mrf.mxu1 }
 0x108   :  { %699 = vst.msk [vmem:[%s1415_s2 + $0x88] sm:$0xff] %vm681_vm3, %v493_v17  ;;  %731 = vst.msk [vmem:[%s1415_s2 + $0x188] sm:$0xff] %vm681_vm3, %v621_v18 }
 0x109   :  { %v896_v19 = vpop.f32.mrf.mxu0  ;;  %v928_v20 = vpop.f32.mrf.mxu1 }
 0x10a   :  { %704 = vst.msk [vmem:[%s1415_s2 + $0xb0] sm:$0xff] %vm681_vm3, %v896_v19  ;;  %736 = vst.msk [vmem:[%s1415_s2 + $0x1b0] sm:$0xff] %vm681_vm3, %v928_v20 }
 0x10b   :  { %v506_v21 = vpop.f32.mrf.mxu0  ;;  %v634_v22 = vpop.f32.mrf.mxu1 }
 0x10c   :  { %702 = vst.msk [vmem:[%s1415_s2 + $0xa0] sm:$0xff] %vm681_vm3, %v506_v21  ;;  %734 = vst.msk [vmem:[%s1415_s2 + $0x1a0] sm:$0xff] %vm681_vm3, %v634_v22 }
 0x10d   :  { %v897_v23 = vpop.f32.mrf.mxu0  ;;  %v929_v24 = vpop.f32.mrf.mxu1 }
 0x10e   :  { %705 = vst.msk [vmem:[%s1415_s2 + $0xb8] sm:$0xff] %vm681_vm3, %v897_v23  ;;  %737 = vst.msk [vmem:[%s1415_s2 + $0x1b8] sm:$0xff] %vm681_vm3, %v929_v24 }
 0x10f   :  { %v509_v25 = vpop.f32.mrf.mxu0  ;;  %v637_v26 = vpop.f32.mrf.mxu1 }
 0x110   :  { %703 = vst.msk [vmem:[%s1415_s2 + $0xa8] sm:$0xff] %vm681_vm3, %v509_v25  ;;  %735 = vst.msk [vmem:[%s1415_s2 + $0x1a8] sm:$0xff] %vm681_vm3, %v637_v26 }
 0x111   :  { %v900_v27 = vpop.f32.mrf.mxu0  ;;  %v932_v28 = vpop.f32.mrf.mxu1 }
 0x112   :  { %708 = vst.msk [vmem:[%s1415_s2 + $0xd0] sm:$0xff] %vm681_vm3, %v900_v27  ;;  %740 = vst.msk [vmem:[%s1415_s2 + $0x1d0] sm:$0xff] %vm681_vm3, %v932_v28 }
 0x113   :  { %v522_v29 = vpop.f32.mrf.mxu0  ;;  %v650_v30 = vpop.f32.mrf.mxu1 }
 0x114   :  { %706 = vst.msk [vmem:[%s1415_s2 + $0xc0] sm:$0xff] %vm681_vm3, %v522_v29  ;;  %738 = vst.msk [vmem:[%s1415_s2 + $0x1c0] sm:$0xff] %vm681_vm3, %v650_v30 }
 0x115   :  { %v901_v31 = vpop.f32.mrf.mxu0  ;;  %v933_v32 = vpop.f32.mrf.mxu1 }
 0x116   :  { %709 = vst.msk [vmem:[%s1415_s2 + $0xd8] sm:$0xff] %vm681_vm3, %v901_v31  ;;  %741 = vst.msk [vmem:[%s1415_s2 + $0x1d8] sm:$0xff] %vm681_vm3, %v933_v32 }
 0x117   :  { %v525_v33 = vpop.f32.mrf.mxu0  ;;  %v653_v34 = vpop.f32.mrf.mxu1 }
 0x118   :  { %707 = vst.msk [vmem:[%s1415_s2 + $0xc8] sm:$0xff] %vm681_vm3, %v525_v33  ;;  %739 = vst.msk [vmem:[%s1415_s2 + $0x1c8] sm:$0xff] %vm681_vm3, %v653_v34 }
 0x119   :  { %v904_v35 = vpop.f32.mrf.mxu0  ;;  %v936_v36 = vpop.f32.mrf.mxu1 }
 0x11a   :  { %712 = vst.msk [vmem:[%s1415_s2 + $0xf0] sm:$0xff] %vm681_vm3, %v904_v35  ;;  %744 = vst.msk [vmem:[%s1415_s2 + $0x1f0] sm:$0xff] %vm681_vm3, %v936_v36 }
 0x11b   :  { %v538_v37 = vpop.f32.mrf.mxu0  ;;  %v666_v38 = vpop.f32.mrf.mxu1 }
 0x11c   :  { %710 = vst.msk [vmem:[%s1415_s2 + $0xe0] sm:$0xff] %vm681_vm3, %v538_v37  ;;  %742 = vst.msk [vmem:[%s1415_s2 + $0x1e0] sm:$0xff] %vm681_vm3, %v666_v38 }
 0x11d   :  { %v905_v39 = vpop.f32.mrf.mxu0  ;;  %v937_v40 = vpop.f32.mrf.mxu1 }
 0x11e   :  { %713 = vst.msk [vmem:[%s1415_s2 + $0xf8] sm:$0xff] %vm681_vm3, %v905_v39  ;;  %745 = vst.msk [vmem:[%s1415_s2 + $0x1f8] sm:$0xff] %vm681_vm3, %v937_v40 }
 0x11f   :  { %v541_v41 = vpop.f32.mrf.mxu0  ;;  %v669_v42 = vpop.f32.mrf.mxu1 }
 0x120   :  { %711 = vst.msk [vmem:[%s1415_s2 + $0xe8] sm:$0xff] %vm681_vm3, %v541_v41  ;;  %743 = vst.msk [vmem:[%s1415_s2 + $0x1e8] sm:$0xff] %vm681_vm3, %v669_v42 }

</bundles_post_ra>
